<compile_context>
chip_gen: v7x
topology: tpu7x:2x2x1
jax: 0.10.0
libtpu: 0.0.40
codegen_flags: <defaults>
</compile_context>

<pallas_src>
import jax
import jax.numpy as jnp
from jax.experimental import pallas as pl
from jax.experimental.pallas import tpu as pltpu


def _fused_kernel(x1_ref, x2_ref, inp_ref, out_ref):
    """One grid step = Bblk independent problem instances.

    Refs:
      x1_ref, x2_ref, inp_ref : (Bblk, N, N) f32 VMEM tiles
      out_ref                 : (Bblk, 2N, N) f32 VMEM tile; rows [0:N) hold
                                v2, rows [N:2N) hold v3 (the dim-0 concat).
    """
    x1 = x1_ref[...]
    x2 = x2_ref[...]
    w = inp_ref[...]

    # v1 = x1.mm(inp)  -- batched over the block's Bblk instances.
    v1 = jnp.einsum(
        "bij,bjk->bik", x1, w,
        preferred_element_type=jnp.float32,
        precision=jax.lax.Precision.HIGHEST,
    )
    # v2 = v1 + x2
    v2 = v1 + x2
    # v3 = torch.mm(v1, x2)
    v3 = jnp.einsum(
        "bij,bjk->bik", v1, x2,
        preferred_element_type=jnp.float32,
        precision=jax.lax.Precision.HIGHEST,
    )

    n = x1_ref.shape[1]
    # torch.cat([v2, v3], dim=0) -- both stores are sublane-aligned (N % 8 == 0)
    # and lane-dense (N % 128 == 0 in the demo).
    out_ref[:, 0:n, :] = v2
    out_ref[:, n:2 * n, :] = v3


def batched_model_forward(x1, x2, inp, *, block_b=8):
    """Batched forward: x1, x2, inp are (B, N, N); returns (B, 2N, N).

    out[b] == torch.cat([x1[b] @ inp[b] + x2[b], (x1[b] @ inp[b]) @ x2[b]], dim=0)
    """
    B, n, k = x1.shape
    assert n == k and x2.shape == (B, n, n) and inp.shape == (B, n, n), \
        "forward requires square, mutually-compatible matrices"

    # Block the batch axis; for small B the grid collapses to a single step.
    bblk = min(B, block_b)
    b_padded = pl.cdiv(B, bblk) * bblk
    if b_padded != B:
        pad = b_padded - B
        zeros = jnp.zeros((pad, n, n), x1.dtype)
        x1 = jnp.concatenate([x1, zeros], axis=0)
        x2 = jnp.concatenate([x2, zeros], axis=0)
        inp = jnp.concatenate([inp, zeros], axis=0)

    num_steps = b_padded // bblk

    # Advisory cost estimate: two (N,N)x(N,N) matmuls + one add per instance.
    flops = b_padded * (2 * 2 * n * n * n + n * n)
    bytes_accessed = b_padded * (3 * n * n + 2 * n * n) * 4
    cost = pl.CostEstimate(flops=flops, transcendentals=0,
                           bytes_accessed=bytes_accessed)

    grid_spec = pltpu.PrefetchScalarGridSpec(
        num_scalar_prefetch=0,
        grid=(num_steps,),
        in_specs=[
            pl.BlockSpec((bblk, n, n), lambda b: (b, 0, 0)),
            pl.BlockSpec((bblk, n, n), lambda b: (b, 0, 0)),
            pl.BlockSpec((bblk, n, n), lambda b: (b, 0, 0)),
        ],
        out_specs=pl.BlockSpec((bblk, 2 * n, n), lambda b: (b, 0, 0)),
    )

    # Only ask for megacore sharding when there is more than one grid step.
    semantics = ("parallel",) if num_steps > 1 else ("arbitrary",)

    out = pl.pallas_call(
        _fused_kernel,
        out_shape=jax.ShapeDtypeStruct((b_padded, 2 * n, n), jnp.float32),
        grid_spec=grid_spec,
        compiler_params=pltpu.CompilerParams(dimension_semantics=semantics),
        cost_estimate=cost,
    )(x1, x2, inp)

    return out[:B]


def model_forward(x1, x2, inp):
    """Unbatched wrapper matching Model.forward(x1, x2, inp) exactly."""
    out = batched_model_forward(x1[None], x2[None], inp[None])
    return out[0]


if __name__ == "__main__":
    B = 4     # batch of independent problem instances (one fat grid step)
    N = 128   # lane-dense: full 128-lane vreg width / full MXU tile

    key = jax.random.PRNGKey(0)
    k1, k2, k3 = jax.random.split(key, 3)
    x1 = jax.random.normal(k1, (B, N, N), dtype=jnp.float32)
    x2 = jax.random.normal(k2, (B, N, N), dtype=jnp.float32)
    inp = jax.random.normal(k3, (B, N, N), dtype=jnp.float32)

    # Batched run.
    out = jax.block_until_ready(batched_model_forward(x1, x2, inp))

    # Reference (plain JAX, high-precision f32 matmuls — same fidelity as the
    # kernel's explicit Precision.HIGHEST).
    v1 = jnp.einsum("bij,bjk->bik", x1, inp,
                    precision=jax.lax.Precision.HIGHEST)
    v3 = jnp.einsum("bij,bjk->bik", v1, x2,
                    precision=jax.lax.Precision.HIGHEST)
    ref = jnp.concatenate([v1 + x2, v3], axis=1)

    assert out.shape == (B, 2 * N, N)
    assert jnp.allclose(out, ref, rtol=1e-3, atol=1e-2)

    # Unbatched path (exact original module signature) also checked.
    out0 = jax.block_until_ready(model_forward(x1[0], x2[0], inp[0]))
    assert out0.shape == (2 * N, N)
    assert jnp.allclose(out0, ref[0], rtol=1e-3, atol=1e-2)

    print("KERNEL_OK")
</pallas_src>

<mosaic_0001>
module attributes {stable_mosaic.version = 11 : i64} {
  func.func @_fused_kernel(%arg0: i32, %arg1: memref<4x128x128xf32, #tpu.memory_space<vmem>>, %arg2: memref<4x128x128xf32, #tpu.memory_space<vmem>>, %arg3: memref<4x128x128xf32, #tpu.memory_space<vmem>>, %arg4: memref<4x256x128xf32, #tpu.memory_space<vmem>>) attributes {dimension_semantics = [#tpu.dimension_semantics<arbitrary>], iteration_bounds = array<i64: 1>, scalar_prefetch = 0 : i64, scratch_operands = 0 : i64, tpu.core_type = #tpu.core_type<tc>, window_params = [{transform_indices = @transform_0, window_bounds = array<i64: 4, 128, 128>}, {transform_indices = @transform_1, window_bounds = array<i64: 4, 128, 128>}, {transform_indices = @transform_2, window_bounds = array<i64: 4, 128, 128>}, {transform_indices = @transform_3, window_bounds = array<i64: 4, 256, 128>}]} {
    %c0 = arith.constant 0 : index
    %c0_0 = arith.constant 0 : index
    %c0_1 = arith.constant 0 : index
    %0 = vector.load %arg1[%c0, %c0_0, %c0_1] : memref<4x128x128xf32, #tpu.memory_space<vmem>>, vector<4x128x128xf32>
    %c0_2 = arith.constant 0 : index
    %c0_3 = arith.constant 0 : index
    %c0_4 = arith.constant 0 : index
    %1 = vector.load %arg2[%c0_2, %c0_3, %c0_4] : memref<4x128x128xf32, #tpu.memory_space<vmem>>, vector<4x128x128xf32>
    %c0_5 = arith.constant 0 : index
    %c0_6 = arith.constant 0 : index
    %c0_7 = arith.constant 0 : index
    %2 = vector.load %arg3[%c0_5, %c0_6, %c0_7] : memref<4x128x128xf32, #tpu.memory_space<vmem>>, vector<4x128x128xf32>
    "tpu.trace_start"() <{level = 10 : i32, message = "bij,bjk->bik"}> : () -> ()
    %cst = arith.constant dense<0.000000e+00> : vector<4x128x128xf32>
    %3 = tpu.matmul %0, %2, %cst {dimension_numbers = #tpu.dot_dimension_numbers<[2], [1], [1], [2], [0, 0, 0, 1, 1, 2], [0], [0]>, precision = #tpu.contract_precision<fp32>} : vector<4x128x128xf32>, vector<4x128x128xf32>, vector<4x128x128xf32> -> vector<4x128x128xf32>
    "tpu.trace_stop"() : () -> ()
    %4 = arith.addf %3, %1 : vector<4x128x128xf32>
    "tpu.trace_start"() <{level = 10 : i32, message = "bij,bjk->bik"}> : () -> ()
    %cst_8 = arith.constant dense<0.000000e+00> : vector<4x128x128xf32>
    %5 = tpu.matmul %3, %1, %cst_8 {dimension_numbers = #tpu.dot_dimension_numbers<[2], [1], [1], [2], [0, 0, 0, 1, 1, 2], [0], [0]>, precision = #tpu.contract_precision<fp32>} : vector<4x128x128xf32>, vector<4x128x128xf32>, vector<4x128x128xf32> -> vector<4x128x128xf32>
    "tpu.trace_stop"() : () -> ()
    %c0_9 = arith.constant 0 : index
    %c0_10 = arith.constant 0 : index
    %c0_11 = arith.constant 0 : index
    %6 = vector.load %arg4[%c0_9, %c0_10, %c0_11] : memref<4x256x128xf32, #tpu.memory_space<vmem>>, vector<4x128x128xf32>
    tpu.vector_store %arg4[%c0_9, %c0_10, %c0_11], %4 {strides = array<i32>} : memref<4x256x128xf32, #tpu.memory_space<vmem>>, vector<4x128x128xf32>,
    %c0_12 = arith.constant 0 : index
    %c128 = arith.constant 128 : index
    %c0_13 = arith.constant 0 : index
    %7 = vector.load %arg4[%c0_12, %c128, %c0_13] : memref<4x256x128xf32, #tpu.memory_space<vmem>>, vector<4x128x128xf32>
    tpu.vector_store %arg4[%c0_12, %c128, %c0_13], %5 {strides = array<i32>} : memref<4x256x128xf32, #tpu.memory_space<vmem>>, vector<4x128x128xf32>,
    return
  }
  func.func @transform_0(%arg0: i32) -> (i32, i32, i32) {
    %c0_i32 = arith.constant 0 : i32
    %c0_i32_0 = arith.constant 0 : i32
    %c0_i32_1 = arith.constant 0 : i32
    return %arg0, %c0_i32, %c0_i32_0 : i32, i32, i32
  }
  func.func @transform_1(%arg0: i32) -> (i32, i32, i32) {
    %c0_i32 = arith.constant 0 : i32
    %c0_i32_0 = arith.constant 0 : i32
    %c0_i32_1 = arith.constant 0 : i32
    return %arg0, %c0_i32, %c0_i32_0 : i32, i32, i32
  }
  func.func @transform_2(%arg0: i32) -> (i32, i32, i32) {
    %c0_i32 = arith.constant 0 : i32
    %c0_i32_0 = arith.constant 0 : i32
    %c0_i32_1 = arith.constant 0 : i32
    return %arg0, %c0_i32, %c0_i32_0 : i32, i32, i32
  }
  func.func @transform_3(%arg0: i32) -> (i32, i32, i32) {
    %c0_i32 = arith.constant 0 : i32
    %c0_i32_0 = arith.constant 0 : i32
    %c0_i32_1 = arith.constant 0 : i32
    return %arg0, %c0_i32, %c0_i32_0 : i32, i32, i32
  }
}

</mosaic_0001>

<bundles_post_ra>
// kernel: tpu_custom_call.1
= control target key start
LH: loop header
LB: loop body
LE: loop exit
PB: predicated region body
PF: predicated region fallthrough
CT: control target
= control target key end

     0   :  { %8 = vsyncpa [#allocation3], 0  ;;  %s22541_s0 = inlined_call_operand.hbm [shape: f32[4,128,128], index: 0, kind: input, shape index: {}]   ;;  %s22542_s1 = inlined_call_operand.hbm [shape: f32[4,128,128], index: 1, kind: input, shape index: {}]   ;;  %s22543_s2 = inlined_call_operand.hbm [shape: f32[4,128,128], index: 2, kind: input, shape index: {}]   ;;  %s22544_s3 = inlined_call_operand.hbm [shape: f32[4,256,128], index: 3, kind: output, shape index: {}]  }
   0x1   :  { %9 = vsyncpa [#allocation6], 0 }
   0x2   :  { %10 = vsyncpa [#allocation4], 0  ;;  %s17246_s12 = smov [#allocation5]   ;;  %s17247_s14 = smov [#allocation2]  }
   0x3   :  { %s28_s13 = sshll.u32 %s17246_s12, 4  ;;  %s16_s15 = sshll.u32 %s17247_s14, 4  ;;  %s29_s13 = int_to_ptr.vmem [resolvable:$true] %s28_s13  ;;  %s17272_s15 = int_to_ptr.vmem [resolvable:$true] %s16_s15 }
   0x4   :  { %s17152_s18 = scalar_lea.hbm %s22542_s1, 8192 }
   0x5   :  { %p17153_p0 = scmp.ne.s32.totalorder %s22542_s1, %s17152_s18  ;;  %p17156_p1 = scmp.lt.u32.totalorder %s17152_s18, %s22542_s1 }
   0x7   :  { %p17158_p2 = pnand %p17156_p1, %p17153_p0 }
   0x9   :  { %17161 = shalt.err (!%p17158_p2)
}
   0xa   :  { %s17162_s23 = scalar_lea.vmem %s29_s13, 8192  ;;  %p17167_p4 = scmp.lt.s32.totalorder %s29_s13, %s29_s13 }
   0xb   :  { %p17163_p3 = scmp.ne.s32.totalorder %s29_s13, %s17162_s23  ;;  %p17168_p5 = scmp.lt.s32.totalorder %s17162_s23, %s17162_s23 }
   0xd   :  { %p17169_p6 = por %p17168_p5, %p17167_p4 }
   0xf   :  { %p17170_p7 = pnand %p17169_p6, %p17163_p3 }
  0x11   :  { %17173 = shalt.err (!%p17170_p7)
}
  0x12   :  { %s17248_s24 = smov 128   ;;  %s17249_s25 = smov 8  }
  0x13   :  { %34 = dma.hbm_to_vmem [thread:$0]  %s22542_s1, 8192, %s29_s13, [#allocation6], %s17248_s24, %s17248_s24, %s17249_s25  }
  0x14   :  { %s17174_s30 = scalar_lea.hbm %s22541_s0, 8192 }
  0x15   :  { %p17175_p8 = scmp.ne.s32.totalorder %s22541_s0, %s17174_s30  ;;  %p17178_p9 = scmp.lt.u32.totalorder %s17174_s30, %s22541_s0 }
  0x17   :  { %p17180_p10 = pnand %p17178_p9, %p17175_p8 }
  0x19   :  { %17183 = shalt.err (!%p17180_p10)
}
  0x1a   :  { %s17184_s8 = scalar_lea.vmem %s17272_s15, 8192  ;;  %p17189_p12 = scmp.lt.s32.totalorder %s17272_s15, %s17272_s15 }
  0x1b   :  { %p17185_p11 = scmp.ne.s32.totalorder %s17272_s15, %s17184_s8  ;;  %p17190_p13 = scmp.lt.s32.totalorder %s17184_s8, %s17184_s8 }
  0x1d   :  { %p17191_p0 = por %p17190_p13, %p17189_p12 }
  0x1f   :  { %p17192_p1 = pnand %p17191_p0, %p17185_p11 }
  0x21   :  { %17195 = shalt.err (!%p17192_p1)
}
  0x22   :  { %22 = dma.hbm_to_vmem [thread:$0]  %s22541_s0, 8192, %s17272_s15, [#allocation3], %s17248_s24, %s17248_s24, %s17249_s25  }
  0x23   :  { %s17250_s10 = smov [#allocation7]   ;;  %s17196_s14 = scalar_lea.hbm %s22543_s2, 8192 }
  0x24   :  { %s40_s11 = sshll.u32 %s17250_s10, 4  ;;  %p17197_p2 = scmp.ne.s32.totalorder %s22543_s2, %s17196_s14  ;;  %s41_s11 = int_to_ptr.vmem [resolvable:$true] %s40_s11 }
  0x25   :  { %p17200_p3 = scmp.lt.u32.totalorder %s17196_s14, %s22543_s2 }
  0x27   :  { %p17202_p4 = pnand %p17200_p3, %p17197_p2 }
  0x29   :  { %17205 = shalt.err (!%p17202_p4)
}
  0x2a   :  { %s17206_s20 = scalar_lea.vmem %s41_s11, 8192  ;;  %p17211_p6 = scmp.lt.s32.totalorder %s41_s11, %s41_s11 }
  0x2b   :  { %p17207_p5 = scmp.ne.s32.totalorder %s41_s11, %s17206_s20  ;;  %p17212_p7 = scmp.lt.s32.totalorder %s17206_s20, %s17206_s20 }
  0x2d   :  { %p17213_p8 = por %p17212_p7, %p17211_p6 }
  0x2f   :  { %p17214_p9 = pnand %p17213_p8, %p17207_p5 }
  0x31   :  { %17217 = shalt.err (!%p17214_p9)
}
  0x32   :  { %46 = dma.hbm_to_vmem [thread:$0]  %s22543_s2, 8192, %s41_s11, [#allocation6], %s17248_s24, %s17248_s24, %s17249_s25  }
  0x33   :  { %17240 = dma.done.wait [#allocation3], 8192  }
  0x34   :  { %17241 = vsyncadd [#allocation3], 4294959104 }
  0x35   :  { %17242 = dma.done.wait [#allocation6], 16384  }
  0x36   :  { %17243 = vsyncadd [#allocation6], 4294950912  ;;  %v17324_v0 = vld [vmem:[#allocation7] sm:$0xff]  ;;  %v17326_v1 = vld [vmem:[#allocation7 + $0x8] sm:$0xff]  ;;  %s17251_s2 = smov [#allocation8]  }
  0x37   :  { %v17328_v2 = vld [vmem:[#allocation7 + $0x80] sm:$0xff]  ;;  %v249_v3 = vand.u32 4294901760, %v17324_v0  ;;  %v252_v4 = vand.u32 4294901760, %v17326_v1  ;;  %v17332_v5 = vld [vmem:[#allocation7 + $0x88] sm:$0xff]  ;;  %v17335_v7 = vld [vmem:[#allocation7 + $0x10] sm:$0xff]  ;;  %s10733_s21 = sshll.u32 %s17251_s2, 4  ;;  %s10734_s21 = int_to_ptr.vmem [resolvable:$true] %s10733_s21 }
  0x38   :  { %v1535_v6 = vand.u32 4294901760, %v17328_v2  ;;  %v17337_v8 = vld [vmem:[#allocation7 + $0x18] sm:$0xff]  ;;  %v22567_v9 = vand.u32 4294901760, %v17332_v5  ;;  %v22564_v10 = vand.u32 4294901760, %v17335_v7  ;;  %v17342_v12 = vld [vmem:[#allocation7 + $0x90] sm:$0xff]  ;;  %v17346_v14 = vld [vmem:[#allocation7 + $0x20] sm:$0xff]  ;;  %p17223_p11 = scmp.lt.s32.totalorder %s10734_s21, %s10734_s21 }
  0x39   :  { %v22563_v11 = vand.u32 4294901760, %v17337_v8  ;;  %v17344_v13 = vld [vmem:[#allocation7 + $0x98] sm:$0xff]  ;;  %v17352_v15 = vpack.c.bf16 %v252_v4, %v249_v3  ;;  %v22562_v16 = vand.u32 4294901760, %v17342_v12  ;;  %v17356_v18 = vld [vmem:[#allocation7 + $0x28] sm:$0xff]  ;;  %v22558_v19 = vand.u32 4294901760, %v17346_v14  ;;  %v17359_v20 = vld [vmem:[#allocation7 + $0xa0] sm:$0xff] }
  0x3a   :  { %v22559_v17 = vand.u32 4294901760, %v17344_v13  ;;  %v17361_v21 = vld [vmem:[#allocation7 + $0xa8] sm:$0xff]  ;;  %v17367_v22 = vpack.c.bf16 %v22567_v9, %v1535_v6  ;;  %v22557_v24 = vand.u32 4294901760, %v17356_v18  ;;  %v22556_v25 = vand.u32 4294901760, %v17359_v20  ;;  %v17377_v26 = vld [vmem:[#allocation7 + $0x30] sm:$0xff]  ;;  %v17379_v27 = vld [vmem:[#allocation7 + $0x38] sm:$0xff] }
  0x3b   :  { %23530 = vst [vmem:[#allocation12_spill] sm:$0xff] %v17352_v15  ;;  %v17373_v23 = vpack.c.bf16 %v22563_v11, %v22564_v10  ;;  %v17381_v28 = vld [vmem:[#allocation7 + $0xb0] sm:$0xff]  ;;  %14971 = vmatprep.subr.bf16.mxu0 %v17352_v15  ;;  %v22551_v30 = vand.u32 4294901760, %v17361_v21  ;;  %v22550_v31 = vand.u32 4294901760, %v17377_v26  ;;  %v22549_v32 = vand.u32 4294901760, %v17379_v27  ;;  %v17393_v33 = vld [vmem:[#allocation7 + $0xb8] sm:$0xff] }
  0x3c   :  { %23531 = vst [vmem:[#allocation13_spill] sm:$0xff] %v17367_v22  ;;  %v17388_v29 = vpack.c.bf16 %v22559_v17, %v22562_v16  ;;  %v17395_v34 = vld [vmem:[#allocation7 + $0x40] sm:$0xff]  ;;  %v17397_v35 = vld [vmem:[#allocation7 + $0x48] sm:$0xff]  ;;  %15163 = vmatprep.subr.bf16.mxu1 %v17367_v22  ;;  %14973 = vmatpush3.bf16.msra.mxu0 %v17352_v15  ;;  %v17405_v36 = vpack.c.bf16 %v22557_v24, %v22558_v19  ;;  %v22548_v37 = vand.u32 4294901760, %v17381_v28  ;;  %v22547_v38 = vand.u32 4294901760, %v17393_v33  ;;  %v17414_v42 = vld [vmem:[#allocation7 + $0x50] sm:$0xff] }
  0x3d   :  { %23532 = vst [vmem:[#allocation14_spill] sm:$0xff] %v17373_v23  ;;  %v22546_v39 = vand.u32 4294901760, %v17395_v34  ;;  %v17410_v40 = vld [vmem:[#allocation7 + $0xc0] sm:$0xff]  ;;  %v17412_v41 = vld [vmem:[#allocation7 + $0xc8] sm:$0xff]  ;;  %15165 = vmatpush3.bf16.msra.mxu1 %v17367_v22  ;;  %14975 = vmatprep.subr.bf16.mxu0 %v17373_v23  ;;  %v17422_v43 = vpack.c.bf16 %v22551_v30, %v22556_v25  ;;  %v17428_v44 = vpack.c.bf16 %v22549_v32, %v22550_v31  ;;  %v22545_v45 = vand.u32 4294901760, %v17397_v35  ;;  %v17432_v47 = vld [vmem:[#allocation7 + $0x58] sm:$0xff] }
  0x3e   :  { %23533 = vst [vmem:[#allocation15_spill] sm:$0xff] %v17388_v29  ;;  %23534 = vst [vmem:[#allocation16_spill] sm:$0xff] %v17405_v36  ;;  %v22555_v46 = vand.u32 4294901760, %v17410_v40  ;;  %v17434_v48 = vld [vmem:[#allocation7 + $0xd0] sm:$0xff]  ;;  %v17436_v49 = vld [vmem:[#allocation7 + $0xd8] sm:$0xff]  ;;  %15167 = vmatprep.subr.bf16.mxu1 %v17388_v29  ;;  %v17443_v50 = vpack.c.bf16 %v22547_v38, %v22548_v37  ;;  %v22552_v51 = vand.u32 4294901760, %v17412_v41 }
  0x3f   :  { %23535 = vst [vmem:[#allocation17_spill] sm:$0xff] %v17422_v43  ;;  %23536 = vst [vmem:[#allocation18_spill] sm:$0xff] %v17428_v44  ;;  %v22554_v52 = vand.u32 4294901760, %v17414_v42  ;;  %v22553_v53 = vand.u32 4294901760, %v17432_v47  ;;  %v17448_v54 = vld [vmem:[#allocation7 + $0x60] sm:$0xff]  ;;  %v17450_v55 = vld [vmem:[#allocation7 + $0x68] sm:$0xff]  ;;  %v17458_v57 = vpack.c.bf16 %v22545_v45, %v22546_v39 }
  0x40   :  { %23537 = vst [vmem:[#allocation19_spill] sm:$0xff] %v17443_v50  ;;  %v17452_v56 = vld [vmem:[#allocation7 + $0xe0] sm:$0xff]  ;;  %v22561_v58 = vand.u32 4294901760, %v17434_v48  ;;  %v22560_v59 = vand.u32 4294901760, %v17436_v49  ;;  %v22566_v60 = vand.u32 4294901760, %v17448_v54  ;;  %v17463_v61 = vld [vmem:[#allocation7 + $0xe8] sm:$0xff]  ;;  %14977 = vmatpush3.bf16.msra.mxu0 %v17373_v23  ;;  %v17474_v45 = vpack.c.bf16 %v22552_v51, %v22555_v46 }
  0x41   :  { %23538 = vst [vmem:[#allocation20_spill] sm:$0xff] %v17458_v57  ;;  %v17465_v62 = vld [vmem:[#allocation7 + $0x70] sm:$0xff]  ;;  %v17467_v63 = vld [vmem:[#allocation7 + $0x78] sm:$0xff]  ;;  %v17480_v39 = vpack.c.bf16 %v22553_v53, %v22554_v52  ;;  %v22565_v38 = vand.u32 4294901760, %v17450_v55  ;;  %v22573_v37 = vand.u32 4294901760, %v17452_v56  ;;  %v56_v30 = vld [vmem:[#allocation2] sm:$0xff]  ;;  %15169 = vmatpush3.bf16.msra.mxu1 %v17388_v29  ;;  %14979 = vmatprep.subr.bf16.mxu0 %v17405_v36 }
  0x42   :  { %23539 = vst [vmem:[#allocation21_spill] sm:$0xff] %v17474_v45  ;;  %v17484_v32 = vld [vmem:[#allocation7 + $0xf0] sm:$0xff]  ;;  %v17486_v31 = vld [vmem:[#allocation7 + $0xf8] sm:$0xff]  ;;  %v17494_v51 = vpack.c.bf16 %v22560_v59, %v22561_v58  ;;  %v22568_v53 = vand.u32 4294901760, %v17463_v61  ;;  %v22570_v52 = vand.u32 4294901760, %v17465_v62  ;;  %v22569_v46 = vand.u32 4294901760, %v17467_v63  ;;  %15171 = vmatprep.subr.bf16.mxu1 %v17422_v43 }
  0x43   :  { %23540 = vst [vmem:[#allocation22_spill] sm:$0xff] %v17480_v39  ;;  %v72_v25 = vld [vmem:[#allocation2 + $0x80] sm:$0xff]  ;;  %v57_v24 = vld [vmem:[#allocation2 + $0x8] sm:$0xff]  ;;  %v17504_v19 = vpack.c.bf16 %v22565_v38, %v22566_v60  ;;  %v22572_v17 = vand.u32 4294901760, %v17484_v32  ;;  %v22571_v59 = vand.u32 4294901760, %v17486_v31  ;;  %v17508_v58 = vand.u32 4294901760, %v56_v30 }
  0x44   :  { %23541 = vst [vmem:[#allocation23_spill] sm:$0xff] %v17494_v51  ;;  %v73_v16 = vld [vmem:[#allocation2 + $0x88] sm:$0xff]  ;;  %v17514_v11 = vpack.c.bf16 %v22568_v53, %v22573_v37  ;;  %v17520_v10 = vpack.c.bf16 %v22569_v46, %v22570_v52  ;;  %v17522_v38 = vand.u32 4294901760, %v72_v25  ;;  %v17524_v60 = vand.u32 4294901760, %v57_v24  ;;  %14981 = vmatpush3.bf16.msra.mxu0 %v17405_v36  ;;  %v74_v36 = vld [vmem:[#allocation2 + $0x90] sm:$0xff]  ;;  %v59_v15 = vld [vmem:[#allocation2 + $0x18] sm:$0xff] }
  0x45   :  { %23542 = vst [vmem:[#allocation24_spill] sm:$0xff] %v17504_v19  ;;  %v17531_v9 = vpack.c.bf16 %v22571_v59, %v22572_v17  ;;  %v17534_v53 = vsub.f32 %v56_v30, %v17508_v58  ;;  %v17539_v46 = vsub.f32 %v17324_v0, %v249_v3  ;;  %v17544_v52 = vsub.f32 %v17326_v1, %v252_v4  ;;  %s17218_s22 = scalar_lea.vmem %s10734_s21, 16384 }
  0x46   :  { %23543 = vst [vmem:[#allocation25_spill] sm:$0xff] %v17514_v11  ;;  %23544 = vst [vmem:[#allocation26_spill] sm:$0xff] %v17520_v10  ;;  %15173 = vmatpush3.bf16.msra.mxu1 %v17422_v43  ;;  %14983 = vmatprep.subr.bf16.mxu0 %v17428_v44  ;;  %v17549_v59 = vsub.f32 %v72_v25, %v17522_v38  ;;  %v17552_v30 = vsub.f32 %v57_v24, %v17524_v60  ;;  %v17554_v17 = vand.u32 4294901760, %v73_v16  ;;  %v58_v43 = vld [vmem:[#allocation2 + $0x10] sm:$0xff]  ;;  %p17219_p10 = scmp.ne.s32.totalorder %s10734_s21, %s17218_s22  ;;  %p17224_p12 = scmp.lt.s32.totalorder %s17218_s22, %s17218_s22 }
  0x47   :  { %23545 = vst [vmem:[#allocation27_spill] sm:$0xff] %v17522_v38  ;;  %23546 = vst [vmem:[#allocation28_spill] sm:$0xff] %v17524_v60  ;;  %v17559_v0 = vsub.f32 %v17328_v2, %v1535_v6  ;;  %15175 = vmatprep.subr.bf16.mxu1 %v17443_v50  ;;  %v22576_v1 = vand.u32 4294901760, %v17534_v53  ;;  %v22579_v3 = vand.u32 4294901760, %v17539_v46  ;;  %v23552_v25 = vand.u32 4294901760, %v17332_v5 }
  0x48   :  { %23547 = vst [vmem:[#allocation29_spill] sm:$0xff] %v17531_v9  ;;  %23548 = vst [vmem:[#allocation30_spill] sm:$0xff] %v17534_v53  ;;  %v17573_v2 = vsub.f32 %v73_v16, %v17554_v17  ;;  %14985 = vmatpush3.bf16.msra.mxu0 %v17428_v44  ;;  %v23555_v16 = vand.u32 4294901760, %v17549_v59  ;;  %p17225_p13 = por %p17224_p12, %p17223_p11 }
  0x49   :  { %23549 = vst [vmem:[#allocation31_spill] sm:$0xff] %v17549_v59  ;;  %23550 = vst [vmem:[#allocation32_spill] sm:$0xff] %v17552_v30  ;;  %v17568_v24 = vsub.f32 %v17332_v5, %v23552_v25  ;;  %v332_v4 = vsub.f32 %v17534_v53, %v22576_v1  ;;  %v493_v5 = vsub.f32 %v17539_v46, %v22579_v3  ;;  %v23554_v25 = vand.u32 4294901760, %v17544_v52 }
  0x4a   :  { %23551 = vst [vmem:[#allocation33_spill] sm:$0xff] %v17554_v17  ;;  %23553 = vst [vmem:[#allocation34_spill] sm:$0xff] %v17573_v2  ;;  %15177 = vmatpush3.bf16.msra.mxu1 %v17443_v50  ;;  %14987 = vmatprep.subr.bf16.mxu0 %v17458_v57  ;;  %v1618_v6 = vsub.f32 %v17549_v59, %v23555_v16  ;;  %v23556_v1 = vand.u32 4294901760, %v17552_v30  ;;  %v22600_v3 = vand.u32 4294901760, %v17573_v2  ;;  %v23557_v29 = vand.u32 4294901760, %v17559_v0  ;;  %v75_v17 = vld [vmem:[#allocation2 + $0x98] sm:$0xff]  ;;  %p17226_p0 = pnand %p17225_p13, %p17219_p10 }
  0x4b   :  { %v500_v37 = vsub.f32 %v17544_v52, %v23554_v25  ;;  %15179 = vmatprep.subr.bf16.mxu1 %v17474_v45  ;;  %v333_v50 = vand.u32 4294901760, %v332_v4  ;;  %v494_v22 = vand.u32 4294901760, %v493_v5  ;;  %v23558_v16 = vand.u32 4294901760, %v17568_v24 }
  0x4c   :  { %v17595_v44 = vsub.f32 %v17552_v30, %v23556_v1  ;;  %v1779_v25 = vsub.f32 %v17559_v0, %v23557_v29  ;;  %v1619_v1 = vand.u32 4294901760, %v1618_v6  ;;  %v17609_v53 = vsub.f32 %v17573_v2, %v22600_v3  ;;  %14989 = vmatpush3.bf16.msra.mxu0 %v17458_v57 }
  0x4d   :  { %v501_v23 = vand.u32 4294901760, %v500_v37  ;;  %v1786_v59 = vsub.f32 %v17568_v24, %v23558_v16  ;;  %12314 = vmatprep.mubr.f32.mxu0 %v333_v50  ;;  %v17614_v5 = vand.u32 4294901760, %v58_v43  ;;  %v17616_v16 = vand.u32 4294901760, %v74_v36  ;;  %14991 = vmatprep.subr.bf16.mxu0 %v17480_v39 }
  0x4e   :  { %v1780_v29 = vand.u32 4294901760, %v1779_v25  ;;  %15181 = vmatpush3.bf16.msra.mxu1 %v17474_v45  ;;  %v17621_v3 = vand.u32 4294901760, %v59_v15  ;;  %v23562_v25 = vand.u32 4294901760, %v17335_v7  ;;  %12650 = vmatprep.mubr.f32.mxu1 %v1619_v1  ;;  %v17642_v45 = vand.u32 4294901760, %v75_v17 }
  0x4f   :  { %v17612_v4 = vpack.c.bf16 %v501_v23, %v494_v22  ;;  %v1787_v37 = vand.u32 4294901760, %v1786_v59  ;;  %23559 = vst [vmem:[#allocation35_spill] sm:$0xff] %v17614_v5  ;;  %23560 = vst [vmem:[#allocation36_spill] sm:$0xff] %v17616_v16  ;;  %v23563_v22 = vand.u32 4294901760, %v17337_v8  ;;  %15183 = vmatprep.subr.bf16.mxu1 %v17494_v51  ;;  %v17637_v59 = vsub.f32 %v58_v43, %v17614_v5 }
  0x50   :  { %23561 = vst [vmem:[#allocation37_spill] sm:$0xff] %v17621_v3  ;;  %v17626_v30 = vsub.f32 %v17335_v7, %v23562_v25  ;;  %v17640_v6 = vsub.f32 %v74_v36, %v17616_v16  ;;  %23566 = vst [vmem:[#allocation40_spill] sm:$0xff] %v17642_v45  ;;  %v17645_v7 = vsub.f32 %v59_v15, %v17621_v3  ;;  %14993 = vmatpush3.bf16.msra.mxu0 %v17480_v39  ;;  %v60_v39 = vld [vmem:[#allocation2 + $0x20] sm:$0xff]  ;;  %v61_v16 = vld [vmem:[#allocation2 + $0x28] sm:$0xff] }
  0x51   :  { %v17631_v23 = vsub.f32 %v17337_v8, %v23563_v22  ;;  %v17634_v50 = vpack.c.bf16 %v1787_v37, %v1780_v29  ;;  %23564 = vst [vmem:[#allocation38_spill] sm:$0xff] %v17637_v59  ;;  %v23568_v22 = vand.u32 4294901760, %v17342_v12  ;;  %v22615_v43 = vand.u32 4294901760, %v17637_v59  ;;  %14995 = vmatprep.subr.bf16.mxu0 %v17504_v19 }
  0x52   :  { %23565 = vst [vmem:[#allocation39_spill] sm:$0xff] %v17640_v6  ;;  %23567 = vst [vmem:[#allocation41_spill] sm:$0xff] %v17645_v7  ;;  %v22605_v25 = vand.u32 4294901760, %v17626_v30  ;;  %v17658_v29 = vsub.f32 %v75_v17, %v17642_v45  ;;  %v23570_v15 = vand.u32 4294901760, %v17344_v13  ;;  %15185 = vmatpush3.bf16.msra.mxu1 %v17494_v51  ;;  %v17713_v3 = vand.u32 4294901760, %v61_v16 }
  0x53   :  { %v22608_v8 = vand.u32 4294901760, %v17631_v23  ;;  %v17652_v1 = vsub.f32 %v17342_v12, %v23568_v22  ;;  %15187 = vmatprep.subr.bf16.mxu1 %v17514_v11 }
  0x54   :  { %23569 = vst [vmem:[#allocation42_spill] sm:$0xff] %v17658_v29  ;;  %v17663_v37 = vsub.f32 %v17344_v13, %v23570_v15  ;;  %v507_v22 = vsub.f32 %v17626_v30, %v22605_v25  ;;  %v352_v13 = vsub.f32 %v17637_v59, %v22615_v43  ;;  %v23571_v15 = vand.u32 4294901760, %v17640_v6  ;;  %v76_v59 = vld [vmem:[#allocation2 + $0xa0] sm:$0xff]  ;;  %14997 = vmatpush3.bf16.msra.mxu0 %v17504_v19 }
  0x55   :  { %v514_v17 = vsub.f32 %v17631_v23, %v22608_v8  ;;  %v23572_v8 = vand.u32 4294901760, %v17645_v7  ;;  %v23573_v45 = vand.u32 4294901760, %v17652_v1  ;;  %v23574_v25 = vand.u32 4294901760, %v17658_v29  ;;  %14999 = vmatprep.subr.bf16.mxu0 %v17520_v10  ;;  %23578 = vst [vmem:[#allocation45_spill] sm:$0xff] %v17713_v3 }
  0x56   :  { %v17682_v12 = vsub.f32 %v17640_v6, %v23571_v15  ;;  %v508_v57 = vand.u32 4294901760, %v507_v22  ;;  %v353_v15 = vand.u32 4294901760, %v352_v13  ;;  %15189 = vmatpush3.bf16.msra.mxu1 %v17514_v11  ;;  %v23580_v11 = vand.u32 4294901760, %v17346_v14 }
  0x57   :  { %v17689_v36 = vsub.f32 %v17645_v7, %v23572_v8  ;;  %v515_v2 = vand.u32 4294901760, %v514_v17  ;;  %v1793_v43 = vsub.f32 %v17652_v1, %v23573_v45  ;;  %v17699_v6 = vsub.f32 %v17658_v29, %v23574_v25  ;;  %v77_v17 = vld [vmem:[#allocation2 + $0xa8] sm:$0xff]  ;;  %15191 = vmatprep.subr.bf16.mxu1 %v17531_v9 }
  0x58   :  { %v1639_v51 = vand.u32 4294901760, %v17682_v12  ;;  %v23575_v8 = vand.u32 4294901760, %v17663_v37  ;;  %v17707_v7 = vand.u32 4294901760, %v60_v39  ;;  %v17711_v29 = vand.u32 4294901760, %v76_v59  ;;  %15001 = vmatpush3.bf16.msra.mxu0 %v17520_v10 }
  0x59   :  { %v363_v45 = vand.u32 4294901760, %v17689_v36  ;;  %v15006_v19 = vpack.c.bf16 %v515_v2, %v508_v57  ;;  %v1794_v13 = vand.u32 4294901760, %v1793_v43  ;;  %v1649_v25 = vand.u32 4294901760, %v17699_v6  ;;  %15003 = vmatprep.subr.bf16.mxu0 %v17612_v4 }
  0x5a   :  { %v1800_v22 = vsub.f32 %v17663_v37, %v23575_v8  ;;  %23576 = vst [vmem:[#allocation43_spill] sm:$0xff] %v17707_v7  ;;  %23577 = vst [vmem:[#allocation44_spill] sm:$0xff] %v17711_v29  ;;  %v17716_v8 = vsub.f32 %v60_v39, %v17707_v7  ;;  %v17721_v36 = vsub.f32 %v17346_v14, %v23580_v11  ;;  %v23581_v57 = vand.u32 4294901760, %v17356_v18 }
  0x5b   :  { %v17728_v43 = vand.u32 4294901760, %v77_v17  ;;  %v17735_v39 = vsub.f32 %v61_v16, %v17713_v3  ;;  %v23585_v7 = vand.u32 4294901760, %v17359_v20  ;;  %15193 = vmatpush3.bf16.msra.mxu1 %v17531_v9  ;;  %v62_v9 = vld [vmem:[#allocation2 + $0x30] sm:$0xff]  ;;  %v79_v3 = vld [vmem:[#allocation2 + $0xb8] sm:$0xff] }
  0x5c   :  { %v1801_v12 = vand.u32 4294901760, %v1800_v22  ;;  %23579 = vst [vmem:[#allocation46_spill] sm:$0xff] %v17716_v8  ;;  %v17726_v2 = vsub.f32 %v17356_v18, %v23581_v57  ;;  %v17732_v22 = vsub.f32 %v76_v59, %v17711_v29  ;;  %v22636_v14 = vand.u32 4294901760, %v17716_v8  ;;  %15195 = vmatprep.subr.bf16.mxu1 %v17634_v50 }
  0x5d   :  { %23582 = vst [vmem:[#allocation47_spill] sm:$0xff] %v17728_v43  ;;  %23584 = vst [vmem:[#allocation49_spill] sm:$0xff] %v17735_v39  ;;  %v17740_v11 = vsub.f32 %v17359_v20, %v23585_v7  ;;  %v17748_v59 = vsub.f32 %v77_v17, %v17728_v43  ;;  %v23588_v18 = vand.u32 4294901760, %v17595_v44  ;;  %v63_v43 = vld [vmem:[#allocation2 + $0x38] sm:$0xff] }
  0x5e   :  { %v15198_v6 = vpack.c.bf16 %v1801_v12, %v1794_v13  ;;  %23583 = vst [vmem:[#allocation48_spill] sm:$0xff] %v17732_v22  ;;  %v23587_v12 = vand.u32 4294901760, %v17361_v21  ;;  %v372_v17 = vsub.f32 %v17716_v8, %v22636_v14  ;;  %v23589_v13 = vand.u32 4294901760, %v17721_v36  ;;  %v78_v8 = vld [vmem:[#allocation2 + $0xb0] sm:$0xff] }
  0x5f   :  { %23586 = vst [vmem:[#allocation50_spill] sm:$0xff] %v17748_v59  ;;  %12315 = vmatmul.mubr.f32.vlgmr.msra.gmra.mrb[0].mxu0 %v23588_v18  ;;  %v23590_v20 = vand.u32 4294901760, %v17726_v2  ;;  %v23592_v44 = vand.u32 4294901760, %v17732_v22 }
  0x60   :  { %v17757_v57 = vsub.f32 %v17361_v21, %v23587_v12  ;;  %v521_v16 = vsub.f32 %v17721_v36, %v23589_v13  ;;  %v23591_v21 = vand.u32 4294901760, %v17609_v53  ;;  %15005 = vmatpush3.bf16.msra.mxu0 %v17612_v4  ;;  %v23593_v12 = vand.u32 4294901760, %v17735_v39  ;;  %12317 = vmatprep.mubr.f32.mxu0 %v353_v15 }
  0x61   :  { %v528_v7 = vsub.f32 %v17726_v2, %v23590_v20  ;;  %v1658_v18 = vsub.f32 %v17732_v22, %v23592_v44  ;;  %v23594_v13 = vand.u32 4294901760, %v17740_v11  ;;  %v373_v53 = vand.u32 4294901760, %v372_v17  ;;  %15007 = vmatprep.subr.bf16.mxu0 %v15006_v19 }
  0x62   :  { %12651 = vmatmul.mubr.f32.vlgmr.msra.gmra.mrb[0].mxu1 %v23591_v21  ;;  %v382_v14 = vsub.f32 %v17735_v39, %v23593_v12  ;;  %v22655_v20 = vand.u32 4294901760, %v17757_v57  ;;  %v522_v4 = vand.u32 4294901760, %v521_v16  ;;  %v23595_v44 = vand.u32 4294901760, %v17748_v59 }
  0x63   :  { %v1807_v10 = vsub.f32 %v17740_v11, %v23594_v13  ;;  %15197 = vmatpush3.bf16.msra.mxu1 %v17634_v50  ;;  %v529_v21 = vand.u32 4294901760, %v528_v7  ;;  %12653 = vmatprep.mubr.f32.mxu1 %v1639_v51  ;;  %v1659_v12 = vand.u32 4294901760, %v1658_v18  ;;  %v17791_v16 = vand.u32 4294901760, %v62_v9 }
  0x64   :  { %v1668_v22 = vsub.f32 %v17748_v59, %v23595_v44  ;;  %v383_v39 = vand.u32 4294901760, %v382_v14  ;;  %v1814_v29 = vsub.f32 %v17757_v57, %v22655_v20  ;;  %12318 = vmatmul.mubr.f32.gmra.mrb[2].mxu0 %v363_v45  ;;  %15199 = vmatprep.subr.bf16.mxu1 %v15198_v6  ;;  %v17793_v7 = vand.u32 4294901760, %v78_v8 }
  0x65   :  { %v1808_v13 = vand.u32 4294901760, %v1807_v10  ;;  %v15010_v50 = vpack.c.bf16 %v529_v21, %v522_v4  ;;  %23596 = vst [vmem:[#allocation51_spill] sm:$0xff] %v17791_v16  ;;  %15009 = vmatpush3.bf16.msra.mxu0 %v15006_v19  ;;  %v17795_v17 = vand.u32 4294901760, %v63_v43  ;;  %v23599_v10 = vand.u32 4294901760, %v17377_v26  ;;  %12320 = vmatprep.mubr.f32.mxu0 %v373_v53 }
  0x66   :  { %v1669_v15 = vand.u32 4294901760, %v1668_v22  ;;  %23597 = vst [vmem:[#allocation52_spill] sm:$0xff] %v17793_v7  ;;  %12654 = vmatmul.mubr.f32.gmra.mrb[2].mxu1 %v1649_v25  ;;  %v1815_v51 = vand.u32 4294901760, %v1814_v29  ;;  %v23600_v18 = vand.u32 4294901760, %v17379_v27  ;;  %v17808_v22 = vsub.f32 %v62_v9, %v17791_v16 }
  0x67   :  { %23598 = vst [vmem:[#allocation53_spill] sm:$0xff] %v17795_v17  ;;  %v17800_v14 = vsub.f32 %v17377_v26, %v23599_v10  ;;  %15201 = vmatpush3.bf16.msra.mxu1 %v15198_v6  ;;  %v17811_v19 = vsub.f32 %v78_v8, %v17793_v7  ;;  %v17813_v29 = vand.u32 4294901760, %v79_v3  ;;  %v23604_v25 = vand.u32 4294901760, %v17381_v28  ;;  %12656 = vmatprep.mubr.f32.mxu1 %v1659_v12 }
  0x68   :  { %v17805_v45 = vsub.f32 %v17379_v27, %v23600_v18  ;;  %23601 = vst [vmem:[#allocation54_spill] sm:$0xff] %v17808_v22  ;;  %15011 = vmatprep.subr.bf16.mxu0 %v15010_v50  ;;  %v15202_v4 = vpack.c.bf16 %v1815_v51, %v1808_v13  ;;  %v17821_v27 = vsub.f32 %v63_v43, %v17795_v17  ;;  %v22651_v8 = vand.u32 4294901760, %v17808_v22  ;;  %v64_v18 = vld [vmem:[#allocation2 + $0x40] sm:$0xff] }
  0x69   :  { %23602 = vst [vmem:[#allocation55_spill] sm:$0xff] %v17811_v19  ;;  %23603 = vst [vmem:[#allocation56_spill] sm:$0xff] %v17813_v29  ;;  %v17818_v26 = vsub.f32 %v17381_v28, %v23604_v25  ;;  %v22653_v6 = vand.u32 4294901760, %v17800_v14  ;;  %12321 = vmatmul.mubr.f32.gmra.mrb[4].mxu0 %v383_v39  ;;  %v22654_v53 = vand.u32 4294901760, %v17811_v19  ;;  %v17828_v21 = vsub.f32 %v79_v3, %v17813_v29 }
  0x6a   :  { %23605 = vst [vmem:[#allocation57_spill] sm:$0xff] %v17821_v27  ;;  %v22652_v9 = vand.u32 4294901760, %v17805_v45  ;;  %12657 = vmatmul.mubr.f32.gmra.mrb[4].mxu1 %v1669_v15  ;;  %15203 = vmatprep.subr.bf16.mxu1 %v15202_v4  ;;  %v22661_v44 = vand.u32 4294901760, %v17821_v27  ;;  %v23607_v12 = vand.u32 4294901760, %v17393_v33  ;;  %v392_v3 = vsub.f32 %v17808_v22, %v22651_v8  ;;  %v65_v8 = vld [vmem:[#allocation2 + $0x48] sm:$0xff] }
  0x6b   :  { %23606 = vst [vmem:[#allocation58_spill] sm:$0xff] %v17828_v21  ;;  %v22658_v28 = vand.u32 4294901760, %v17818_v26  ;;  %v535_v43 = vsub.f32 %v17800_v14, %v22653_v6  ;;  %15013 = vmatpush3.bf16.msra.mxu0 %v15010_v50  ;;  %15205 = vmatpush3.bf16.msra.mxu1 %v15202_v4  ;;  %v1678_v15 = vsub.f32 %v17811_v19, %v22654_v53  ;;  %v22664_v51 = vand.u32 4294901760, %v17828_v21  ;;  %v81_v19 = vld [vmem:[#allocation2 + $0xc8] sm:$0xff] }
  0x6c   :  { %v542_v39 = vsub.f32 %v17805_v45, %v22652_v9  ;;  %v17841_v13 = vsub.f32 %v17393_v33, %v23607_v12  ;;  %v402_v33 = vsub.f32 %v17821_v27, %v22661_v44  ;;  %v80_v12 = vld [vmem:[#allocation2 + $0xc0] sm:$0xff]  ;;  %v393_v9 = vand.u32 4294901760, %v392_v3 }
  0x6d   :  { %v1821_v10 = vsub.f32 %v17818_v26, %v22658_v28  ;;  %v536_v50 = vand.u32 4294901760, %v535_v43  ;;  %v1679_v6 = vand.u32 4294901760, %v1678_v15  ;;  %v1688_v53 = vsub.f32 %v17828_v21, %v22664_v51  ;;  %v82_v21 = vld [vmem:[#allocation2 + $0xd0] sm:$0xff] }
  0x6e   :  { %v543_v25 = vand.u32 4294901760, %v542_v39  ;;  %v22665_v4 = vand.u32 4294901760, %v17841_v13  ;;  %v403_v28 = vand.u32 4294901760, %v402_v33  ;;  %v17863_v43 = vand.u32 4294901760, %v64_v18  ;;  %12323 = vmatprep.mubr.f32.mxu0 %v393_v9 }
  0x6f   :  { %v1822_v20 = vand.u32 4294901760, %v1821_v10  ;;  %12659 = vmatprep.mubr.f32.mxu1 %v1679_v6  ;;  %v1689_v39 = vand.u32 4294901760, %v1688_v53  ;;  %v17865_v27 = vand.u32 4294901760, %v80_v12  ;;  %v17867_v3 = vand.u32 4294901760, %v65_v8 }
  0x70   :  { %v15014_v59 = vpack.c.bf16 %v543_v25, %v536_v50  ;;  %v1828_v44 = vsub.f32 %v17841_v13, %v22665_v4  ;;  %23608 = vst [vmem:[#allocation59_spill] sm:$0xff] %v17863_v43  ;;  %v23611_v15 = vand.u32 4294901760, %v17395_v34  ;;  %12324 = vmatmul.mubr.f32.gmra.mrb[6].mxu0 %v403_v28  ;;  %v17875_v50 = vsub.f32 %v64_v18, %v17863_v43  ;;  %v66_v4 = vld [vmem:[#allocation2 + $0x50] sm:$0xff] }
  0x71   :  { %23609 = vst [vmem:[#allocation60_spill] sm:$0xff] %v17865_v27  ;;  %23610 = vst [vmem:[#allocation61_spill] sm:$0xff] %v17867_v3  ;;  %v23613_v25 = vand.u32 4294901760, %v17397_v35  ;;  %v17882_v9 = vand.u32 4294901760, %v81_v19  ;;  %12660 = vmatmul.mubr.f32.gmra.mrb[6].mxu1 %v1689_v39  ;;  %v17885_v53 = vsub.f32 %v80_v12, %v17865_v27  ;;  %v17932_v29 = vand.u32 4294901760, %v66_v4 }
  0x72   :  { %v17872_v10 = vsub.f32 %v17395_v34, %v23611_v15  ;;  %15015 = vmatprep.subr.bf16.mxu0 %v15014_v59  ;;  %v1829_v33 = vand.u32 4294901760, %v1828_v44  ;;  %23612 = vst [vmem:[#allocation62_spill] sm:$0xff] %v17875_v50  ;;  %v17888_v34 = vsub.f32 %v65_v8, %v17867_v3  ;;  %v23617_v44 = vand.u32 4294901760, %v17410_v40 }
  0x73   :  { %v17880_v6 = vsub.f32 %v17397_v35, %v23613_v25  ;;  %23614 = vst [vmem:[#allocation63_spill] sm:$0xff] %v17882_v9  ;;  %15017 = vmatpush3.bf16.msra.mxu0 %v15014_v59  ;;  %23615 = vst [vmem:[#allocation64_spill] sm:$0xff] %v17885_v53  ;;  %v22667_v35 = vand.u32 4294901760, %v17875_v50  ;;  %v17899_v59 = vsub.f32 %v81_v19, %v17882_v9  ;;  %v22677_v12 = vand.u32 4294901760, %v17885_v53  ;;  %v67_v9 = vld [vmem:[#allocation2 + $0x58] sm:$0xff] }
  0x74   :  { %23616 = vst [vmem:[#allocation65_spill] sm:$0xff] %v17888_v34  ;;  %v22666_v28 = vand.u32 4294901760, %v17872_v10  ;;  %v17894_v18 = vsub.f32 %v17410_v40, %v23617_v44  ;;  %v15206_v15 = vpack.c.bf16 %v1829_v33, %v1822_v20  ;;  %v22684_v8 = vand.u32 4294901760, %v17888_v34  ;;  %23622 = vst [vmem:[#allocation67_spill] sm:$0xff] %v17932_v29 }
  0x75   :  { %v22668_v25 = vand.u32 4294901760, %v17880_v6  ;;  %23618 = vst [vmem:[#allocation66_spill] sm:$0xff] %v17899_v59  ;;  %v412_v40 = vsub.f32 %v17875_v50, %v22667_v35  ;;  %v23619_v33 = vand.u32 4294901760, %v17412_v41 }
  0x76   :  { %v549_v39 = vsub.f32 %v17872_v10, %v22666_v28  ;;  %15207 = vmatprep.subr.bf16.mxu1 %v15206_v15  ;;  %v1698_v28 = vsub.f32 %v17885_v53, %v22677_v12  ;;  %v422_v35 = vsub.f32 %v17888_v34, %v22684_v8 }
  0x77   :  { %v556_v20 = vsub.f32 %v17880_v6, %v22668_v25  ;;  %v17917_v44 = vsub.f32 %v17412_v41, %v23619_v33  ;;  %15209 = vmatpush3.bf16.msra.mxu1 %v15206_v15  ;;  %v23620_v25 = vand.u32 4294901760, %v17894_v18  ;;  %v413_v50 = vand.u32 4294901760, %v412_v40 }
  0x78   :  { %v550_v51 = vand.u32 4294901760, %v549_v39  ;;  %v23621_v41 = vand.u32 4294901760, %v17899_v59  ;;  %v1699_v12 = vand.u32 4294901760, %v1698_v28  ;;  %v423_v53 = vand.u32 4294901760, %v422_v35  ;;  %v83_v39 = vld [vmem:[#allocation2 + $0xd8] sm:$0xff] }
  0x79   :  { %v1835_v19 = vsub.f32 %v17894_v18, %v23620_v25  ;;  %v557_v22 = vand.u32 4294901760, %v556_v20  ;;  %v22688_v33 = vand.u32 4294901760, %v17917_v44  ;;  %12326 = vmatprep.mubr.f32.mxu0 %v413_v50  ;;  %v17937_v40 = vand.u32 4294901760, %v82_v21 }
  0x7a   :  { %v1708_v15 = vsub.f32 %v17899_v59, %v23621_v41  ;;  %12662 = vmatprep.mubr.f32.mxu1 %v1699_v12  ;;  %12327 = vmatmul.mubr.f32.gmra.mrb[8].mxu0 %v423_v53  ;;  %v17940_v20 = vsub.f32 %v66_v4, %v17932_v29  ;;  %v17942_v28 = vand.u32 4294901760, %v67_v9  ;;  %v23626_v35 = vand.u32 4294901760, %v17414_v42 }
  0x7b   :  { %v1836_v27 = vand.u32 4294901760, %v1835_v19  ;;  %v15018_v8 = vpack.c.bf16 %v557_v22, %v550_v51  ;;  %v1842_v25 = vsub.f32 %v17917_v44, %v22688_v33  ;;  %23623 = vst [vmem:[#allocation68_spill] sm:$0xff] %v17937_v40  ;;  %v23627_v22 = vand.u32 4294901760, %v17432_v47 }
  0x7c   :  { %v1709_v34 = vand.u32 4294901760, %v1708_v15  ;;  %23624 = vst [vmem:[#allocation69_spill] sm:$0xff] %v17940_v20  ;;  %23625 = vst [vmem:[#allocation70_spill] sm:$0xff] %v17942_v28  ;;  %v17947_v19 = vsub.f32 %v17414_v42, %v23626_v35  ;;  %v17955_v53 = vsub.f32 %v82_v21, %v17937_v40  ;;  %v17957_v4 = vand.u32 4294901760, %v83_v39 }
  0x7d   :  { %v17952_v51 = vsub.f32 %v17432_v47, %v23627_v22  ;;  %15019 = vmatprep.subr.bf16.mxu0 %v15018_v8  ;;  %v1843_v50 = vand.u32 4294901760, %v1842_v25  ;;  %v23630_v12 = vand.u32 4294901760, %v17434_v48  ;;  %v22687_v42 = vand.u32 4294901760, %v17940_v20 }
  0x7e   :  { %12663 = vmatmul.mubr.f32.gmra.mrb[8].mxu1 %v1709_v34  ;;  %23628 = vst [vmem:[#allocation71_spill] sm:$0xff] %v17955_v53  ;;  %23629 = vst [vmem:[#allocation72_spill] sm:$0xff] %v17957_v4  ;;  %15021 = vmatpush3.bf16.msra.mxu0 %v15018_v8  ;;  %v17966_v15 = vsub.f32 %v67_v9, %v17942_v28  ;;  %v22689_v47 = vand.u32 4294901760, %v17947_v19  ;;  %v22695_v21 = vand.u32 4294901760, %v17955_v53  ;;  %v84_v8 = vld [vmem:[#allocation2 + $0xe0] sm:$0xff] }
  0x7f   :  { %v17962_v41 = vsub.f32 %v17434_v48, %v23630_v12  ;;  %v22690_v34 = vand.u32 4294901760, %v17952_v51  ;;  %v15210_v25 = vpack.c.bf16 %v1843_v50, %v1836_v27  ;;  %v17972_v35 = vsub.f32 %v83_v39, %v17957_v4  ;;  %v69_v50 = vld [vmem:[#allocation2 + $0x68] sm:$0xff] }
  0x80   :  { %23631 = vst [vmem:[#allocation73_spill] sm:$0xff] %v17966_v15  ;;  %v432_v48 = vsub.f32 %v17940_v20, %v22687_v42  ;;  %v563_v9 = vsub.f32 %v17947_v19, %v22689_v47  ;;  %v1718_v39 = vsub.f32 %v17955_v53, %v22695_v21  ;;  %v23633_v42 = vand.u32 4294901760, %v17436_v49  ;;  %v68_v47 = vld [vmem:[#allocation2 + $0x60] sm:$0xff] }
  0x81   :  { %23632 = vst [vmem:[#allocation74_spill] sm:$0xff] %v17972_v35  ;;  %v22702_v22 = vand.u32 4294901760, %v17962_v41  ;;  %v570_v27 = vsub.f32 %v17952_v51, %v22690_v34  ;;  %15211 = vmatprep.subr.bf16.mxu1 %v15210_v25  ;;  %v23634_v59 = vand.u32 4294901760, %v17966_v15  ;;  %v23635_v40 = vand.u32 4294901760, %v17972_v35 }
  0x82   :  { %v17995_v33 = vsub.f32 %v17436_v49, %v23633_v42  ;;  %15213 = vmatpush3.bf16.msra.mxu1 %v15210_v25  ;;  %v433_v34 = vand.u32 4294901760, %v432_v48  ;;  %v564_v21 = vand.u32 4294901760, %v563_v9  ;;  %v1719_v4 = vand.u32 4294901760, %v1718_v39  ;;  %v85_v42 = vld [vmem:[#allocation2 + $0xe8] sm:$0xff] }
  0x83   :  { %v1849_v12 = vsub.f32 %v17962_v41, %v22702_v22  ;;  %v442_v20 = vsub.f32 %v17966_v15, %v23634_v59  ;;  %v571_v53 = vand.u32 4294901760, %v570_v27  ;;  %v1728_v22 = vsub.f32 %v17972_v35, %v23635_v40 }
  0x84   :  { %v22710_v49 = vand.u32 4294901760, %v17995_v33  ;;  %12329 = vmatprep.mubr.f32.mxu0 %v433_v34  ;;  %v18004_v48 = vand.u32 4294901760, %v68_v47  ;;  %v18006_v3 = vand.u32 4294901760, %v84_v8  ;;  %12665 = vmatprep.mubr.f32.mxu1 %v1719_v4  ;;  %v18011_v27 = vand.u32 4294901760, %v69_v50 }
  0x85   :  { %v1850_v28 = vand.u32 4294901760, %v1849_v12  ;;  %v443_v29 = vand.u32 4294901760, %v442_v20  ;;  %v15022_v25 = vpack.c.bf16 %v571_v53, %v564_v21  ;;  %v1729_v59 = vand.u32 4294901760, %v1728_v22 }
  0x86   :  { %23636 = vst [vmem:[#allocation75_spill] sm:$0xff] %v18004_v48  ;;  %23637 = vst [vmem:[#allocation76_spill] sm:$0xff] %v18006_v3  ;;  %v1856_v9 = vsub.f32 %v17995_v33, %v22710_v49  ;;  %v23639_v40 = vand.u32 4294901760, %v17448_v54  ;;  %v18019_v20 = vsub.f32 %v68_v47, %v18004_v48  ;;  %v18022_v53 = vsub.f32 %v84_v8, %v18006_v3 }
  0x87   :  { %23638 = vst [vmem:[#allocation77_spill] sm:$0xff] %v18011_v27  ;;  %12330 = vmatmul.mubr.f32.gmra.mrb[10].mxu0 %v443_v29  ;;  %15023 = vmatprep.subr.bf16.mxu0 %v15022_v25  ;;  %v23642_v4 = vand.u32 4294901760, %v17450_v55  ;;  %v18029_v21 = vand.u32 4294901760, %v85_v42  ;;  %v23645_v47 = vand.u32 4294901760, %v17452_v56  ;;  %v23647_v35 = vand.u32 4294901760, %v17463_v61 }
  0x88   :  { %v18016_v39 = vsub.f32 %v17448_v54, %v23639_v40  ;;  %23640 = vst [vmem:[#allocation78_spill] sm:$0xff] %v18019_v20  ;;  %23641 = vst [vmem:[#allocation79_spill] sm:$0xff] %v18022_v53  ;;  %12666 = vmatmul.mubr.f32.gmra.mrb[10].mxu1 %v1729_v59  ;;  %v1857_v22 = vand.u32 4294901760, %v1856_v9  ;;  %15025 = vmatpush3.bf16.msra.mxu0 %v15022_v25  ;;  %v18032_v54 = vsub.f32 %v69_v50, %v18011_v27  ;;  %v87_v27 = vld [vmem:[#allocation2 + $0xf8] sm:$0xff] }
  0x89   :  { %v18027_v34 = vsub.f32 %v17450_v55, %v23642_v4  ;;  %23643 = vst [vmem:[#allocation80_spill] sm:$0xff] %v18029_v21  ;;  %v18038_v8 = vsub.f32 %v17452_v56, %v23645_v47  ;;  %v22711_v12 = vand.u32 4294901760, %v18019_v20  ;;  %v22714_v55 = vand.u32 4294901760, %v18022_v53 }
  0x8a   :  { %23644 = vst [vmem:[#allocation81_spill] sm:$0xff] %v18032_v54  ;;  %v22709_v29 = vand.u32 4294901760, %v18016_v39  ;;  %v18044_v59 = vsub.f32 %v85_v42, %v18029_v21  ;;  %v15214_v25 = vpack.c.bf16 %v1857_v22, %v1850_v28  ;;  %v22724_v50 = vand.u32 4294901760, %v18032_v54  ;;  %v70_v22 = vld [vmem:[#allocation2 + $0x70] sm:$0xff] }
  0x8b   :  { %v22717_v40 = vand.u32 4294901760, %v18027_v34  ;;  %v22729_v4 = vand.u32 4294901760, %v18038_v8  ;;  %v452_v56 = vsub.f32 %v18019_v20, %v22711_v12  ;;  %v1738_v47 = vsub.f32 %v18022_v53, %v22714_v55  ;;  %v86_v53 = vld [vmem:[#allocation2 + $0xf0] sm:$0xff] }
  0x8c   :  { %23646 = vst [vmem:[#allocation82_spill] sm:$0xff] %v18044_v59  ;;  %v577_v9 = vsub.f32 %v18016_v39, %v22709_v29  ;;  %15215 = vmatprep.subr.bf16.mxu1 %v15214_v25  ;;  %v462_v29 = vsub.f32 %v18032_v54, %v22724_v50  ;;  %v18070_v55 = vsub.f32 %v17463_v61, %v23647_v35  ;;  %v23648_v21 = vand.u32 4294901760, %v18044_v59 }
  0x8d   :  { %v584_v28 = vsub.f32 %v18027_v34, %v22717_v40  ;;  %v1863_v12 = vsub.f32 %v18038_v8, %v22729_v4  ;;  %v71_v40 = vld [vmem:[#allocation2 + $0x78] sm:$0xff]  ;;  %15217 = vmatpush3.bf16.msra.mxu1 %v15214_v25  ;;  %v453_v42 = vand.u32 4294901760, %v452_v56  ;;  %v1739_v20 = vand.u32 4294901760, %v1738_v47 }
  0x8e   :  { %v578_v49 = vand.u32 4294901760, %v577_v9  ;;  %v1748_v50 = vsub.f32 %v18044_v59, %v23648_v21  ;;  %v463_v9 = vand.u32 4294901760, %v462_v29  ;;  %v22735_v3 = vand.u32 4294901760, %v18070_v55 }
  0x8f   :  { %v585_v15 = vand.u32 4294901760, %v584_v28  ;;  %v1864_v54 = vand.u32 4294901760, %v1863_v12  ;;  %v18076_v4 = vand.u32 4294901760, %v70_v22  ;;  %12332 = vmatprep.mubr.f32.mxu0 %v453_v42  ;;  %12668 = vmatprep.mubr.f32.mxu1 %v1739_v20  ;;  %v18078_v48 = vand.u32 4294901760, %v86_v53 }
  0x90   :  { %v1749_v35 = vand.u32 4294901760, %v1748_v50  ;;  %v18080_v25 = vand.u32 4294901760, %v71_v40  ;;  %12333 = vmatmul.mubr.f32.gmra.mrb[12].mxu0 %v463_v9  ;;  %v1870_v21 = vsub.f32 %v18070_v55, %v22735_v3  ;;  %v23653_v12 = vand.u32 4294901760, %v17465_v62 }
  0x91   :  { %23649 = vst [vmem:[#allocation83_spill] sm:$0xff] %v18076_v4  ;;  %v15026_v61 = vpack.c.bf16 %v585_v15, %v578_v49  ;;  %23650 = vst [vmem:[#allocation84_spill] sm:$0xff] %v18078_v48  ;;  %v18086_v29 = vsub.f32 %v70_v22, %v18076_v4  ;;  %v23654_v15 = vand.u32 4294901760, %v17467_v63  ;;  %v18099_v20 = vsub.f32 %v86_v53, %v18078_v48 }
  0x92   :  { %23651 = vst [vmem:[#allocation85_spill] sm:$0xff] %v18080_v25  ;;  %v18091_v56 = vsub.f32 %v17465_v62, %v23653_v12  ;;  %12669 = vmatmul.mubr.f32.gmra.mrb[12].mxu1 %v1749_v35  ;;  %v18102_v50 = vsub.f32 %v71_v40, %v18080_v25  ;;  %v18104_v47 = vand.u32 4294901760, %v87_v27  ;;  %v23658_v28 = vand.u32 4294901760, %v17484_v32 }
  0x93   :  { %23652 = vst [vmem:[#allocation86_spill] sm:$0xff] %v18086_v29  ;;  %v18096_v49 = vsub.f32 %v17467_v63, %v23654_v15  ;;  %15027 = vmatprep.subr.bf16.mxu0 %v15026_v61  ;;  %23655 = vst [vmem:[#allocation87_spill] sm:$0xff] %v18099_v20  ;;  %v1871_v42 = vand.u32 4294901760, %v1870_v21  ;;  %v22734_v63 = vand.u32 4294901760, %v18086_v29  ;;  %v22743_v53 = vand.u32 4294901760, %v18099_v20 }
  0x94   :  { %23656 = vst [vmem:[#allocation88_spill] sm:$0xff] %v18102_v50  ;;  %23657 = vst [vmem:[#allocation89_spill] sm:$0xff] %v18104_v47  ;;  %v18109_v62 = vsub.f32 %v17484_v32, %v23658_v28  ;;  %15029 = vmatpush3.bf16.msra.mxu0 %v15026_v61  ;;  %v22738_v22 = vand.u32 4294901760, %v18091_v56  ;;  %v22744_v40 = vand.u32 4294901760, %v18102_v50  ;;  %v18117_v35 = vsub.f32 %v87_v27, %v18104_v47 }
  0x95   :  { %v597_v9 = vand.u32 4294901760, %v18096_v49  ;;  %v15218_v15 = vpack.c.bf16 %v1871_v42, %v1864_v54  ;;  %v472_v32 = vsub.f32 %v18086_v29, %v22734_v63  ;;  %v1758_v28 = vsub.f32 %v18099_v20, %v22743_v53 }
  0x96   :  { %v1876_v12 = vand.u32 4294901760, %v18109_v62  ;;  %v591_v61 = vsub.f32 %v18091_v56, %v22738_v22  ;;  %v482_v27 = vsub.f32 %v18102_v50, %v22744_v40  ;;  %v22749_v54 = vand.u32 4294901760, %v18117_v35 }
  0x97   :  { %v598_v21 = vsub.f32 %v18096_v49, %v597_v9  ;;  %15219 = vmatprep.subr.bf16.mxu1 %v15218_v15  ;;  %v473_v63 = vand.u32 4294901760, %v472_v32  ;;  %v23659_v22 = vand.u32 4294901760, %v17486_v31  ;;  %v1759_v47 = vand.u32 4294901760, %v1758_v28 }
  0x98   :  { %v1877_v42 = vsub.f32 %v18109_v62, %v1876_v12  ;;  %v592_v3 = vand.u32 4294901760, %v591_v61  ;;  %15221 = vmatpush3.bf16.msra.mxu1 %v15218_v15  ;;  %v483_v53 = vand.u32 4294901760, %v482_v27  ;;  %v1768_v40 = vsub.f32 %v18117_v35, %v22749_v54 }
  0x99   :  { %v599_v59 = vand.u32 4294901760, %v598_v21  ;;  %v18138_v29 = vsub.f32 %v17486_v31, %v23659_v22  ;;  %12335 = vmatprep.mubr.f32.mxu0 %v473_v63  ;;  %v15034_v32 = vpack.c.bf16 %v17544_v52, %v17539_v46  ;;  %12671 = vmatprep.mubr.f32.mxu1 %v1759_v47  ;;  %v15230_v31 = vpack.c.bf16 %v17663_v37, %v17652_v1 }
  0x9a   :  { %12336 = vmatmul.mubr.f32.gmra.mrb[14].mxu0 %v483_v53  ;;  %v1769_v61 = vand.u32 4294901760, %v1768_v40  ;;  %v1878_v22 = vand.u32 4294901760, %v1877_v42  ;;  %v15038_v47 = vpack.c.bf16 %v17631_v23, %v17626_v30  ;;  %v15226_v53 = vpack.c.bf16 %v17568_v24, %v17559_v0 }
  0x9b   :  { %v15030_v20 = vpack.c.bf16 %v599_v59, %v592_v3  ;;  %v1883_v50 = vand.u32 4294901760, %v18138_v29  ;;  %12370 = vmatprep.mubr.f32.mxu0 %v17508_v58  ;;  %v15234_v3 = vpack.c.bf16 %v17757_v57, %v17740_v11  ;;  %v15042_v40 = vpack.c.bf16 %v17726_v2, %v17721_v36 }
  0x9c   :  { %12672 = vmatmul.mubr.f32.gmra.mrb[14].mxu1 %v1769_v61  ;;  %v23661_v21 = vand.u32 4294901760, %v17726_v2  ;;  %v23662_v27 = vand.u32 4294901760, %v17740_v11  ;;  %v23663_v42 = vand.u32 4294901760, %v17757_v57  ;;  %v23667_v2 = vand.u32 4294901760, %v17841_v13 }
  0x9d   :  { %15031 = vmatprep.subr.bf16.mxu0 %v15030_v20  ;;  %v1884_v15 = vsub.f32 %v18138_v29, %v1883_v50  ;;  %12706 = vmatprep.mubr.f32.mxu1 %v17522_v38  ;;  %v23668_v11 = vand.u32 4294901760, %v17872_v10  ;;  %v23669_v57 = vand.u32 4294901760, %v17880_v6 }
  0x9e   :  { %15033 = vmatpush3.bf16.msra.mxu0 %v15030_v20  ;;  %v23660_v20 = vand.u32 4294901760, %v17721_v36  ;;  %v18171_v61 = vpack.c.bf16 %v23663_v42, %v23662_v27  ;;  %v23666_v36 = vand.u32 4294901760, %v17818_v26  ;;  %v23671_v27 = vand.u32 4294901760, %v17917_v44 }
  0x9f   :  { %v1885_v59 = vand.u32 4294901760, %v1884_v15  ;;  %15035 = vmatprep.subr.bf16.mxu0 %v15034_v32  ;;  %v23665_v15 = vand.u32 4294901760, %v17805_v45 }
  0xa0   :  { %v18165_v28 = vpack.c.bf16 %v23661_v21, %v23660_v20  ;;  %v18189_v20 = vpack.c.bf16 %v23669_v57, %v23668_v11  ;;  %v23670_v21 = vand.u32 4294901760, %v17894_v18  ;;  %v23676_v11 = vand.u32 4294901760, %v18016_v39 }
  0xa1   :  { %v15222_v63 = vpack.c.bf16 %v1885_v59, %v1878_v22  ;;  %12371 = vmatmul.mubr.f32.vlgmr.msra.gmra.mrb[0].mxu0 %v17524_v60  ;;  %v23664_v22 = vand.u32 4294901760, %v17800_v14  ;;  %v23677_v57 = vand.u32 4294901760, %v18027_v34 }
  0xa2   :  { %15037 = vmatpush3.bf16.msra.mxu0 %v15034_v32  ;;  %12373 = vmatprep.mubr.f32.mxu0 %v17614_v5  ;;  %v18183_v32 = vpack.c.bf16 %v23667_v2, %v23666_v36  ;;  %v18195_v42 = vpack.c.bf16 %v23671_v27, %v23670_v21  ;;  %v23674_v36 = vand.u32 4294901760, %v17962_v41  ;;  %v23675_v2 = vand.u32 4294901760, %v17995_v33 }
  0xa3   :  { %v18177_v59 = vpack.c.bf16 %v23665_v15, %v23664_v22  ;;  %15223 = vmatprep.subr.bf16.mxu1 %v15222_v63  ;;  %15039 = vmatprep.subr.bf16.mxu0 %v15038_v47  ;;  %v23672_v22 = vand.u32 4294901760, %v17947_v19  ;;  %v23673_v15 = vand.u32 4294901760, %v17952_v51  ;;  %v18213_v5 = vpack.c.bf16 %v23677_v57, %v23676_v11  ;;  %v23683_v11 = vld [vmem:[#allocation33_spill] sm:$0xff] }
  0xa4   :  { %15225 = vmatpush3.bf16.msra.mxu1 %v15222_v63  ;;  %v18207_v38 = vpack.c.bf16 %v23675_v2, %v23674_v36  ;;  %v23678_v63 = vand.u32 4294901760, %v18038_v8  ;;  %v23679_v21 = vand.u32 4294901760, %v18070_v55  ;;  %v18226_v36 = vpack.c.bf16 %v1883_v50, %v1876_v12  ;;  %v23682_v2 = vld [vmem:[#allocation43_spill] sm:$0xff]  ;;  %v23686_v50 = vld [vmem:[#allocation40_spill] sm:$0xff] }
  0xa5   :  { %v18201_v54 = vpack.c.bf16 %v23673_v15, %v23672_v22  ;;  %15227 = vmatprep.subr.bf16.mxu1 %v15226_v53  ;;  %v23680_v22 = vld [vmem:[#allocation37_spill] sm:$0xff]  ;;  %v23681_v15 = vand.u32 4294901760, %v18091_v56  ;;  %v15046_v57 = vpack.c.bf16 %v17805_v45, %v17800_v14  ;;  %v23687_v12 = vld [vmem:[#allocation44_spill] sm:$0xff]  ;;  %v15238_v14 = vpack.c.bf16 %v17841_v13, %v17818_v26  ;;  %v23688_v45 = vld [vmem:[#allocation47_spill] sm:$0xff] }
  0xa6   :  { %v18219_v27 = vpack.c.bf16 %v23679_v21, %v23678_v63  ;;  %12374 = vmatmul.mubr.f32.gmra.mrb[2].mxu0 %v23680_v22  ;;  %v23684_v63 = vld [vmem:[#allocation36_spill] sm:$0xff]  ;;  %v23685_v21 = vld [vmem:[#allocation45_spill] sm:$0xff]  ;;  %v23690_v26 = vld [vmem:[#allocation67_spill] sm:$0xff] }
  0xa7   :  { %v18224_v60 = vpack.c.bf16 %v597_v9, %v23681_v15  ;;  %15041 = vmatpush3.bf16.msra.mxu0 %v15038_v47  ;;  %12376 = vmatprep.mubr.f32.mxu0 %v23682_v2  ;;  %v15050_v9 = vpack.c.bf16 %v17880_v6, %v17872_v10  ;;  %v15054_v47 = vpack.c.bf16 %v17952_v51, %v17947_v19  ;;  %v23689_v10 = vld [vmem:[#allocation61_spill] sm:$0xff]  ;;  %v23691_v13 = vld [vmem:[#allocation56_spill] sm:$0xff]  ;;  %v23693_v51 = vld [vmem:[#allocation70_spill] sm:$0xff] }
  0xa8   :  { %12707 = vmatmul.mubr.f32.vlgmr.msra.gmra.mrb[0].mxu1 %v23683_v11  ;;  %15043 = vmatprep.subr.bf16.mxu0 %v15042_v40  ;;  %v15242_v6 = vpack.c.bf16 %v17917_v44, %v17894_v18  ;;  %v23692_v19 = vld [vmem:[#allocation60_spill] sm:$0xff]  ;;  %v23694_v18 = vld [vmem:[#allocation75_spill] sm:$0xff]  ;;  %v23749_v11 = vld [vmem:[#allocation82_spill] sm:$0xff] }
  0xa9   :  { %15229 = vmatpush3.bf16.msra.mxu1 %v15226_v53  ;;  %12709 = vmatprep.mubr.f32.mxu1 %v23684_v63  ;;  %v23695_v44 = vld [vmem:[#allocation63_spill] sm:$0xff]  ;;  %v15062_v53 = vpack.c.bf16 %v18096_v49, %v18091_v56  ;;  %v15254_v56 = vpack.c.bf16 %v18138_v29, %v18109_v62  ;;  %v23700_v49 = vld [vmem:[#allocation30_spill] sm:$0xff]  ;;  %v23701_v15 = vld [vmem:[#allocation80_spill] sm:$0xff] }
  0xaa   :  { %15231 = vmatprep.subr.bf16.mxu1 %v15230_v31  ;;  %12377 = vmatmul.mubr.f32.gmra.mrb[4].mxu0 %v23685_v21  ;;  %v23706_v29 = vld [vmem:[#allocation14_spill] sm:$0xff]  ;;  %v23707_v62 = vld [vmem:[#allocation31_spill] sm:$0xff]  ;;  %v23744_v21 = vand.u32 4294901760, %v17544_v52  ;;  %v23746_v63 = vld [vmem:[#allocation25_spill] sm:$0xff]  ;;  %v23751_v52 = vand.u32 4294901760, %v17631_v23 }
  0xab   :  { %15045 = vmatpush3.bf16.msra.mxu0 %v15042_v40  ;;  %12379 = vmatprep.mubr.f32.mxu0 %v17791_v16  ;;  %v15250_v40 = vpack.c.bf16 %v18070_v55, %v18038_v8  ;;  %v23702_v8 = vld [vmem:[#allocation12_spill] sm:$0xff]  ;;  %v23743_v16 = vand.u32 4294901760, %v17539_v46  ;;  %v23750_v46 = vand.u32 4294901760, %v17626_v30  ;;  %v23758_v23 = vand.u32 4294901760, %v23707_v62 }
  0xac   :  { %12710 = vmatmul.mubr.f32.gmra.mrb[2].mxu1 %v23686_v50  ;;  %15047 = vmatprep.subr.bf16.mxu0 %v15046_v57  ;;  %v23703_v55 = vld [vmem:[#allocation32_spill] sm:$0xff]  ;;  %v23741_v50 = vld [vmem:[#allocation74_spill] sm:$0xff] }
  0xad   :  { %15233 = vmatpush3.bf16.msra.mxu1 %v15230_v31  ;;  %12712 = vmatprep.mubr.f32.mxu1 %v23687_v12  ;;  %v15058_v31 = vpack.c.bf16 %v18027_v34, %v18016_v39  ;;  %v23696_v39 = vld [vmem:[#allocation68_spill] sm:$0xff]  ;;  %v23697_v34 = vld [vmem:[#allocation77_spill] sm:$0xff]  ;;  %v23738_v12 = vld [vmem:[#allocation23_spill] sm:$0xff]  ;;  %v23754_v2 = vand.u32 4294901760, %v23703_v55 }
  0xae   :  { %15235 = vmatprep.subr.bf16.mxu1 %v15234_v3  ;;  %12380 = vmatmul.mubr.f32.gmra.mrb[6].mxu0 %v17795_v17  ;;  %v23735_v17 = vld [vmem:[#allocation66_spill] sm:$0xff] }
  0xaf   :  { %15049 = vmatpush3.bf16.msra.mxu0 %v15046_v57  ;;  %12382 = vmatprep.mubr.f32.mxu0 %v17863_v43  ;;  %v23704_v57 = vld [vmem:[#allocation38_spill] sm:$0xff] }
  0xb0   :  { %12713 = vmatmul.mubr.f32.gmra.mrb[4].mxu1 %v23688_v45  ;;  %15051 = vmatprep.subr.bf16.mxu0 %v15050_v9  ;;  %v23733_v45 = vld [vmem:[#allocation73_spill] sm:$0xff]  ;;  %v23734_v43 = vld [vmem:[#allocation78_spill] sm:$0xff]  ;;  %v23757_v30 = vand.u32 4294901760, %v23704_v57 }
  0xb1   :  { %15237 = vmatpush3.bf16.msra.mxu1 %v15234_v3  ;;  %12715 = vmatprep.mubr.f32.mxu1 %v17793_v7  ;;  %v15246_v3 = vpack.c.bf16 %v17995_v33, %v17962_v41  ;;  %v23698_v33 = vld [vmem:[#allocation72_spill] sm:$0xff]  ;;  %v23732_v7 = vld [vmem:[#allocation21_spill] sm:$0xff] }
  0xb2   :  { %15239 = vmatprep.subr.bf16.mxu1 %v15238_v14  ;;  %12383 = vmatmul.mubr.f32.gmra.mrb[8].mxu0 %v23689_v10  ;;  %v23699_v41 = vld [vmem:[#allocation76_spill] sm:$0xff] }
  0xb3   :  { %15053 = vmatpush3.bf16.msra.mxu0 %v15050_v9  ;;  %12385 = vmatprep.mubr.f32.mxu0 %v23690_v26  ;;  %v23705_v9 = vld [vmem:[#allocation89_spill] sm:$0xff]  ;;  %v23730_v26 = vld [vmem:[#allocation22_spill] sm:$0xff]  ;;  %v23731_v10 = vld [vmem:[#allocation64_spill] sm:$0xff] }
  0xb4   :  { %12716 = vmatmul.mubr.f32.gmra.mrb[6].mxu1 %v23691_v13  ;;  %15055 = vmatprep.subr.bf16.mxu0 %v15054_v47  ;;  %v23729_v13 = vld [vmem:[#allocation58_spill] sm:$0xff] }
  0xb5   :  { %15241 = vmatpush3.bf16.msra.mxu1 %v15238_v14  ;;  %12718 = vmatprep.mubr.f32.mxu1 %v23692_v19  ;;  %v23708_v14 = vld [vmem:[#allocation13_spill] sm:$0xff] }
  0xb6   :  { %15243 = vmatprep.subr.bf16.mxu1 %v15242_v6  ;;  %12386 = vmatmul.mubr.f32.gmra.mrb[10].mxu0 %v23693_v51  ;;  %v23727_v51 = vld [vmem:[#allocation65_spill] sm:$0xff] }
  0xb7   :  { %15057 = vmatpush3.bf16.msra.mxu0 %v15054_v47  ;;  %12388 = vmatprep.mubr.f32.mxu0 %v23694_v18  ;;  %v23709_v47 = vld [vmem:[#allocation41_spill] sm:$0xff]  ;;  %v23726_v18 = vld [vmem:[#allocation19_spill] sm:$0xff] }
  0xb8   :  { %12719 = vmatmul.mubr.f32.gmra.mrb[8].mxu1 %v23695_v44  ;;  %15059 = vmatprep.subr.bf16.mxu0 %v15058_v31  ;;  %v23725_v44 = vld [vmem:[#allocation55_spill] sm:$0xff]  ;;  %v23728_v19 = vld [vmem:[#allocation69_spill] sm:$0xff] }
  0xb9   :  { %15245 = vmatpush3.bf16.msra.mxu1 %v15242_v6  ;;  %12721 = vmatprep.mubr.f32.mxu1 %v23696_v39  ;;  %v23710_v6 = vld [vmem:[#allocation46_spill] sm:$0xff]  ;;  %v23724_v39 = vld [vmem:[#allocation20_spill] sm:$0xff] }
  0xba   :  { %15247 = vmatprep.subr.bf16.mxu1 %v15246_v3  ;;  %12389 = vmatmul.mubr.f32.gmra.mrb[12].mxu0 %v23697_v34  ;;  %v23723_v34 = vld [vmem:[#allocation50_spill] sm:$0xff] }
  0xbb   :  { %15061 = vmatpush3.bf16.msra.mxu0 %v15058_v31  ;;  %12391 = vmatprep.mubr.f32.mxu0 %v18076_v4  ;;  %v23711_v31 = vld [vmem:[#allocation34_spill] sm:$0xff] }
  0xbc   :  { %12722 = vmatmul.mubr.f32.gmra.mrb[10].mxu1 %v23698_v33  ;;  %15063 = vmatprep.subr.bf16.mxu0 %v15062_v53  ;;  %v23721_v33 = vld [vmem:[#allocation57_spill] sm:$0xff]  ;;  %v23722_v4 = vld [vmem:[#allocation62_spill] sm:$0xff] }
  0xbd   :  { %15249 = vmatpush3.bf16.msra.mxu1 %v15246_v3  ;;  %12724 = vmatprep.mubr.f32.mxu1 %v23699_v41  ;;  %v23712_v3 = vld [vmem:[#allocation16_spill] sm:$0xff]  ;;  %v23720_v41 = vld [vmem:[#allocation17_spill] sm:$0xff] }
  0xbe   :  { %15251 = vmatprep.subr.bf16.mxu1 %v15250_v40  ;;  %12392 = vmatmul.mubr.f32.gmra.mrb[14].mxu0 %v18080_v25  ;;  %v23719_v25 = vld [vmem:[#allocation48_spill] sm:$0xff] }
  0xbf   :  { %15065 = vmatpush3.bf16.msra.mxu0 %v15062_v53  ;;  %12426 = vmatprep.mubr.f32.mxu0 %v23700_v49  ;;  %v23713_v53 = vld [vmem:[#allocation39_spill] sm:$0xff] }
  0xc0   :  { %12725 = vmatmul.mubr.f32.gmra.mrb[12].mxu1 %v23701_v15  ;;  %15067 = vmatprep.subr.bf16.mxu0 %v23702_v8  ;;  %v23718_v15 = vld [vmem:[#allocation18_spill] sm:$0xff] }
  0xc1   :  { %15253 = vmatpush3.bf16.msra.mxu1 %v15250_v40  ;;  %12727 = vmatprep.mubr.f32.mxu1 %v18078_v48  ;;  %v23714_v40 = vld [vmem:[#allocation15_spill] sm:$0xff]  ;;  %v23717_v48 = vld [vmem:[#allocation42_spill] sm:$0xff] }
  0xc2   :  { %15255 = vmatprep.subr.bf16.mxu1 %v15254_v56  ;;  %12427 = vmatmul.mubr.f32.vlgmr.msra.gmra.mrb[0].mxu0 %v23703_v55 }
  0xc3   :  { %15069 = vmatpush3.bf16.msra.mxu0 %v23702_v8  ;;  %12429 = vmatprep.mubr.f32.mxu0 %v23704_v57  ;;  %v23762_v57 = vand.u32 4294901760, %v23710_v6 }
  0xc4   :  { %12728 = vmatmul.mubr.f32.gmra.mrb[14].mxu1 %v23705_v9  ;;  %15071 = vmatprep.subr.bf16.mxu0 %v23706_v29  ;;  %v23716_v9 = vld [vmem:[#allocation54_spill] sm:$0xff] }
  0xc5   :  { %15257 = vmatpush3.bf16.msra.mxu1 %v15254_v56  ;;  %12762 = vmatprep.mubr.f32.mxu1 %v23707_v62  ;;  %v23715_v56 = vld [vmem:[#allocation49_spill] sm:$0xff]  ;;  %v23764_v62 = vand.u32 4294901760, %v23713_v53 }
  0xc6   :  { %15259 = vmatprep.subr.bf16.mxu1 %v23708_v14  ;;  %12430 = vmatmul.mubr.f32.gmra.mrb[2].mxu0 %v23709_v47 }
  0xc7   :  { %15073 = vmatpush3.bf16.msra.mxu0 %v23706_v29  ;;  %12432 = vmatprep.mubr.f32.mxu0 %v23710_v6  ;;  %v23769_v6 = vand.u32 4294901760, %v23721_v33 }
  0xc8   :  { %12763 = vmatmul.mubr.f32.vlgmr.msra.gmra.mrb[0].mxu1 %v23711_v31  ;;  %15075 = vmatprep.subr.bf16.mxu0 %v23712_v3 }
  0xc9   :  { %15261 = vmatpush3.bf16.msra.mxu1 %v23708_v14  ;;  %12765 = vmatprep.mubr.f32.mxu1 %v23713_v53 }
  0xca   :  { %15263 = vmatprep.subr.bf16.mxu1 %v23714_v40  ;;  %12433 = vmatmul.mubr.f32.gmra.mrb[4].mxu0 %v23715_v56 }
  0xcb   :  { %15077 = vmatpush3.bf16.msra.mxu0 %v23712_v3  ;;  %12435 = vmatprep.mubr.f32.mxu0 %v23716_v9  ;;  %v23747_v3 = vld [vmem:[#allocation88_spill] sm:$0xff] }
  0xcc   :  { %12766 = vmatmul.mubr.f32.gmra.mrb[2].mxu1 %v23717_v48  ;;  %15079 = vmatprep.subr.bf16.mxu0 %v23718_v15 }
  0xcd   :  { %15265 = vmatpush3.bf16.msra.mxu1 %v23714_v40  ;;  %12768 = vmatprep.mubr.f32.mxu1 %v23719_v25  ;;  %v15098_v40 = vpack.c.bf16 %v23744_v21, %v23743_v16  ;;  %v15102_v16 = vpack.c.bf16 %v23751_v52, %v23750_v46  ;;  %v23752_v21 = vld [vmem:[#allocation87_spill] sm:$0xff] }
  0xce   :  { %15267 = vmatprep.subr.bf16.mxu1 %v23720_v41  ;;  %12436 = vmatmul.mubr.f32.gmra.mrb[6].mxu0 %v23721_v33  ;;  %v18453_v33 = vld [vmem:[#allocation7 + $0x128] sm:$0xff]  ;;  %v23787_v53 = vand.u32 4294901760, %v23752_v21  ;;  %v18471_v52 = vld [vmem:[#allocation7 + $0x138] sm:$0xff] }
  0xcf   :  { %15081 = vmatpush3.bf16.msra.mxu0 %v23718_v15  ;;  %12438 = vmatprep.mubr.f32.mxu0 %v23722_v4  ;;  %v23740_v15 = vld [vmem:[#allocation86_spill] sm:$0xff] }
  0xd0   :  { %12769 = vmatmul.mubr.f32.gmra.mrb[4].mxu1 %v23723_v34  ;;  %15083 = vmatprep.subr.bf16.mxu0 %v23724_v39 }
  0xd1   :  { %15269 = vmatpush3.bf16.msra.mxu1 %v23720_v41  ;;  %12771 = vmatprep.mubr.f32.mxu1 %v23725_v44  ;;  %v23737_v41 = vld [vmem:[#allocation71_spill] sm:$0xff] }
  0xd2   :  { %15271 = vmatprep.subr.bf16.mxu1 %v23726_v18  ;;  %12439 = vmatmul.mubr.f32.gmra.mrb[8].mxu0 %v23727_v51 }
  0xd3   :  { %15085 = vmatpush3.bf16.msra.mxu0 %v23724_v39  ;;  %12441 = vmatprep.mubr.f32.mxu0 %v23728_v19  ;;  %v23736_v39 = vld [vmem:[#allocation24_spill] sm:$0xff] }
  0xd4   :  { %12772 = vmatmul.mubr.f32.gmra.mrb[6].mxu1 %v23729_v13  ;;  %15087 = vmatprep.subr.bf16.mxu0 %v23730_v26 }
  0xd5   :  { %15273 = vmatpush3.bf16.msra.mxu1 %v23726_v18  ;;  %12774 = vmatprep.mubr.f32.mxu1 %v23731_v10  ;;  %v23739_v18 = vld [vmem:[#allocation81_spill] sm:$0xff] }
  0xd6   :  { %15275 = vmatprep.subr.bf16.mxu1 %v23732_v7  ;;  %12442 = vmatmul.mubr.f32.gmra.mrb[10].mxu0 %v23733_v45 }
  0xd7   :  { %15089 = vmatpush3.bf16.msra.mxu0 %v23730_v26  ;;  %12444 = vmatprep.mubr.f32.mxu0 %v23734_v43  ;;  %v23742_v26 = vld [vmem:[#allocation26_spill] sm:$0xff] }
  0xd8   :  { %12775 = vmatmul.mubr.f32.gmra.mrb[8].mxu1 %v23735_v17  ;;  %15091 = vmatprep.subr.bf16.mxu0 %v23736_v39 }
  0xd9   :  { %15277 = vmatpush3.bf16.msra.mxu1 %v23732_v7  ;;  %12777 = vmatprep.mubr.f32.mxu1 %v23737_v41  ;;  %v23745_v7 = vld [vmem:[#allocation79_spill] sm:$0xff] }
  0xda   :  { %15279 = vmatprep.subr.bf16.mxu1 %v23738_v12  ;;  %12445 = vmatmul.mubr.f32.gmra.mrb[12].mxu0 %v23739_v18 }
  0xdb   :  { %15093 = vmatpush3.bf16.msra.mxu0 %v23736_v39  ;;  %12447 = vmatprep.mubr.f32.mxu0 %v23740_v15  ;;  %v23748_v39 = vand.u32 4294901760, %v23700_v49  ;;  %v23755_v49 = vand.u32 4294901760, %v17559_v0  ;;  %v23760_v0 = vand.u32 4294901760, %v17652_v1  ;;  %v23766_v1 = vand.u32 4294901760, %v23716_v9 }
  0xdc   :  { %12778 = vmatmul.mubr.f32.gmra.mrb[10].mxu1 %v23741_v50  ;;  %15095 = vmatprep.subr.bf16.mxu0 %v23742_v26  ;;  %v23771_v9 = vand.u32 4294901760, %v23723_v34  ;;  %v18445_v34 = vld [vmem:[#allocation7 + $0x190] sm:$0xff] }
  0xdd   :  { %15281 = vmatpush3.bf16.msra.mxu1 %v23738_v12  ;;  %12780 = vmatprep.mubr.f32.mxu1 %v23745_v7  ;;  %v23753_v12 = vld [vmem:[#allocation29_spill] sm:$0xff] }
  0xde   :  { %15283 = vmatprep.subr.bf16.mxu1 %v23746_v63  ;;  %12448 = vmatmul.mubr.f32.gmra.mrb[14].mxu0 %v23747_v3 }
  0xdf   :  { %15097 = vmatpush3.bf16.msra.mxu0 %v23742_v26  ;;  %12482 = vmatprep.mubr.f32.mxu0 %v23748_v39  ;;  %v23756_v39 = vand.u32 4294901760, %v17568_v24  ;;  %v23761_v24 = vand.u32 4294901760, %v17663_v37  ;;  %v23767_v37 = vand.u32 4294901760, %v23717_v48  ;;  %v23772_v48 = vand.u32 4294901760, %v23725_v44  ;;  %v18443_v44 = vld [vmem:[#allocation7 + $0x118] sm:$0xff] }
  0xe0   :  { %12781 = vmatmul.mubr.f32.gmra.mrb[12].mxu1 %v23749_v11  ;;  %15099 = vmatprep.subr.bf16.mxu0 %v15098_v40 }
  0xe1   :  { %15285 = vmatpush3.bf16.msra.mxu1 %v23746_v63  ;;  %12783 = vmatprep.mubr.f32.mxu1 %v23752_v21  ;;  %v15290_v26 = vpack.c.bf16 %v23756_v39, %v23755_v49  ;;  %v15294_v55 = vpack.c.bf16 %v23761_v24, %v23760_v0  ;;  %v18475_v49 = vld [vmem:[#allocation7 + $0x1b8] sm:$0xff]  ;;  %v23788_v39 = vld [vmem:[#allocation28_spill] sm:$0xff]  ;;  %v22787_v21 = vand.u32 4294901760, %v18443_v44 }
  0xe2   :  { %15287 = vmatprep.subr.bf16.mxu1 %v23753_v12  ;;  %12483 = vmatmul.mubr.f32.vlgmr.msra.gmra.mrb[0].mxu0 %v23754_v2  ;;  %v23759_v2 = vand.u32 4294901760, %v23709_v47  ;;  %v23765_v47 = vand.u32 4294901760, %v23715_v56  ;;  %v23789_v0 = vld [vmem:[#allocation35_spill] sm:$0xff] }
  0xe3   :  { %15101 = vmatpush3.bf16.msra.mxu0 %v15098_v40  ;;  %12485 = vmatprep.mubr.f32.mxu0 %v23757_v30  ;;  %v23763_v40 = vand.u32 4294901760, %v23711_v31  ;;  %v18459_v31 = vld [vmem:[#allocation7 + $0x1a0] sm:$0xff]  ;;  %v22786_v30 = vand.u32 4294901760, %v18445_v34 }
  0xe4   :  { %12784 = vmatmul.mubr.f32.gmra.mrb[14].mxu1 %v18117_v35  ;;  %15103 = vmatprep.subr.bf16.mxu0 %v15102_v16 }
  0xe5   :  { %15289 = vmatpush3.bf16.msra.mxu1 %v23753_v12  ;;  %12818 = vmatprep.mubr.f32.mxu1 %v23758_v23 }
  0xe6   :  { %15291 = vmatprep.subr.bf16.mxu1 %v15290_v26  ;;  %12486 = vmatmul.mubr.f32.gmra.mrb[2].mxu0 %v23759_v2  ;;  %v88_v2 = vld [vmem:[#allocation2 + $0x100] sm:$0xff] }
  0xe7   :  { %15105 = vmatpush3.bf16.msra.mxu0 %v15102_v16  ;;  %12488 = vmatprep.mubr.f32.mxu0 %v23762_v57  ;;  %v18473_v16 = vld [vmem:[#allocation7 + $0x1b0] sm:$0xff]  ;;  %v22783_v57 = vand.u32 4294901760, %v18459_v31 }
  0xe8   :  { %12819 = vmatmul.mubr.f32.vlgmr.msra.gmra.mrb[0].mxu1 %v23763_v40  ;;  %15107 = vmatprep.subr.bf16.mxu0 %v18165_v28 }
  0xe9   :  { %15293 = vmatpush3.bf16.msra.mxu1 %v15290_v26  ;;  %12821 = vmatprep.mubr.f32.mxu1 %v23764_v62  ;;  %v23768_v26 = vand.u32 4294901760, %v23719_v25  ;;  %v23773_v25 = vand.u32 4294901760, %v23727_v51  ;;  %v23777_v51 = vand.u32 4294901760, %v23733_v45  ;;  %v23781_v45 = vand.u32 4294901760, %v23739_v18  ;;  %v18441_v18 = vld [vmem:[#allocation7 + $0x110] sm:$0xff]  ;;  %v104_v62 = vld [vmem:[#allocation2 + $0x180] sm:$0xff] }
  0xea   :  { %15295 = vmatprep.subr.bf16.mxu1 %v15294_v55  ;;  %12489 = vmatmul.mubr.f32.gmra.mrb[4].mxu0 %v23765_v47  ;;  %v23790_v47 = vand.u32 4294901760, %v18117_v35 }
  0xeb   :  { %15109 = vmatpush3.bf16.msra.mxu0 %v18165_v28  ;;  %12491 = vmatprep.mubr.f32.mxu0 %v23766_v1  ;;  %v23770_v28 = vand.u32 4294901760, %v23722_v4  ;;  %v23774_v4 = vand.u32 4294901760, %v23728_v19  ;;  %v18434_v19 = vld [vmem:[#allocation7 + $0x180] sm:$0xff] }
  0xec   :  { %12822 = vmatmul.mubr.f32.gmra.mrb[2].mxu1 %v23767_v37  ;;  %15111 = vmatprep.subr.bf16.mxu0 %v18177_v59  ;;  %v22793_v37 = vand.u32 4294901760, %v18473_v16 }
  0xed   :  { %15297 = vmatpush3.bf16.msra.mxu1 %v15294_v55  ;;  %12824 = vmatprep.mubr.f32.mxu1 %v23768_v26  ;;  %v22781_v55 = vand.u32 4294901760, %v18453_v33  ;;  %v22792_v26 = vand.u32 4294901760, %v18475_v49 }
  0xee   :  { %15299 = vmatprep.subr.bf16.mxu1 %v18171_v61  ;;  %12492 = vmatmul.mubr.f32.gmra.mrb[6].mxu0 %v23769_v6  ;;  %v18496_v6 = vld [vmem:[#allocation7 + $0x140] sm:$0xff] }
  0xef   :  { %15113 = vmatpush3.bf16.msra.mxu0 %v18177_v59  ;;  %12494 = vmatprep.mubr.f32.mxu0 %v23770_v28  ;;  %v23775_v59 = vand.u32 4294901760, %v23729_v13  ;;  %v23779_v13 = vand.u32 4294901760, %v23735_v17  ;;  %v23783_v17 = vand.u32 4294901760, %v23741_v50  ;;  %v23785_v50 = vand.u32 4294901760, %v23747_v3  ;;  %v18461_v3 = vld [vmem:[#allocation7 + $0x1a8] sm:$0xff]  ;;  %23791 = vst [vmem:[#allocation37_spill] sm:$0xff] %v18496_v6 }
  0xf0   :  { %12825 = vmatmul.mubr.f32.gmra.mrb[4].mxu1 %v23771_v9  ;;  %15115 = vmatprep.subr.bf16.mxu0 %v18189_v20  ;;  %v22782_v40 = vand.u32 4294901760, %v18461_v3  ;;  %v18498_v28 = vld [vmem:[#allocation7 + $0x148] sm:$0xff]  ;;  %v23793_v9 = vld [vmem:[#allocation27_spill] sm:$0xff] }
  0xf1   :  { %15301 = vmatpush3.bf16.msra.mxu1 %v18171_v61  ;;  %12827 = vmatprep.mubr.f32.mxu1 %v23772_v48  ;;  %v23776_v61 = vand.u32 4294901760, %v23731_v10  ;;  %v18432_v10 = vld [vmem:[#allocation7 + $0x108] sm:$0xff]  ;;  %23792 = vst [vmem:[#allocation30_spill] sm:$0xff] %v18498_v28  ;;  %v18508_v48 = vld [vmem:[#allocation7 + $0x1c0] sm:$0xff] }
  0xf2   :  { %15303 = vmatprep.subr.bf16.mxu1 %v18183_v32  ;;  %12495 = vmatmul.mubr.f32.gmra.mrb[8].mxu0 %v23773_v25  ;;  %v22795_v56 = vand.u32 4294901760, %v18432_v10  ;;  %23795 = vst [vmem:[#allocation32_spill] sm:$0xff] %v18508_v48  ;;  %v18510_v25 = vand.u32 4294901760, %v88_v2 }
  0xf3   :  { %15117 = vmatpush3.bf16.msra.mxu0 %v18189_v20  ;;  %12497 = vmatprep.mubr.f32.mxu0 %v23774_v4  ;;  %v23778_v20 = vand.u32 4294901760, %v23734_v43  ;;  %v23782_v43 = vand.u32 4294901760, %v23740_v15  ;;  %v89_v4 = vld [vmem:[#allocation2 + $0x108] sm:$0xff] }
  0xf4   :  { %12828 = vmatmul.mubr.f32.gmra.mrb[6].mxu1 %v23775_v59  ;;  %15119 = vmatprep.subr.bf16.mxu0 %v18201_v54  ;;  %23796 = vst [vmem:[#allocation38_spill] sm:$0xff] %v18510_v25 }
  0xf5   :  { %15305 = vmatpush3.bf16.msra.mxu1 %v18183_v32  ;;  %12830 = vmatprep.mubr.f32.mxu1 %v23776_v61  ;;  %v23780_v32 = vand.u32 4294901760, %v23737_v41  ;;  %v23786_v41 = vand.u32 4294901760, %v23749_v11  ;;  %v22794_v11 = vand.u32 4294901760, %v18434_v19 }
  0xf6   :  { %15307 = vmatprep.subr.bf16.mxu1 %v18195_v42  ;;  %12498 = vmatmul.mubr.f32.gmra.mrb[10].mxu0 %v23777_v51  ;;  %v18532_v51 = vld [vmem:[#allocation7 + $0x1c8] sm:$0xff] }
  0xf7   :  { %15121 = vmatpush3.bf16.msra.mxu0 %v18201_v54  ;;  %12500 = vmatprep.mubr.f32.mxu0 %v23778_v20  ;;  %v18427_v54 = vld [vmem:[#allocation7 + $0x100] sm:$0xff]  ;;  %23800 = vst [vmem:[#allocation41_spill] sm:$0xff] %v18532_v51  ;;  %v18534_v20 = vld [vmem:[#allocation7 + $0x150] sm:$0xff] }
  0xf8   :  { %12831 = vmatmul.mubr.f32.gmra.mrb[8].mxu1 %v23779_v13  ;;  %15123 = vmatprep.subr.bf16.mxu0 %v18213_v5  ;;  %v22796_v15 = vand.u32 4294901760, %v18427_v54  ;;  %23801 = vst [vmem:[#allocation46_spill] sm:$0xff] %v18534_v20  ;;  %v18536_v13 = vld [vmem:[#allocation7 + $0x158] sm:$0xff] }
  0xf9   :  { %15309 = vmatpush3.bf16.msra.mxu1 %v18195_v42  ;;  %12833 = vmatprep.mubr.f32.mxu1 %v23780_v32  ;;  %v23784_v42 = vand.u32 4294901760, %v23745_v7  ;;  %v18451_v7 = vld [vmem:[#allocation7 + $0x120] sm:$0xff]  ;;  %23802 = vst [vmem:[#allocation34_spill] sm:$0xff] %v18536_v13  ;;  %v18538_v32 = vand.u32 4294901760, %v104_v62 }
  0xfa   :  { %15311 = vmatprep.subr.bf16.mxu1 %v18207_v38  ;;  %12501 = vmatmul.mubr.f32.gmra.mrb[12].mxu0 %v23781_v45  ;;  %v22784_v24 = vand.u32 4294901760, %v18451_v7  ;;  %v18506_v35 = vpack.c.bf16 %v22795_v56, %v22796_v15  ;;  %v23804_v45 = vld [vmem:[#allocation43_spill] sm:$0xff]  ;;  %v23821_v56 = vld [vmem:[#allocation45_spill] sm:$0xff] }
  0xfb   :  { %15125 = vmatpush3.bf16.msra.mxu0 %v18213_v5  ;;  %12503 = vmatprep.mubr.f32.mxu0 %v23782_v43  ;;  %v18436_v5 = vld [vmem:[#allocation7 + $0x188] sm:$0xff]  ;;  %23803 = vst [vmem:[#allocation39_spill] sm:$0xff] %v18538_v32 }
  0xfc   :  { %12834 = vmatmul.mubr.f32.gmra.mrb[10].mxu1 %v23783_v17  ;;  %15127 = vmatprep.subr.bf16.mxu0 %v18224_v60  ;;  %v22791_v46 = vand.u32 4294901760, %v18436_v5  ;;  %23794 = vst [vmem:[#allocation12_spill] sm:$0xff] %v18506_v35  ;;  %v18546_v43 = vpack.c.bf16 %v22781_v55, %v22784_v24  ;;  %v18552_v17 = vpack.c.bf16 %v22782_v40, %v22783_v57  ;;  %v23811_v55 = vld [vmem:[#allocation16_spill] sm:$0xff]  ;;  %v23820_v24 = vld [vmem:[#allocation15_spill] sm:$0xff] }
  0xfd   :  { %15313 = vmatpush3.bf16.msra.mxu1 %v18207_v38  ;;  %12836 = vmatprep.mubr.f32.mxu1 %v23784_v42  ;;  %v18449_v38 = vld [vmem:[#allocation7 + $0x198] sm:$0xff]  ;;  %v18574_v57 = vpack.c.bf16 %v22792_v26, %v22793_v37  ;;  %v18591_v37 = vsub.f32 %v88_v2, %v18510_v25  ;;  %v18598_v42 = vld [vmem:[#allocation7 + $0x170] sm:$0xff]  ;;  %v23825_v26 = vand.u32 4294901760, %v18496_v6  ;;  %v23840_v6 = vand.u32 4294901760, %v18508_v48 }
  0xfe   :  { %15315 = vmatprep.subr.bf16.mxu1 %v18219_v27  ;;  %12504 = vmatmul.mubr.f32.gmra.mrb[14].mxu0 %v23785_v50  ;;  %v22785_v23 = vand.u32 4294901760, %v18449_v38  ;;  %23805 = vst [vmem:[#allocation49_spill] sm:$0xff] %v18546_v43  ;;  %23806 = vst [vmem:[#allocation54_spill] sm:$0xff] %v18552_v17  ;;  %v23824_v2 = vld [vmem:[#allocation51_spill] sm:$0xff]  ;;  %v23832_v17 = vld [vmem:[#allocation18_spill] sm:$0xff]  ;;  %v23836_v50 = vand.u32 4294901760, %v18432_v10 }
  0xff   :  { %15129 = vmatpush3.bf16.msra.mxu0 %v18224_v60  ;;  %12538 = vmatprep.mubr.f32.mxu0 %v17508_v58  ;;  %v18463_v60 = vld [vmem:[#allocation7 + $0x130] sm:$0xff]  ;;  %23813 = vst [vmem:[#allocation50_spill] sm:$0xff] %v18574_v57  ;;  %23819 = vst [vmem:[#allocation64_spill] sm:$0xff] %v18591_v37  ;;  %v18614_v57 = vld [vmem:[#allocation7 + $0x178] sm:$0xff] }
 0x100   :  { %12837 = vmatmul.mubr.f32.gmra.mrb[12].mxu1 %v23786_v41  ;;  %15131 = vmatprep.subr.bf16.mxu0 %v23702_v8  ;;  %v22790_v1 = vand.u32 4294901760, %v18463_v60  ;;  %v18530_v61 = vpack.c.bf16 %v22785_v23, %v22786_v30  ;;  %v18556_v41 = vld [vmem:[#allocation7 + $0x1d0] sm:$0xff]  ;;  %v18577_v23 = vld [vmem:[#allocation7 + $0x168] sm:$0xff]  ;;  %v18579_v30 = vld [vmem:[#allocation7 + $0x1e0] sm:$0xff]  ;;  %23822 = vst [vmem:[#allocation73_spill] sm:$0xff] %v18598_v42 }
 0x101   :  { %15317 = vmatpush3.bf16.msra.mxu1 %v18219_v27  ;;  %12839 = vmatprep.mubr.f32.mxu1 %v23787_v53  ;;  %v22788_v27 = vand.u32 4294901760, %v18441_v18  ;;  %23807 = vst [vmem:[#allocation42_spill] sm:$0xff] %v18556_v41  ;;  %v18560_v53 = vld [vmem:[#allocation7 + $0x160] sm:$0xff]  ;;  %23814 = vst [vmem:[#allocation55_spill] sm:$0xff] %v18577_v23  ;;  %v23853_v48 = vand.u32 4294901760, %v18577_v23 }
 0x102   :  { %15319 = vmatprep.subr.bf16.mxu1 %v18226_v36  ;;  %12539 = vmatmul.mubr.f32.vlgmr.msra.gmra.mrb[0].mxu0 %v23788_v39  ;;  %23799 = vst [vmem:[#allocation13_spill] sm:$0xff] %v18530_v61  ;;  %23809 = vst [vmem:[#allocation57_spill] sm:$0xff] %v18560_v53 }
 0x103   :  { %15133 = vmatpush3.bf16.msra.mxu0 %v23702_v8  ;;  %12541 = vmatprep.mubr.f32.mxu0 %v23789_v0  ;;  %v22789_v8 = vand.u32 4294901760, %v18471_v52  ;;  %v18524_v59 = vpack.c.bf16 %v22787_v21, %v22788_v27  ;;  %23815 = vst [vmem:[#allocation65_spill] sm:$0xff] %v18579_v30  ;;  %v18581_v21 = vld [vmem:[#allocation7 + $0x1e8] sm:$0xff]  ;;  %v18583_v27 = vand.u32 4294901760, %v89_v4  ;;  %23828 = vst [vmem:[#allocation71_spill] sm:$0xff] %v18614_v57 }
 0x104   :  { %12840 = vmatmul.mubr.f32.gmra.mrb[14].mxu1 %v23790_v47  ;;  %15135 = vmatprep.subr.bf16.mxu0 %v23706_v29  ;;  %v23810_v47 = vld [vmem:[#allocation33_spill] sm:$0xff]  ;;  %23816 = vst [vmem:[#allocation69_spill] sm:$0xff] %v18581_v21 }
 0x105   :  { %15321 = vmatpush3.bf16.msra.mxu1 %v18226_v36  ;;  %12874 = vmatprep.mubr.f32.mxu1 %v23793_v9  ;;  %v18518_v36 = vpack.c.bf16 %v22791_v46, %v22794_v11  ;;  %23798 = vst [vmem:[#allocation31_spill] sm:$0xff] %v18524_v59  ;;  %v18568_v40 = vpack.c.bf16 %v22789_v8, %v22790_v1  ;;  %23817 = vst [vmem:[#allocation58_spill] sm:$0xff] %v18583_v27  ;;  %v23818_v8 = vld [vmem:[#allocation36_spill] sm:$0xff]  ;;  %v105_v11 = vld [vmem:[#allocation2 + $0x188] sm:$0xff]  ;;  %v23826_v1 = vand.u32 4294901760, %v18498_v28 }
 0x106   :  { %15323 = vmatprep.subr.bf16.mxu1 %v23708_v14  ;;  %12542 = vmatmul.mubr.f32.gmra.mrb[2].mxu0 %v23680_v22  ;;  %v18601_v46 = vsub.f32 %v104_v62, %v18538_v32  ;;  %v18616_v62 = vld [vmem:[#allocation7 + $0x1f0] sm:$0xff]  ;;  %v18618_v32 = vld [vmem:[#allocation7 + $0x1f8] sm:$0xff]  ;;  %v18623_v28 = vsub.f32 %v89_v4, %v18583_v27  ;;  %v18635_v15 = vand.u32 4294901760, %v105_v11  ;;  %v23841_v4 = vand.u32 4294901760, %v18532_v51 }
 0x107   :  { %23797 = vst [vmem:[#allocation14_spill] sm:$0xff] %v18518_v36  ;;  %15137 = vmatpush3.bf16.msra.mxu0 %v23706_v29  ;;  %12544 = vmatprep.mubr.f32.mxu0 %v23804_v45  ;;  %v18558_v29 = vld [vmem:[#allocation7 + $0x1d8] sm:$0xff]  ;;  %23812 = vst [vmem:[#allocation62_spill] sm:$0xff] %v18568_v40  ;;  %v18609_v25 = vpack.c.bf16 %v23826_v1, %v23825_v26  ;;  %v23834_v1 = vand.u32 4294901760, %v18427_v54 }
 0x108   :  { %23808 = vst [vmem:[#allocation48_spill] sm:$0xff] %v18558_v29  ;;  %12875 = vmatmul.mubr.f32.vlgmr.msra.gmra.mrb[0].mxu1 %v23810_v47  ;;  %15139 = vmatprep.subr.bf16.mxu0 %v23811_v55  ;;  %23823 = vst [vmem:[#allocation78_spill] sm:$0xff] %v18601_v46  ;;  %v18643_v27 = vpack.c.bf16 %v23841_v4, %v23840_v6  ;;  %v23855_v6 = vand.u32 4294901760, %v18579_v30  ;;  %v23856_v4 = vand.u32 4294901760, %v18581_v21  ;;  %v23878_v21 = vld [vmem:[#allocation67_spill] sm:$0xff]  ;;  %v23892_v30 = vld [vmem:[#allocation60_spill] sm:$0xff] }
 0x109   :  { %15325 = vmatpush3.bf16.msra.mxu1 %v23708_v14  ;;  %12877 = vmatprep.mubr.f32.mxu1 %v23818_v8  ;;  %23827 = vst [vmem:[#allocation66_spill] sm:$0xff] %v18609_v25  ;;  %23829 = vst [vmem:[#allocation81_spill] sm:$0xff] %v18616_v62  ;;  %v18628_v26 = vsub.f32 %v18427_v54, %v23834_v1  ;;  %v18633_v14 = vsub.f32 %v18432_v10, %v23836_v50  ;;  %v23839_v25 = vld [vmem:[#allocation44_spill] sm:$0xff]  ;;  %v23843_v54 = vand.u32 4294901760, %v18534_v20 }
 0x10a   :  { %15327 = vmatprep.subr.bf16.mxu1 %v23820_v24  ;;  %12545 = vmatmul.mubr.f32.gmra.mrb[4].mxu0 %v23821_v56  ;;  %23830 = vst [vmem:[#allocation86_spill] sm:$0xff] %v18618_v32  ;;  %23833 = vst [vmem:[#allocation74_spill] sm:$0xff] %v18623_v28  ;;  %v23844_v1 = vand.u32 4294901760, %v18536_v13  ;;  %v23850_v10 = vand.u32 4294901760, %v18558_v29  ;;  %v23852_v13 = vand.u32 4294901760, %v18560_v53  ;;  %v18677_v51 = vpack.c.bf16 %v23856_v4, %v23855_v6  ;;  %v23861_v53 = vld [vmem:[#allocation52_spill] sm:$0xff] }
 0x10b   :  { %15141 = vmatpush3.bf16.msra.mxu0 %v23811_v55  ;;  %12547 = vmatprep.mubr.f32.mxu0 %v23824_v2  ;;  %v23831_v55 = vld [vmem:[#allocation40_spill] sm:$0xff]  ;;  %23835 = vst [vmem:[#allocation79_spill] sm:$0xff] %v18628_v26  ;;  %23837 = vst [vmem:[#allocation25_spill] sm:$0xff] %v18633_v14  ;;  %v18685_v23 = vsub.f32 %v105_v11, %v18635_v15  ;;  %v23862_v6 = vand.u32 4294901760, %v18591_v37  ;;  %v23864_v29 = vand.u32 4294901760, %v18434_v19 }
 0x10c   :  { %12878 = vmatmul.mubr.f32.gmra.mrb[2].mxu1 %v23831_v55  ;;  %15143 = vmatprep.subr.bf16.mxu0 %v23832_v17  ;;  %23838 = vst [vmem:[#allocation88_spill] sm:$0xff] %v18635_v15  ;;  %23842 = vst [vmem:[#allocation82_spill] sm:$0xff] %v18643_v27  ;;  %v18649_v40 = vpack.c.bf16 %v23844_v1, %v23843_v54  ;;  %v23846_v55 = vld [vmem:[#allocation17_spill] sm:$0xff]  ;;  %v23848_v54 = vld [vmem:[#allocation59_spill] sm:$0xff]  ;;  %v23849_v1 = vand.u32 4294901760, %v18556_v41  ;;  %v18671_v20 = vpack.c.bf16 %v23853_v48, %v23852_v13 }
 0x10d   :  { %15329 = vmatpush3.bf16.msra.mxu1 %v23820_v24  ;;  %12880 = vmatprep.mubr.f32.mxu1 %v23839_v25  ;;  %v23847_v24 = vld [vmem:[#allocation53_spill] sm:$0xff]  ;;  %23857 = vst [vmem:[#allocation35_spill] sm:$0xff] %v18677_v51  ;;  %v23859_v27 = vld [vmem:[#allocation20_spill] sm:$0xff]  ;;  %23860 = vst [vmem:[#allocation27_spill] sm:$0xff] %v18685_v23  ;;  %v18692_v4 = vsub.f32 %v18591_v37, %v23862_v6  ;;  %v23870_v51 = vand.u32 4294901760, %v18598_v42  ;;  %v23871_v6 = vand.u32 4294901760, %v18614_v57 }
 0x10e   :  { %23845 = vst [vmem:[#allocation87_spill] sm:$0xff] %v18649_v40  ;;  %15331 = vmatprep.subr.bf16.mxu1 %v23846_v55  ;;  %12548 = vmatmul.mubr.f32.gmra.mrb[6].mxu0 %v23847_v24  ;;  %v18665_v50 = vpack.c.bf16 %v23850_v10, %v23849_v1  ;;  %23854 = vst [vmem:[#allocation28_spill] sm:$0xff] %v18671_v20  ;;  %v90_v48 = vld [vmem:[#allocation2 + $0x110] sm:$0xff]  ;;  %v18697_v10 = vsub.f32 %v18434_v19, %v23864_v29  ;;  %v23866_v1 = vand.u32 4294901760, %v18436_v5  ;;  %v91_v15 = vld [vmem:[#allocation2 + $0x118] sm:$0xff] }
 0x10f   :  { %15145 = vmatpush3.bf16.msra.mxu0 %v23832_v17  ;;  %12550 = vmatprep.mubr.f32.mxu0 %v23848_v54  ;;  %v23858_v17 = vld [vmem:[#allocation47_spill] sm:$0xff]  ;;  %v106_v13 = vld [vmem:[#allocation2 + $0x190] sm:$0xff]  ;;  %23863 = vst [vmem:[#allocation43_spill] sm:$0xff] %v18692_v4  ;;  %v18710_v37 = vpack.c.bf16 %v23871_v6, %v23870_v51  ;;  %v23874_v19 = vand.u32 4294901760, %v18618_v32  ;;  %v18725_v42 = vand.u32 4294901760, %v90_v48  ;;  %v23881_v51 = vand.u32 4294901760, %v18441_v18 }
 0x110   :  { %23851 = vst [vmem:[#allocation29_spill] sm:$0xff] %v18665_v50  ;;  %12881 = vmatmul.mubr.f32.gmra.mrb[4].mxu1 %v23858_v17  ;;  %15147 = vmatprep.subr.bf16.mxu0 %v23859_v27  ;;  %23865 = vst [vmem:[#allocation33_spill] sm:$0xff] %v18697_v10  ;;  %v18702_v11 = vsub.f32 %v18436_v5, %v23866_v1  ;;  %v23868_v41 = vld [vmem:[#allocation19_spill] sm:$0xff]  ;;  %v23873_v50 = vand.u32 4294901760, %v18616_v62  ;;  %v23876_v5 = vand.u32 4294901760, %v18601_v46  ;;  %v18727_v57 = vand.u32 4294901760, %v106_v13 }
 0x111   :  { %15333 = vmatpush3.bf16.msra.mxu1 %v23846_v55  ;;  %12883 = vmatprep.mubr.f32.mxu1 %v23861_v53  ;;  %v23869_v55 = vld [vmem:[#allocation61_spill] sm:$0xff]  ;;  %23872 = vst [vmem:[#allocation36_spill] sm:$0xff] %v18710_v37  ;;  %23879 = vst [vmem:[#allocation51_spill] sm:$0xff] %v18725_v42  ;;  %v18732_v6 = vsub.f32 %v18441_v18, %v23881_v51  ;;  %v23887_v32 = vand.u32 4294901760, %v18623_v28  ;;  %v23889_v37 = vand.u32 4294901760, %v18628_v26  ;;  %v23890_v51 = vand.u32 4294901760, %v18633_v14 }
 0x112   :  { %23867 = vst [vmem:[#allocation16_spill] sm:$0xff] %v18702_v11  ;;  %15335 = vmatprep.subr.bf16.mxu1 %v23868_v41  ;;  %12551 = vmatmul.mubr.f32.gmra.mrb[8].mxu0 %v23869_v55  ;;  %v18716_v29 = vpack.c.bf16 %v23874_v19, %v23873_v50  ;;  %v18721_v1 = vsub.f32 %v18601_v46, %v23876_v5  ;;  %23880 = vst [vmem:[#allocation18_spill] sm:$0xff] %v18727_v57  ;;  %v23883_v50 = vand.u32 4294901760, %v18443_v44  ;;  %v107_v5 = vld [vmem:[#allocation2 + $0x198] sm:$0xff]  ;;  %v92_v46 = vld [vmem:[#allocation2 + $0x120] sm:$0xff] }
 0x113   :  { %15149 = vmatpush3.bf16.msra.mxu0 %v23859_v27  ;;  %12553 = vmatprep.mubr.f32.mxu0 %v23878_v21  ;;  %23882 = vst [vmem:[#allocation44_spill] sm:$0xff] %v18732_v6  ;;  %v23886_v27 = vld [vmem:[#allocation22_spill] sm:$0xff]  ;;  %v18744_v62 = vsub.f32 %v18623_v28, %v23887_v32  ;;  %v18749_v18 = vsub.f32 %v18628_v26, %v23889_v37  ;;  %v108_v26 = vld [vmem:[#allocation2 + $0x1a0] sm:$0xff]  ;;  %v23893_v40 = vld [vmem:[#allocation21_spill] sm:$0xff]  ;;  %v23897_v20 = vand.u32 4294901760, %v18449_v38  ;;  %v18778_v28 = vand.u32 4294901760, %v92_v46 }
 0x114   :  { %23875 = vst [vmem:[#allocation15_spill] sm:$0xff] %v18716_v29  ;;  %23877 = vst [vmem:[#allocation45_spill] sm:$0xff] %v18721_v1  ;;  %v18737_v19 = vsub.f32 %v18443_v44, %v23883_v50  ;;  %v23885_v29 = vld [vmem:[#allocation56_spill] sm:$0xff]  ;;  %15151 = vmatprep.subr.bf16.mxu0 %v23886_v27  ;;  %v18754_v44 = vsub.f32 %v18633_v14, %v23890_v51  ;;  %v18756_v50 = vand.u32 4294901760, %v91_v15  ;;  %v18766_v51 = vand.u32 4294901760, %v107_v5  ;;  %v93_v37 = vld [vmem:[#allocation2 + $0x128] sm:$0xff] }
 0x115   :  { %12884 = vmatmul.mubr.f32.gmra.mrb[6].mxu1 %v23885_v29  ;;  %23888 = vst [vmem:[#allocation53_spill] sm:$0xff] %v18744_v62  ;;  %v23894_v29 = vld [vmem:[#allocation70_spill] sm:$0xff]  ;;  %v23896_v14 = vand.u32 4294901760, %v18445_v34  ;;  %v18776_v32 = vsub.f32 %v18449_v38, %v23897_v20  ;;  %23898 = vst [vmem:[#allocation20_spill] sm:$0xff] %v18778_v28  ;;  %v23899_v4 = vld [vmem:[#allocation75_spill] sm:$0xff]  ;;  %v18818_v62 = vsub.f32 %v92_v46, %v18778_v28  ;;  %v23919_v28 = vand.u32 4294901760, %v18685_v23 }
 0x116   :  { %23884 = vst [vmem:[#allocation17_spill] sm:$0xff] %v18737_v19  ;;  %23891 = vst [vmem:[#allocation59_spill] sm:$0xff] %v18756_v50  ;;  %15337 = vmatpush3.bf16.msra.mxu1 %v23868_v41  ;;  %12886 = vmatprep.mubr.f32.mxu1 %v23892_v30  ;;  %v18786_v30 = vsub.f32 %v106_v13, %v18727_v57  ;;  %v23902_v21 = vld [vmem:[#allocation63_spill] sm:$0xff]  ;;  %v23903_v38 = vld [vmem:[#allocation24_spill] sm:$0xff] }
 0x117   :  { %15339 = vmatprep.subr.bf16.mxu1 %v23893_v40  ;;  %12554 = vmatmul.mubr.f32.gmra.mrb[10].mxu0 %v23894_v29  ;;  %23895 = vst [vmem:[#allocation47_spill] sm:$0xff] %v18766_v51  ;;  %v18771_v41 = vsub.f32 %v18445_v34, %v23896_v14  ;;  %v18783_v29 = vsub.f32 %v90_v48, %v18725_v42  ;;  %v18797_v48 = vand.u32 4294901760, %v108_v26  ;;  %v23906_v13 = vld [vmem:[#allocation68_spill] sm:$0xff]  ;;  %v3066_v34 = vand.u32 4294901760, %v18749_v18  ;;  %v23918_v46 = vld [vmem:[#allocation26_spill] sm:$0xff] }
 0x118   :  { %15153 = vmatpush3.bf16.msra.mxu0 %v23886_v27  ;;  %12556 = vmatprep.mubr.f32.mxu0 %v23899_v4  ;;  %23901 = vst [vmem:[#allocation19_spill] sm:$0xff] %v18786_v30  ;;  %v18795_v4 = vsub.f32 %v91_v15, %v18756_v50  ;;  %v23907_v14 = vand.u32 4294901760, %v18697_v10  ;;  %v23908_v42 = vand.u32 4294901760, %v18702_v11  ;;  %v18808_v27 = vand.u32 4294901760, %v93_v37  ;;  %v23910_v15 = vld [vmem:[#allocation23_spill] sm:$0xff]  ;;  %v23911_v50 = vld [vmem:[#allocation77_spill] sm:$0xff] }
 0x119   :  { %23900 = vst [vmem:[#allocation52_spill] sm:$0xff] %v18783_v29  ;;  %12887 = vmatmul.mubr.f32.gmra.mrb[8].mxu1 %v23902_v21  ;;  %15155 = vmatprep.subr.bf16.mxu0 %v23903_v38  ;;  %23905 = vst [vmem:[#allocation22_spill] sm:$0xff] %v18797_v48  ;;  %v23917_v18 = vld [vmem:[#allocation72_spill] sm:$0xff] }
 0x11a   :  { %23904 = vst [vmem:[#allocation61_spill] sm:$0xff] %v18795_v4  ;;  %15341 = vmatpush3.bf16.msra.mxu1 %v23893_v40  ;;  %12889 = vmatprep.mubr.f32.mxu1 %v23906_v13  ;;  %v4351_v57 = vsub.f32 %v18697_v10, %v23907_v14  ;;  %v4358_v20 = vsub.f32 %v18702_v11, %v23908_v42  ;;  %23909 = vst [vmem:[#allocation21_spill] sm:$0xff] %v18808_v27  ;;  %v23914_v14 = vld [vmem:[#allocation83_spill] sm:$0xff]  ;;  %v23915_v10 = vand.u32 4294901760, %v18732_v6 }
 0x11b   :  { %15343 = vmatprep.subr.bf16.mxu1 %v23910_v15  ;;  %12557 = vmatmul.mubr.f32.gmra.mrb[12].mxu0 %v23911_v50  ;;  %v18813_v40 = vsub.f32 %v107_v5, %v18766_v51  ;;  %23913 = vst [vmem:[#allocation24_spill] sm:$0xff] %v18818_v62  ;;  %v23916_v51 = vand.u32 4294901760, %v18737_v19  ;;  %v18836_v42 = vsub.f32 %v18685_v23, %v23919_v28  ;;  %v23924_v28 = vld [vmem:[#allocation85_spill] sm:$0xff] }
 0x11c   :  { %15157 = vmatpush3.bf16.msra.mxu0 %v23903_v38  ;;  %12559 = vmatprep.mubr.f32.mxu0 %v23914_v14  ;;  %v3079_v5 = vsub.f32 %v18732_v6, %v23915_v10  ;;  %v3073_v38 = vand.u32 4294901760, %v18754_v44  ;;  %v18840_v14 = vsub.f32 %v108_v26, %v18797_v48  ;;  %v23921_v10 = vld [vmem:[#allocation76_spill] sm:$0xff]  ;;  %v18845_v6 = vsub.f32 %v93_v37, %v18808_v27  ;;  %v109_v23 = vld [vmem:[#allocation2 + $0x1a8] sm:$0xff] }
 0x11d   :  { %23912 = vst [vmem:[#allocation63_spill] sm:$0xff] %v18813_v40  ;;  %v3086_v1 = vsub.f32 %v18737_v19, %v23916_v51  ;;  %12890 = vmatmul.mubr.f32.gmra.mrb[10].mxu1 %v23917_v18  ;;  %15159 = vmatprep.subr.bf16.mxu0 %v23918_v46  ;;  %v4352_v51 = vand.u32 4294901760, %v4351_v57  ;;  %v4359_v19 = vand.u32 4294901760, %v4358_v20  ;;  %v23923_v44 = vand.u32 4294901760, %v18451_v7 }
 0x11e   :  { %23920 = vst [vmem:[#allocation68_spill] sm:$0xff] %v18840_v14  ;;  %15345 = vmatpush3.bf16.msra.mxu1 %v23910_v15  ;;  %12892 = vmatprep.mubr.f32.mxu1 %v23921_v10  ;;  %23922 = vst [vmem:[#allocation23_spill] sm:$0xff] %v18845_v6  ;;  %v23925_v15 = vand.u32 4294901760, %v18771_v41  ;;  %v23926_v57 = vand.u32 4294901760, %v18776_v32  ;;  %v23928_v26 = vand.u32 4294901760, %v18786_v30  ;;  %v3080_v48 = vand.u32 4294901760, %v3079_v5 }
 0x11f   :  { %v18850_v18 = vsub.f32 %v18451_v7, %v23923_v44  ;;  %15347 = vmatprep.subr.bf16.mxu1 %v23746_v63  ;;  %12560 = vmatmul.mubr.f32.gmra.mrb[14].mxu0 %v23924_v28  ;;  %v23927_v7 = vand.u32 4294901760, %v18783_v29  ;;  %v3087_v27 = vand.u32 4294901760, %v3086_v1  ;;  %v18876_v20 = vpack.c.bf16 %v3073_v38, %v3066_v34 }
 0x120   :  { %v4365_v11 = vsub.f32 %v18771_v41, %v23925_v15  ;;  %v4372_v37 = vsub.f32 %v18776_v32, %v23926_v57  ;;  %15161 = vmatpush3.bf16.msra.mxu0 %v23918_v46  ;;  %12594 = vmatprep.mubr.f32.mxu0 %v17508_v58  ;;  %v18872_v15 = vsub.f32 %v18786_v30, %v23928_v26  ;;  %v23929_v57 = vld [vmem:[#allocation80_spill] sm:$0xff]  ;;  %v23930_v46 = vand.u32 4294901760, %v18795_v4 }
 0x121   :  { %v18867_v44 = vsub.f32 %v18783_v29, %v23927_v7  ;;  %12893 = vmatmul.mubr.f32.gmra.mrb[12].mxu1 %v23929_v57  ;;  %15355 = vmatprep.subr.bf16.mxu0 %v18506_v35  ;;  %v23931_v26 = vld [vmem:[#allocation84_spill] sm:$0xff]  ;;  %v23932_v34 = vand.u32 4294901760, %v18453_v33  ;;  %v18894_v58 = vand.u32 4294901760, %v109_v23  ;;  %v23935_v5 = vand.u32 4294901760, %v18818_v62 }
 0x122   :  { %v18882_v7 = vsub.f32 %v18795_v4, %v23930_v46  ;;  %15349 = vmatpush3.bf16.msra.mxu1 %v23746_v63  ;;  %12895 = vmatprep.mubr.f32.mxu1 %v23931_v26  ;;  %v23934_v46 = vand.u32 4294901760, %v18813_v40  ;;  %v4366_v29 = vand.u32 4294901760, %v4365_v11  ;;  %v4373_v1 = vand.u32 4294901760, %v4372_v37  ;;  %v23936_v11 = vld [vmem:[#allocation89_spill] sm:$0xff] }
 0x123   :  { %v18892_v38 = vsub.f32 %v18453_v33, %v23932_v34  ;;  %23933 = vst [vmem:[#allocation77_spill] sm:$0xff] %v18894_v58  ;;  %15351 = vmatprep.subr.bf16.mxu1 %v23753_v12  ;;  %12595 = vmatmul.mubr.f32.vlgmr.msra.gmra.mrb[0].mxu0 %v23788_v39  ;;  %v18906_v30 = vsub.f32 %v18818_v62, %v23935_v5  ;;  %v23937_v5 = vand.u32 4294901760, %v18840_v14  ;;  %v95_v34 = vld [vmem:[#allocation2 + $0x138] sm:$0xff]  ;;  %v23942_v37 = vand.u32 4294901760, %v18845_v6 }
 0x124   :  { %v18901_v63 = vsub.f32 %v18813_v40, %v23934_v46  ;;  %15357 = vmatpush3.bf16.msra.mxu0 %v18506_v35  ;;  %12597 = vmatprep.mubr.f32.mxu0 %v23789_v0  ;;  %v18910_v33 = vpack.c.bf16 %v4359_v19, %v4352_v51  ;;  %v18914_v4 = vpack.c.bf16 %v3087_v27, %v3080_v48  ;;  %v94_v46 = vld [vmem:[#allocation2 + $0x130] sm:$0xff]  ;;  %v23938_v0 = vand.u32 4294901760, %v18459_v31  ;;  %v23969_v35 = vld [vmem:[#allocation37_spill] sm:$0xff] }
 0x125   :  { %12896 = vmatmul.mubr.f32.gmra.mrb[14].mxu1 %v23936_v11  ;;  %15359 = vmatprep.subr.bf16.mxu0 %v18524_v59  ;;  %v18922_v40 = vsub.f32 %v18840_v14, %v23937_v5  ;;  %v23940_v27 = vand.u32 4294901760, %v18461_v3  ;;  %v110_v51 = vld [vmem:[#allocation2 + $0x1b0] sm:$0xff]  ;;  %v18939_v5 = vsub.f32 %v18845_v6, %v23942_v37  ;;  %v23943_v39 = vand.u32 4294901760, %v18850_v18 }
 0x126   :  { %v18927_v19 = vsub.f32 %v18459_v31, %v23938_v0  ;;  %15353 = vmatpush3.bf16.msra.mxu1 %v23753_v12  ;;  %12930 = vmatprep.mubr.f32.mxu1 %v23793_v9  ;;  %v18953_v9 = vpack.c.bf16 %v4373_v1, %v4366_v29  ;;  %v18956_v14 = vand.u32 4294901760, %v94_v46  ;;  %v23948_v0 = vand.u32 4294901760, %v18463_v60  ;;  %v96_v12 = vld [vmem:[#allocation2 + $0x140] sm:$0xff] }
 0x127   :  { %v18932_v48 = vsub.f32 %v18461_v3, %v23940_v27  ;;  %v18944_v31 = vsub.f32 %v18850_v18, %v23943_v39  ;;  %v18948_v3 = vsub.f32 %v109_v23, %v18894_v58  ;;  %v111_v27 = vld [vmem:[#allocation2 + $0x1b8] sm:$0xff]  ;;  %15547 = vmatprep.subr.bf16.mxu1 %v18518_v36  ;;  %12598 = vmatmul.mubr.f32.gmra.mrb[2].mxu0 %v23680_v22  ;;  %v18960_v39 = vand.u32 4294901760, %v110_v51  ;;  %v24004_v58 = vld [vmem:[#allocation65_spill] sm:$0xff] }
 0x128   :  { %23939 = vst [vmem:[#allocation26_spill] sm:$0xff] %v18927_v19  ;;  %23945 = vst [vmem:[#allocation80_spill] sm:$0xff] %v18956_v14  ;;  %15361 = vmatpush3.bf16.msra.mxu0 %v18524_v59  ;;  %12600 = vmatprep.mubr.f32.mxu0 %v23804_v45  ;;  %v18962_v23 = vand.u32 4294901760, %v95_v34  ;;  %v18967_v22 = vsub.f32 %v18463_v60, %v23948_v0  ;;  %v23949_v29 = vand.u32 4294901760, %v18471_v52  ;;  %v18979_v62 = vand.u32 4294901760, %v111_v27  ;;  %v112_v45 = vld [vmem:[#allocation2 + $0x1c0] sm:$0xff] }
 0x129   :  { %23941 = vst [vmem:[#allocation76_spill] sm:$0xff] %v18932_v48  ;;  %23944 = vst [vmem:[#allocation85_spill] sm:$0xff] %v18948_v3  ;;  %12931 = vmatmul.mubr.f32.vlgmr.msra.gmra.mrb[0].mxu1 %v23810_v47  ;;  %15363 = vmatprep.subr.bf16.mxu0 %v18546_v43  ;;  %v23952_v47 = vand.u32 4294901760, %v18892_v38  ;;  %v18992_v6 = vsub.f32 %v94_v46, %v18956_v14 }
 0x12a   :  { %23946 = vst [vmem:[#allocation84_spill] sm:$0xff] %v18960_v39  ;;  %23947 = vst [vmem:[#allocation89_spill] sm:$0xff] %v18962_v23  ;;  %v18972_v1 = vsub.f32 %v18471_v52, %v23949_v29  ;;  %15549 = vmatpush3.bf16.msra.mxu1 %v18518_v36  ;;  %12933 = vmatprep.mubr.f32.mxu1 %v23818_v8  ;;  %v3094_v52 = vand.u32 4294901760, %v18944_v31  ;;  %v23954_v8 = vand.u32 4294901760, %v18473_v16  ;;  %v23956_v31 = vand.u32 4294901760, %v18475_v49  ;;  %v97_v29 = vld [vmem:[#allocation2 + $0x148] sm:$0xff] }
 0x12b   :  { %23951 = vst [vmem:[#allocation91_spill] sm:$0xff] %v18979_v62  ;;  %v3100_v0 = vsub.f32 %v18892_v38, %v23952_v47  ;;  %15551 = vmatprep.subr.bf16.mxu1 %v18530_v61  ;;  %12601 = vmatmul.mubr.f32.gmra.mrb[4].mxu0 %v23821_v56  ;;  %23953 = vst [vmem:[#allocation92_spill] sm:$0xff] %v18992_v6  ;;  %v19004_v47 = vand.u32 4294901760, %v96_v12  ;;  %v19009_v56 = vsub.f32 %v110_v51, %v18960_v39  ;;  %v23961_v36 = vld [vmem:[#allocation40_spill] sm:$0xff] }
 0x12c   :  { %23950 = vst [vmem:[#allocation90_spill] sm:$0xff] %v18972_v1  ;;  %v18997_v60 = vsub.f32 %v18473_v16, %v23954_v8  ;;  %v19002_v37 = vsub.f32 %v18475_v49, %v23956_v31  ;;  %15365 = vmatpush3.bf16.msra.mxu0 %v18546_v43  ;;  %12603 = vmatprep.mubr.f32.mxu0 %v23824_v2  ;;  %v23962_v49 = vld [vmem:[#allocation62_spill] sm:$0xff]  ;;  %v23963_v31 = vand.u32 4294901760, %v18927_v19  ;;  %v23964_v2 = vand.u32 4294901760, %v18932_v48 }
 0x12d   :  { %23958 = vst [vmem:[#allocation95_spill] sm:$0xff] %v19004_v47  ;;  %23959 = vst [vmem:[#allocation96_spill] sm:$0xff] %v19009_v56  ;;  %v19012_v46 = vsub.f32 %v95_v34, %v18962_v23  ;;  %12934 = vmatmul.mubr.f32.gmra.mrb[2].mxu1 %v23961_v36  ;;  %15367 = vmatprep.subr.bf16.mxu0 %v23962_v49  ;;  %v19025_v59 = vsub.f32 %v111_v27, %v18979_v62  ;;  %v19027_v34 = vand.u32 4294901760, %v112_v45  ;;  %v23972_v27 = vld [vmem:[#allocation54_spill] sm:$0xff]  ;;  %v24024_v23 = vld [vmem:[#allocation81_spill] sm:$0xff] }
 0x12e   :  { %23955 = vst [vmem:[#allocation93_spill] sm:$0xff] %v18997_v60  ;;  %23957 = vst [vmem:[#allocation94_spill] sm:$0xff] %v19002_v37  ;;  %v4379_v43 = vsub.f32 %v18927_v19, %v23963_v31  ;;  %v4386_v51 = vsub.f32 %v18932_v48, %v23964_v2  ;;  %15553 = vmatpush3.bf16.msra.mxu1 %v18530_v61  ;;  %12936 = vmatprep.mubr.f32.mxu1 %v23839_v25  ;;  %v3101_v36 = vand.u32 4294901760, %v3100_v0 }
 0x12f   :  { %23960 = vst [vmem:[#allocation97_spill] sm:$0xff] %v19012_v46  ;;  %23965 = vst [vmem:[#allocation40_spill] sm:$0xff] %v19025_v59  ;;  %v23967_v8 = vand.u32 4294901760, %v18948_v3  ;;  %v19036_v31 = vand.u32 4294901760, %v97_v29  ;;  %v23970_v39 = vand.u32 4294901760, %v23969_v35  ;;  %15555 = vmatprep.subr.bf16.mxu1 %v23972_v27  ;;  %12604 = vmatmul.mubr.f32.gmra.mrb[6].mxu0 %v23847_v24  ;;  %v23975_v61 = vand.u32 4294901760, %v18972_v1 }
 0x130   :  { %23966 = vst [vmem:[#allocation98_spill] sm:$0xff] %v19027_v34  ;;  %15369 = vmatpush3.bf16.msra.mxu0 %v23962_v49  ;;  %12606 = vmatprep.mubr.f32.mxu0 %v23848_v54  ;;  %v4380_v0 = vand.u32 4294901760, %v4379_v43  ;;  %v4387_v49 = vand.u32 4294901760, %v4386_v51  ;;  %v23982_v51 = vld [vmem:[#allocation50_spill] sm:$0xff]  ;;  %v23986_v54 = vld [vmem:[#allocation67_spill] sm:$0xff] }
 0x131   :  { %v19034_v16 = vsub.f32 %v18948_v3, %v23967_v8  ;;  %23968 = vst [vmem:[#allocation99_spill] sm:$0xff] %v19036_v31  ;;  %v19041_v2 = vsub.f32 %v23969_v35, %v23970_v39  ;;  %v19049_v8 = vsub.f32 %v96_v12, %v19004_v47  ;;  %v23974_v3 = vand.u32 4294901760, %v18967_v22  ;;  %12937 = vmatmul.mubr.f32.gmra.mrb[4].mxu1 %v23858_v17  ;;  %v23976_v12 = vld [vmem:[#allocation66_spill] sm:$0xff] }
 0x132   :  { %v3114_v25 = vsub.f32 %v18972_v1, %v23975_v61  ;;  %15371 = vmatprep.subr.bf16.mxu0 %v23976_v12  ;;  %v19065_v35 = vsub.f32 %v112_v45, %v19027_v34  ;;  %15557 = vmatpush3.bf16.msra.mxu1 %v23972_v27  ;;  %v19072_v39 = vsub.f32 %v97_v29, %v19036_v31  ;;  %v23979_v17 = vld [vmem:[#allocation30_spill] sm:$0xff]  ;;  %v23983_v45 = vand.u32 4294901760, %v18992_v6 }
 0x133   :  { %23971 = vst [vmem:[#allocation37_spill] sm:$0xff] %v19041_v2  ;;  %23973 = vst [vmem:[#allocation100_spill] sm:$0xff] %v19049_v8  ;;  %v3107_v24 = vsub.f32 %v18967_v22, %v23974_v3  ;;  %12939 = vmatprep.mubr.f32.mxu1 %v23861_v53  ;;  %v19069_v3 = vpack.c.bf16 %v3101_v36, %v3094_v52  ;;  %v23980_v62 = vand.u32 4294901760, %v23979_v17  ;;  %15559 = vmatprep.subr.bf16.mxu1 %v23982_v51 }
 0x134   :  { %23977 = vst [vmem:[#allocation101_spill] sm:$0xff] %v19065_v35  ;;  %23978 = vst [vmem:[#allocation102_spill] sm:$0xff] %v19072_v39  ;;  %12607 = vmatmul.mubr.f32.gmra.mrb[8].mxu0 %v23869_v55  ;;  %v19085_v53 = vsub.f32 %v18992_v6, %v23983_v45  ;;  %v23984_v52 = vand.u32 4294901760, %v18997_v60  ;;  %v23985_v36 = vand.u32 4294901760, %v19002_v37  ;;  %v23987_v55 = vand.u32 4294901760, %v19009_v56 }
 0x135   :  { %v19078_v43 = vsub.f32 %v23979_v17, %v23980_v62  ;;  %v113_v17 = vld [vmem:[#allocation2 + $0x1c8] sm:$0xff]  ;;  %15373 = vmatpush3.bf16.msra.mxu0 %v23976_v12  ;;  %12609 = vmatprep.mubr.f32.mxu0 %v23986_v54  ;;  %v23988_v27 = vand.u32 4294901760, %v19012_v46  ;;  %v3108_v6 = vand.u32 4294901760, %v3107_v24  ;;  %v3115_v34 = vand.u32 4294901760, %v3114_v25  ;;  %v23990_v62 = vld [vmem:[#allocation87_spill] sm:$0xff]  ;;  %v23995_v12 = vld [vmem:[#allocation82_spill] sm:$0xff] }
 0x136   :  { %v4393_v29 = vsub.f32 %v18997_v60, %v23984_v52  ;;  %v4400_v61 = vsub.f32 %v19002_v37, %v23985_v36  ;;  %v19099_v45 = vsub.f32 %v19009_v56, %v23987_v55  ;;  %v23989_v36 = vld [vmem:[#allocation56_spill] sm:$0xff]  ;;  %15375 = vmatprep.subr.bf16.mxu0 %v23990_v62  ;;  %v19109_v31 = vpack.c.bf16 %v4387_v49, %v4380_v0  ;;  %v24001_v49 = vld [vmem:[#allocation75_spill] sm:$0xff] }
 0x137   :  { %23981 = vst [vmem:[#allocation30_spill] sm:$0xff] %v19078_v43  ;;  %v19104_v52 = vsub.f32 %v19012_v46, %v23988_v27  ;;  %12940 = vmatmul.mubr.f32.gmra.mrb[6].mxu1 %v23989_v36  ;;  %v23991_v54 = vand.u32 4294901760, %v19025_v59  ;;  %v23992_v27 = vld [vmem:[#allocation60_spill] sm:$0xff]  ;;  %v23993_v24 = vand.u32 4294901760, %v19041_v2  ;;  %v19126_v0 = vand.u32 4294901760, %v113_v17  ;;  %v99_v37 = vld [vmem:[#allocation2 + $0x158] sm:$0xff] }
 0x138   :  { %15561 = vmatpush3.bf16.msra.mxu1 %v23982_v51  ;;  %12942 = vmatprep.mubr.f32.mxu1 %v23992_v27  ;;  %v4394_v56 = vand.u32 4294901760, %v4393_v29  ;;  %v23997_v51 = vand.u32 4294901760, %v19049_v8  ;;  %v23998_v25 = vld [vmem:[#allocation32_spill] sm:$0xff]  ;;  %v19145_v29 = vpack.c.bf16 %v3115_v34, %v3108_v6  ;;  %v24005_v47 = vand.u32 4294901760, %v24004_v58  ;;  %v24006_v6 = vld [vmem:[#allocation69_spill] sm:$0xff] }
 0x139   :  { %v19114_v55 = vsub.f32 %v19025_v59, %v23991_v54  ;;  %v19123_v36 = vsub.f32 %v19041_v2, %v23993_v24  ;;  %23994 = vst [vmem:[#allocation67_spill] sm:$0xff] %v19126_v0  ;;  %15563 = vmatprep.subr.bf16.mxu1 %v23995_v12  ;;  %v23996_v54 = vld [vmem:[#allocation70_spill] sm:$0xff]  ;;  %v4401_v59 = vand.u32 4294901760, %v4400_v61  ;;  %v23999_v46 = vand.u32 4294901760, %v23998_v25  ;;  %15377 = vmatpush3.bf16.msra.mxu0 %v23990_v62 }
 0x13a   :  { %12610 = vmatmul.mubr.f32.gmra.mrb[10].mxu0 %v23996_v54  ;;  %v19133_v27 = vsub.f32 %v19049_v8, %v23997_v51  ;;  %v24002_v51 = vld [vmem:[#allocation28_spill] sm:$0xff]  ;;  %v114_v62 = vld [vmem:[#allocation2 + $0x1d0] sm:$0xff]  ;;  %v19158_v54 = vsub.f32 %v24004_v58, %v24005_v47  ;;  %v24007_v34 = vand.u32 4294901760, %v24006_v6  ;;  %v24008_v8 = vand.u32 4294901760, %v19072_v39 }
 0x13b   :  { %v19138_v24 = vsub.f32 %v23998_v25, %v23999_v46  ;;  %12612 = vmatprep.mubr.f32.mxu0 %v24001_v49  ;;  %12943 = vmatmul.mubr.f32.gmra.mrb[8].mxu1 %v23902_v21  ;;  %v24003_v46 = vand.u32 4294901760, %v19065_v35  ;;  %v98_v49 = vld [vmem:[#allocation2 + $0x150] sm:$0xff]  ;;  %v3122_v61 = vand.u32 4294901760, %v19123_v36  ;;  %v19177_v47 = vsub.f32 %v113_v17, %v19126_v0 }
 0x13c   :  { %15379 = vmatprep.subr.bf16.mxu0 %v24002_v51  ;;  %v19163_v21 = vsub.f32 %v24006_v6, %v24007_v34  ;;  %15565 = vmatpush3.bf16.msra.mxu1 %v23995_v12  ;;  %v24011_v6 = vld [vmem:[#allocation29_spill] sm:$0xff]  ;;  %v19181_v34 = vpack.c.bf16 %v4401_v59, %v4394_v56  ;;  %v19192_v17 = vand.u32 4294901760, %v98_v49  ;;  %v19194_v0 = vand.u32 4294901760, %v114_v62 }
 0x13d   :  { %24000 = vst [vmem:[#allocation56_spill] sm:$0xff] %v19138_v24  ;;  %v19153_v25 = vsub.f32 %v19065_v35, %v24003_v46  ;;  %12945 = vmatprep.mubr.f32.mxu1 %v23906_v13  ;;  %v19170_v46 = vsub.f32 %v19072_v39, %v24008_v8  ;;  %v24009_v35 = vand.u32 4294901760, %v19078_v43  ;;  %24010 = vst [vmem:[#allocation60_spill] sm:$0xff] %v19177_v47  ;;  %15567 = vmatprep.subr.bf16.mxu1 %v24011_v6  ;;  %v24012_v12 = vld [vmem:[#allocation41_spill] sm:$0xff]  ;;  %v24020_v13 = vld [vmem:[#allocation71_spill] sm:$0xff] }
 0x13e   :  { %12613 = vmatmul.mubr.f32.gmra.mrb[12].mxu0 %v23911_v50  ;;  %v24013_v39 = vand.u32 4294901760, %v24012_v12  ;;  %24016 = vst [vmem:[#allocation32_spill] sm:$0xff] %v19192_v17  ;;  %24017 = vst [vmem:[#allocation75_spill] sm:$0xff] %v19194_v0  ;;  %v24018_v59 = vld [vmem:[#allocation73_spill] sm:$0xff]  ;;  %v24021_v8 = vand.u32 4294901760, %v24020_v13  ;;  %v24035_v48 = vand.u32 4294901760, %v19163_v21 }
 0x13f   :  { %v3128_v58 = vsub.f32 %v19078_v43, %v24009_v35  ;;  %15381 = vmatpush3.bf16.msra.mxu0 %v24002_v51  ;;  %v24015_v35 = vld [vmem:[#allocation83_spill] sm:$0xff]  ;;  %v24019_v50 = vand.u32 4294901760, %v24018_v59  ;;  %v24025_v43 = vand.u32 4294901760, %v24024_v23  ;;  %v24029_v51 = vld [vmem:[#allocation46_spill] sm:$0xff] }
 0x140   :  { %v19188_v36 = vsub.f32 %v24012_v12, %v24013_v39  ;;  %12615 = vmatprep.mubr.f32.mxu0 %v24015_v35  ;;  %v19204_v60 = vsub.f32 %v24020_v13, %v24021_v8  ;;  %v24022_v39 = vld [vmem:[#allocation72_spill] sm:$0xff]  ;;  %15569 = vmatpush3.bf16.msra.mxu1 %v24011_v6  ;;  %v24030_v35 = vand.u32 4294901760, %v24029_v51  ;;  %v24032_v6 = vld [vmem:[#allocation34_spill] sm:$0xff]  ;;  %v24034_v8 = vand.u32 4294901760, %v19158_v54 }
 0x141   :  { %v19199_v56 = vsub.f32 %v24018_v59, %v24019_v50  ;;  %12946 = vmatmul.mubr.f32.gmra.mrb[10].mxu1 %v24022_v39  ;;  %v24023_v12 = vld [vmem:[#allocation36_spill] sm:$0xff]  ;;  %v19213_v2 = vsub.f32 %v24024_v23, %v24025_v43  ;;  %v24026_v59 = vld [vmem:[#allocation86_spill] sm:$0xff]  ;;  %v19224_v39 = vand.u32 4294901760, %v99_v37  ;;  %v24031_v43 = vld [vmem:[#allocation35_spill] sm:$0xff] }
 0x142   :  { %24014 = vst [vmem:[#allocation70_spill] sm:$0xff] %v19188_v36  ;;  %15383 = vmatprep.subr.bf16.mxu0 %v24023_v12  ;;  %v24027_v50 = vand.u32 4294901760, %v24026_v59  ;;  %12948 = vmatprep.mubr.f32.mxu1 %v23921_v10  ;;  %v19229_v23 = vsub.f32 %v24029_v51, %v24030_v35  ;;  %v24033_v10 = vand.u32 4294901760, %v24032_v6  ;;  %v19243_v19 = vpack.c.bf16 %v24035_v48, %v24034_v8  ;;  %v24037_v51 = vld [vmem:[#allocation43_spill] sm:$0xff] }
 0x143   :  { %24028 = vst [vmem:[#allocation65_spill] sm:$0xff] %v19224_v39  ;;  %15571 = vmatprep.subr.bf16.mxu1 %v24031_v43  ;;  %12616 = vmatmul.mubr.f32.gmra.mrb[14].mxu0 %v23924_v28  ;;  %v24038_v35 = vand.u32 4294901760, %v24037_v51  ;;  %v24039_v28 = vand.u32 4294901760, %v19138_v24  ;;  %v19259_v48 = vsub.f32 %v98_v49, %v19192_v17  ;;  %v19262_v8 = vsub.f32 %v114_v62, %v19194_v0  ;;  %v100_v51 = vld [vmem:[#allocation2 + $0x160] sm:$0xff]  ;;  %v101_v0 = vld [vmem:[#allocation2 + $0x168] sm:$0xff] }
 0x144   :  { %v19218_v14 = vsub.f32 %v24026_v59, %v24027_v50  ;;  %v3129_v50 = vand.u32 4294901760, %v3128_v58  ;;  %v19237_v13 = vsub.f32 %v24032_v6, %v24033_v10  ;;  %24036 = vst [vmem:[#allocation69_spill] sm:$0xff] %v19243_v19  ;;  %15385 = vmatpush3.bf16.msra.mxu0 %v24023_v12  ;;  %v22972_v6 = vand.u32 4294901760, %v19199_v56  ;;  %15573 = vmatpush3.bf16.msra.mxu1 %v24031_v43  ;;  %v115_v10 = vld [vmem:[#allocation2 + $0x1d8] sm:$0xff] }
 0x145   :  { %12986 = vmatprep.mubr.f32.mxu0 %v24038_v35  ;;  %v19251_v58 = vsub.f32 %v19138_v24, %v24039_v28  ;;  %12949 = vmatmul.mubr.f32.gmra.mrb[12].mxu1 %v23929_v57  ;;  %24040 = vst [vmem:[#allocation41_spill] sm:$0xff] %v19259_v48  ;;  %24041 = vst [vmem:[#allocation83_spill] sm:$0xff] %v19262_v8  ;;  %v24042_v59 = vand.u32 4294901760, %v19177_v47  ;;  %v19274_v49 = vsub.f32 %v99_v37, %v19224_v39  ;;  %v24046_v19 = vld [vmem:[#allocation15_spill] sm:$0xff]  ;;  %v24049_v37 = vld [vmem:[#allocation42_spill] sm:$0xff] }
 0x146   :  { %15387 = vmatprep.subr.bf16.mxu0 %v18876_v20  ;;  %12951 = vmatprep.mubr.f32.mxu1 %v23931_v26  ;;  %v24044_v35 = vand.u32 4294901760, %v19204_v60  ;;  %v24047_v26 = vld [vmem:[#allocation53_spill] sm:$0xff]  ;;  %v19286_v12 = vpack.c.bf16 %v3129_v50, %v3122_v61  ;;  %v24051_v39 = vand.u32 4294901760, %v19213_v2  ;;  %v24055_v50 = vand.u32 4294901760, %v19188_v36 }
 0x147   :  { %v19271_v57 = vsub.f32 %v19177_v47, %v24042_v59  ;;  %24043 = vst [vmem:[#allocation73_spill] sm:$0xff] %v19274_v49  ;;  %15575 = vmatprep.subr.bf16.mxu1 %v24046_v19  ;;  %v24048_v43 = vand.u32 4294901760, %v24047_v26  ;;  %v24050_v47 = vand.u32 4294901760, %v24049_v37  ;;  %v4408_v61 = vand.u32 4294901760, %v19251_v58  ;;  %v24057_v59 = vld [vmem:[#allocation57_spill] sm:$0xff]  ;;  %v24060_v58 = vld [vmem:[#allocation55_spill] sm:$0xff] }
 0x148   :  { %v19281_v28 = vpack.c.bf16 %v24044_v35, %v22972_v6  ;;  %v24052_v35 = vand.u32 4294901760, %v19218_v14  ;;  %v4414_v26 = vsub.f32 %v19188_v36, %v24055_v50  ;;  %v102_v50 = vld [vmem:[#allocation2 + $0x170] sm:$0xff]  ;;  %15577 = vmatpush3.bf16.msra.mxu1 %v24046_v19  ;;  %v19337_v1 = vand.u32 4294901760, %v101_v0 }
 0x149   :  { %12987 = vmatmul.mubr.f32.vlgmr.msra.gmra.mrb[16].mxu0 %v24048_v43  ;;  %v19292_v62 = vsub.f32 %v24049_v37, %v24050_v47  ;;  %v24054_v43 = vand.u32 4294901760, %v18867_v44  ;;  %v19307_v47 = vand.u32 4294901760, %v100_v51  ;;  %v116_v37 = vld [vmem:[#allocation2 + $0x1e0] sm:$0xff]  ;;  %12952 = vmatmul.mubr.f32.gmra.mrb[14].mxu1 %v23936_v11 }
 0x14a   :  { %24045 = vst [vmem:[#allocation71_spill] sm:$0xff] %v19281_v28  ;;  %v19298_v6 = vpack.c.bf16 %v24052_v35, %v24051_v39  ;;  %15389 = vmatpush3.bf16.msra.mxu0 %v18876_v20  ;;  %v24058_v28 = vand.u32 4294901760, %v24057_v59  ;;  %v19318_v39 = vand.u32 4294901760, %v115_v10  ;;  %v24061_v35 = vand.u32 4294901760, %v24060_v58  ;;  %v24065_v44 = vld [vmem:[#allocation48_spill] sm:$0xff]  ;;  %24067 = vst [vmem:[#allocation46_spill] sm:$0xff] %v19337_v1  ;;  %15579 = vmatprep.subr.bf16.mxu1 %v18910_v33 }
 0x14b   :  { %12989 = vmatprep.mubr.f32.mxu0 %v24054_v43  ;;  %24056 = vst [vmem:[#allocation81_spill] sm:$0xff] %v19307_v47  ;;  %15391 = vmatprep.subr.bf16.mxu0 %v18914_v4  ;;  %v24066_v36 = vand.u32 4294901760, %v24065_v44  ;;  %v19347_v11 = vand.u32 4294901760, %v116_v37  ;;  %v19353_v19 = vsub.f32 %v100_v51, %v19307_v47 }
 0x14c   :  { %24053 = vst [vmem:[#allocation72_spill] sm:$0xff] %v19298_v6  ;;  %v19312_v17 = vsub.f32 %v24057_v59, %v24058_v28  ;;  %24059 = vst [vmem:[#allocation86_spill] sm:$0xff] %v19318_v39  ;;  %v19323_v43 = vsub.f32 %v24060_v58, %v24061_v35  ;;  %v24062_v28 = vld [vmem:[#allocation45_spill] sm:$0xff]  ;;  %v24064_v6 = vand.u32 4294901760, %v19229_v23  ;;  %v24068_v58 = vand.u32 4294901760, %v18882_v7  ;;  %v103_v35 = vld [vmem:[#allocation2 + $0x178] sm:$0xff] }
 0x14d   :  { %v24063_v59 = vand.u32 4294901760, %v24062_v28  ;;  %v19335_v24 = vsub.f32 %v24065_v44, %v24066_v36  ;;  %v24069_v28 = vand.u32 4294901760, %v19237_v13  ;;  %24070 = vst [vmem:[#allocation34_spill] sm:$0xff] %v19347_v11  ;;  %v24071_v36 = vand.u32 4294901760, %v18906_v30  ;;  %v117_v7 = vld [vmem:[#allocation2 + $0x1e8] sm:$0xff] }
 0x14e   :  { %v3135_v20 = vsub.f32 %v19229_v23, %v24064_v6  ;;  %12990 = vmatmul.mubr.f32.gmra.mrb[18].mxu0 %v24068_v58  ;;  %v4415_v44 = vand.u32 4294901760, %v4414_v26  ;;  %v19356_v58 = vand.u32 4294901760, %v102_v50  ;;  %v24074_v6 = vand.u32 4294901760, %v19259_v48 }
 0x14f   :  { %13322 = vmatprep.mubr.f32.mxu1 %v24063_v59  ;;  %v3142_v59 = vsub.f32 %v19237_v13, %v24069_v28  ;;  %15393 = vmatpush3.bf16.msra.mxu0 %v18914_v4  ;;  %v24073_v28 = vand.u32 4294901760, %v18836_v42  ;;  %v24075_v30 = vand.u32 4294901760, %v19262_v8  ;;  %v19372_v26 = vsub.f32 %v115_v10, %v19318_v39 }
 0x150   :  { %12992 = vmatprep.mubr.f32.mxu0 %v24071_v36  ;;  %24072 = vst [vmem:[#allocation43_spill] sm:$0xff] %v19356_v58  ;;  %15395 = vmatprep.subr.bf16.mxu0 %v19069_v3  ;;  %v19364_v4 = vsub.f32 %v19259_v48, %v24074_v6  ;;  %v24077_v42 = vand.u32 4294901760, %v18872_v15  ;;  %v3136_v48 = vand.u32 4294901760, %v3135_v20  ;;  %v24079_v10 = vand.u32 4294901760, %v18939_v5  ;;  %v118_v20 = vld [vmem:[#allocation2 + $0x1f0] sm:$0xff] }
 0x151   :  { %13323 = vmatmul.mubr.f32.vlgmr.msra.gmra.mrb[16].mxu1 %v24073_v28  ;;  %v19369_v51 = vsub.f32 %v19262_v8, %v24075_v30  ;;  %24076 = vst [vmem:[#allocation53_spill] sm:$0xff] %v19372_v26  ;;  %v24078_v28 = vand.u32 4294901760, %v19274_v49  ;;  %v19385_v8 = vsub.f32 %v101_v0, %v19337_v1  ;;  %v24080_v15 = vand.u32 4294901760, %v19292_v62 }
 0x152   :  { %15581 = vmatpush3.bf16.msra.mxu1 %v18910_v33  ;;  %13325 = vmatprep.mubr.f32.mxu1 %v24077_v42  ;;  %v3143_v33 = vand.u32 4294901760, %v3142_v59  ;;  %v19398_v36 = vand.u32 4294901760, %v103_v35  ;;  %v24082_v0 = vand.u32 4294901760, %v19085_v53  ;;  %v24083_v59 = vand.u32 4294901760, %v19312_v17 }
 0x153   :  { %v19381_v6 = vsub.f32 %v19274_v49, %v24078_v28  ;;  %15583 = vmatprep.subr.bf16.mxu1 %v18953_v9  ;;  %12993 = vmatmul.mubr.f32.gmra.mrb[20].mxu0 %v24079_v10  ;;  %v19393_v42 = vsub.f32 %v19292_v62, %v24080_v15  ;;  %v19396_v28 = vsub.f32 %v116_v37, %v19347_v11  ;;  %v19407_v30 = vand.u32 4294901760, %v117_v7 }
 0x154   :  { %24081 = vst [vmem:[#allocation42_spill] sm:$0xff] %v19398_v36  ;;  %15397 = vmatpush3.bf16.msra.mxu0 %v19069_v3  ;;  %12995 = vmatprep.mubr.f32.mxu0 %v24082_v0  ;;  %v3149_v10 = vsub.f32 %v19312_v17, %v24083_v59  ;;  %v19410_v15 = vsub.f32 %v102_v50, %v19356_v58  ;;  %v24085_v37 = vand.u32 4294901760, %v18901_v63  ;;  %v3005_v53 = vand.u32 4294901760, %v19364_v4  ;;  %v119_v0 = vld [vmem:[#allocation2 + $0x1f8] sm:$0xff] }
 0x155   :  { %24084 = vst [vmem:[#allocation57_spill] sm:$0xff] %v19407_v30  ;;  %15399 = vmatprep.subr.bf16.mxu0 %v19145_v29  ;;  %v19415_v3 = vpack.c.bf16 %v4415_v44, %v4408_v61  ;;  %v24086_v5 = vand.u32 4294901760, %v19323_v43  ;;  %v24087_v50 = vand.u32 4294901760, %v18922_v40  ;;  %v19430_v4 = vand.u32 4294901760, %v118_v20 }
 0x156   :  { %13326 = vmatmul.mubr.f32.gmra.mrb[18].mxu1 %v24085_v37  ;;  %v24088_v37 = vand.u32 4294901760, %v19335_v24  ;;  %v4422_v40 = vand.u32 4294901760, %v19393_v42  ;;  %v19438_v63 = vsub.f32 %v103_v35, %v19398_v36  ;;  %v24092_v44 = vand.u32 4294901760, %v19353_v19 }
 0x157   :  { %v3156_v59 = vsub.f32 %v19323_v43, %v24086_v5  ;;  %15585 = vmatpush3.bf16.msra.mxu1 %v18953_v9  ;;  %13328 = vmatprep.mubr.f32.mxu1 %v24087_v50  ;;  %24089 = vst [vmem:[#allocation55_spill] sm:$0xff] %v19430_v4  ;;  %v24090_v5 = vand.u32 4294901760, %v19104_v52  ;;  %v15406_v9 = vpack.c.bf16 %v3143_v33, %v3136_v48  ;;  %v22994_v50 = vand.u32 4294901760, %v19396_v28 }
 0x158   :  { %v4428_v61 = vsub.f32 %v19335_v24, %v24088_v37  ;;  %15587 = vmatprep.subr.bf16.mxu1 %v19109_v31  ;;  %15401 = vmatpush3.bf16.msra.mxu0 %v19145_v29  ;;  %v24091_v37 = vand.u32 4294901760, %v19133_v27  ;;  %v3024_v49 = vsub.f32 %v19353_v19, %v24092_v44  ;;  %v3150_v11 = vand.u32 4294901760, %v3149_v10 }
 0x159   :  { %12996 = vmatmul.mubr.f32.gmra.mrb[22].mxu0 %v24090_v5  ;;  %v19447_v52 = vsub.f32 %v117_v7, %v19407_v30  ;;  %v22995_v48 = vand.u32 4294901760, %v19410_v15  ;;  %v24093_v33 = vand.u32 4294901760, %v19034_v16  ;;  %15403 = vmatprep.subr.bf16.mxu0 %v19286_v12  ;;  %v3157_v35 = vand.u32 4294901760, %v3156_v59 }
 0x15a   :  { %12998 = vmatprep.mubr.f32.mxu0 %v24091_v37  ;;  %v24094_v29 = vand.u32 4294901760, %v19199_v56  ;;  %v24095_v42 = vand.u32 4294901760, %v19204_v60  ;;  %v19459_v10 = vand.u32 4294901760, %v119_v0  ;;  %v24097_v7 = vand.u32 4294901760, %v19099_v45 }
 0x15b   :  { %13329 = vmatmul.mubr.f32.gmra.mrb[20].mxu1 %v24093_v33  ;;  %v4429_v16 = vand.u32 4294901760, %v4428_v61  ;;  %v24098_v5 = vand.u32 4294901760, %v19385_v8  ;;  %v24099_v37 = vand.u32 4294901760, %v19158_v54  ;;  %v24101_v45 = vand.u32 4294901760, %v19372_v26 }
 0x15c   :  { %v3163_v27 = vsub.f32 %v19199_v56, %v24094_v29  ;;  %v3170_v44 = vsub.f32 %v19204_v60, %v24095_v42  ;;  %24096 = vst [vmem:[#allocation45_spill] sm:$0xff] %v19459_v10  ;;  %15589 = vmatpush3.bf16.msra.mxu1 %v19109_v31  ;;  %13331 = vmatprep.mubr.f32.mxu1 %v24097_v7  ;;  %v24100_v42 = vand.u32 4294901760, %v19170_v46  ;;  %v3015_v31 = vand.u32 4294901760, %v19381_v6 }
 0x15d   :  { %v3034_v59 = vsub.f32 %v19385_v8, %v24098_v5  ;;  %v4435_v33 = vsub.f32 %v19158_v54, %v24099_v37  ;;  %v19471_v29 = vsub.f32 %v118_v20, %v19430_v4  ;;  %15591 = vmatprep.subr.bf16.mxu1 %v19181_v34  ;;  %v4300_v61 = vsub.f32 %v19372_v26, %v24101_v45 }
 0x15e   :  { %12999 = vmatmul.mubr.f32.gmra.mrb[24].mxu0 %v24100_v42  ;;  %v24102_v7 = vand.u32 4294901760, %v19163_v21  ;;  %v3025_v20 = vand.u32 4294901760, %v3024_v49  ;;  %v4310_v46 = vsub.f32 %v19396_v28, %v22994_v50  ;;  %v3044_v42 = vsub.f32 %v19410_v15, %v22995_v48 }
 0x15f   :  { %15405 = vmatpush3.bf16.msra.mxu0 %v19286_v12  ;;  %13001 = vmatprep.mubr.f32.mxu0 %v3005_v53  ;;  %v24103_v45 = vand.u32 4294901760, %v19114_v55  ;;  %v3164_v37 = vand.u32 4294901760, %v3163_v27  ;;  %v3171_v26 = vand.u32 4294901760, %v3170_v44  ;;  %v19495_v12 = vsub.f32 %v119_v0, %v19459_v10 }
 0x160   :  { %v4442_v5 = vsub.f32 %v19163_v21, %v24102_v7  ;;  %15407 = vmatprep.subr.bf16.mxu0 %v15406_v9  ;;  %v15410_v7 = vpack.c.bf16 %v3157_v35, %v3150_v11  ;;  %15593 = vmatpush3.bf16.msra.mxu1 %v19181_v34  ;;  %v24104_v49 = vand.u32 4294901760, %v19153_v25  ;;  %v15598_v53 = vpack.c.bf16 %v4429_v16, %v4422_v40 }
 0x161   :  { %13332 = vmatmul.mubr.f32.gmra.mrb[22].mxu1 %v24103_v45  ;;  %v3035_v50 = vand.u32 4294901760, %v3034_v59  ;;  %v4436_v6 = vand.u32 4294901760, %v4435_v33  ;;  %v22997_v48 = vand.u32 4294901760, %v19471_v29  ;;  %15595 = vmatprep.subr.bf16.mxu1 %v19415_v3  ;;  %v24105_v11 = vand.u32 4294901760, %v19438_v63 }
 0x162   :  { %13334 = vmatprep.mubr.f32.mxu1 %v24104_v49  ;;  %13002 = vmatmul.mubr.f32.gmra.mrb[26].mxu0 %v3015_v31  ;;  %v4443_v55 = vand.u32 4294901760, %v4442_v5  ;;  %v24106_v0 = vand.u32 4294901760, %v19213_v2  ;;  %v24107_v25 = vand.u32 4294901760, %v19218_v14  ;;  %v3045_v27 = vand.u32 4294901760, %v3044_v42 }
 0x163   :  { %v3054_v35 = vsub.f32 %v19438_v63, %v24105_v11  ;;  %15409 = vmatpush3.bf16.msra.mxu0 %v15406_v9  ;;  %13004 = vmatprep.mubr.f32.mxu0 %v3025_v20  ;;  %v24108_v44 = vand.u32 4294901760, %v19271_v57  ;;  %v4301_v16 = vand.u32 4294901760, %v4300_v61  ;;  %v24109_v59 = vand.u32 4294901760, %v19447_v52 }
 0x164   :  { %v4449_v34 = vsub.f32 %v19213_v2, %v24106_v0  ;;  %v4456_v40 = vsub.f32 %v19218_v14, %v24107_v25  ;;  %15411 = vmatprep.subr.bf16.mxu0 %v15410_v7  ;;  %v15414_v31 = vpack.c.bf16 %v3171_v26, %v3164_v37  ;;  %v22996_v5 = vand.u32 4294901760, %v19495_v12  ;;  %15597 = vmatpush3.bf16.msra.mxu1 %v19415_v3  ;;  %v24111_v3 = vld [vmem:[#allocation79_spill] sm:$0xff]  ;;  %v24112_v37 = vld [vmem:[#allocation25_spill] sm:$0xff]  ;;  %v24118_v25 = vld [vmem:[#allocation16_spill] sm:$0xff] }
 0x165   :  { %13335 = vmatmul.mubr.f32.gmra.mrb[24].mxu1 %v24108_v44  ;;  %v4320_v33 = vsub.f32 %v19447_v52, %v24109_v59  ;;  %v24110_v45 = vand.u32 4294901760, %v19369_v51  ;;  %v4311_v9 = vand.u32 4294901760, %v4310_v46  ;;  %v4330_v57 = vsub.f32 %v19471_v29, %v22997_v48  ;;  %15599 = vmatprep.subr.bf16.mxu1 %v15598_v53  ;;  %v24121_v59 = vld [vmem:[#allocation59_spill] sm:$0xff]  ;;  %v24136_v48 = vld [vmem:[#allocation94_spill] sm:$0xff] }
 0x166   :  { %13005 = vmatmul.mubr.f32.gmra.mrb[28].mxu0 %v3035_v50  ;;  %v15602_v61 = vpack.c.bf16 %v4443_v55, %v4436_v6  ;;  %v3055_v20 = vand.u32 4294901760, %v3054_v35  ;;  %v4450_v42 = vand.u32 4294901760, %v4449_v34  ;;  %v4457_v49 = vand.u32 4294901760, %v4456_v40  ;;  %v24113_v6 = vld [vmem:[#allocation38_spill] sm:$0xff]  ;;  %v24114_v55 = vld [vmem:[#allocation44_spill] sm:$0xff]  ;;  %v24115_v35 = vld [vmem:[#allocation17_spill] sm:$0xff] }
 0x167   :  { %13337 = vmatprep.mubr.f32.mxu1 %v24110_v45  ;;  %15413 = vmatpush3.bf16.msra.mxu0 %v15410_v7  ;;  %v4321_v26 = vand.u32 4294901760, %v4320_v33  ;;  %v4340_v51 = vsub.f32 %v19495_v12, %v22996_v5  ;;  %v15418_v46 = vpack.c.bf16 %v24112_v37, %v24111_v3  ;;  %v4331_v11 = vand.u32 4294901760, %v4330_v57  ;;  %v24116_v34 = vld [vmem:[#allocation58_spill] sm:$0xff]  ;;  %v24123_v45 = vld [vmem:[#allocation88_spill] sm:$0xff]  ;;  %v24135_v5 = vld [vmem:[#allocation93_spill] sm:$0xff] }
 0x168   :  { %13007 = vmatprep.mubr.f32.mxu0 %v3045_v27  ;;  %15415 = vmatprep.subr.bf16.mxu0 %v15414_v31  ;;  %v15606_v50 = vpack.c.bf16 %v4457_v49, %v4450_v42  ;;  %v15422_v0 = vpack.c.bf16 %v24115_v35, %v24114_v55  ;;  %v24119_v27 = vld [vmem:[#allocation51_spill] sm:$0xff]  ;;  %v15426_v44 = vpack.c.bf16 %v18892_v38, %v18850_v18  ;;  %v24127_v42 = vld [vmem:[#allocation26_spill] sm:$0xff]  ;;  %v24128_v49 = vld [vmem:[#allocation76_spill] sm:$0xff] }
 0x169   :  { %13338 = vmatmul.mubr.f32.gmra.mrb[26].mxu1 %v4301_v16  ;;  %v4341_v7 = vand.u32 4294901760, %v4340_v51  ;;  %v24120_v16 = vld [vmem:[#allocation39_spill] sm:$0xff]  ;;  %v15614_v33 = vpack.c.bf16 %v18776_v32, %v18771_v41  ;;  %v24129_v51 = vld [vmem:[#allocation80_spill] sm:$0xff] }
 0x16a   :  { %15601 = vmatpush3.bf16.msra.mxu1 %v15598_v53  ;;  %13340 = vmatprep.mubr.f32.mxu1 %v4311_v9  ;;  %v24117_v53 = vld [vmem:[#allocation33_spill] sm:$0xff]  ;;  %v24124_v9 = vld [vmem:[#allocation90_spill] sm:$0xff] }
 0x16b   :  { %15603 = vmatprep.subr.bf16.mxu1 %v15602_v61  ;;  %13008 = vmatmul.mubr.f32.gmra.mrb[30].mxu0 %v3055_v20  ;;  %v15610_v40 = vpack.c.bf16 %v24118_v25, %v24117_v53  ;;  %v15430_v57 = vpack.c.bf16 %v24124_v9, %v18967_v22  ;;  %v24126_v20 = vld [vmem:[#allocation21_spill] sm:$0xff] }
 0x16c   :  { %15417 = vmatpush3.bf16.msra.mxu0 %v15414_v31  ;;  %13042 = vmatprep.mubr.f32.mxu0 %v24113_v6  ;;  %v24122_v31 = vld [vmem:[#allocation20_spill] sm:$0xff]  ;;  %v24189_v6 = vand.u32 4294901760, %v24112_v37  ;;  %v24193_v37 = vand.u32 4294901760, %v24115_v35  ;;  %v24199_v35 = vand.u32 4294901760, %v18850_v18 }
 0x16d   :  { %13341 = vmatmul.mubr.f32.gmra.mrb[28].mxu1 %v4321_v26  ;;  %15419 = vmatprep.subr.bf16.mxu0 %v15418_v46  ;;  %v15618_v26 = vpack.c.bf16 %v24128_v49, %v24127_v42 }
 0x16e   :  { %15605 = vmatpush3.bf16.msra.mxu1 %v15602_v61  ;;  %13343 = vmatprep.mubr.f32.mxu1 %v4331_v11  ;;  %v24125_v61 = vld [vmem:[#allocation18_spill] sm:$0xff]  ;;  %v24131_v11 = vld [vmem:[#allocation37_spill] sm:$0xff] }
 0x16f   :  { %15607 = vmatprep.subr.bf16.mxu1 %v15606_v50  ;;  %13043 = vmatmul.mubr.f32.vlgmr.msra.gmra.mrb[16].mxu0 %v24116_v34  ;;  %v24185_v34 = vld [vmem:[#allocation29_spill] sm:$0xff] }
 0x170   :  { %15421 = vmatpush3.bf16.msra.mxu0 %v15418_v46  ;;  %13045 = vmatprep.mubr.f32.mxu0 %v24119_v27  ;;  %v24130_v46 = vld [vmem:[#allocation47_spill] sm:$0xff] }
 0x171   :  { %13344 = vmatmul.mubr.f32.gmra.mrb[30].mxu1 %v4341_v7  ;;  %15423 = vmatprep.subr.bf16.mxu0 %v15422_v0  ;;  %v24184_v27 = vld [vmem:[#allocation83_spill] sm:$0xff] }
 0x172   :  { %15609 = vmatpush3.bf16.msra.mxu1 %v15606_v50  ;;  %13378 = vmatprep.mubr.f32.mxu1 %v24120_v16  ;;  %v24132_v50 = vld [vmem:[#allocation30_spill] sm:$0xff] }
 0x173   :  { %15611 = vmatprep.subr.bf16.mxu1 %v15610_v40  ;;  %13046 = vmatmul.mubr.f32.gmra.mrb[18].mxu0 %v24121_v59  ;;  %v15434_v7 = vpack.c.bf16 %v24132_v50, %v24131_v11  ;;  %v24177_v59 = vld [vmem:[#allocation40_spill] sm:$0xff]  ;;  %v24180_v16 = vld [vmem:[#allocation82_spill] sm:$0xff] }
 0x174   :  { %15425 = vmatpush3.bf16.msra.mxu0 %v15422_v0  ;;  %13048 = vmatprep.mubr.f32.mxu0 %v24122_v31  ;;  %v24133_v0 = vld [vmem:[#allocation22_spill] sm:$0xff]  ;;  %v24143_v31 = vld [vmem:[#allocation32_spill] sm:$0xff] }
 0x175   :  { %13379 = vmatmul.mubr.f32.vlgmr.msra.gmra.mrb[16].mxu1 %v24123_v45  ;;  %15427 = vmatprep.subr.bf16.mxu0 %v15426_v44 }
 0x176   :  { %15613 = vmatpush3.bf16.msra.mxu1 %v15610_v40  ;;  %13381 = vmatprep.mubr.f32.mxu1 %v24125_v61  ;;  %v24134_v40 = vld [vmem:[#allocation89_spill] sm:$0xff]  ;;  %v24137_v61 = vld [vmem:[#allocation95_spill] sm:$0xff] }
 0x177   :  { %15615 = vmatprep.subr.bf16.mxu1 %v15614_v33  ;;  %13049 = vmatmul.mubr.f32.gmra.mrb[20].mxu0 %v24126_v20  ;;  %v15622_v20 = vpack.c.bf16 %v24136_v48, %v24135_v5 }
 0x178   :  { %15429 = vmatpush3.bf16.msra.mxu0 %v15426_v44  ;;  %13051 = vmatprep.mubr.f32.mxu0 %v24129_v51  ;;  %v24138_v44 = vld [vmem:[#allocation77_spill] sm:$0xff]  ;;  %v24139_v51 = vld [vmem:[#allocation84_spill] sm:$0xff] }
 0x179   :  { %13382 = vmatmul.mubr.f32.gmra.mrb[18].mxu1 %v24130_v46  ;;  %15431 = vmatprep.subr.bf16.mxu0 %v15430_v57  ;;  %v15438_v46 = vpack.c.bf16 %v19237_v13, %v19229_v23 }
 0x17a   :  { %15617 = vmatpush3.bf16.msra.mxu1 %v15614_v33  ;;  %13384 = vmatprep.mubr.f32.mxu1 %v24133_v0  ;;  %v24140_v33 = vld [vmem:[#allocation99_spill] sm:$0xff]  ;;  %v24141_v0 = vld [vmem:[#allocation56_spill] sm:$0xff] }
 0x17b   :  { %15619 = vmatprep.subr.bf16.mxu1 %v15618_v26  ;;  %13052 = vmatmul.mubr.f32.gmra.mrb[22].mxu0 %v24134_v40  ;;  %v24142_v40 = vld [vmem:[#allocation70_spill] sm:$0xff] }
 0x17c   :  { %15433 = vmatpush3.bf16.msra.mxu0 %v15430_v57  ;;  %13054 = vmatprep.mubr.f32.mxu0 %v24137_v61  ;;  %v15626_v45 = vpack.c.bf16 %v24142_v40, %v24141_v0  ;;  %v24144_v57 = vld [vmem:[#allocation91_spill] sm:$0xff]  ;;  %v24145_v61 = vld [vmem:[#allocation98_spill] sm:$0xff] }
 0x17d   :  { %13385 = vmatmul.mubr.f32.gmra.mrb[20].mxu1 %v24138_v44  ;;  %15435 = vmatprep.subr.bf16.mxu0 %v15434_v7  ;;  %v15442_v44 = vpack.c.bf16 %v19323_v43, %v19312_v17 }
 0x17e   :  { %15621 = vmatpush3.bf16.msra.mxu1 %v15618_v26  ;;  %13387 = vmatprep.mubr.f32.mxu1 %v24139_v51  ;;  %v24146_v26 = vld [vmem:[#allocation65_spill] sm:$0xff]  ;;  %v24174_v51 = vld [vmem:[#allocation50_spill] sm:$0xff] }
 0x17f   :  { %15623 = vmatprep.subr.bf16.mxu1 %v15622_v20  ;;  %13055 = vmatmul.mubr.f32.gmra.mrb[24].mxu0 %v24140_v33  ;;  %v15630_v33 = vpack.c.bf16 %v19335_v24, %v19292_v62 }
 0x180   :  { %15437 = vmatpush3.bf16.msra.mxu0 %v15434_v7  ;;  %13057 = vmatprep.mubr.f32.mxu0 %v24143_v31  ;;  %v24147_v7 = vld [vmem:[#allocation67_spill] sm:$0xff] }
 0x181   :  { %13388 = vmatmul.mubr.f32.gmra.mrb[22].mxu1 %v24144_v57  ;;  %15439 = vmatprep.subr.bf16.mxu0 %v15438_v46  ;;  %v15446_v57 = vpack.c.bf16 %v19204_v60, %v19199_v56  ;;  %v24148_v31 = vld [vmem:[#allocation75_spill] sm:$0xff]  ;;  %v15638_v60 = vpack.c.bf16 %v19218_v14, %v19213_v2  ;;  %v24150_v56 = vld [vmem:[#allocation64_spill] sm:$0xff]  ;;  %v24155_v2 = vld [vmem:[#allocation78_spill] sm:$0xff] }
 0x182   :  { %15625 = vmatpush3.bf16.msra.mxu1 %v15622_v20  ;;  %13390 = vmatprep.mubr.f32.mxu1 %v24145_v61  ;;  %v15634_v20 = vpack.c.bf16 %v19163_v21, %v19158_v54  ;;  %v24151_v54 = vld [vmem:[#allocation12_spill] sm:$0xff]  ;;  %v24152_v21 = vld [vmem:[#allocation74_spill] sm:$0xff]  ;;  %v24154_v14 = vld [vmem:[#allocation31_spill] sm:$0xff] }
 0x183   :  { %15627 = vmatprep.subr.bf16.mxu1 %v15626_v45  ;;  %13058 = vmatmul.mubr.f32.gmra.mrb[26].mxu0 %v24146_v26  ;;  %v24172_v26 = vld [vmem:[#allocation66_spill] sm:$0xff]  ;;  %v24173_v61 = vld [vmem:[#allocation96_spill] sm:$0xff] }
 0x184   :  { %15441 = vmatpush3.bf16.msra.mxu0 %v15438_v46  ;;  %13060 = vmatprep.mubr.f32.mxu0 %v19307_v47  ;;  %v24149_v46 = vld [vmem:[#allocation34_spill] sm:$0xff]  ;;  %v24171_v47 = vld [vmem:[#allocation85_spill] sm:$0xff] }
 0x185   :  { %13391 = vmatmul.mubr.f32.gmra.mrb[24].mxu1 %v24147_v7  ;;  %15443 = vmatprep.subr.bf16.mxu0 %v15442_v44  ;;  %v24170_v7 = vld [vmem:[#allocation100_spill] sm:$0xff] }
 0x186   :  { %15629 = vmatpush3.bf16.msra.mxu1 %v15626_v45  ;;  %13393 = vmatprep.mubr.f32.mxu1 %v24148_v31  ;;  %v24153_v45 = vld [vmem:[#allocation52_spill] sm:$0xff]  ;;  %v24169_v31 = vld [vmem:[#allocation97_spill] sm:$0xff] }
 0x187   :  { %15631 = vmatprep.subr.bf16.mxu1 %v15630_v33  ;;  %13061 = vmatmul.mubr.f32.gmra.mrb[28].mxu0 %v19337_v1  ;;  %v24168_v1 = vld [vmem:[#allocation54_spill] sm:$0xff] }
 0x188   :  { %15445 = vmatpush3.bf16.msra.mxu0 %v15442_v44  ;;  %13063 = vmatprep.mubr.f32.mxu0 %v19356_v58  ;;  %v24156_v44 = vld [vmem:[#allocation14_spill] sm:$0xff]  ;;  %v24167_v58 = vld [vmem:[#allocation68_spill] sm:$0xff] }
 0x189   :  { %13394 = vmatmul.mubr.f32.gmra.mrb[26].mxu1 %v19318_v39  ;;  %15447 = vmatprep.subr.bf16.mxu0 %v15446_v57  ;;  %v24166_v39 = vld [vmem:[#allocation62_spill] sm:$0xff] }
 0x18a   :  { %15633 = vmatpush3.bf16.msra.mxu1 %v15630_v33  ;;  %13396 = vmatprep.mubr.f32.mxu1 %v24149_v46  ;;  %v24157_v33 = vld [vmem:[#allocation61_spill] sm:$0xff]  ;;  %v24165_v46 = vld [vmem:[#allocation63_spill] sm:$0xff] }
 0x18b   :  { %15635 = vmatprep.subr.bf16.mxu1 %v15634_v20  ;;  %13064 = vmatmul.mubr.f32.gmra.mrb[30].mxu0 %v19398_v36  ;;  %v24164_v36 = vld [vmem:[#allocation92_spill] sm:$0xff] }
 0x18c   :  { %15449 = vmatpush3.bf16.msra.mxu0 %v15446_v57  ;;  %13098 = vmatprep.mubr.f32.mxu0 %v24150_v56  ;;  %v24158_v57 = vld [vmem:[#allocation24_spill] sm:$0xff] }
 0x18d   :  { %13397 = vmatmul.mubr.f32.gmra.mrb[28].mxu1 %v19407_v30  ;;  %15451 = vmatprep.subr.bf16.mxu0 %v24151_v54  ;;  %v24162_v30 = vld [vmem:[#allocation13_spill] sm:$0xff]  ;;  %v24205_v18 = vand.u32 4294901760, %v24158_v57 }
 0x18e   :  { %15637 = vmatpush3.bf16.msra.mxu1 %v15634_v20  ;;  %13399 = vmatprep.mubr.f32.mxu1 %v19430_v4  ;;  %v24159_v20 = vld [vmem:[#allocation27_spill] sm:$0xff]  ;;  %v24160_v4 = vld [vmem:[#allocation49_spill] sm:$0xff] }
 0x18f   :  { %15639 = vmatprep.subr.bf16.mxu1 %v15638_v60  ;;  %13099 = vmatmul.mubr.f32.vlgmr.msra.gmra.mrb[16].mxu0 %v24152_v21 }
 0x190   :  { %15453 = vmatpush3.bf16.msra.mxu0 %v24151_v54  ;;  %13101 = vmatprep.mubr.f32.mxu0 %v24153_v45  ;;  %v24188_v54 = vand.u32 4294901760, %v24111_v3  ;;  %v24192_v3 = vand.u32 4294901760, %v24114_v55  ;;  %v24198_v55 = vand.u32 4294901760, %v24153_v45 }
 0x191   :  { %13400 = vmatmul.mubr.f32.gmra.mrb[30].mxu1 %v19459_v10  ;;  %15455 = vmatprep.subr.bf16.mxu0 %v24154_v14  ;;  %v24161_v10 = vld [vmem:[#allocation19_spill] sm:$0xff] }
 0x192   :  { %15641 = vmatpush3.bf16.msra.mxu1 %v15638_v60  ;;  %13434 = vmatprep.mubr.f32.mxu1 %v24155_v2  ;;  %v24163_v60 = vld [vmem:[#allocation23_spill] sm:$0xff] }
 0x193   :  { %15643 = vmatprep.subr.bf16.mxu1 %v24156_v44  ;;  %13102 = vmatmul.mubr.f32.gmra.mrb[18].mxu0 %v24157_v33 }
 0x194   :  { %15457 = vmatpush3.bf16.msra.mxu0 %v24154_v14  ;;  %13104 = vmatprep.mubr.f32.mxu0 %v24158_v57  ;;  %v24182_v14 = vld [vmem:[#allocation60_spill] sm:$0xff]  ;;  %v24212_v57 = vand.u32 4294901760, %v24128_v49  ;;  %v24220_v49 = vand.u32 4294901760, %v24136_v48 }
 0x195   :  { %13435 = vmatmul.mubr.f32.vlgmr.msra.gmra.mrb[16].mxu1 %v24159_v20  ;;  %15459 = vmatprep.subr.bf16.mxu0 %v24160_v4 }
 0x196   :  { %15645 = vmatpush3.bf16.msra.mxu1 %v24156_v44  ;;  %13437 = vmatprep.mubr.f32.mxu1 %v24161_v10  ;;  %v24179_v44 = vld [vmem:[#allocation101_spill] sm:$0xff] }
 0x197   :  { %15647 = vmatprep.subr.bf16.mxu1 %v24162_v30  ;;  %13105 = vmatmul.mubr.f32.gmra.mrb[20].mxu0 %v24163_v60 }
 0x198   :  { %15461 = vmatpush3.bf16.msra.mxu0 %v24160_v4  ;;  %13107 = vmatprep.mubr.f32.mxu0 %v24164_v36  ;;  %v24176_v4 = vld [vmem:[#allocation41_spill] sm:$0xff] }
 0x199   :  { %13438 = vmatmul.mubr.f32.gmra.mrb[18].mxu1 %v24165_v46  ;;  %15463 = vmatprep.subr.bf16.mxu0 %v24166_v39 }
 0x19a   :  { %15649 = vmatpush3.bf16.msra.mxu1 %v24162_v30  ;;  %13440 = vmatprep.mubr.f32.mxu1 %v24167_v58  ;;  %v24175_v30 = vld [vmem:[#allocation102_spill] sm:$0xff] }
 0x19b   :  { %15651 = vmatprep.subr.bf16.mxu1 %v24168_v1  ;;  %13108 = vmatmul.mubr.f32.gmra.mrb[22].mxu0 %v24169_v31  ;;  %v24226_v48 = vand.u32 4294901760, %v24175_v30 }
 0x19c   :  { %15465 = vmatpush3.bf16.msra.mxu0 %v24166_v39  ;;  %13110 = vmatprep.mubr.f32.mxu0 %v24170_v7  ;;  %v24178_v39 = vld [vmem:[#allocation87_spill] sm:$0xff] }
 0x19d   :  { %13441 = vmatmul.mubr.f32.gmra.mrb[20].mxu1 %v24171_v47  ;;  %15467 = vmatprep.subr.bf16.mxu0 %v24172_v26 }
 0x19e   :  { %15653 = vmatpush3.bf16.msra.mxu1 %v24168_v1  ;;  %13443 = vmatprep.mubr.f32.mxu1 %v24173_v61  ;;  %v24181_v1 = vld [vmem:[#allocation73_spill] sm:$0xff] }
 0x19f   :  { %15655 = vmatprep.subr.bf16.mxu1 %v24174_v51  ;;  %13111 = vmatmul.mubr.f32.gmra.mrb[24].mxu0 %v24175_v30  ;;  %v24233_v30 = vand.u32 4294901760, %v24179_v44 }
 0x1a0   :  { %15469 = vmatpush3.bf16.msra.mxu0 %v24172_v26  ;;  %13113 = vmatprep.mubr.f32.mxu0 %v24176_v4  ;;  %v24183_v26 = vld [vmem:[#allocation28_spill] sm:$0xff] }
 0x1a1   :  { %13444 = vmatmul.mubr.f32.gmra.mrb[22].mxu1 %v24177_v59  ;;  %15471 = vmatprep.subr.bf16.mxu0 %v24178_v39 }
 0x1a2   :  { %15657 = vmatpush3.bf16.msra.mxu1 %v24174_v51  ;;  %13446 = vmatprep.mubr.f32.mxu1 %v24179_v44  ;;  %v24186_v51 = vld [vmem:[#allocation53_spill] sm:$0xff]  ;;  %v24240_v44 = vand.u32 4294901760, %v24184_v27 }
 0x1a3   :  { %15659 = vmatprep.subr.bf16.mxu1 %v24180_v16  ;;  %13114 = vmatmul.mubr.f32.gmra.mrb[26].mxu0 %v24181_v1 }
 0x1a4   :  { %15473 = vmatpush3.bf16.msra.mxu0 %v24178_v39  ;;  %13116 = vmatprep.mubr.f32.mxu0 %v19353_v19  ;;  %v24187_v39 = vld [vmem:[#allocation36_spill] sm:$0xff] }
 0x1a5   :  { %13447 = vmatmul.mubr.f32.gmra.mrb[24].mxu1 %v24182_v14  ;;  %15475 = vmatprep.subr.bf16.mxu0 %v24183_v26  ;;  %v15482_v14 = vpack.c.bf16 %v24189_v6, %v24188_v54  ;;  %v15486_v6 = vpack.c.bf16 %v24193_v37, %v24192_v3  ;;  %v24194_v54 = vld [vmem:[#allocation15_spill] sm:$0xff]  ;;  %v24200_v3 = vand.u32 4294901760, %v18892_v38  ;;  %v24206_v38 = vand.u32 4294901760, %v24159_v20 }
 0x1a6   :  { %15661 = vmatpush3.bf16.msra.mxu1 %v24180_v16  ;;  %13449 = vmatprep.mubr.f32.mxu1 %v24184_v27  ;;  %v24190_v16 = vld [vmem:[#allocation35_spill] sm:$0xff]  ;;  %v24247_v27 = vand.u32 4294901760, %v19438_v63 }
 0x1a7   :  { %15663 = vmatprep.subr.bf16.mxu1 %v24185_v34  ;;  %13117 = vmatmul.mubr.f32.gmra.mrb[28].mxu0 %v19385_v8  ;;  %v15490_v37 = vpack.c.bf16 %v24200_v3, %v24199_v35  ;;  %v24229_v35 = vand.u32 4294901760, %v24176_v4  ;;  %v24235_v4 = vand.u32 4294901760, %v19292_v62  ;;  %v24243_v62 = vand.u32 4294901760, %v24186_v51 }
 0x1a8   :  { %15477 = vmatpush3.bf16.msra.mxu0 %v24183_v26  ;;  %13119 = vmatprep.mubr.f32.mxu0 %v19410_v15  ;;  %v24191_v26 = vand.u32 4294901760, %v24150_v56  ;;  %v24196_v56 = vand.u32 4294901760, %v24117_v53  ;;  %v24202_v53 = vand.u32 4294901760, %v24157_v33  ;;  %v24209_v33 = vand.u32 4294901760, %v24161_v10 }
 0x1a9   :  { %13450 = vmatmul.mubr.f32.gmra.mrb[26].mxu1 %v24186_v51  ;;  %15479 = vmatprep.subr.bf16.mxu0 %v24187_v39  ;;  %v24216_v10 = vand.u32 4294901760, %v24132_v50  ;;  %v24224_v50 = vand.u32 4294901760, %v19237_v13  ;;  %v24230_v13 = vand.u32 4294901760, %v24177_v59  ;;  %v24250_v51 = vld [vmem:[#allocation12_spill] sm:$0xff] }
 0x1aa   :  { %15665 = vmatpush3.bf16.msra.mxu1 %v24185_v34  ;;  %13452 = vmatprep.mubr.f32.mxu1 %v19396_v28  ;;  %v24195_v34 = vand.u32 4294901760, %v24152_v21  ;;  %v24204_v21 = vand.u32 4294901760, %v18776_v32  ;;  %v24210_v32 = vand.u32 4294901760, %v24163_v60  ;;  %v24217_v60 = vand.u32 4294901760, %v24167_v58 }
 0x1ab   :  { %15667 = vmatprep.subr.bf16.mxu1 %v24190_v16  ;;  %13120 = vmatmul.mubr.f32.gmra.mrb[30].mxu0 %v19438_v63  ;;  %v24223_v58 = vand.u32 4294901760, %v19229_v23  ;;  %v24231_v23 = vand.u32 4294901760, %v19312_v17  ;;  %v24238_v17 = vld [vmem:[#allocation60_spill] sm:$0xff] }
 0x1ac   :  { %15481 = vmatpush3.bf16.msra.mxu0 %v24187_v39  ;;  %13154 = vmatprep.mubr.f32.mxu0 %v24191_v26  ;;  %v24197_v26 = vand.u32 4294901760, %v24118_v25  ;;  %v24203_v25 = vand.u32 4294901760, %v18771_v41  ;;  %v24211_v41 = vand.u32 4294901760, %v24127_v42  ;;  %v24218_v42 = vand.u32 4294901760, %v24169_v31  ;;  %v19778_v63 = vld [vmem:[#allocation5 + $0x80] sm:$0xff] }
 0x1ad   :  { %13453 = vmatmul.mubr.f32.gmra.mrb[28].mxu1 %v19447_v52  ;;  %15483 = vmatprep.subr.bf16.mxu0 %v15482_v14  ;;  %v24225_v31 = vand.u32 4294901760, %v24173_v61  ;;  %v24232_v61 = vand.u32 4294901760, %v19323_v43  ;;  %v24239_v43 = vand.u32 4294901760, %v24238_v17  ;;  %24254 = vst [vmem:[#allocation25_spill] sm:$0xff] %v19778_v63  ;;  %v24284_v17 = vld [vmem:[#allocation21_spill] sm:$0xff] }
 0x1ae   :  { %15669 = vmatpush3.bf16.msra.mxu1 %v24190_v16  ;;  %13455 = vmatprep.mubr.f32.mxu1 %v19471_v29  ;;  %v15674_v39 = vpack.c.bf16 %v24197_v26, %v24196_v56  ;;  %v15678_v45 = vpack.c.bf16 %v24204_v21, %v24203_v25  ;;  %v15682_v20 = vpack.c.bf16 %v24212_v57, %v24211_v41  ;;  %v24221_v26 = vand.u32 4294901760, %v24170_v7  ;;  %v19771_v25 = vld [vmem:[#allocation5] sm:$0xff]  ;;  %v19776_v21 = vld [vmem:[#allocation5 + $0x8] sm:$0xff] }
 0x1af   :  { %15671 = vmatprep.subr.bf16.mxu1 %v24194_v54  ;;  %13155 = vmatmul.mubr.f32.vlgmr.msra.gmra.mrb[16].mxu0 %v24195_v34  ;;  %v24201_v34 = vand.u32 4294901760, %v24155_v2  ;;  %v24208_v2 = vand.u32 4294901760, %v24124_v9  ;;  %v24228_v7 = vand.u32 4294901760, %v24142_v40  ;;  %v15506_v3 = vpack.c.bf16 %v24232_v61, %v24231_v23  ;;  %24251 = vst [vmem:[#allocation48_spill] sm:$0xff] %v19771_v25  ;;  %24253 = vst [vmem:[#allocation79_spill] sm:$0xff] %v19776_v21  ;;  %v24281_v23 = vld [vmem:[#allocation18_spill] sm:$0xff] }
 0x1b0   :  { %15485 = vmatpush3.bf16.msra.mxu0 %v15482_v14  ;;  %13157 = vmatprep.mubr.f32.mxu0 %v24198_v55  ;;  %v24207_v14 = vand.u32 4294901760, %v18967_v22  ;;  %v24214_v22 = vand.u32 4294901760, %v24165_v46  ;;  %v15502_v55 = vpack.c.bf16 %v24224_v50, %v24223_v58  ;;  %v24236_v40 = vand.u32 4294901760, %v19335_v24  ;;  %v19821_v58 = vld [vmem:[#allocation5 + $0xb0] sm:$0xff]  ;;  %v19823_v50 = vld [vmem:[#allocation5 + $0xb8] sm:$0xff] }
 0x1b1   :  { %13456 = vmatmul.mubr.f32.gmra.mrb[30].mxu1 %v19495_v12  ;;  %15487 = vmatprep.subr.bf16.mxu0 %v15486_v6  ;;  %v24242_v24 = vand.u32 4294901760, %v19410_v15  ;;  %v24249_v15 = vand.u32 4294901760, %v19447_v52  ;;  %v19784_v52 = vld [vmem:[#allocation5 + $0x10] sm:$0xff]  ;;  %v23031_v41 = vand.u32 4294901760, %v19778_v63  ;;  %24275 = vst [vmem:[#allocation56_spill] sm:$0xff] %v19821_v58  ;;  %24276 = vst [vmem:[#allocation70_spill] sm:$0xff] %v19823_v50 }
 0x1b2   :  { %15673 = vmatpush3.bf16.msra.mxu1 %v24194_v54  ;;  %13490 = vmatprep.mubr.f32.mxu1 %v24201_v34  ;;  %v15494_v56 = vpack.c.bf16 %v24208_v2, %v24207_v14  ;;  %v15694_v59 = vpack.c.bf16 %v24236_v40, %v24235_v4  ;;  %v24245_v34 = vand.u32 4294901760, %v19396_v28  ;;  %v24252_v28 = vand.u32 4294901760, %v19471_v29  ;;  %24258 = vst [vmem:[#allocation17_spill] sm:$0xff] %v19784_v52  ;;  %v19786_v14 = vld [vmem:[#allocation5 + $0x18] sm:$0xff]  ;;  %v19857_v4 = vld [vmem:[#allocation5 + $0xc8] sm:$0xff]  ;;  %v19859_v40 = vld [vmem:[#allocation5 + $0x50] sm:$0xff] }
 0x1b3   :  { %15675 = vmatprep.subr.bf16.mxu1 %v15674_v39  ;;  %13158 = vmatmul.mubr.f32.gmra.mrb[18].mxu0 %v24202_v53  ;;  %v24246_v53 = vld [vmem:[#allocation69_spill] sm:$0xff]  ;;  %24259 = vst [vmem:[#allocation33_spill] sm:$0xff] %v19786_v14  ;;  %v24260_v2 = vld [vmem:[#allocation51_spill] sm:$0xff]  ;;  %v24261_v29 = vand.u32 4294901760, %v19495_v12  ;;  %v23028_v12 = vand.u32 4294901760, %v19786_v14 }
 0x1b4   :  { %15489 = vmatpush3.bf16.msra.mxu0 %v15486_v6  ;;  %13160 = vmatprep.mubr.f32.mxu0 %v24205_v18  ;;  %v24213_v6 = vand.u32 4294901760, %v24164_v36  ;;  %v24219_v36 = vand.u32 4294901760, %v24135_v5  ;;  %v24227_v5 = vand.u32 4294901760, %v24141_v0  ;;  %v24234_v0 = vand.u32 4294901760, %v24181_v1  ;;  %v24256_v18 = vld [vmem:[#allocation72_spill] sm:$0xff] }
 0x1b5   :  { %13491 = vmatmul.mubr.f32.vlgmr.msra.gmra.mrb[16].mxu1 %v24206_v38  ;;  %15491 = vmatprep.subr.bf16.mxu0 %v15490_v37  ;;  %v24241_v1 = vand.u32 4294901760, %v19385_v8  ;;  %v24248_v8 = vld [vmem:[#allocation38_spill] sm:$0xff] }
 0x1b6   :  { %15677 = vmatpush3.bf16.msra.mxu1 %v15674_v39  ;;  %13493 = vmatprep.mubr.f32.mxu1 %v24209_v33  ;;  %v24215_v39 = vand.u32 4294901760, %v24131_v11  ;;  %v15686_v46 = vpack.c.bf16 %v24220_v49, %v24219_v36  ;;  %v24222_v11 = vand.u32 4294901760, %v24171_v47  ;;  %v15690_v47 = vpack.c.bf16 %v24228_v7, %v24227_v5  ;;  %v24257_v38 = vld [vmem:[#allocation58_spill] sm:$0xff]  ;;  %v19811_v36 = vld [vmem:[#allocation5 + $0xa0] sm:$0xff]  ;;  %v19813_v49 = vld [vmem:[#allocation5 + $0xa8] sm:$0xff] }
 0x1b7   :  { %15679 = vmatprep.subr.bf16.mxu1 %v15678_v45  ;;  %13161 = vmatmul.mubr.f32.gmra.mrb[20].mxu0 %v24210_v32  ;;  %v5457_v33 = vand.u32 4294901760, %v19771_v25  ;;  %v23032_v32 = vand.u32 4294901760, %v19776_v21  ;;  %24270 = vst [vmem:[#allocation37_spill] sm:$0xff] %v19811_v36  ;;  %24271 = vst [vmem:[#allocation30_spill] sm:$0xff] %v19813_v49 }
 0x1b8   :  { %15493 = vmatpush3.bf16.msra.mxu0 %v15490_v37  ;;  %13163 = vmatprep.mubr.f32.mxu0 %v24213_v6  ;;  %v15498_v9 = vpack.c.bf16 %v24216_v10, %v24215_v39  ;;  %v24237_v37 = vand.u32 4294901760, %v19353_v19  ;;  %v24244_v19 = vld [vmem:[#allocation71_spill] sm:$0xff]  ;;  %v19805_v10 = vld [vmem:[#allocation5 + $0x20] sm:$0xff] }
 0x1b9   :  { %13494 = vmatmul.mubr.f32.gmra.mrb[18].mxu1 %v24214_v22  ;;  %15495 = vmatprep.subr.bf16.mxu0 %v15494_v56  ;;  %v24264_v6 = vld [vmem:[#allocation39_spill] sm:$0xff]  ;;  %v23029_v22 = vand.u32 4294901760, %v19784_v52  ;;  %24266 = vst [vmem:[#allocation26_spill] sm:$0xff] %v19805_v10 }
 0x1ba   :  { %15681 = vmatpush3.bf16.msra.mxu1 %v15678_v45  ;;  %13496 = vmatprep.mubr.f32.mxu1 %v24217_v60  ;;  %v19780_v45 = vld [vmem:[#allocation5 + $0x88] sm:$0xff]  ;;  %v19803_v39 = vld [vmem:[#allocation5 + $0x98] sm:$0xff]  ;;  %v24268_v60 = vld [vmem:[#allocation14_spill] sm:$0xff] }
 0x1bb   :  { %15683 = vmatprep.subr.bf16.mxu1 %v15682_v20  ;;  %13164 = vmatmul.mubr.f32.gmra.mrb[22].mxu0 %v24218_v42  ;;  %24255 = vst [vmem:[#allocation44_spill] sm:$0xff] %v19780_v45  ;;  %v23030_v57 = vand.u32 4294901760, %v19780_v45  ;;  %24265 = vst [vmem:[#allocation90_spill] sm:$0xff] %v19803_v39  ;;  %v24269_v42 = vld [vmem:[#allocation59_spill] sm:$0xff]  ;;  %v19852_v61 = vpack.c.bf16 %v23028_v12, %v23029_v22  ;;  %v19921_v22 = vld [vmem:[#allocation5 + $0xe0] sm:$0xff] }
 0x1bc   :  { %15497 = vmatpush3.bf16.msra.mxu0 %v15494_v56  ;;  %13166 = vmatprep.mubr.f32.mxu0 %v24221_v26  ;;  %v24262_v56 = vld [vmem:[#allocation31_spill] sm:$0xff]  ;;  %v24273_v26 = vld [vmem:[#allocation20_spill] sm:$0xff]  ;;  %v19923_v12 = vld [vmem:[#allocation5 + $0xe8] sm:$0xff] }
 0x1bd   :  { %13497 = vmatmul.mubr.f32.gmra.mrb[20].mxu1 %v24222_v11  ;;  %15499 = vmatprep.subr.bf16.mxu0 %v15498_v9  ;;  %v19819_v11 = vld [vmem:[#allocation5 + $0x38] sm:$0xff]  ;;  %v19837_v5 = vpack.c.bf16 %v23030_v57, %v23031_v41  ;;  %24282 = vst [vmem:[#allocation52_spill] sm:$0xff] %v19852_v61  ;;  %v24288_v57 = vld [vmem:[#allocation22_spill] sm:$0xff] }
 0x1be   :  { %15685 = vmatpush3.bf16.msra.mxu1 %v15682_v20  ;;  %13499 = vmatprep.mubr.f32.mxu1 %v24225_v31  ;;  %v19797_v20 = vld [vmem:[#allocation5 + $0x90] sm:$0xff]  ;;  %24274 = vst [vmem:[#allocation94_spill] sm:$0xff] %v19819_v11  ;;  %v24278_v31 = vld [vmem:[#allocation49_spill] sm:$0xff] }
 0x1bf   :  { %15687 = vmatprep.subr.bf16.mxu1 %v15686_v46  ;;  %13167 = vmatmul.mubr.f32.gmra.mrb[24].mxu0 %v24226_v48  ;;  %24263 = vst [vmem:[#allocation16_spill] sm:$0xff] %v19797_v20  ;;  %v19831_v48 = vpack.c.bf16 %v23032_v32, %v5457_v33  ;;  %24280 = vst [vmem:[#allocation74_spill] sm:$0xff] %v19837_v5  ;;  %v23036_v7 = vand.u32 4294901760, %v19797_v20 }
 0x1c0   :  { %15501 = vmatpush3.bf16.msra.mxu0 %v15498_v9  ;;  %13169 = vmatprep.mubr.f32.mxu0 %v24229_v35  ;;  %v19807_v9 = vld [vmem:[#allocation5 + $0x28] sm:$0xff] }
 0x1c1   :  { %13500 = vmatmul.mubr.f32.gmra.mrb[22].mxu1 %v24230_v13  ;;  %15503 = vmatprep.subr.bf16.mxu0 %v15502_v55  ;;  %24267 = vst [vmem:[#allocation76_spill] sm:$0xff] %v19807_v9  ;;  %24279 = vst [vmem:[#allocation64_spill] sm:$0xff] %v19831_v48  ;;  %v19842_v35 = vld [vmem:[#allocation5 + $0x48] sm:$0xff]  ;;  %v19844_v13 = vld [vmem:[#allocation5 + $0xc0] sm:$0xff] }
 0x1c2   :  { %15689 = vmatpush3.bf16.msra.mxu1 %v15686_v46  ;;  %13502 = vmatprep.mubr.f32.mxu1 %v24233_v30  ;;  %v19815_v46 = vld [vmem:[#allocation5 + $0x30] sm:$0xff]  ;;  %v23035_v30 = vand.u32 4294901760, %v19805_v10 }
 0x1c3   :  { %15691 = vmatprep.subr.bf16.mxu1 %v15690_v47  ;;  %13170 = vmatmul.mubr.f32.gmra.mrb[26].mxu0 %v24234_v0  ;;  %24272 = vst [vmem:[#allocation93_spill] sm:$0xff] %v19815_v46  ;;  %v23034_v0 = vand.u32 4294901760, %v19807_v9 }
 0x1c4   :  { %15505 = vmatpush3.bf16.msra.mxu0 %v15502_v55  ;;  %13172 = vmatprep.mubr.f32.mxu0 %v24237_v37  ;;  %v24277_v55 = vld [vmem:[#allocation88_spill] sm:$0xff]  ;;  %v24283_v37 = vld [vmem:[#allocation13_spill] sm:$0xff] }
 0x1c5   :  { %13503 = vmatmul.mubr.f32.gmra.mrb[24].mxu1 %v24239_v43  ;;  %15507 = vmatprep.subr.bf16.mxu0 %v15506_v3  ;;  %v23040_v43 = vand.u32 4294901760, %v19811_v36  ;;  %v19901_v32 = vpack.c.bf16 %v23034_v0, %v23035_v30  ;;  %v24300_v30 = vld [vmem:[#allocation66_spill] sm:$0xff] }
 0x1c6   :  { %15693 = vmatpush3.bf16.msra.mxu1 %v15690_v47  ;;  %13505 = vmatprep.mubr.f32.mxu1 %v24240_v44  ;;  %v19840_v47 = vld [vmem:[#allocation5 + $0x40] sm:$0xff]  ;;  %v23037_v44 = vand.u32 4294901760, %v19813_v49 }
 0x1c7   :  { %15695 = vmatprep.subr.bf16.mxu1 %v15694_v59  ;;  %13173 = vmatmul.mubr.f32.gmra.mrb[28].mxu0 %v24241_v1  ;;  %v23039_v1 = vand.u32 4294901760, %v19815_v46  ;;  %24290 = vst [vmem:[#allocation61_spill] sm:$0xff] %v19901_v32 }
 0x1c8   :  { %15509 = vmatpush3.bf16.msra.mxu0 %v15506_v3  ;;  %13175 = vmatprep.mubr.f32.mxu0 %v24242_v24  ;;  %v23033_v3 = vand.u32 4294901760, %v19803_v39  ;;  %v23038_v24 = vand.u32 4294901760, %v19819_v11 }
 0x1c9   :  { %13506 = vmatmul.mubr.f32.gmra.mrb[26].mxu1 %v24243_v62  ;;  %15511 = vmatprep.subr.bf16.mxu0 %v24244_v19  ;;  %v19869_v62 = vld [vmem:[#allocation5 + $0xd0] sm:$0xff] }
 0x1ca   :  { %15697 = vmatpush3.bf16.msra.mxu1 %v15694_v59  ;;  %13508 = vmatprep.mubr.f32.mxu1 %v24245_v34  ;;  %v19861_v59 = vld [vmem:[#allocation5 + $0x58] sm:$0xff]  ;;  %v24285_v34 = vld [vmem:[#allocation80_spill] sm:$0xff]  ;;  %v19895_v41 = vpack.c.bf16 %v23033_v3, %v23036_v7  ;;  %v19911_v3 = vpack.c.bf16 %v23037_v44, %v23040_v43  ;;  %v19917_v0 = vpack.c.bf16 %v23038_v24, %v23039_v1  ;;  %v19939_v1 = vld [vmem:[#allocation5 + $0x70] sm:$0xff] }
 0x1cb   :  { %15699 = vmatprep.subr.bf16.mxu1 %v24246_v53  ;;  %13176 = vmatmul.mubr.f32.gmra.mrb[30].mxu0 %v24247_v27  ;;  %v23041_v27 = vand.u32 4294901760, %v19823_v50  ;;  %v19941_v43 = vld [vmem:[#allocation5 + $0x78] sm:$0xff]  ;;  %v24299_v7 = vld [vmem:[#allocation77_spill] sm:$0xff] }
 0x1cc   :  { %15513 = vmatpush3.bf16.msra.mxu0 %v24244_v19  ;;  %13210 = vmatprep.mubr.f32.mxu0 %v24248_v8  ;;  %v19871_v19 = vld [vmem:[#allocation5 + $0xd8] sm:$0xff]  ;;  %24289 = vst [vmem:[#allocation78_spill] sm:$0xff] %v19895_v41  ;;  %24293 = vst [vmem:[#allocation24_spill] sm:$0xff] %v19911_v3 }
 0x1cd   :  { %13509 = vmatmul.mubr.f32.gmra.mrb[28].mxu1 %v24249_v15  ;;  %15515 = vmatprep.subr.bf16.mxu0 %v24250_v51  ;;  %v23045_v15 = vand.u32 4294901760, %v19840_v47  ;;  %24294 = vst [vmem:[#allocation27_spill] sm:$0xff] %v19917_v0 }
 0x1ce   :  { %15701 = vmatpush3.bf16.msra.mxu1 %v24246_v53  ;;  %13511 = vmatprep.mubr.f32.mxu1 %v24252_v28  ;;  %v23042_v53 = vand.u32 4294901760, %v19821_v58  ;;  %v19879_v28 = vld [vmem:[#allocation5 + $0x60] sm:$0xff] }
 0x1cf   :  { %15703 = vmatprep.subr.bf16.mxu1 %v24256_v18  ;;  %13211 = vmatmul.mubr.f32.vlgmr.msra.gmra.mrb[16].mxu0 %v24257_v38 }
 0x1d0   :  { %15517 = vmatpush3.bf16.msra.mxu0 %v24250_v51  ;;  %13213 = vmatprep.mubr.f32.mxu0 %v24260_v2  ;;  %v23044_v51 = vand.u32 4294901760, %v19842_v35  ;;  %v19931_v44 = vpack.c.bf16 %v23041_v27, %v23042_v53  ;;  %v24301_v27 = vand.u32 4294901760, %v19844_v13  ;;  %v24302_v53 = vand.u32 4294901760, %v19857_v4 }
 0x1d1   :  { %13512 = vmatmul.mubr.f32.gmra.mrb[30].mxu1 %v24261_v29  ;;  %15519 = vmatprep.subr.bf16.mxu0 %v24262_v56  ;;  %v24286_v29 = vld [vmem:[#allocation47_spill] sm:$0xff] }
 0x1d2   :  { %15705 = vmatpush3.bf16.msra.mxu1 %v24256_v18  ;;  %13546 = vmatprep.mubr.f32.mxu1 %v24264_v6  ;;  %v19881_v18 = vld [vmem:[#allocation5 + $0x68] sm:$0xff]  ;;  %24296 = vst [vmem:[#allocation19_spill] sm:$0xff] %v19931_v44  ;;  %v19937_v24 = vpack.c.bf16 %v23044_v51, %v23045_v15  ;;  %v19954_v44 = vpack.c.bf16 %v24302_v53, %v24301_v27  ;;  %v24304_v51 = vand.u32 4294901760, %v19859_v40  ;;  %v24305_v15 = vand.u32 4294901760, %v19861_v59 }
 0x1d3   :  { %15707 = vmatprep.subr.bf16.mxu1 %v24268_v60  ;;  %13214 = vmatmul.mubr.f32.gmra.mrb[18].mxu0 %v24269_v42  ;;  %v24311_v53 = vand.u32 4294901760, %v19871_v19 }
 0x1d4   :  { %15521 = vmatpush3.bf16.msra.mxu0 %v24262_v56  ;;  %13216 = vmatprep.mubr.f32.mxu0 %v24273_v26  ;;  %v24287_v56 = vld [vmem:[#allocation62_spill] sm:$0xff]  ;;  %24297 = vst [vmem:[#allocation23_spill] sm:$0xff] %v19937_v24  ;;  %24303 = vst [vmem:[#allocation63_spill] sm:$0xff] %v19954_v44  ;;  %v19960_v24 = vpack.c.bf16 %v24305_v15, %v24304_v51  ;;  %v24313_v51 = vand.u32 4294901760, %v19778_v63  ;;  %v24320_v15 = vand.u32 4294901760, %v19780_v45 }
 0x1d5   :  { %13547 = vmatmul.mubr.f32.vlgmr.msra.gmra.mrb[16].mxu1 %v24277_v55  ;;  %15523 = vmatprep.subr.bf16.mxu0 %v24278_v31 }
 0x1d6   :  { %15709 = vmatpush3.bf16.msra.mxu1 %v24268_v60  ;;  %13549 = vmatprep.mubr.f32.mxu1 %v24281_v23  ;;  %v24295_v60 = vld [vmem:[#allocation95_spill] sm:$0xff]  ;;  %24306 = vst [vmem:[#allocation68_spill] sm:$0xff] %v19960_v24  ;;  %v19980_v24 = vsub.f32 %v19778_v63, %v24313_v51  ;;  %v19995_v44 = vsub.f32 %v19780_v45, %v24320_v15  ;;  %v24322_v51 = vld [vmem:[#allocation32_spill] sm:$0xff]  ;;  %v24338_v63 = vand.u32 4294901760, %v19921_v22 }
 0x1d7   :  { %15711 = vmatprep.subr.bf16.mxu1 %v24283_v37  ;;  %13217 = vmatmul.mubr.f32.gmra.mrb[20].mxu0 %v24284_v17  ;;  %v24330_v45 = vld [vmem:[#allocation87_spill] sm:$0xff] }
 0x1d8   :  { %15525 = vmatpush3.bf16.msra.mxu0 %v24278_v31  ;;  %13219 = vmatprep.mubr.f32.mxu0 %v24285_v34  ;;  %v24291_v31 = vld [vmem:[#allocation54_spill] sm:$0xff]  ;;  %24314 = vst [vmem:[#allocation85_spill] sm:$0xff] %v19980_v24  ;;  %24321 = vst [vmem:[#allocation102_spill] sm:$0xff] %v19995_v44 }
 0x1d9   :  { %13550 = vmatmul.mubr.f32.gmra.mrb[18].mxu1 %v24286_v29  ;;  %15527 = vmatprep.subr.bf16.mxu0 %v24287_v56 }
 0x1da   :  { %15713 = vmatpush3.bf16.msra.mxu1 %v24283_v37  ;;  %13552 = vmatprep.mubr.f32.mxu1 %v24288_v57  ;;  %v24292_v37 = vld [vmem:[#allocation89_spill] sm:$0xff] }
 0x1db   :  { %15715 = vmatprep.subr.bf16.mxu1 %v24291_v31  ;;  %13220 = vmatmul.mubr.f32.gmra.mrb[22].mxu0 %v24292_v37 }
 0x1dc   :  { %15529 = vmatpush3.bf16.msra.mxu0 %v24287_v56  ;;  %13222 = vmatprep.mubr.f32.mxu0 %v24295_v60  ;;  %v19946_v56 = vsub.f32 %v19771_v25, %v5457_v33  ;;  %v24307_v60 = vand.u32 4294901760, %v19776_v21  ;;  %v24309_v25 = vld [vmem:[#allocation84_spill] sm:$0xff] }
 0x1dd   :  { %13553 = vmatmul.mubr.f32.gmra.mrb[20].mxu1 %v24299_v7  ;;  %15531 = vmatprep.subr.bf16.mxu0 %v24300_v30  ;;  %v24310_v7 = vand.u32 4294901760, %v19869_v62 }
 0x1de   :  { %24298 = vst [vmem:[#allocation92_spill] sm:$0xff] %v19946_v56  ;;  %v19965_v33 = vsub.f32 %v19776_v21, %v24307_v60  ;;  %15717 = vmatpush3.bf16.msra.mxu1 %v24291_v31  ;;  %13555 = vmatprep.mubr.f32.mxu1 %v24309_v25  ;;  %v24315_v60 = vld [vmem:[#allocation50_spill] sm:$0xff]  ;;  %v24316_v31 = vld [vmem:[#allocation99_spill] sm:$0xff]  ;;  %v24317_v21 = vand.u32 4294901760, %v19879_v28  ;;  %v24318_v25 = vand.u32 4294901760, %v19881_v18 }
 0x1df   :  { %v19973_v27 = vpack.c.bf16 %v24311_v53, %v24310_v7  ;;  %15719 = vmatprep.subr.bf16.mxu1 %v24315_v60  ;;  %13223 = vmatmul.mubr.f32.gmra.mrb[24].mxu0 %v24316_v31  ;;  %v24327_v7 = vand.u32 4294901760, %v19797_v20  ;;  %v24366_v31 = vand.u32 4294901760, %v19823_v50 }
 0x1e0   :  { %24308 = vst [vmem:[#allocation97_spill] sm:$0xff] %v19965_v33  ;;  %v19988_v37 = vpack.c.bf16 %v24318_v25, %v24317_v21  ;;  %15533 = vmatpush3.bf16.msra.mxu0 %v24300_v30  ;;  %13225 = vmatprep.mubr.f32.mxu0 %v24322_v51  ;;  %v24325_v21 = vand.u32 4294901760, %v19786_v14  ;;  %v24329_v30 = vld [vmem:[#allocation91_spill] sm:$0xff]  ;;  %v24347_v51 = vand.u32 4294901760, %v19939_v1 }
 0x1e1   :  { %24312 = vst [vmem:[#allocation100_spill] sm:$0xff] %v19973_v27  ;;  %v24323_v27 = vand.u32 4294901760, %v19784_v52  ;;  %v20013_v15 = vsub.f32 %v19797_v20, %v24327_v7  ;;  %13556 = vmatmul.mubr.f32.gmra.mrb[22].mxu1 %v24329_v30  ;;  %15535 = vmatprep.subr.bf16.mxu0 %v24330_v45  ;;  %v24337_v20 = vld [vmem:[#allocation98_spill] sm:$0xff]  ;;  %v24339_v30 = vand.u32 4294901760, %v19923_v12 }
 0x1e2   :  { %24319 = vst [vmem:[#allocation96_spill] sm:$0xff] %v19988_v37  ;;  %v20008_v53 = vsub.f32 %v19786_v14, %v24325_v21  ;;  %v24331_v37 = vand.u32 4294901760, %v19803_v39  ;;  %v24335_v14 = vand.u32 4294901760, %v19807_v9  ;;  %15721 = vmatpush3.bf16.msra.mxu1 %v24315_v60  ;;  %13558 = vmatprep.mubr.f32.mxu1 %v24337_v20  ;;  %v24345_v60 = vld [vmem:[#allocation82_spill] sm:$0xff]  ;;  %v24346_v20 = vld [vmem:[#allocation65_spill] sm:$0xff] }
 0x1e3   :  { %v20003_v25 = vsub.f32 %v19784_v52, %v24323_v27  ;;  %24328 = vst [vmem:[#allocation101_spill] sm:$0xff] %v20013_v15  ;;  %v24333_v52 = vand.u32 4294901760, %v19805_v10  ;;  %15723 = vmatprep.subr.bf16.mxu1 %v24345_v60  ;;  %13226 = vmatmul.mubr.f32.gmra.mrb[26].mxu0 %v24346_v20  ;;  %v24355_v20 = vand.u32 4294901760, %v19946_v56 }
 0x1e4   :  { %24326 = vst [vmem:[#allocation40_spill] sm:$0xff] %v20008_v53  ;;  %v20021_v27 = vsub.f32 %v19803_v39, %v24331_v37  ;;  %v20031_v7 = vsub.f32 %v19807_v9, %v24335_v14  ;;  %v20039_v37 = vpack.c.bf16 %v24339_v30, %v24338_v63  ;;  %v24343_v14 = vand.u32 4294901760, %v19813_v49  ;;  %15537 = vmatpush3.bf16.msra.mxu0 %v24330_v45  ;;  %v24359_v39 = vld [vmem:[#allocation75_spill] sm:$0xff] }
 0x1e5   :  { %24324 = vst [vmem:[#allocation41_spill] sm:$0xff] %v20003_v25  ;;  %v20026_v21 = vsub.f32 %v19805_v10, %v24333_v52  ;;  %v24341_v52 = vand.u32 4294901760, %v19811_v36  ;;  %v24348_v63 = vand.u32 4294901760, %v19941_v43  ;;  %v24358_v45 = vand.u32 4294901760, %v19965_v33 }
 0x1e6   :  { %24332 = vst [vmem:[#allocation73_spill] sm:$0xff] %v20021_v27  ;;  %24336 = vst [vmem:[#allocation53_spill] sm:$0xff] %v20031_v7  ;;  %v20050_v9 = vsub.f32 %v19813_v49, %v24343_v14  ;;  %v24352_v14 = vand.u32 4294901760, %v19819_v11  ;;  %15725 = vmatpush3.bf16.msra.mxu1 %v24345_v60  ;;  %v24364_v60 = vld [vmem:[#allocation46_spill] sm:$0xff] }
 0x1e7   :  { %24334 = vst [vmem:[#allocation83_spill] sm:$0xff] %v20026_v21  ;;  %24340 = vst [vmem:[#allocation35_spill] sm:$0xff] %v20039_v37  ;;  %v20045_v10 = vsub.f32 %v19811_v36, %v24341_v52  ;;  %v20058_v30 = vpack.c.bf16 %v24348_v63, %v24347_v51  ;;  %v24350_v52 = vand.u32 4294901760, %v19815_v46  ;;  %v24354_v37 = vld [vmem:[#allocation81_spill] sm:$0xff]  ;;  %v20076_v51 = vsub.f32 %v19946_v56, %v24355_v20 }
 0x1e8   :  { %24344 = vst [vmem:[#allocation60_spill] sm:$0xff] %v20050_v9  ;;  %v20069_v49 = vsub.f32 %v19819_v11, %v24352_v14  ;;  %13228 = vmatprep.mubr.f32.mxu0 %v24354_v37  ;;  %v20083_v14 = vld [vmem:[#allocation5 + $0xf0] sm:$0xff]  ;;  %v5708_v11 = vsub.f32 %v19965_v33, %v24358_v45  ;;  %v24360_v56 = vand.u32 4294901760, %v19980_v24  ;;  %v24361_v37 = vand.u32 4294901760, %v19821_v58  ;;  %v24363_v63 = vld [vmem:[#allocation29_spill] sm:$0xff] }
 0x1e9   :  { %24342 = vst [vmem:[#allocation15_spill] sm:$0xff] %v20045_v10  ;;  %24349 = vst [vmem:[#allocation71_spill] sm:$0xff] %v20058_v30  ;;  %v20064_v36 = vsub.f32 %v19815_v46, %v24350_v52  ;;  %v24356_v46 = vld [vmem:[#allocation67_spill] sm:$0xff]  ;;  %v24357_v30 = vld [vmem:[#allocation28_spill] sm:$0xff]  ;;  %15727 = vmatprep.subr.bf16.mxu1 %v24363_v63  ;;  %13229 = vmatmul.mubr.f32.gmra.mrb[28].mxu0 %v24364_v60  ;;  %v24365_v33 = vand.u32 4294901760, %v19995_v44  ;;  %v20115_v45 = vsub.f32 %v19823_v50, %v24366_v31 }
 0x1ea   :  { %24353 = vst [vmem:[#allocation38_spill] sm:$0xff] %v20069_v49  ;;  %13559 = vmatmul.mubr.f32.gmra.mrb[24].mxu1 %v24356_v46  ;;  %15539 = vmatprep.subr.bf16.mxu0 %v24357_v30  ;;  %v20093_v52 = vld [vmem:[#allocation5 + $0xf8] sm:$0xff]  ;;  %v6987_v46 = vsub.f32 %v19980_v24, %v24360_v56  ;;  %v20103_v20 = vsub.f32 %v19821_v58, %v24361_v37  ;;  %v24369_v24 = vand.u32 4294901760, %v20003_v25  ;;  %v24371_v56 = vand.u32 4294901760, %v20013_v15  ;;  %v24372_v31 = vld [vmem:[#allocation86_spill] sm:$0xff]  ;;  %v24373_v50 = vld [vmem:[#allocation36_spill] sm:$0xff] }
 0x1eb   :  { %24351 = vst [vmem:[#allocation69_spill] sm:$0xff] %v20064_v36  ;;  %13561 = vmatprep.mubr.f32.mxu1 %v24359_v39  ;;  %v6994_v39 = vsub.f32 %v19995_v44, %v24365_v33  ;;  %24367 = vst [vmem:[#allocation72_spill] sm:$0xff] %v20115_v45  ;;  %15541 = vmatpush3.bf16.msra.mxu0 %v24357_v30  ;;  %v24368_v37 = vld [vmem:[#allocation43_spill] sm:$0xff]  ;;  %v24370_v33 = vand.u32 4294901760, %v20008_v53  ;;  %v24374_v58 = vand.u32 4294901760, %v20021_v27  ;;  %v24378_v30 = vand.u32 4294901760, %v20045_v10 }
 0x1ec   :  { %24362 = vst [vmem:[#allocation12_spill] sm:$0xff] %v20103_v20  ;;  %13231 = vmatprep.mubr.f32.mxu0 %v24368_v37  ;;  %v5715_v60 = vsub.f32 %v20003_v25, %v24369_v24  ;;  %v7001_v44 = vsub.f32 %v20013_v15, %v24371_v56  ;;  %15543 = vmatprep.subr.bf16.mxu0 %v24373_v50  ;;  %v24375_v24 = vand.u32 4294901760, %v20026_v21  ;;  %v24377_v56 = vld [vmem:[#allocation34_spill] sm:$0xff]  ;;  %v5702_v15 = vand.u32 4294901760, %v20076_v51 }
 0x1ed   :  { %v5722_v3 = vsub.f32 %v20008_v53, %v24370_v33  ;;  %v7008_v37 = vsub.f32 %v20021_v27, %v24374_v58  ;;  %v24376_v33 = vand.u32 4294901760, %v20031_v7  ;;  %15729 = vmatpush3.bf16.msra.mxu1 %v24363_v63  ;;  %v24379_v58 = vand.u32 4294901760, %v20050_v9 }
 0x1ee   :  { %13562 = vmatmul.mubr.f32.gmra.mrb[26].mxu1 %v24372_v31  ;;  %v5729_v25 = vsub.f32 %v20026_v21, %v24375_v24  ;;  %v7015_v31 = vsub.f32 %v20045_v10, %v24378_v30  ;;  %15731 = vmatprep.subr.bf16.mxu1 %v24190_v16  ;;  %v24380_v21 = vld [vmem:[#allocation42_spill] sm:$0xff]  ;;  %v24381_v63 = vand.u32 4294901760, %v20064_v36  ;;  %v24382_v51 = vand.u32 4294901760, %v20069_v49 }
 0x1ef   :  { %v5736_v53 = vsub.f32 %v20031_v7, %v24376_v33  ;;  %13564 = vmatprep.mubr.f32.mxu1 %v24377_v56  ;;  %v7022_v27 = vsub.f32 %v20050_v9, %v24379_v58  ;;  %13232 = vmatmul.mubr.f32.gmra.mrb[30].mxu0 %v24380_v21  ;;  %v5709_v33 = vand.u32 4294901760, %v5708_v11  ;;  %v6988_v58 = vand.u32 4294901760, %v6987_v46  ;;  %v24383_v21 = vld [vmem:[#allocation57_spill] sm:$0xff] }
 0x1f0   :  { %v5743_v7 = vsub.f32 %v20064_v36, %v24381_v63  ;;  %v5750_v56 = vsub.f32 %v20069_v49, %v24382_v51  ;;  %15545 = vmatpush3.bf16.msra.mxu0 %v24373_v50  ;;  %13266 = vmatprep.mubr.f32.mxu0 %v24248_v8  ;;  %v6995_v24 = vand.u32 4294901760, %v6994_v39  ;;  %v5716_v9 = vand.u32 4294901760, %v5715_v60  ;;  %v24384_v51 = vld [vmem:[#allocation55_spill] sm:$0xff]  ;;  %v24488_v49 = vld [vmem:[#allocation76_spill] sm:$0xff] }
 0x1f1   :  { %v5723_v10 = vand.u32 4294901760, %v5722_v3  ;;  %15739 = vmatprep.subr.bf16.mxu0 %v19831_v48  ;;  %v7002_v11 = vand.u32 4294901760, %v7001_v44  ;;  %v7009_v63 = vand.u32 4294901760, %v7008_v37  ;;  %v5730_v36 = vand.u32 4294901760, %v5729_v25  ;;  %15733 = vmatpush3.bf16.msra.mxu1 %v24190_v16 }
 0x1f2   :  { %13565 = vmatmul.mubr.f32.gmra.mrb[28].mxu1 %v24383_v21  ;;  %v5737_v57 = vand.u32 4294901760, %v5736_v53  ;;  %v24385_v50 = vand.u32 4294901760, %v20083_v14  ;;  %v24386_v8 = vand.u32 4294901760, %v20093_v52  ;;  %v7016_v39 = vand.u32 4294901760, %v7015_v31  ;;  %15735 = vmatprep.subr.bf16.mxu1 %v24194_v54 }
 0x1f3   :  { %13567 = vmatprep.mubr.f32.mxu1 %v24384_v51  ;;  %v7023_v3 = vand.u32 4294901760, %v7022_v27  ;;  %v24388_v60 = vand.u32 4294901760, %v20103_v20  ;;  %13267 = vmatmul.mubr.f32.vlgmr.msra.gmra.mrb[16].mxu0 %v24257_v38  ;;  %v20179_v16 = vpack.c.bf16 %v5709_v33, %v5702_v15  ;;  %v5744_v44 = vand.u32 4294901760, %v5743_v7  ;;  %v24392_v15 = vld [vmem:[#allocation45_spill] sm:$0xff] }
 0x1f4   :  { %v20170_v46 = vpack.c.bf16 %v24386_v8, %v24385_v50  ;;  %v5751_v53 = vand.u32 4294901760, %v5750_v56  ;;  %v24389_v25 = vand.u32 4294901760, %v20115_v45  ;;  %15741 = vmatpush3.bf16.msra.mxu0 %v19831_v48  ;;  %13269 = vmatprep.mubr.f32.mxu0 %v24260_v2  ;;  %v20188_v27 = vpack.c.bf16 %v6995_v24, %v6988_v58 }
 0x1f5   :  { %v20175_v30 = vsub.f32 %v20103_v20, %v24388_v60  ;;  %v20190_v31 = vpack.c.bf16 %v5723_v10, %v5716_v9  ;;  %v24390_v50 = vand.u32 4294901760, %v19840_v47  ;;  %15743 = vmatprep.subr.bf16.mxu0 %v19852_v61  ;;  %v20199_v7 = vpack.c.bf16 %v7009_v63, %v7002_v11  ;;  %15737 = vmatpush3.bf16.msra.mxu1 %v24194_v54 }
 0x1f6   :  { %24387 = vst [vmem:[#allocation58_spill] sm:$0xff] %v20170_v46  ;;  %v20184_v37 = vsub.f32 %v20115_v45, %v24389_v25  ;;  %13568 = vmatmul.mubr.f32.gmra.mrb[30].mxu1 %v24392_v15  ;;  %v20201_v56 = vpack.c.bf16 %v5737_v57, %v5730_v36  ;;  %v24393_v33 = vand.u32 4294901760, %v19842_v35  ;;  %v20210_v10 = vpack.c.bf16 %v7023_v3, %v7016_v39  ;;  %v24478_v45 = vld [vmem:[#allocation86_spill] sm:$0xff] }
 0x1f7   :  { %v20195_v38 = vsub.f32 %v19840_v47, %v24390_v50  ;;  %13602 = vmatprep.mubr.f32.mxu1 %v24264_v6  ;;  %v24395_v24 = vand.u32 4294901760, %v19844_v13  ;;  %v24397_v57 = vand.u32 4294901760, %v19857_v4  ;;  %15931 = vmatprep.subr.bf16.mxu1 %v19837_v5  ;;  %v20225_v54 = vpack.c.bf16 %v5751_v53, %v5744_v44 }
 0x1f8   :  { %v20206_v2 = vsub.f32 %v19842_v35, %v24393_v33  ;;  %13270 = vmatmul.mubr.f32.gmra.mrb[18].mxu0 %v24269_v42  ;;  %v24399_v11 = vand.u32 4294901760, %v19859_v40  ;;  %v24401_v8 = vand.u32 4294901760, %v19861_v59  ;;  %v24403_v3 = vand.u32 4294901760, %v19869_v62 }
 0x1f9   :  { %24391 = vst [vmem:[#allocation51_spill] sm:$0xff] %v20195_v38  ;;  %v20216_v58 = vsub.f32 %v19844_v13, %v24395_v24  ;;  %v20221_v36 = vsub.f32 %v19857_v4, %v24397_v57  ;;  %15745 = vmatpush3.bf16.msra.mxu0 %v19852_v61  ;;  %13272 = vmatprep.mubr.f32.mxu0 %v24273_v26  ;;  %v23096_v42 = vand.u32 4294901760, %v20195_v38  ;;  %v24405_v44 = vand.u32 4294901760, %v19871_v19  ;;  %v24426_v61 = vld [vmem:[#allocation24_spill] sm:$0xff] }
 0x1fa   :  { %24394 = vst [vmem:[#allocation31_spill] sm:$0xff] %v20206_v2  ;;  %v20231_v63 = vsub.f32 %v19859_v40, %v24399_v11  ;;  %v20236_v39 = vsub.f32 %v19861_v59, %v24401_v8  ;;  %v20244_v60 = vsub.f32 %v19869_v62, %v24403_v3  ;;  %v24407_v25 = vand.u32 4294901760, %v19879_v28  ;;  %13603 = vmatmul.mubr.f32.vlgmr.msra.gmra.mrb[16].mxu1 %v24277_v55 }
 0x1fb   :  { %24396 = vst [vmem:[#allocation39_spill] sm:$0xff] %v20216_v58  ;;  %24398 = vst [vmem:[#allocation14_spill] sm:$0xff] %v20221_v36  ;;  %v20249_v53 = vsub.f32 %v19871_v19, %v24405_v44  ;;  %15747 = vmatprep.subr.bf16.mxu0 %v19901_v32  ;;  %v23099_v26 = vand.u32 4294901760, %v20206_v2  ;;  %v24409_v33 = vand.u32 4294901760, %v19881_v18  ;;  %v24411_v57 = vand.u32 4294901760, %v19921_v22  ;;  %15933 = vmatpush3.bf16.msra.mxu1 %v19837_v5  ;;  %v24434_v5 = vld [vmem:[#allocation77_spill] sm:$0xff] }
 0x1fc   :  { %24400 = vst [vmem:[#allocation59_spill] sm:$0xff] %v20231_v63  ;;  %24402 = vst [vmem:[#allocation20_spill] sm:$0xff] %v20236_v39  ;;  %v20254_v50 = vsub.f32 %v19879_v28, %v24407_v25  ;;  %v24413_v8 = vand.u32 4294901760, %v19923_v12  ;;  %13605 = vmatprep.mubr.f32.mxu1 %v24281_v23  ;;  %v24415_v25 = vand.u32 4294901760, %v19939_v1  ;;  %15935 = vmatprep.subr.bf16.mxu1 %v19895_v41  ;;  %v24419_v9 = vand.u32 4294901760, %v20083_v14  ;;  %v24427_v23 = vld [vmem:[#allocation89_spill] sm:$0xff] }
 0x1fd   :  { %24404 = vst [vmem:[#allocation88_spill] sm:$0xff] %v20244_v60  ;;  %24406 = vst [vmem:[#allocation49_spill] sm:$0xff] %v20249_v53  ;;  %v20262_v24 = vsub.f32 %v19881_v18, %v24409_v33  ;;  %v20267_v11 = vsub.f32 %v19921_v22, %v24411_v57  ;;  %v24417_v57 = vand.u32 4294901760, %v19941_v43  ;;  %13273 = vmatmul.mubr.f32.gmra.mrb[20].mxu0 %v24284_v17  ;;  %v24431_v48 = vand.u32 4294901760, %v20244_v60 }
 0x1fe   :  { %24408 = vst [vmem:[#allocation18_spill] sm:$0xff] %v20254_v50  ;;  %v20272_v3 = vsub.f32 %v19923_v12, %v24413_v8  ;;  %v20281_v33 = vsub.f32 %v19939_v1, %v24415_v25  ;;  %v20295_v44 = vsub.f32 %v20083_v14, %v24419_v9  ;;  %v24421_v25 = vand.u32 4294901760, %v20093_v52  ;;  %15749 = vmatpush3.bf16.msra.mxu0 %v19901_v32 }
 0x1ff   :  { %24410 = vst [vmem:[#allocation13_spill] sm:$0xff] %v20262_v24  ;;  %24412 = vst [vmem:[#allocation21_spill] sm:$0xff] %v20267_v11  ;;  %v20286_v6 = vsub.f32 %v19941_v43, %v24417_v57  ;;  %13275 = vmatprep.mubr.f32.mxu0 %v24285_v34  ;;  %v5757_v17 = vsub.f32 %v20195_v38, %v23096_v42  ;;  %13606 = vmatmul.mubr.f32.gmra.mrb[18].mxu1 %v24286_v29  ;;  %v24423_v57 = vld [vmem:[#allocation22_spill] sm:$0xff]  ;;  %v24424_v9 = vand.u32 4294901760, %v20216_v58 }
 0x200   :  { %24414 = vst [vmem:[#allocation80_spill] sm:$0xff] %v20272_v3  ;;  %24416 = vst [vmem:[#allocation47_spill] sm:$0xff] %v20281_v33  ;;  %v20300_v55 = vsub.f32 %v20093_v52, %v24421_v25  ;;  %15751 = vmatprep.subr.bf16.mxu0 %v19917_v0  ;;  %v5764_v25 = vsub.f32 %v20206_v2, %v23099_v26  ;;  %15937 = vmatpush3.bf16.msra.mxu1 %v19895_v41  ;;  %v24425_v8 = vand.u32 4294901760, %v20221_v36  ;;  %v24430_v26 = vld [vmem:[#allocation95_spill] sm:$0xff] }
 0x201   :  { %24418 = vst [vmem:[#allocation62_spill] sm:$0xff] %v20286_v6  ;;  %24420 = vst [vmem:[#allocation54_spill] sm:$0xff] %v20295_v44  ;;  %13608 = vmatprep.mubr.f32.mxu1 %v24423_v57  ;;  %v7043_v29 = vsub.f32 %v20216_v58, %v24424_v9  ;;  %15939 = vmatprep.subr.bf16.mxu1 %v24426_v61  ;;  %v24428_v42 = vand.u32 4294901760, %v20231_v63  ;;  %v24429_v41 = vand.u32 4294901760, %v20236_v39  ;;  %v5758_v34 = vand.u32 4294901760, %v5757_v17  ;;  %v24442_v58 = vld [vmem:[#allocation19_spill] sm:$0xff] }
 0x202   :  { %24422 = vst [vmem:[#allocation66_spill] sm:$0xff] %v20300_v55  ;;  %v7050_v32 = vsub.f32 %v20221_v36, %v24425_v8  ;;  %13276 = vmatmul.mubr.f32.gmra.mrb[22].mxu0 %v24427_v23  ;;  %v7057_v23 = vsub.f32 %v20244_v60, %v24431_v48  ;;  %v24432_v36 = vand.u32 4294901760, %v20249_v53  ;;  %v24435_v8 = vld [vmem:[#allocation23_spill] sm:$0xff]  ;;  %v24438_v60 = vand.u32 4294901760, %v20272_v3 }
 0x203   :  { %v5771_v57 = vsub.f32 %v20231_v63, %v24428_v42  ;;  %v5778_v9 = vsub.f32 %v20236_v39, %v24429_v41  ;;  %15753 = vmatpush3.bf16.msra.mxu0 %v19917_v0  ;;  %13278 = vmatprep.mubr.f32.mxu0 %v24430_v26  ;;  %v24433_v63 = vand.u32 4294901760, %v20254_v50  ;;  %v5765_v0 = vand.u32 4294901760, %v5764_v25 }
 0x204   :  { %v7064_v42 = vsub.f32 %v20249_v53, %v24432_v36  ;;  %13609 = vmatmul.mubr.f32.gmra.mrb[20].mxu1 %v24434_v5  ;;  %15755 = vmatprep.subr.bf16.mxu0 %v24435_v8  ;;  %v24436_v26 = vand.u32 4294901760, %v20262_v24  ;;  %v24437_v39 = vand.u32 4294901760, %v20267_v11  ;;  %v7078_v36 = vsub.f32 %v20272_v3, %v24438_v60 }
 0x205   :  { %v5785_v41 = vsub.f32 %v20254_v50, %v24433_v63  ;;  %15941 = vmatpush3.bf16.msra.mxu1 %v24426_v61  ;;  %v24439_v63 = vld [vmem:[#allocation84_spill] sm:$0xff]  ;;  %v7044_v5 = vand.u32 4294901760, %v7043_v29  ;;  %v7051_v50 = vand.u32 4294901760, %v7050_v32  ;;  %v24440_v25 = vand.u32 4294901760, %v20281_v33 }
 0x206   :  { %v5792_v17 = vsub.f32 %v20262_v24, %v24436_v26  ;;  %v7071_v48 = vsub.f32 %v20267_v11, %v24437_v39  ;;  %13611 = vmatprep.mubr.f32.mxu1 %v24439_v63  ;;  %v24441_v26 = vand.u32 4294901760, %v20286_v6  ;;  %15943 = vmatprep.subr.bf16.mxu1 %v24442_v58  ;;  %v24443_v39 = vld [vmem:[#allocation99_spill] sm:$0xff]  ;;  %v24444_v60 = vand.u32 4294901760, %v20175_v30 }
 0x207   :  { %v5799_v53 = vsub.f32 %v20281_v33, %v24440_v25  ;;  %13279 = vmatmul.mubr.f32.gmra.mrb[24].mxu0 %v24443_v39  ;;  %v24445_v61 = vand.u32 4294901760, %v20184_v37  ;;  %v24446_v32 = vand.u32 4294901760, %v20295_v44  ;;  %v24447_v63 = vand.u32 4294901760, %v20300_v55  ;;  %v24449_v11 = vld [vmem:[#allocation91_spill] sm:$0xff] }
 0x208   :  { %v5806_v24 = vsub.f32 %v20286_v6, %v24441_v26  ;;  %15757 = vmatpush3.bf16.msra.mxu0 %v24435_v8  ;;  %v24448_v26 = vld [vmem:[#allocation32_spill] sm:$0xff]  ;;  %v5772_v6 = vand.u32 4294901760, %v5771_v57  ;;  %v5779_v39 = vand.u32 4294901760, %v5778_v9  ;;  %v7058_v33 = vand.u32 4294901760, %v7057_v23  ;;  %13612 = vmatmul.mubr.f32.gmra.mrb[22].mxu1 %v24449_v11  ;;  %v24452_v23 = vld [vmem:[#allocation63_spill] sm:$0xff] }
 0x209   :  { %v20374_v3 = vpack.c.bf16 %v24445_v61, %v24444_v60  ;;  %v7085_v29 = vsub.f32 %v20295_v44, %v24446_v32  ;;  %v7092_v25 = vsub.f32 %v20300_v55, %v24447_v63  ;;  %13281 = vmatprep.mubr.f32.mxu0 %v24448_v26  ;;  %v7065_v30 = vand.u32 4294901760, %v7064_v42  ;;  %v24450_v61 = vld [vmem:[#allocation68_spill] sm:$0xff]  ;;  %15945 = vmatpush3.bf16.msra.mxu1 %v24442_v58  ;;  %v24451_v44 = vld [vmem:[#allocation98_spill] sm:$0xff]  ;;  %v12596_v63 = vpop.f32.mrb[0].mxu0  ;;  %v24453_v11 = vld [vmem:[#allocation79_spill] sm:$0xff] }
 0x20a   :  { %15759 = vmatprep.subr.bf16.mxu0 %v24450_v61  ;;  %v5786_v37 = vand.u32 4294901760, %v5785_v41  ;;  %v5793_v60 = vand.u32 4294901760, %v5792_v17  ;;  %v7072_v2 = vand.u32 4294901760, %v7071_v48  ;;  %v7079_v32 = vand.u32 4294901760, %v7078_v36  ;;  %13614 = vmatprep.mubr.f32.mxu1 %v24451_v44  ;;  %v1440_v41 = vpop.f32.mrb[1].mxu0  ;;  %v24455_v17 = vld [vmem:[#allocation65_spill] sm:$0xff] }
 0x20b   :  { %v20388_v8 = vpack.c.bf16 %v5765_v0, %v5758_v34  ;;  %v20390_v26 = vpack.c.bf16 %v7051_v50, %v7044_v5  ;;  %v5800_v57 = vand.u32 4294901760, %v5799_v53  ;;  %v5807_v9 = vand.u32 4294901760, %v5806_v24  ;;  %15947 = vmatprep.subr.bf16.mxu1 %v24452_v23  ;;  %13282 = vmatmul.mubr.f32.gmra.mrb[26].mxu0 %v24455_v17  ;;  %v24456_v58 = vld [vmem:[#allocation48_spill] sm:$0xff]  ;;  %v24458_v0 = vld [vmem:[#allocation81_spill] sm:$0xff]  ;;  %v24459_v24 = vld [vmem:[#allocation67_spill] sm:$0xff] }
 0x20c   :  { %v5393_v42 = vadd.f32 %v12596_v63, %v24453_v11  ;;  %v20394_v55 = vand.u32 4294901760, %v12596_v63  ;;  %v7086_v48 = vand.u32 4294901760, %v7085_v29  ;;  %v7093_v36 = vand.u32 4294901760, %v7092_v25  ;;  %15761 = vmatpush3.bf16.msra.mxu0 %v24450_v61  ;;  %13284 = vmatprep.mubr.f32.mxu0 %v24458_v0  ;;  %v24461_v5 = vld [vmem:[#allocation96_spill] sm:$0xff]  ;;  %v24462_v25 = vld [vmem:[#allocation75_spill] sm:$0xff]  ;;  %v24469_v0 = vld [vmem:[#allocation46_spill] sm:$0xff] }
 0x20d   :  { %v5392_v44 = vadd.f32 %v1440_v41, %v24456_v58  ;;  %v20398_v38 = vand.u32 4294901760, %v1440_v41  ;;  %v20402_v53 = vpack.c.bf16 %v5779_v39, %v5772_v6  ;;  %v20404_v50 = vpack.c.bf16 %v7065_v30, %v7058_v33  ;;  %13615 = vmatmul.mubr.f32.gmra.mrb[24].mxu1 %v24459_v24  ;;  %15763 = vmatprep.subr.bf16.mxu0 %v24461_v5  ;;  %v12599_v33 = vpop.f32.mrb[2].mxu0  ;;  %v24464_v30 = vld [vmem:[#allocation92_spill] sm:$0xff] }
 0x20e   :  { %24454 = vst [vmem:[#allocation50_spill] sm:$0xff] %v20394_v55  ;;  %v20408_v34 = vsub.f32 %v12596_v63, %v20394_v55  ;;  %10601 = vst [vmem:[#allocation8 + $0x8] sm:$0xff] %v5393_v42  ;;  %v20411_v29 = vpack.c.bf16 %v5793_v60, %v5786_v37  ;;  %v20413_v58 = vpack.c.bf16 %v7079_v32, %v7072_v2  ;;  %15949 = vmatpush3.bf16.msra.mxu1 %v24452_v23  ;;  %v24465_v63 = vld [vmem:[#allocation97_spill] sm:$0xff]  ;;  %v24466_v60 = vld [vmem:[#allocation100_spill] sm:$0xff]  ;;  %v1452_v17 = vpop.f32.mrb[3].mxu0 }
 0x20f   :  { %24457 = vst [vmem:[#allocation87_spill] sm:$0xff] %v20398_v38  ;;  %13617 = vmatprep.mubr.f32.mxu1 %v24462_v25  ;;  %v20418_v6 = vsub.f32 %v1440_v41, %v20398_v38  ;;  %10600 = vst [vmem:[#allocation8] sm:$0xff] %v5392_v44  ;;  %v20420_v39 = vpack.c.bf16 %v5807_v9, %v5800_v57  ;;  %v20424_v11 = vpack.c.bf16 %v24465_v63, %v24464_v30  ;;  %v24467_v2 = vld [vmem:[#allocation33_spill] sm:$0xff]  ;;  %v12932_v44 = vpop.f32.mrb[0].mxu1  ;;  %v24472_v25 = vld [vmem:[#allocation43_spill] sm:$0xff] }
 0x210   :  { %24460 = vst [vmem:[#allocation82_spill] sm:$0xff] %v20408_v34  ;;  %15951 = vmatprep.subr.bf16.mxu1 %v24466_v60  ;;  %v5395_v32 = vadd.f32 %v12599_v33, %v24467_v2  ;;  %v20429_v42 = vand.u32 4294901760, %v12599_v33  ;;  %13285 = vmatmul.mubr.f32.gmra.mrb[28].mxu0 %v24469_v0  ;;  %v20432_v41 = vpack.c.bf16 %v7093_v36, %v7086_v48  ;;  %v24470_v57 = vld [vmem:[#allocation17_spill] sm:$0xff]  ;;  %v20435_v24 = vand.u32 4294901760, %v1452_v17  ;;  %v24474_v2 = vld [vmem:[#allocation102_spill] sm:$0xff]  ;;  %v24476_v36 = vld [vmem:[#allocation44_spill] sm:$0xff] }
 0x211   :  { %24463 = vst [vmem:[#allocation28_spill] sm:$0xff] %v20418_v6  ;;  %v5394_v9 = vadd.f32 %v1452_v17, %v24470_v57  ;;  %15765 = vmatpush3.bf16.msra.mxu0 %v24461_v5  ;;  %13287 = vmatprep.mubr.f32.mxu0 %v24472_v25  ;;  %v24473_v63 = vld [vmem:[#allocation85_spill] sm:$0xff]  ;;  %v24475_v61 = vand.u32 4294901760, %v20408_v34  ;;  %v5409_v0 = vadd.f32 %v12932_v44, %v24476_v36  ;;  %v20448_v23 = vand.u32 4294901760, %v12932_v44  ;;  %v2726_v57 = vpop.f32.mrb[1].mxu1  ;;  %v24480_v25 = vld [vmem:[#allocation71_spill] sm:$0xff] }
 0x212   :  { %24468 = vst [vmem:[#allocation29_spill] sm:$0xff] %v20429_v42  ;;  %24471 = vst [vmem:[#allocation36_spill] sm:$0xff] %v20435_v24  ;;  %v20442_v30 = vpack.c.bf16 %v24474_v2, %v24473_v63  ;;  %13618 = vmatmul.mubr.f32.gmra.mrb[26].mxu1 %v24478_v45  ;;  %v20452_v5 = vsub.f32 %v12599_v33, %v20429_v42  ;;  %15767 = vmatprep.subr.bf16.mxu0 %v24480_v25  ;;  %v24481_v37 = vld [vmem:[#allocation25_spill] sm:$0xff]  ;;  %v20456_v63 = vand.u32 4294901760, %v2726_v57 }
 0x213   :  { %v5550_v48 = vsub.f32 %v20408_v34, %v24475_v61  ;;  %24477 = vst [vmem:[#allocation57_spill] sm:$0xff] %v20448_v23  ;;  %10603 = vst [vmem:[#allocation8 + $0x18] sm:$0xff] %v5395_v32  ;;  %v5408_v2 = vadd.f32 %v2726_v57, %v24481_v37  ;;  %15953 = vmatpush3.bf16.msra.mxu1 %v24466_v60  ;;  %v24483_v61 = vld [vmem:[#allocation34_spill] sm:$0xff]  ;;  %v20461_v36 = vsub.f32 %v1452_v17, %v20435_v24  ;;  %v12602_v34 = vpop.f32.mrb[4].mxu0  ;;  %v24487_v37 = vld [vmem:[#allocation35_spill] sm:$0xff]  ;;  %v12935_v24 = vpop.f32.mrb[2].mxu1 }
 0x214   :  { %24479 = vst [vmem:[#allocation55_spill] sm:$0xff] %v20452_v5  ;;  %24482 = vst [vmem:[#allocation45_spill] sm:$0xff] %v20456_v63  ;;  %13620 = vmatprep.mubr.f32.mxu1 %v24483_v61  ;;  %v24485_v45 = vand.u32 4294901760, %v20418_v6  ;;  %v20467_v20 = vsub.f32 %v12932_v44, %v20448_v23  ;;  %15955 = vmatprep.subr.bf16.mxu1 %v24487_v37  ;;  %v5397_v60 = vadd.f32 %v12602_v34, %v24488_v49  ;;  %v1464_v61 = vpop.f32.mrb[5].mxu0  ;;  %v24490_v17 = vld [vmem:[#allocation42_spill] sm:$0xff]  ;;  %v2738_v38 = vpop.f32.mrb[3].mxu1 }
 0x215   :  { %24484 = vst [vmem:[#allocation22_spill] sm:$0xff] %v20461_v36  ;;  %10602 = vst [vmem:[#allocation8 + $0x10] sm:$0xff] %v5394_v9  ;;  %v5551_v32 = vand.u32 4294901760, %v5550_v48  ;;  %v20471_v42 = vand.u32 4294901760, %v12602_v34  ;;  %13288 = vmatmul.mubr.f32.gmra.mrb[30].mxu0 %v24490_v17  ;;  %v20475_v9 = vsub.f32 %v2726_v57, %v20456_v63  ;;  %v24494_v49 = vld [vmem:[#allocation90_spill] sm:$0xff]  ;;  %v20483_v55 = vand.u32 4294901760, %v12935_v24 }
 0x216   :  { %v5540_v33 = vsub.f32 %v20418_v6, %v24485_v45  ;;  %24486 = vst [vmem:[#allocation89_spill] sm:$0xff] %v20467_v20  ;;  %10617 = vst [vmem:[#allocation8 + $0x108] sm:$0xff] %v5409_v0  ;;  %v24492_v45 = vld [vmem:[#allocation26_spill] sm:$0xff]  ;;  %v20478_v6 = vand.u32 4294901760, %v1464_v61  ;;  %15769 = vmatpush3.bf16.msra.mxu0 %v24480_v25  ;;  %v23171_v0 = vand.u32 4294901760, %v20467_v20  ;;  %v5411_v23 = vadd.f32 %v12935_v24, %v24494_v49  ;;  %v12605_v49 = vpop.f32.mrb[6].mxu0 }
 0x217   :  { %24489 = vst [vmem:[#allocation95_spill] sm:$0xff] %v20471_v42  ;;  %24491 = vst [vmem:[#allocation77_spill] sm:$0xff] %v20475_v9  ;;  %v5396_v48 = vadd.f32 %v1464_v61, %v24492_v45  ;;  %13621 = vmatmul.mubr.f32.gmra.mrb[28].mxu1 %v24383_v21  ;;  %v20487_v57 = vsub.f32 %v12602_v34, %v20471_v42  ;;  %15771 = vmatprep.subr.bf16.mxu0 %v20179_v16  ;;  %v20491_v45 = vand.u32 4294901760, %v2738_v38  ;;  %v12938_v21 = vpop.f32.mrb[4].mxu1 }
 0x218   :  { %10616 = vst [vmem:[#allocation8 + $0x100] sm:$0xff] %v5408_v2  ;;  %24493 = vst [vmem:[#allocation84_spill] sm:$0xff] %v20478_v6  ;;  %v5541_v44 = vand.u32 4294901760, %v5540_v33  ;;  %v24497_v2 = vld [vmem:[#allocation16_spill] sm:$0xff]  ;;  %15957 = vmatpush3.bf16.msra.mxu1 %v24487_v37  ;;  %13623 = vmatprep.mubr.f32.mxu1 %v24384_v51  ;;  %v20496_v33 = vsub.f32 %v1464_v61, %v20478_v6  ;;  %v6836_v34 = vsub.f32 %v20467_v20, %v23171_v0  ;;  %v1476_v61 = vpop.f32.mrb[7].mxu0 }
 0x219   :  { %24495 = vst [vmem:[#allocation99_spill] sm:$0xff] %v20483_v55  ;;  %24496 = vst [vmem:[#allocation32_spill] sm:$0xff] %v20487_v57  ;;  %v5410_v17 = vadd.f32 %v2738_v38, %v24497_v2  ;;  %15959 = vmatprep.subr.bf16.mxu1 %v20170_v46  ;;  %v24500_v2 = vld [vmem:[#allocation94_spill] sm:$0xff]  ;;  %v20507_v51 = vand.u32 4294901760, %v12605_v49  ;;  %v24503_v37 = vand.u32 4294901760, %v20475_v9 }
 0x21a   :  { %10605 = vst [vmem:[#allocation8 + $0x28] sm:$0xff] %v5397_v60  ;;  %24498 = vst [vmem:[#allocation91_spill] sm:$0xff] %v20491_v45  ;;  %v20503_v60 = vsub.f32 %v12935_v24, %v20483_v55  ;;  %v5399_v25 = vadd.f32 %v12605_v49, %v24500_v2  ;;  %13658 = vmatprep.mubr.f32.mxu0 %v5541_v44  ;;  %v24504_v24 = vld [vmem:[#allocation93_spill] sm:$0xff]  ;;  %v6837_v42 = vand.u32 4294901760, %v6836_v34  ;;  %v24506_v2 = vld [vmem:[#allocation30_spill] sm:$0xff]  ;;  %v20519_v55 = vand.u32 4294901760, %v12938_v21 }
 0x21b   :  { %10604 = vst [vmem:[#allocation8 + $0x20] sm:$0xff] %v5396_v48  ;;  %10619 = vst [vmem:[#allocation8 + $0x118] sm:$0xff] %v5411_v23  ;;  %v20510_v48 = vsub.f32 %v2738_v38, %v20491_v45  ;;  %v6826_v0 = vsub.f32 %v20475_v9, %v24503_v37  ;;  %v5398_v20 = vadd.f32 %v1476_v61, %v24504_v24  ;;  %v20516_v23 = vand.u32 4294901760, %v1476_v61  ;;  %v2750_v44 = vpop.f32.mrb[5].mxu1  ;;  %v24508_v37 = vld [vmem:[#allocation37_spill] sm:$0xff] }
 0x21c   :  { %24499 = vst [vmem:[#allocation98_spill] sm:$0xff] %v20503_v60  ;;  %24501 = vst [vmem:[#allocation79_spill] sm:$0xff] %v20507_v51  ;;  %13659 = vmatmul.mubr.f32.vlgmr.msra.gmra.mrb[32].mxu0 %v5551_v32  ;;  %v5413_v6 = vadd.f32 %v12938_v21, %v24506_v2  ;;  %13624 = vmatmul.mubr.f32.gmra.mrb[30].mxu1 %v24392_v15  ;;  %v20523_v38 = vsub.f32 %v12605_v49, %v20507_v51  ;;  %v20527_v24 = vand.u32 4294901760, %v2750_v44  ;;  %v12608_v2 = vpop.f32.mrb[8].mxu0 }
 0x21d   :  { %24502 = vst [vmem:[#allocation65_spill] sm:$0xff] %v20510_v48  ;;  %10618 = vst [vmem:[#allocation8 + $0x110] sm:$0xff] %v5410_v17  ;;  %15773 = vmatpush3.bf16.msra.mxu0 %v20179_v16  ;;  %v5412_v17 = vadd.f32 %v2750_v44, %v24508_v37  ;;  %15961 = vmatpush3.bf16.msra.mxu1 %v20170_v46  ;;  %v6827_v32 = vand.u32 4294901760, %v6826_v0  ;;  %v20531_v34 = vsub.f32 %v1476_v61, %v20516_v23  ;;  %v1488_v0 = vpop.f32.mrb[9].mxu0  ;;  %v24512_v46 = vld [vmem:[#allocation70_spill] sm:$0xff] }
 0x21e   :  { %24505 = vst [vmem:[#allocation48_spill] sm:$0xff] %v20516_v23  ;;  %24507 = vst [vmem:[#allocation81_spill] sm:$0xff] %v20519_v55  ;;  %15775 = vmatprep.subr.bf16.mxu0 %v20190_v31  ;;  %v20535_v15 = vsub.f32 %v12938_v21, %v20519_v55  ;;  %15963 = vmatprep.subr.bf16.mxu1 %v20188_v27  ;;  %v5401_v16 = vadd.f32 %v12608_v2, %v19842_v35 }
 0x21f   :  { %10607 = vst [vmem:[#allocation8 + $0x38] sm:$0xff] %v5399_v25  ;;  %24509 = vst [vmem:[#allocation67_spill] sm:$0xff] %v20527_v24  ;;  %v20539_v25 = vand.u32 4294901760, %v12608_v2  ;;  %v20543_v61 = vsub.f32 %v2750_v44, %v20527_v24  ;;  %13994 = vmatprep.mubr.f32.mxu1 %v6827_v32  ;;  %v5400_v21 = vadd.f32 %v1488_v0, %v19840_v47  ;;  %v24514_v44 = vand.u32 4294901760, %v20461_v36  ;;  %v24515_v32 = vld [vmem:[#allocation56_spill] sm:$0xff] }
 0x220   :  { %10606 = vst [vmem:[#allocation8 + $0x30] sm:$0xff] %v5398_v20  ;;  %10621 = vst [vmem:[#allocation8 + $0x128] sm:$0xff] %v5413_v6  ;;  %v12941_v20 = vpop.f32.mrb[6].mxu1  ;;  %v20547_v6 = vand.u32 4294901760, %v1488_v0  ;;  %13995 = vmatmul.mubr.f32.vlgmr.msra.gmra.mrb[32].mxu1 %v6837_v42 }
 0x221   :  { %24510 = vst [vmem:[#allocation75_spill] sm:$0xff] %v20539_v25  ;;  %10620 = vst [vmem:[#allocation8 + $0x120] sm:$0xff] %v5412_v17  ;;  %v5415_v9 = vadd.f32 %v12941_v20, %v24512_v46  ;;  %v20550_v35 = vand.u32 4294901760, %v12941_v20  ;;  %v2762_v51 = vpop.f32.mrb[7].mxu1  ;;  %v20553_v49 = vsub.f32 %v12608_v2, %v20539_v25  ;;  %v5560_v17 = vsub.f32 %v20461_v36, %v24514_v44 }
 0x222   :  { %24511 = vst [vmem:[#allocation33_spill] sm:$0xff] %v20547_v6  ;;  %10609 = vst [vmem:[#allocation8 + $0x48] sm:$0xff] %v5401_v16  ;;  %15777 = vmatpush3.bf16.msra.mxu0 %v20190_v31  ;;  %v5414_v47 = vadd.f32 %v2762_v51, %v24515_v32  ;;  %v20560_v37 = vand.u32 4294901760, %v2762_v51  ;;  %15965 = vmatpush3.bf16.msra.mxu1 %v20188_v27  ;;  %v24517_v46 = vand.u32 4294901760, %v20510_v48  ;;  %v12611_v16 = vpop.f32.mrb[10].mxu0  ;;  %v23192_v32 = vand.u32 4294901760, %v20452_v5 }
 0x223   :  { %24513 = vst [vmem:[#allocation46_spill] sm:$0xff] %v20550_v35  ;;  %v20567_v2 = vsub.f32 %v1488_v0, %v20547_v6  ;;  %10608 = vst [vmem:[#allocation8 + $0x40] sm:$0xff] %v5400_v21  ;;  %15779 = vmatprep.subr.bf16.mxu0 %v20201_v56  ;;  %v20571_v44 = vsub.f32 %v12941_v20, %v20550_v35  ;;  %v5561_v31 = vand.u32 4294901760, %v5560_v17  ;;  %15967 = vmatprep.subr.bf16.mxu1 %v20199_v7  ;;  %v1500_v36 = vpop.f32.mrb[11].mxu0  ;;  %v12944_v0 = vpop.f32.mrb[8].mxu1 }
 0x224   :  { %24516 = vst [vmem:[#allocation17_spill] sm:$0xff] %v20560_v37  ;;  %v6846_v42 = vsub.f32 %v20510_v48, %v24517_v46  ;;  %10623 = vst [vmem:[#allocation8 + $0x138] sm:$0xff] %v5415_v9  ;;  %v20577_v46 = vsub.f32 %v2762_v51, %v20560_v37  ;;  %v5403_v48 = vadd.f32 %v12611_v16, %v19861_v59  ;;  %v20580_v25 = vand.u32 4294901760, %v12611_v16  ;;  %v2774_v17 = vpop.f32.mrb[9].mxu1 }
 0x225   :  { %10622 = vst [vmem:[#allocation8 + $0x130] sm:$0xff] %v5414_v47  ;;  %v5417_v9 = vadd.f32 %v12944_v0, %v19857_v4  ;;  %v20583_v20 = vand.u32 4294901760, %v12944_v0  ;;  %13661 = vmatprep.mubr.f32.mxu0 %v5561_v31  ;;  %v5570_v27 = vsub.f32 %v20452_v5, %v23192_v32  ;;  %v24520_v51 = vand.u32 4294901760, %v20503_v60  ;;  %v12614_v32 = vpop.f32.mrb[12].mxu0 }
 0x226   :  { %v6847_v21 = vand.u32 4294901760, %v6846_v42  ;;  %24518 = vst [vmem:[#allocation43_spill] sm:$0xff] %v20580_v25  ;;  %15781 = vmatpush3.bf16.msra.mxu0 %v20201_v56  ;;  %v5416_v59 = vadd.f32 %v2774_v17, %v19844_v13  ;;  %v20593_v42 = vand.u32 4294901760, %v2774_v17  ;;  %15969 = vmatpush3.bf16.msra.mxu1 %v20199_v7  ;;  %v20597_v4 = vsub.f32 %v12611_v16, %v20580_v25  ;;  %v20605_v13 = vpop.f32.mrb[13].mxu0 }
 0x227   :  { %24519 = vst [vmem:[#allocation44_spill] sm:$0xff] %v20583_v20  ;;  %v6856_v47 = vsub.f32 %v20503_v60, %v24520_v51  ;;  %10611 = vst [vmem:[#allocation8 + $0x58] sm:$0xff] %v5403_v48  ;;  %v23199_v31 = vand.u32 4294901760, %v20496_v33  ;;  %v20601_v5 = vsub.f32 %v12944_v0, %v20583_v20  ;;  %v5571_v51 = vand.u32 4294901760, %v5570_v27  ;;  %15971 = vmatprep.subr.bf16.mxu1 %v20210_v10  ;;  %v12947_v48 = vpop.f32.mrb[10].mxu1 }
 0x228   :  { %13997 = vmatprep.mubr.f32.mxu1 %v6847_v21  ;;  %24521 = vst [vmem:[#allocation86_spill] sm:$0xff] %v20593_v42  ;;  %10625 = vst [vmem:[#allocation8 + $0x148] sm:$0xff] %v5417_v9  ;;  %v23200_v21 = vand.u32 4294901760, %v20543_v61  ;;  %15783 = vmatprep.subr.bf16.mxu0 %v20225_v54  ;;  %v20609_v7 = vsub.f32 %v2774_v17, %v20593_v42  ;;  %v5402_v27 = vadd.f32 %v1500_v36, %v19859_v40 }
 0x229   :  { %v6857_v56 = vand.u32 4294901760, %v6856_v47  ;;  %10624 = vst [vmem:[#allocation8 + $0x140] sm:$0xff] %v5416_v59  ;;  %v5580_v16 = vsub.f32 %v20496_v33, %v23199_v31  ;;  %v20615_v0 = vand.u32 4294901760, %v1500_v36  ;;  %13662 = vmatmul.mubr.f32.gmra.mrb[34].mxu0 %v5571_v51  ;;  %v5419_v9 = vadd.f32 %v12947_v48, %v19871_v19  ;;  %v2786_v59 = vpop.f32.mrb[11].mxu1  ;;  %v12617_v19 = vpop.f32.mrb[14].mxu0 }
 0x22a   :  { %v20618_v47 = vand.u32 4294901760, %v12947_v48  ;;  %v6866_v17 = vsub.f32 %v20543_v61, %v23200_v21  ;;  %v23201_v60 = vand.u32 4294901760, %v20487_v57  ;;  %10610 = vst [vmem:[#allocation8 + $0x50] sm:$0xff] %v5402_v27  ;;  %v5418_v40 = vadd.f32 %v2786_v59, %v19869_v62  ;;  %15973 = vmatpush3.bf16.msra.mxu1 %v20210_v10  ;;  %15785 = vmatpush3.bf16.msra.mxu0 %v20225_v54  ;;  %v20640_v62 = vpop.f32.mrb[15].mxu0  ;;  %v12950_v27 = vpop.f32.mrb[12].mxu1 }
 0x22b   :  { %24522 = vst [vmem:[#allocation25_spill] sm:$0xff] %v20615_v0  ;;  %13998 = vmatmul.mubr.f32.gmra.mrb[34].mxu1 %v6857_v56  ;;  %v5581_v25 = vand.u32 4294901760, %v5580_v16  ;;  %v20625_v31 = vsub.f32 %v1500_v36, %v20615_v0  ;;  %v20628_v51 = vand.u32 4294901760, %v2786_v59  ;;  %10627 = vst [vmem:[#allocation8 + $0x158] sm:$0xff] %v5419_v9  ;;  %v23204_v16 = vand.u32 4294901760, %v20535_v15  ;;  %15975 = vmatprep.subr.bf16.mxu1 %v20374_v3 }
 0x22c   :  { %24523 = vst [vmem:[#allocation34_spill] sm:$0xff] %v20618_v47  ;;  %v20633_v56 = vsub.f32 %v12947_v48, %v20618_v47  ;;  %v6867_v21 = vand.u32 4294901760, %v6866_v17  ;;  %v5590_v36 = vsub.f32 %v20487_v57, %v23201_v60  ;;  %15787 = vmatprep.subr.bf16.mxu0 %v20388_v8  ;;  %10626 = vst [vmem:[#allocation8 + $0x150] sm:$0xff] %v5418_v40  ;;  %v20647_v48 = vand.u32 4294901760, %v12614_v32 }
 0x22d   :  { %24524 = vst [vmem:[#allocation76_spill] sm:$0xff] %v20628_v51  ;;  %13664 = vmatprep.mubr.f32.mxu0 %v5581_v25  ;;  %v20644_v10 = vsub.f32 %v2786_v59, %v20628_v51  ;;  %v5405_v54 = vadd.f32 %v12614_v32, %v19881_v18  ;;  %v23205_v9 = vand.u32 4294901760, %v20531_v34  ;;  %v6876_v60 = vsub.f32 %v20535_v15, %v23204_v16  ;;  %v2798_v59 = vpop.f32.mrb[13].mxu1 }
 0x22e   :  { %24525 = vst [vmem:[#allocation42_spill] sm:$0xff] %v20647_v48  ;;  %14000 = vmatprep.mubr.f32.mxu1 %v6867_v21  ;;  %v5591_v17 = vand.u32 4294901760, %v5590_v36  ;;  %v5421_v57 = vadd.f32 %v12950_v27, %v19923_v12  ;;  %v20654_v25 = vand.u32 4294901760, %v12950_v27  ;;  %v20657_v40 = vsub.f32 %v12614_v32, %v20647_v48  ;;  %15977 = vmatpush3.bf16.msra.mxu1 %v20374_v3 }
 0x22f   :  { %10613 = vst [vmem:[#allocation8 + $0x68] sm:$0xff] %v5405_v54  ;;  %v5600_v18 = vsub.f32 %v20531_v34, %v23205_v9  ;;  %v23206_v21 = vand.u32 4294901760, %v20577_v46  ;;  %v5404_v36 = vadd.f32 %v20605_v13, %v19879_v28  ;;  %15789 = vmatpush3.bf16.msra.mxu0 %v20388_v8  ;;  %v6877_v12 = vand.u32 4294901760, %v6876_v60  ;;  %15979 = vmatprep.subr.bf16.mxu1 %v20390_v26  ;;  %v12953_v60 = vpop.f32.mrb[14].mxu1 }
 0x230   :  { %24526 = vst [vmem:[#allocation26_spill] sm:$0xff] %v20654_v25  ;;  %24527 = vst [vmem:[#allocation90_spill] sm:$0xff] %v20657_v40  ;;  %13665 = vmatmul.mubr.f32.gmra.mrb[36].mxu0 %v5591_v17  ;;  %v20668_v16 = vsub.f32 %v12950_v27, %v20654_v25  ;;  %v20671_v32 = vand.u32 4294901760, %v20605_v13  ;;  %v5420_v54 = vadd.f32 %v2798_v59, %v19921_v22  ;;  %v20678_v3 = vand.u32 4294901760, %v2798_v59 }
 0x231   :  { %10629 = vst [vmem:[#allocation8 + $0x168] sm:$0xff] %v5421_v57  ;;  %v5601_v9 = vand.u32 4294901760, %v5600_v18  ;;  %v6886_v28 = vsub.f32 %v20577_v46, %v23206_v21  ;;  %10612 = vst [vmem:[#allocation8 + $0x60] sm:$0xff] %v5404_v36  ;;  %v23213_v8 = vand.u32 4294901760, %v20523_v38  ;;  %15791 = vmatprep.subr.bf16.mxu0 %v20402_v53  ;;  %14001 = vmatmul.mubr.f32.gmra.mrb[36].mxu1 %v6877_v12  ;;  %v23207_v22 = vand.u32 4294901760, %v20571_v44  ;;  %v2810_v18 = vpop.f32.mrb[15].mxu1 }
 0x232   :  { %24528 = vst [vmem:[#allocation16_spill] sm:$0xff] %v20668_v16  ;;  %24529 = vst [vmem:[#allocation94_spill] sm:$0xff] %v20671_v32  ;;  %v20684_v57 = vsub.f32 %v20605_v13, %v20671_v32  ;;  %v5407_v27 = vadd.f32 %v12617_v19, %v19941_v43  ;;  %v20688_v17 = vand.u32 4294901760, %v12617_v19  ;;  %v20691_v21 = vsub.f32 %v2798_v59, %v20678_v3 }
 0x233   :  { %24530 = vst [vmem:[#allocation93_spill] sm:$0xff] %v20678_v3  ;;  %10628 = vst [vmem:[#allocation8 + $0x160] sm:$0xff] %v5420_v54  ;;  %13667 = vmatprep.mubr.f32.mxu0 %v5601_v9  ;;  %v6887_v36 = vand.u32 4294901760, %v6886_v28  ;;  %v5610_v12 = vsub.f32 %v20523_v38, %v23213_v8  ;;  %v5423_v13 = vadd.f32 %v12953_v60, %v20093_v52  ;;  %15981 = vmatpush3.bf16.msra.mxu1 %v20390_v26 }
 0x234   :  { %24531 = vst [vmem:[#allocation30_spill] sm:$0xff] %v20688_v17  ;;  %24532 = vst [vmem:[#allocation37_spill] sm:$0xff] %v20691_v21  ;;  %v6896_v43 = vsub.f32 %v20571_v44, %v23207_v22  ;;  %v20702_v54 = vsub.f32 %v12617_v19, %v20688_v17  ;;  %v20704_v9 = vand.u32 4294901760, %v12953_v60  ;;  %v23209_v59 = vand.u32 4294901760, %v20567_v2  ;;  %15983 = vmatprep.subr.bf16.mxu1 %v20404_v50 }
 0x235   :  { %10615 = vst [vmem:[#allocation8 + $0x78] sm:$0xff] %v5407_v27  ;;  %15793 = vmatpush3.bf16.msra.mxu0 %v20402_v53  ;;  %14003 = vmatprep.mubr.f32.mxu1 %v6887_v36  ;;  %v5611_v52 = vand.u32 4294901760, %v5610_v12  ;;  %10631 = vst [vmem:[#allocation8 + $0x178] sm:$0xff] %v5423_v13  ;;  %v23208_v26 = vand.u32 4294901760, %v20609_v7  ;;  %v5406_v28 = vadd.f32 %v20640_v62, %v19939_v1  ;;  %v20713_v19 = vand.u32 4294901760, %v20640_v62 }
 0x236   :  { %24533 = vst [vmem:[#allocation70_spill] sm:$0xff] %v20704_v9  ;;  %15795 = vmatprep.subr.bf16.mxu0 %v20411_v29  ;;  %v6897_v27 = vand.u32 4294901760, %v6896_v43  ;;  %v20717_v22 = vsub.f32 %v12953_v60, %v20704_v9  ;;  %v5620_v53 = vsub.f32 %v20567_v2, %v23209_v59  ;;  %v5422_v36 = vadd.f32 %v2810_v18, %v20083_v14 }
 0x237   :  { %24534 = vst [vmem:[#allocation56_spill] sm:$0xff] %v20713_v19  ;;  %13668 = vmatmul.mubr.f32.gmra.mrb[38].mxu0 %v5611_v52  ;;  %v6906_v1 = vsub.f32 %v20609_v7, %v23208_v26  ;;  %v20728_v12 = vsub.f32 %v20640_v62, %v20713_v19  ;;  %10614 = vst [vmem:[#allocation8 + $0x70] sm:$0xff] %v5406_v28  ;;  %v20730_v13 = vand.u32 4294901760, %v2810_v18  ;;  %v23212_v60 = vand.u32 4294901760, %v20553_v49 }
 0x238   :  { %15985 = vmatpush3.bf16.msra.mxu1 %v20404_v50  ;;  %v5621_v43 = vand.u32 4294901760, %v5620_v53  ;;  %10630 = vst [vmem:[#allocation8 + $0x170] sm:$0xff] %v5422_v36  ;;  %v23210_v14 = vand.u32 4294901760, %v20601_v5  ;;  %v23211_v52 = vand.u32 4294901760, %v20625_v31  ;;  %v23214_v26 = vand.u32 4294901760, %v20644_v10 }
 0x239   :  { %24535 = vst [vmem:[#allocation103_spill] sm:$0xff] %v20728_v12  ;;  %24536 = vst [vmem:[#allocation104_spill] sm:$0xff] %v20730_v13  ;;  %14004 = vmatmul.mubr.f32.gmra.mrb[38].mxu1 %v6897_v27  ;;  %15987 = vmatprep.subr.bf16.mxu1 %v20413_v58  ;;  %v6907_v62 = vand.u32 4294901760, %v6906_v1  ;;  %v20739_v28 = vsub.f32 %v2810_v18, %v20730_v13  ;;  %v5630_v59 = vsub.f32 %v20553_v49, %v23212_v60 }
 0x23a   :  { %v23215_v50 = vand.u32 4294901760, %v20597_v4  ;;  %15797 = vmatpush3.bf16.msra.mxu0 %v20411_v29  ;;  %13670 = vmatprep.mubr.f32.mxu0 %v5621_v43  ;;  %v6916_v27 = vsub.f32 %v20601_v5, %v23210_v14  ;;  %v5640_v53 = vsub.f32 %v20625_v31, %v23211_v52  ;;  %v6926_v18 = vsub.f32 %v20644_v10, %v23214_v26 }
 0x23b   :  { %v23216_v36 = vand.u32 4294901760, %v20633_v56  ;;  %15799 = vmatprep.subr.bf16.mxu0 %v20420_v39  ;;  %14006 = vmatprep.mubr.f32.mxu1 %v6907_v62  ;;  %v5631_v1 = vand.u32 4294901760, %v5630_v59  ;;  %v23217_v43 = vand.u32 4294901760, %v20684_v57  ;;  %v23218_v14 = vand.u32 4294901760, %v20691_v21 }
 0x23c   :  { %v5650_v29 = vsub.f32 %v20597_v4, %v23215_v50  ;;  %15989 = vmatpush3.bf16.msra.mxu1 %v20413_v58  ;;  %v6917_v52 = vand.u32 4294901760, %v6916_v27  ;;  %v5641_v60 = vand.u32 4294901760, %v5640_v53  ;;  %v6927_v8 = vand.u32 4294901760, %v6926_v18 }
 0x23d   :  { %v6936_v26 = vsub.f32 %v20633_v56, %v23216_v36  ;;  %15991 = vmatprep.subr.bf16.mxu1 %v20432_v41  ;;  %13671 = vmatmul.mubr.f32.gmra.mrb[40].mxu0 %v5631_v1  ;;  %v5660_v62 = vsub.f32 %v20684_v57, %v23217_v43  ;;  %v6946_v50 = vsub.f32 %v20691_v21, %v23218_v14  ;;  %v23224_v58 = vand.u32 4294901760, %v20657_v40 }
 0x23e   :  { %v5651_v59 = vand.u32 4294901760, %v5650_v29  ;;  %14007 = vmatmul.mubr.f32.gmra.mrb[40].mxu1 %v6917_v52  ;;  %13673 = vmatprep.mubr.f32.mxu0 %v5641_v60  ;;  %v23223_v53 = vand.u32 4294901760, %v20668_v16  ;;  %v23219_v18 = vand.u32 4294901760, %v20728_v12  ;;  %v23220_v1 = vand.u32 4294901760, %v20739_v28 }
 0x23f   :  { %v6937_v27 = vand.u32 4294901760, %v6936_v26  ;;  %14009 = vmatprep.mubr.f32.mxu1 %v6927_v8  ;;  %v5661_v29 = vand.u32 4294901760, %v5660_v62  ;;  %v6947_v36 = vand.u32 4294901760, %v6946_v50  ;;  %v5670_v43 = vsub.f32 %v20657_v40, %v23224_v58  ;;  %15801 = vmatpush3.bf16.msra.mxu0 %v20420_v39  ;;  %v24550_v58 = vld [vmem:[#allocation99_spill] sm:$0xff] }
 0x240   :  { %v23221_v14 = vand.u32 4294901760, %v20702_v54  ;;  %v6956_v26 = vsub.f32 %v20668_v16, %v23223_v53  ;;  %v5680_v60 = vsub.f32 %v20728_v12, %v23219_v18  ;;  %v6966_v8 = vsub.f32 %v20739_v28, %v23220_v1  ;;  %15993 = vmatpush3.bf16.msra.mxu1 %v20432_v41  ;;  %15803 = vmatprep.subr.bf16.mxu0 %v20424_v11 }
 0x241   :  { %v23222_v52 = vand.u32 4294901760, %v20717_v22  ;;  %13674 = vmatmul.mubr.f32.gmra.mrb[42].mxu0 %v5651_v59  ;;  %15995 = vmatprep.subr.bf16.mxu1 %v20442_v30  ;;  %v5671_v50 = vand.u32 4294901760, %v5670_v43  ;;  %v24538_v43 = vld [vmem:[#allocation41_spill] sm:$0xff] }
 0x242   :  { %14010 = vmatmul.mubr.f32.gmra.mrb[42].mxu1 %v6937_v27  ;;  %13676 = vmatprep.mubr.f32.mxu0 %v5661_v29  ;;  %v5681_v39 = vand.u32 4294901760, %v5680_v60  ;;  %v6967_v62 = vand.u32 4294901760, %v6966_v8  ;;  %v5690_v18 = vsub.f32 %v20702_v54, %v23221_v14  ;;  %v6957_v1 = vand.u32 4294901760, %v6956_v26  ;;  %v24539_v29 = vld [vmem:[#allocation40_spill] sm:$0xff]  ;;  %v24540_v26 = vld [vmem:[#allocation50_spill] sm:$0xff]  ;;  %v24541_v8 = vld [vmem:[#allocation101_spill] sm:$0xff] }
 0x243   :  { %14012 = vmatprep.mubr.f32.mxu1 %v6947_v36  ;;  %v6976_v41 = vsub.f32 %v20717_v22, %v23222_v52  ;;  %v24537_v36 = vld [vmem:[#allocation87_spill] sm:$0xff]  ;;  %v15806_v60 = vpack.c.bf16 %v24539_v29, %v24538_v43  ;;  %v24542_v14 = vld [vmem:[#allocation73_spill] sm:$0xff] }
 0x244   :  { %v5691_v59 = vand.u32 4294901760, %v5690_v18  ;;  %v15998_v52 = vpack.c.bf16 %v24542_v14, %v24541_v8  ;;  %v24545_v18 = vld [vmem:[#allocation83_spill] sm:$0xff] }
 0x245   :  { %13677 = vmatmul.mubr.f32.gmra.mrb[44].mxu0 %v5671_v50  ;;  %v6977_v27 = vand.u32 4294901760, %v6976_v41  ;;  %v24543_v50 = vld [vmem:[#allocation57_spill] sm:$0xff] }
 0x246   :  { %14013 = vmatmul.mubr.f32.gmra.mrb[44].mxu1 %v6957_v1  ;;  %13679 = vmatprep.mubr.f32.mxu0 %v5681_v39  ;;  %v24544_v1 = vld [vmem:[#allocation36_spill] sm:$0xff]  ;;  %v24546_v39 = vld [vmem:[#allocation53_spill] sm:$0xff] }
 0x247   :  { %14015 = vmatprep.mubr.f32.mxu1 %v6967_v62  ;;  %v15810_v62 = vpack.c.bf16 %v24546_v39, %v24545_v18  ;;  %v24547_v41 = vld [vmem:[#allocation29_spill] sm:$0xff] }
 0x249   :  { %13680 = vmatmul.mubr.f32.gmra.mrb[46].mxu0 %v5691_v59  ;;  %v24548_v59 = vld [vmem:[#allocation15_spill] sm:$0xff] }
 0x24a   :  { %14016 = vmatmul.mubr.f32.gmra.mrb[46].mxu1 %v6977_v27  ;;  %13714 = vmatprep.mubr.f32.mxu0 %v24537_v36  ;;  %v24549_v27 = vld [vmem:[#allocation60_spill] sm:$0xff] }
 0x24b   :  { %14050 = vmatprep.mubr.f32.mxu1 %v20456_v63  ;;  %v16002_v53 = vpack.c.bf16 %v24549_v27, %v24548_v59 }
 0x24d   :  { %13715 = vmatmul.mubr.f32.vlgmr.msra.gmra.mrb[32].mxu0 %v24540_v26  ;;  %v24556_v26 = vld [vmem:[#allocation72_spill] sm:$0xff] }
 0x24e   :  { %14051 = vmatmul.mubr.f32.vlgmr.msra.gmra.mrb[32].mxu1 %v24543_v50  ;;  %13717 = vmatprep.mubr.f32.mxu0 %v24544_v1  ;;  %v24551_v50 = vld [vmem:[#allocation84_spill] sm:$0xff]  ;;  %v24554_v1 = vld [vmem:[#allocation95_spill] sm:$0xff] }
 0x24f   :  { %15805 = vmatpush3.bf16.msra.mxu0 %v20424_v11  ;;  %14053 = vmatprep.mubr.f32.mxu1 %v20491_v45  ;;  %v24553_v11 = vld [vmem:[#allocation38_spill] sm:$0xff] }
 0x250   :  { %15997 = vmatpush3.bf16.msra.mxu1 %v20442_v30  ;;  %15807 = vmatprep.subr.bf16.mxu0 %v15806_v60  ;;  %v24552_v30 = vld [vmem:[#allocation69_spill] sm:$0xff] }
 0x251   :  { %13718 = vmatmul.mubr.f32.gmra.mrb[34].mxu0 %v24547_v41  ;;  %15999 = vmatprep.subr.bf16.mxu1 %v15998_v52  ;;  %v15814_v45 = vpack.c.bf16 %v24553_v11, %v24552_v30  ;;  %v24555_v41 = vld [vmem:[#allocation12_spill] sm:$0xff] }
 0x252   :  { %14054 = vmatmul.mubr.f32.gmra.mrb[34].mxu1 %v24550_v58  ;;  %13720 = vmatprep.mubr.f32.mxu0 %v24551_v50  ;;  %v16006_v63 = vpack.c.bf16 %v24556_v26, %v24555_v41  ;;  %v24559_v50 = vld [vmem:[#allocation79_spill] sm:$0xff]  ;;  %v24561_v58 = vld [vmem:[#allocation14_spill] sm:$0xff] }
 0x253   :  { %15809 = vmatpush3.bf16.msra.mxu0 %v15806_v60  ;;  %14056 = vmatprep.mubr.f32.mxu1 %v20527_v24  ;;  %v24558_v60 = vld [vmem:[#allocation31_spill] sm:$0xff] }
 0x254   :  { %16001 = vmatpush3.bf16.msra.mxu1 %v15998_v52  ;;  %15811 = vmatprep.subr.bf16.mxu0 %v15810_v62  ;;  %v24557_v52 = vld [vmem:[#allocation51_spill] sm:$0xff] }
 0x255   :  { %13721 = vmatmul.mubr.f32.gmra.mrb[36].mxu0 %v24554_v1  ;;  %16003 = vmatprep.subr.bf16.mxu1 %v16002_v53  ;;  %v15818_v24 = vpack.c.bf16 %v24558_v60, %v24557_v52  ;;  %v24560_v1 = vld [vmem:[#allocation39_spill] sm:$0xff] }
 0x256   :  { %14057 = vmatmul.mubr.f32.gmra.mrb[36].mxu1 %v20519_v55  ;;  %13723 = vmatprep.mubr.f32.mxu0 %v20516_v23  ;;  %v16010_v36 = vpack.c.bf16 %v24561_v58, %v24560_v1  ;;  %v24564_v23 = vld [vmem:[#allocation75_spill] sm:$0xff]  ;;  %v24566_v55 = vld [vmem:[#allocation49_spill] sm:$0xff] }
 0x257   :  { %15813 = vmatpush3.bf16.msra.mxu0 %v15810_v62  ;;  %14059 = vmatprep.mubr.f32.mxu1 %v20560_v37  ;;  %v24563_v62 = vld [vmem:[#allocation20_spill] sm:$0xff] }
 0x258   :  { %16005 = vmatpush3.bf16.msra.mxu1 %v16002_v53  ;;  %15815 = vmatprep.subr.bf16.mxu0 %v15814_v45  ;;  %v24562_v53 = vld [vmem:[#allocation59_spill] sm:$0xff] }
 0x259   :  { %13724 = vmatmul.mubr.f32.gmra.mrb[38].mxu0 %v24559_v50  ;;  %16007 = vmatprep.subr.bf16.mxu1 %v16006_v63  ;;  %v15822_v37 = vpack.c.bf16 %v24563_v62, %v24562_v53  ;;  %v24565_v50 = vld [vmem:[#allocation88_spill] sm:$0xff] }
 0x25a   :  { %14060 = vmatmul.mubr.f32.gmra.mrb[38].mxu1 %v20550_v35  ;;  %13726 = vmatprep.mubr.f32.mxu0 %v20547_v6  ;;  %v16014_v60 = vpack.c.bf16 %v24566_v55, %v24565_v50  ;;  %v24569_v6 = vld [vmem:[#allocation43_spill] sm:$0xff]  ;;  %v24571_v35 = vld [vmem:[#allocation80_spill] sm:$0xff] }
 0x25b   :  { %15817 = vmatpush3.bf16.msra.mxu0 %v15814_v45  ;;  %14062 = vmatprep.mubr.f32.mxu1 %v20593_v42  ;;  %v24568_v45 = vld [vmem:[#allocation13_spill] sm:$0xff] }
 0x25c   :  { %16009 = vmatpush3.bf16.msra.mxu1 %v16006_v63  ;;  %15819 = vmatprep.subr.bf16.mxu0 %v15818_v24  ;;  %v24567_v63 = vld [vmem:[#allocation18_spill] sm:$0xff] }
 0x25d   :  { %13727 = vmatmul.mubr.f32.gmra.mrb[40].mxu0 %v24564_v23  ;;  %16011 = vmatprep.subr.bf16.mxu1 %v16010_v36  ;;  %v15826_v42 = vpack.c.bf16 %v24568_v45, %v24567_v63  ;;  %v24570_v23 = vld [vmem:[#allocation21_spill] sm:$0xff] }
 0x25e   :  { %14063 = vmatmul.mubr.f32.gmra.mrb[40].mxu1 %v20583_v20  ;;  %13729 = vmatprep.mubr.f32.mxu0 %v20615_v0  ;;  %v16018_v62 = vpack.c.bf16 %v24571_v35, %v24570_v23  ;;  %v24575_v0 = vld [vmem:[#allocation66_spill] sm:$0xff] }
 0x25f   :  { %15821 = vmatpush3.bf16.msra.mxu0 %v15818_v24  ;;  %14065 = vmatprep.mubr.f32.mxu1 %v20628_v51  ;;  %v24572_v24 = vld [vmem:[#allocation47_spill] sm:$0xff] }
 0x260   :  { %16013 = vmatpush3.bf16.msra.mxu1 %v16010_v36  ;;  %15823 = vmatprep.subr.bf16.mxu0 %v15822_v37  ;;  %v24573_v36 = vld [vmem:[#allocation62_spill] sm:$0xff] }
 0x261   :  { %13730 = vmatmul.mubr.f32.gmra.mrb[42].mxu0 %v24569_v6  ;;  %16015 = vmatprep.subr.bf16.mxu1 %v16014_v60  ;;  %v15830_v51 = vpack.c.bf16 %v24573_v36, %v24572_v24  ;;  %v24574_v6 = vld [vmem:[#allocation54_spill] sm:$0xff] }
 0x262   :  { %14066 = vmatmul.mubr.f32.gmra.mrb[42].mxu1 %v20618_v47  ;;  %13732 = vmatprep.mubr.f32.mxu0 %v20671_v32  ;;  %v16022_v20 = vpack.c.bf16 %v24575_v0, %v24574_v6  ;;  %v24589_v32 = vld [vmem:[#allocation32_spill] sm:$0xff] }
 0x263   :  { %15825 = vmatpush3.bf16.msra.mxu0 %v15822_v37  ;;  %14068 = vmatprep.mubr.f32.mxu1 %v20678_v3  ;;  %v24576_v37 = vld [vmem:[#allocation28_spill] sm:$0xff]  ;;  %v24588_v3 = vld [vmem:[#allocation61_spill] sm:$0xff] }
 0x264   :  { %16017 = vmatpush3.bf16.msra.mxu1 %v16014_v60  ;;  %15827 = vmatprep.subr.bf16.mxu0 %v15826_v42  ;;  %v24577_v60 = vld [vmem:[#allocation77_spill] sm:$0xff]  ;;  %v24590_v47 = vld [vmem:[#allocation24_spill] sm:$0xff] }
 0x265   :  { %13733 = vmatmul.mubr.f32.gmra.mrb[44].mxu0 %v20647_v48  ;;  %16019 = vmatprep.subr.bf16.mxu1 %v16018_v62  ;;  %v24578_v48 = vld [vmem:[#allocation64_spill] sm:$0xff] }
 0x266   :  { %14069 = vmatmul.mubr.f32.gmra.mrb[44].mxu1 %v20654_v25  ;;  %13735 = vmatprep.mubr.f32.mxu0 %v20713_v19  ;;  %v24579_v25 = vld [vmem:[#allocation74_spill] sm:$0xff] }
 0x267   :  { %15829 = vmatpush3.bf16.msra.mxu0 %v15826_v42  ;;  %14071 = vmatprep.mubr.f32.mxu1 %v20730_v13  ;;  %v24580_v42 = vld [vmem:[#allocation82_spill] sm:$0xff]  ;;  %v24581_v13 = vld [vmem:[#allocation89_spill] sm:$0xff] }
 0x268   :  { %16021 = vmatpush3.bf16.msra.mxu1 %v16018_v62  ;;  %15831 = vmatprep.subr.bf16.mxu0 %v15830_v51  ;;  %v24582_v62 = vld [vmem:[#allocation22_spill] sm:$0xff] }
 0x269   :  { %13736 = vmatmul.mubr.f32.gmra.mrb[46].mxu0 %v20688_v17  ;;  %16023 = vmatprep.subr.bf16.mxu1 %v16022_v20  ;;  %v24583_v17 = vld [vmem:[#allocation65_spill] sm:$0xff]  ;;  %v24587_v19 = vld [vmem:[#allocation98_spill] sm:$0xff] }
 0x26a   :  { %14072 = vmatmul.mubr.f32.gmra.mrb[46].mxu1 %v20704_v9  ;;  %13770 = vmatprep.mubr.f32.mxu0 %v24576_v37  ;;  %v24585_v9 = vld [vmem:[#allocation55_spill] sm:$0xff] }
 0x26b   :  { %15833 = vmatpush3.bf16.msra.mxu0 %v15830_v51  ;;  %14106 = vmatprep.mubr.f32.mxu1 %v24577_v60  ;;  %v24584_v51 = vld [vmem:[#allocation52_spill] sm:$0xff] }
 0x26c   :  { %16025 = vmatpush3.bf16.msra.mxu1 %v16022_v20  ;;  %15835 = vmatprep.subr.bf16.mxu0 %v24578_v48  ;;  %v24586_v20 = vld [vmem:[#allocation78_spill] sm:$0xff] }
 0x26d   :  { %16027 = vmatprep.subr.bf16.mxu1 %v24579_v25 }
 0x26e   :  { %13771 = vmatmul.mubr.f32.vlgmr.msra.gmra.mrb[32].mxu0 %v24580_v42 }
 0x26f   :  { %14107 = vmatmul.mubr.f32.vlgmr.msra.gmra.mrb[32].mxu1 %v24581_v13  ;;  %13773 = vmatprep.mubr.f32.mxu0 %v24582_v62 }
 0x270   :  { %15837 = vmatpush3.bf16.msra.mxu0 %v24578_v48  ;;  %14109 = vmatprep.mubr.f32.mxu1 %v24583_v17  ;;  %v24602_v48 = vld [vmem:[#allocation97_spill] sm:$0xff] }
 0x271   :  { %16029 = vmatpush3.bf16.msra.mxu1 %v24579_v25  ;;  %15839 = vmatprep.subr.bf16.mxu0 %v24584_v51  ;;  %v24600_v25 = vld [vmem:[#allocation92_spill] sm:$0xff]  ;;  %v24603_v0 = vand.u32 4294901760, %v24602_v48 }
 0x272   :  { %13774 = vmatmul.mubr.f32.gmra.mrb[34].mxu0 %v24585_v9  ;;  %16031 = vmatprep.subr.bf16.mxu1 %v24586_v20 }
 0x273   :  { %14110 = vmatmul.mubr.f32.gmra.mrb[34].mxu1 %v24587_v19  ;;  %13776 = vmatprep.mubr.f32.mxu0 %v20496_v33 }
 0x274   :  { %15841 = vmatpush3.bf16.msra.mxu0 %v24584_v51  ;;  %14112 = vmatprep.mubr.f32.mxu1 %v20543_v61  ;;  %v24591_v51 = vld [vmem:[#allocation27_spill] sm:$0xff] }
 0x275   :  { %16033 = vmatpush3.bf16.msra.mxu1 %v24586_v20  ;;  %15843 = vmatprep.subr.bf16.mxu0 %v24588_v3  ;;  %v24592_v20 = vld [vmem:[#allocation19_spill] sm:$0xff] }
 0x276   :  { %13777 = vmatmul.mubr.f32.gmra.mrb[36].mxu0 %v24589_v32  ;;  %16035 = vmatprep.subr.bf16.mxu1 %v24590_v47 }
 0x277   :  { %14113 = vmatmul.mubr.f32.gmra.mrb[36].mxu1 %v20535_v15  ;;  %13779 = vmatprep.mubr.f32.mxu0 %v20531_v34 }
 0x278   :  { %15845 = vmatpush3.bf16.msra.mxu0 %v24588_v3  ;;  %14115 = vmatprep.mubr.f32.mxu1 %v20577_v46  ;;  %v24593_v3 = vld [vmem:[#allocation23_spill] sm:$0xff] }
 0x279   :  { %16037 = vmatpush3.bf16.msra.mxu1 %v24590_v47  ;;  %15847 = vmatprep.subr.bf16.mxu0 %v24591_v51  ;;  %v24594_v47 = vld [vmem:[#allocation63_spill] sm:$0xff] }
 0x27a   :  { %13780 = vmatmul.mubr.f32.gmra.mrb[38].mxu0 %v20523_v38  ;;  %16039 = vmatprep.subr.bf16.mxu1 %v24592_v20 }
 0x27b   :  { %14116 = vmatmul.mubr.f32.gmra.mrb[38].mxu1 %v20571_v44  ;;  %13782 = vmatprep.mubr.f32.mxu0 %v20567_v2 }
 0x27c   :  { %15849 = vmatpush3.bf16.msra.mxu0 %v24591_v51  ;;  %14118 = vmatprep.mubr.f32.mxu1 %v20609_v7  ;;  %v24595_v51 = vld [vmem:[#allocation68_spill] sm:$0xff] }
 0x27d   :  { %16041 = vmatpush3.bf16.msra.mxu1 %v24592_v20  ;;  %15851 = vmatprep.subr.bf16.mxu0 %v24593_v3  ;;  %v24596_v20 = vld [vmem:[#allocation100_spill] sm:$0xff] }
 0x27e   :  { %13783 = vmatmul.mubr.f32.gmra.mrb[40].mxu0 %v20553_v49  ;;  %16043 = vmatprep.subr.bf16.mxu1 %v24594_v47 }
 0x27f   :  { %14119 = vmatmul.mubr.f32.gmra.mrb[40].mxu1 %v20601_v5  ;;  %13785 = vmatprep.mubr.f32.mxu0 %v20625_v31 }
 0x280   :  { %15853 = vmatpush3.bf16.msra.mxu0 %v24593_v3  ;;  %14121 = vmatprep.mubr.f32.mxu1 %v20644_v10  ;;  %v24597_v3 = vld [vmem:[#allocation96_spill] sm:$0xff] }
 0x281   :  { %16045 = vmatpush3.bf16.msra.mxu1 %v24594_v47  ;;  %15855 = vmatprep.subr.bf16.mxu0 %v24595_v51  ;;  %v24598_v47 = vld [vmem:[#allocation35_spill] sm:$0xff] }
 0x282   :  { %13786 = vmatmul.mubr.f32.gmra.mrb[42].mxu0 %v20597_v4  ;;  %16047 = vmatprep.subr.bf16.mxu1 %v24596_v20 }
 0x283   :  { %14122 = vmatmul.mubr.f32.gmra.mrb[42].mxu1 %v20633_v56  ;;  %13788 = vmatprep.mubr.f32.mxu0 %v20684_v57 }
 0x284   :  { %15857 = vmatpush3.bf16.msra.mxu0 %v24595_v51  ;;  %14124 = vmatprep.mubr.f32.mxu1 %v20691_v21  ;;  %v24599_v51 = vld [vmem:[#allocation71_spill] sm:$0xff] }
 0x285   :  { %16049 = vmatpush3.bf16.msra.mxu1 %v24596_v20  ;;  %15859 = vmatprep.subr.bf16.mxu0 %v24597_v3  ;;  %v24601_v20 = vand.u32 4294901760, %v24600_v25  ;;  %v24610_v25 = vand.u32 4294901760, %v24577_v60  ;;  %v24617_v60 = vand.u32 4294901760, %v24582_v62  ;;  %v24623_v62 = vand.u32 4294901760, %v24549_v27 }
 0x286   :  { %13789 = vmatmul.mubr.f32.gmra.mrb[44].mxu0 %v20657_v40  ;;  %16051 = vmatprep.subr.bf16.mxu1 %v24598_v47  ;;  %v24604_v40 = vld [vmem:[#allocation58_spill] sm:$0xff] }
 0x287   :  { %14125 = vmatmul.mubr.f32.gmra.mrb[44].mxu1 %v20668_v16  ;;  %13791 = vmatprep.mubr.f32.mxu0 %v20728_v12  ;;  %v15866_v6 = vpack.c.bf16 %v24603_v0, %v24601_v20  ;;  %v24605_v16 = vld [vmem:[#allocation85_spill] sm:$0xff]  ;;  %v24607_v12 = vld [vmem:[#allocation102_spill] sm:$0xff]  ;;  %v24611_v0 = vand.u32 4294901760, %v24538_v43  ;;  %v24618_v43 = vand.u32 4294901760, %v24583_v17  ;;  %v24626_v17 = vand.u32 4294901760, %v20543_v61 }
 0x288   :  { %15861 = vmatpush3.bf16.msra.mxu0 %v24597_v3  ;;  %14127 = vmatprep.mubr.f32.mxu1 %v20739_v28  ;;  %v24606_v21 = vand.u32 4294901760, %v24605_v16  ;;  %v24608_v36 = vand.u32 4294901760, %v24607_v12  ;;  %v24612_v16 = vand.u32 4294901760, %v24539_v29  ;;  %v24614_v12 = vand.u32 4294901760, %v24541_v8 }
 0x289   :  { %16053 = vmatpush3.bf16.msra.mxu1 %v24598_v47  ;;  %15863 = vmatprep.subr.bf16.mxu0 %v24599_v51  ;;  %v24609_v47 = vand.u32 4294901760, %v24576_v37  ;;  %v24616_v37 = vand.u32 4294901760, %v24581_v13  ;;  %v24619_v29 = vand.u32 4294901760, %v24545_v18  ;;  %v24622_v13 = vand.u32 4294901760, %v24548_v59 }
 0x28a   :  { %13792 = vmatmul.mubr.f32.gmra.mrb[46].mxu0 %v20702_v54  ;;  %16055 = vmatprep.subr.bf16.mxu1 %v24604_v40  ;;  %v16058_v3 = vpack.c.bf16 %v24608_v36, %v24606_v21  ;;  %v15870_v48 = vpack.c.bf16 %v24612_v16, %v24611_v0  ;;  %v24613_v21 = vand.u32 4294901760, %v24580_v42  ;;  %v24620_v42 = vand.u32 4294901760, %v24546_v39 }
 0x28b   :  { %14128 = vmatmul.mubr.f32.gmra.mrb[46].mxu1 %v20717_v22  ;;  %13826 = vmatprep.mubr.f32.mxu0 %v24609_v47  ;;  %v24615_v47 = vand.u32 4294901760, %v24542_v14  ;;  %v24621_v14 = vand.u32 4294901760, %v24585_v9  ;;  %v16066_v20 = vpack.c.bf16 %v24623_v62, %v24622_v13  ;;  %v24627_v9 = vand.u32 4294901760, %v24552_v30  ;;  %v21043_v62 = vld [vmem:[#allocation5 + $0x198] sm:$0xff] }
 0x28c   :  { %15865 = vmatpush3.bf16.msra.mxu0 %v24599_v51  ;;  %14162 = vmatprep.mubr.f32.mxu1 %v24610_v25  ;;  %v15874_v8 = vpack.c.bf16 %v24620_v42, %v24619_v29  ;;  %v24628_v18 = vand.u32 4294901760, %v24553_v11  ;;  %v24629_v59 = vand.u32 4294901760, %v24589_v32  ;;  %v24632_v25 = vand.u32 4294901760, %v20535_v15  ;;  %v24636_v11 = vld [vmem:[#allocation31_spill] sm:$0xff]  ;;  %v21035_v42 = vld [vmem:[#allocation5 + $0x190] sm:$0xff]  ;;  %24661 = vst [vmem:[#allocation73_spill] sm:$0xff] %v21043_v62 }
 0x28d   :  { %16057 = vmatpush3.bf16.msra.mxu1 %v24604_v40  ;;  %15867 = vmatprep.subr.bf16.mxu0 %v15866_v6  ;;  %v16062_v36 = vpack.c.bf16 %v24615_v47, %v24614_v12  ;;  %v24633_v61 = vand.u32 4294901760, %v20531_v34  ;;  %v24634_v30 = vand.u32 4294901760, %v20577_v46  ;;  %v24635_v32 = vand.u32 4294901760, %v24557_v52  ;;  %v21033_v29 = vld [vmem:[#allocation5 + $0x118] sm:$0xff]  ;;  %24657 = vst [vmem:[#allocation101_spill] sm:$0xff] %v21035_v42 }
 0x28e   :  { %16059 = vmatprep.subr.bf16.mxu1 %v16058_v3  ;;  %v15878_v39 = vpack.c.bf16 %v24628_v18, %v24627_v9  ;;  %v24637_v0 = vand.u32 4294901760, %v24636_v11  ;;  %v24639_v15 = vand.u32 4294901760, %v24560_v1  ;;  %v24640_v34 = vand.u32 4294901760, %v24561_v58  ;;  %v21058_v9 = vld [vmem:[#allocation5 + $0x1a0] sm:$0xff]  ;;  %v21060_v18 = vld [vmem:[#allocation5 + $0x1a8] sm:$0xff]  ;;  %v21075_v11 = vld [vmem:[#allocation5 + $0x1b0] sm:$0xff] }
 0x28f   :  { %13827 = vmatmul.mubr.f32.vlgmr.msra.gmra.mrb[32].mxu0 %v24613_v21  ;;  %v24642_v46 = vand.u32 4294901760, %v20567_v2  ;;  %v24643_v52 = vand.u32 4294901760, %v20609_v7  ;;  %v24645_v21 = vld [vmem:[#allocation20_spill] sm:$0xff]  ;;  %v24647_v58 = vand.u32 4294901760, %v20553_v49  ;;  %v24649_v2 = vand.u32 4294901760, %v24566_v55  ;;  %v21021_v49 = vld [vmem:[#allocation5 + $0x108] sm:$0xff] }
 0x290   :  { %14163 = vmatmul.mubr.f32.vlgmr.msra.gmra.mrb[32].mxu1 %v24616_v37  ;;  %13829 = vmatprep.mubr.f32.mxu0 %v24617_v60  ;;  %v16074_v16 = vpack.c.bf16 %v24640_v34, %v24639_v15  ;;  %v24646_v12 = vand.u32 4294901760, %v24645_v21  ;;  %v24651_v7 = vand.u32 4294901760, %v20625_v31  ;;  %v21017_v37 = vld [vmem:[#allocation5 + $0x100] sm:$0xff]  ;;  %v24655_v55 = vand.u32 4294901760, %v24567_v63  ;;  %24669 = vst [vmem:[#allocation15_spill] sm:$0xff] %v21058_v9  ;;  %24670 = vst [vmem:[#allocation60_spill] sm:$0xff] %v21060_v18 }
 0x291   :  { %15869 = vmatpush3.bf16.msra.mxu0 %v15866_v6  ;;  %14165 = vmatprep.mubr.f32.mxu1 %v24618_v43  ;;  %v24624_v6 = vand.u32 4294901760, %v24587_v19  ;;  %v24630_v19 = vand.u32 4294901760, %v24555_v41  ;;  %v15882_v41 = vpack.c.bf16 %v24637_v0, %v24635_v32  ;;  %v21023_v60 = vld [vmem:[#allocation5 + $0x180] sm:$0xff]  ;;  %v21031_v43 = vld [vmem:[#allocation5 + $0x110] sm:$0xff]  ;;  %v21073_v32 = vld [vmem:[#allocation5 + $0x138] sm:$0xff]  ;;  %24679 = vst [vmem:[#allocation12_spill] sm:$0xff] %v21075_v11 }
 0x292   :  { %16061 = vmatpush3.bf16.msra.mxu1 %v16058_v3  ;;  %15871 = vmatprep.subr.bf16.mxu0 %v15870_v48  ;;  %v24625_v3 = vand.u32 4294901760, %v20496_v33  ;;  %v24631_v33 = vand.u32 4294901760, %v24556_v26  ;;  %v24638_v26 = vand.u32 4294901760, %v20523_v38  ;;  %v24644_v38 = vand.u32 4294901760, %v24562_v53  ;;  %24653 = vst [vmem:[#allocation41_spill] sm:$0xff] %v21023_v60  ;;  %v21045_v63 = vld [vmem:[#allocation5 + $0x120] sm:$0xff] }
 0x293   :  { %13830 = vmatmul.mubr.f32.gmra.mrb[34].mxu0 %v24621_v14  ;;  %16063 = vmatprep.subr.bf16.mxu1 %v16062_v36  ;;  %v24652_v53 = vand.u32 4294901760, %v20644_v10  ;;  %v24658_v10 = vand.u32 4294901760, %v20597_v4  ;;  %v24660_v14 = vand.u32 4294901760, %v24571_v35  ;;  %24662 = vst [vmem:[#allocation83_spill] sm:$0xff] %v21045_v63  ;;  %v24666_v4 = vand.u32 4294901760, %v24572_v24  ;;  %24678 = vst [vmem:[#allocation38_spill] sm:$0xff] %v21073_v32 }
 0x294   :  { %14166 = vmatmul.mubr.f32.gmra.mrb[34].mxu1 %v24624_v6  ;;  %13832 = vmatprep.mubr.f32.mxu0 %v24625_v3  ;;  %v16070_v27 = vpack.c.bf16 %v24631_v33, %v24630_v19  ;;  %v15886_v1 = vpack.c.bf16 %v24646_v12, %v24644_v38  ;;  %v24665_v6 = vand.u32 4294901760, %v20684_v57  ;;  %v24667_v3 = vld [vmem:[#allocation62_spill] sm:$0xff]  ;;  %v8029_v35 = vand.u32 4294901760, %v21017_v37  ;;  %v21077_v0 = vld [vmem:[#allocation5 + $0x1b8] sm:$0xff]  ;;  %v24683_v12 = vld [vmem:[#allocation16_spill] sm:$0xff] }
 0x295   :  { %15873 = vmatpush3.bf16.msra.mxu0 %v15870_v48  ;;  %14168 = vmatprep.mubr.f32.mxu1 %v24626_v17  ;;  %v24641_v48 = vand.u32 4294901760, %v20571_v44  ;;  %v24648_v44 = vand.u32 4294901760, %v24565_v50  ;;  %v21025_v50 = vld [vmem:[#allocation5 + $0x188] sm:$0xff]  ;;  %v24668_v17 = vand.u32 4294901760, %v24667_v3  ;;  %v24674_v19 = vld [vmem:[#allocation54_spill] sm:$0xff]  ;;  %24680 = vst [vmem:[#allocation72_spill] sm:$0xff] %v21077_v0 }
 0x296   :  { %16065 = vmatpush3.bf16.msra.mxu1 %v16062_v36  ;;  %15875 = vmatprep.subr.bf16.mxu0 %v15874_v8  ;;  %v24650_v36 = vand.u32 4294901760, %v20601_v5  ;;  %24654 = vst [vmem:[#allocation40_spill] sm:$0xff] %v21025_v50  ;;  %v24656_v5 = vand.u32 4294901760, %v24568_v45  ;;  %v21047_v45 = vld [vmem:[#allocation5 + $0x128] sm:$0xff]  ;;  %v24675_v57 = vand.u32 4294901760, %v24674_v19  ;;  %v24676_v33 = vld [vmem:[#allocation66_spill] sm:$0xff] }
 0x297   :  { %13833 = vmatmul.mubr.f32.gmra.mrb[36].mxu0 %v24629_v59  ;;  %16067 = vmatprep.subr.bf16.mxu1 %v16066_v20  ;;  %v16078_v47 = vpack.c.bf16 %v24649_v2, %v24648_v44  ;;  %24663 = vst [vmem:[#allocation53_spill] sm:$0xff] %v21047_v45  ;;  %v24672_v59 = vld [vmem:[#allocation37_spill] sm:$0xff]  ;;  %v23294_v15 = vand.u32 4294901760, %v21035_v42  ;;  %v23293_v34 = vand.u32 4294901760, %v21043_v62  ;;  %v23290_v38 = vand.u32 4294901760, %v21058_v9  ;;  %v21152_v19 = vld [vmem:[#allocation5 + $0x1d0] sm:$0xff] }
 0x298   :  { %14169 = vmatmul.mubr.f32.gmra.mrb[36].mxu1 %v24632_v25  ;;  %13835 = vmatprep.mubr.f32.mxu0 %v24633_v61  ;;  %v15890_v31 = vpack.c.bf16 %v24656_v5, %v24655_v55  ;;  %v8032_v25 = vand.u32 4294901760, %v21021_v49  ;;  %v9315_v61 = vand.u32 4294901760, %v21023_v60  ;;  %v23289_v21 = vand.u32 4294901760, %v21060_v18  ;;  %24703 = vst [vmem:[#allocation77_spill] sm:$0xff] %v21152_v19 }
 0x299   :  { %15877 = vmatpush3.bf16.msra.mxu0 %v15874_v8  ;;  %14171 = vmatprep.mubr.f32.mxu1 %v24634_v30  ;;  %v24659_v8 = vand.u32 4294901760, %v24570_v23  ;;  %v15894_v23 = vpack.c.bf16 %v24668_v17, %v24666_v4  ;;  %v9318_v30 = vand.u32 4294901760, %v21025_v50  ;;  %v24697_v4 = vld [vmem:[#allocation87_spill] sm:$0xff] }
 0x29a   :  { %16069 = vmatpush3.bf16.msra.mxu1 %v16066_v20  ;;  %15879 = vmatprep.subr.bf16.mxu0 %v15878_v39  ;;  %v24664_v20 = vand.u32 4294901760, %v20633_v56  ;;  %v24673_v56 = vand.u32 4294901760, %v24672_v59  ;;  %v21099_v55 = vpack.c.bf16 %v8032_v25, %v8029_v35  ;;  %v21134_v3 = vpack.c.bf16 %v23289_v21, %v23290_v38  ;;  %v21148_v59 = vld [vmem:[#allocation5 + $0x150] sm:$0xff] }
 0x29b   :  { %13836 = vmatmul.mubr.f32.gmra.mrb[38].mxu0 %v24638_v26  ;;  %16071 = vmatprep.subr.bf16.mxu1 %v16070_v27  ;;  %v16082_v13 = vpack.c.bf16 %v24660_v14, %v24659_v8  ;;  %v8038_v26 = vand.u32 4294901760, %v21033_v29  ;;  %v21101_v5 = vpack.c.bf16 %v9318_v30, %v9315_v61  ;;  %v21105_v8 = vld [vmem:[#allocation5 + $0x148] sm:$0xff]  ;;  %v24690_v14 = vand.u32 4294901760, %v20702_v54  ;;  %24701 = vst [vmem:[#allocation47_spill] sm:$0xff] %v21148_v59  ;;  %v24714_v21 = vld [vmem:[#allocation50_spill] sm:$0xff] }
 0x29c   :  { %14172 = vmatmul.mubr.f32.gmra.mrb[38].mxu1 %v24641_v48  ;;  %13838 = vmatprep.mubr.f32.mxu0 %v24642_v46  ;;  %v23292_v46 = vand.u32 4294901760, %v21045_v63  ;;  %24688 = vst [vmem:[#allocation51_spill] sm:$0xff] %v21099_v55  ;;  %v24696_v54 = vand.u32 4294901760, %v20717_v22  ;;  %24698 = vst [vmem:[#allocation13_spill] sm:$0xff] %v21134_v3  ;;  %v24741_v3 = vld [vmem:[#allocation67_spill] sm:$0xff] }
 0x29d   :  { %15881 = vmatpush3.bf16.msra.mxu0 %v15878_v39  ;;  %14174 = vmatprep.mubr.f32.mxu1 %v24643_v52  ;;  %v21062_v39 = vld [vmem:[#allocation5 + $0x130] sm:$0xff]  ;;  %v23291_v52 = vand.u32 4294901760, %v21047_v45  ;;  %24689 = vst [vmem:[#allocation39_spill] sm:$0xff] %v21101_v5 }
 0x29e   :  { %16073 = vmatpush3.bf16.msra.mxu1 %v16070_v27  ;;  %15883 = vmatprep.subr.bf16.mxu0 %v15882_v41  ;;  %24671 = vst [vmem:[#allocation69_spill] sm:$0xff] %v21062_v39  ;;  %v24677_v27 = vand.u32 4294901760, %v24676_v33  ;;  %v23288_v2 = vand.u32 4294901760, %v21062_v39 }
 0x29f   :  { %13839 = vmatmul.mubr.f32.gmra.mrb[40].mxu0 %v24647_v58  ;;  %16075 = vmatprep.subr.bf16.mxu1 %v16074_v16  ;;  %v24685_v58 = vld [vmem:[#allocation103_spill] sm:$0xff] }
 0x2a0   :  { %14175 = vmatmul.mubr.f32.gmra.mrb[40].mxu1 %v24650_v36  ;;  %13841 = vmatprep.mubr.f32.mxu0 %v24651_v7  ;;  %v16086_v24 = vpack.c.bf16 %v24677_v27, %v24675_v57  ;;  %v24686_v44 = vand.u32 4294901760, %v24685_v58  ;;  %v23286_v36 = vand.u32 4294901760, %v21075_v11  ;;  %v23285_v7 = vand.u32 4294901760, %v21077_v0  ;;  %v24704_v57 = vld [vmem:[#allocation45_spill] sm:$0xff] }
 0x2a1   :  { %15885 = vmatpush3.bf16.msra.mxu0 %v15882_v41  ;;  %14177 = vmatprep.mubr.f32.mxu1 %v24652_v53  ;;  %v8035_v41 = vand.u32 4294901760, %v21031_v43  ;;  %v24687_v53 = vand.u32 4294901760, %v20739_v28  ;;  %v21115_v28 = vpack.c.bf16 %v23293_v34, %v23294_v15  ;;  %v23295_v27 = vand.u32 4294901760, %v21105_v8 }
 0x2a2   :  { %16077 = vmatpush3.bf16.msra.mxu1 %v16074_v16  ;;  %15887 = vmatprep.subr.bf16.mxu0 %v15886_v1  ;;  %v24681_v16 = vld [vmem:[#allocation90_spill] sm:$0xff]  ;;  %v21146_v22 = vpack.c.bf16 %v23285_v7, %v23286_v36  ;;  %v21167_v58 = vsub.f32 %v21021_v49, %v8032_v25  ;;  %v21179_v7 = vsub.f32 %v21025_v50, %v9318_v30  ;;  %v23299_v36 = vand.u32 4294901760, %v21148_v59 }
 0x2a3   :  { %13842 = vmatmul.mubr.f32.gmra.mrb[42].mxu0 %v24658_v10  ;;  %16079 = vmatprep.subr.bf16.mxu1 %v16078_v47  ;;  %v24682_v48 = vand.u32 4294901760, %v24681_v16  ;;  %v21103_v10 = vld [vmem:[#allocation5 + $0x140] sm:$0xff]  ;;  %24692 = vst [vmem:[#allocation59_spill] sm:$0xff] %v21115_v28  ;;  %v21157_v16 = vld [vmem:[#allocation5 + $0x1d8] sm:$0xff]  ;;  %v24712_v25 = vld [vmem:[#allocation74_spill] sm:$0xff]  ;;  %v24723_v15 = vand.u32 4294901760, %v21035_v42 }
 0x2a4   :  { %14178 = vmatmul.mubr.f32.gmra.mrb[42].mxu1 %v24664_v20  ;;  %13844 = vmatprep.mubr.f32.mxu0 %v24665_v6  ;;  %v21109_v20 = vpack.c.bf16 %v8038_v26, %v8035_v41  ;;  %v21125_v6 = vld [vmem:[#allocation5 + $0x1c8] sm:$0xff]  ;;  %24700 = vst [vmem:[#allocation80_spill] sm:$0xff] %v21146_v22  ;;  %v23296_v33 = vand.u32 4294901760, %v21103_v10  ;;  %24705 = vst [vmem:[#allocation82_spill] sm:$0xff] %v21157_v16  ;;  %v23304_v30 = vand.u32 4294901760, %v21157_v16  ;;  %v24735_v22 = vld [vmem:[#allocation84_spill] sm:$0xff] }
 0x2a5   :  { %15889 = vmatpush3.bf16.msra.mxu0 %v15886_v1  ;;  %14180 = vmatprep.mubr.f32.mxu1 %v24673_v56  ;;  %v24684_v1 = vand.u32 4294901760, %v24683_v12  ;;  %24695 = vst [vmem:[#allocation18_spill] sm:$0xff] %v21125_v6  ;;  %v21150_v56 = vld [vmem:[#allocation5 + $0x158] sm:$0xff]  ;;  %v21161_v12 = vld [vmem:[#allocation5 + $0x168] sm:$0xff]  ;;  %24707 = vst [vmem:[#allocation22_spill] sm:$0xff] %v21167_v58 }
 0x2a6   :  { %16081 = vmatpush3.bf16.msra.mxu1 %v16078_v47  ;;  %15891 = vmatprep.subr.bf16.mxu0 %v15890_v31  ;;  %v23287_v47 = vand.u32 4294901760, %v21073_v32  ;;  %24691 = vst [vmem:[#allocation14_spill] sm:$0xff] %v21109_v20  ;;  %24702 = vst [vmem:[#allocation28_spill] sm:$0xff] %v21150_v56  ;;  %v21208_v38 = vpack.c.bf16 %v23295_v27, %v23296_v33  ;;  %v24721_v27 = vand.u32 4294901760, %v21150_v56 }
 0x2a7   :  { %13845 = vmatmul.mubr.f32.gmra.mrb[44].mxu0 %v24682_v48  ;;  %16083 = vmatprep.subr.bf16.mxu1 %v16082_v13  ;;  %v21159_v48 = vld [vmem:[#allocation5 + $0x160] sm:$0xff]  ;;  %24710 = vst [vmem:[#allocation55_spill] sm:$0xff] %v21179_v7 }
 0x2a8   :  { %14181 = vmatmul.mubr.f32.gmra.mrb[44].mxu1 %v24684_v1  ;;  %13847 = vmatprep.mubr.f32.mxu0 %v24686_v44  ;;  %v21140_v17 = vpack.c.bf16 %v23287_v47, %v23288_v2  ;;  %v21164_v1 = vsub.f32 %v21017_v37, %v8029_v35  ;;  %v21182_v35 = vsub.f32 %v21031_v43, %v8035_v41  ;;  %v24725_v41 = vld [vmem:[#allocation29_spill] sm:$0xff]  ;;  %v24726_v47 = vld [vmem:[#allocation78_spill] sm:$0xff] }
 0x2a9   :  { %15893 = vmatpush3.bf16.msra.mxu0 %v15890_v31  ;;  %14183 = vmatprep.mubr.f32.mxu1 %v24687_v53  ;;  %v21121_v31 = vpack.c.bf16 %v23291_v52, %v23292_v46  ;;  %v21171_v53 = vld [vmem:[#allocation5 + $0x1e0] sm:$0xff]  ;;  %v21189_v2 = vsub.f32 %v21033_v29, %v8038_v26  ;;  %v24715_v52 = vld [vmem:[#allocation57_spill] sm:$0xff]  ;;  %24718 = vst [vmem:[#allocation71_spill] sm:$0xff] %v21208_v38  ;;  %v24734_v38 = vld [vmem:[#allocation99_spill] sm:$0xff] }
 0x2aa   :  { %16085 = vmatpush3.bf16.msra.mxu1 %v16082_v13  ;;  %15895 = vmatprep.subr.bf16.mxu0 %v15894_v23  ;;  %v21123_v13 = vld [vmem:[#allocation5 + $0x1c0] sm:$0xff]  ;;  %24699 = vst [vmem:[#allocation21_spill] sm:$0xff] %v21140_v17  ;;  %24706 = vst [vmem:[#allocation89_spill] sm:$0xff] %v21164_v1  ;;  %v21225_v33 = vpack.c.bf16 %v24721_v27, %v23299_v36  ;;  %v24729_v27 = vand.u32 4294901760, %v21159_v48  ;;  %v24730_v36 = vand.u32 4294901760, %v21161_v12  ;;  %v21262_v17 = vld [vmem:[#allocation5 + $0x178] sm:$0xff] }
 0x2ab   :  { %13848 = vmatmul.mubr.f32.gmra.mrb[46].mxu0 %v24690_v14  ;;  %16087 = vmatprep.subr.bf16.mxu1 %v16086_v24  ;;  %24693 = vst [vmem:[#allocation88_spill] sm:$0xff] %v21121_v31  ;;  %24694 = vst [vmem:[#allocation49_spill] sm:$0xff] %v21123_v13  ;;  %v23298_v44 = vand.u32 4294901760, %v21123_v13  ;;  %v21173_v14 = vld [vmem:[#allocation5 + $0x1e8] sm:$0xff]  ;;  %v24716_v46 = vld [vmem:[#allocation36_spill] sm:$0xff] }
 0x2ac   :  { %14184 = vmatmul.mubr.f32.gmra.mrb[46].mxu1 %v24696_v54  ;;  %13882 = vmatprep.mubr.f32.mxu0 %v24697_v4  ;;  %v21176_v54 = vsub.f32 %v21023_v60, %v9315_v61  ;;  %24711 = vst [vmem:[#allocation98_spill] sm:$0xff] %v21182_v35  ;;  %24713 = vst [vmem:[#allocation32_spill] sm:$0xff] %v21189_v2  ;;  %v24717_v61 = vld [vmem:[#allocation91_spill] sm:$0xff]  ;;  %v24719_v26 = vld [vmem:[#allocation52_spill] sm:$0xff]  ;;  %v21245_v34 = vpack.c.bf16 %v24730_v36, %v24729_v27  ;;  %v24744_v60 = vand.u32 4294901760, %v21182_v35 }
 0x2ad   :  { %15897 = vmatpush3.bf16.msra.mxu0 %v15894_v23  ;;  %14218 = vmatprep.mubr.f32.mxu1 %v24704_v57  ;;  %v24708_v23 = vld [vmem:[#allocation64_spill] sm:$0xff]  ;;  %24722 = vst [vmem:[#allocation97_spill] sm:$0xff] %v21225_v33  ;;  %v21247_v33 = vld [vmem:[#allocation5 + $0x170] sm:$0xff]  ;;  %v21266_v27 = vld [vmem:[#allocation5 + $0x1f8] sm:$0xff] }
 0x2ae   :  { %16089 = vmatpush3.bf16.msra.mxu1 %v16086_v24  ;;  %15899 = vmatprep.subr.bf16.mxu0 %v24708_v23  ;;  %24709 = vst [vmem:[#allocation65_spill] sm:$0xff] %v21176_v54  ;;  %v23297_v24 = vand.u32 4294901760, %v21125_v6  ;;  %24731 = vst [vmem:[#allocation102_spill] sm:$0xff] %v21245_v34  ;;  %v21264_v36 = vld [vmem:[#allocation5 + $0x1f0] sm:$0xff]  ;;  %v24739_v34 = vand.u32 4294901760, %v21164_v1 }
 0x2af   :  { %16091 = vmatprep.subr.bf16.mxu1 %v24712_v25 }
 0x2b0   :  { %13883 = vmatmul.mubr.f32.vlgmr.msra.gmra.mrb[32].mxu0 %v24714_v21 }
 0x2b1   :  { %14219 = vmatmul.mubr.f32.vlgmr.msra.gmra.mrb[32].mxu1 %v24715_v52  ;;  %13885 = vmatprep.mubr.f32.mxu0 %v24716_v46 }
 0x2b2   :  { %15901 = vmatpush3.bf16.msra.mxu0 %v24708_v23  ;;  %14221 = vmatprep.mubr.f32.mxu1 %v24717_v61  ;;  %v21219_v23 = vpack.c.bf16 %v23297_v24, %v23298_v44  ;;  %v24727_v24 = vand.u32 4294901760, %v21152_v19 }
 0x2b3   :  { %16093 = vmatpush3.bf16.msra.mxu1 %v24712_v25  ;;  %15903 = vmatprep.subr.bf16.mxu0 %v24719_v26  ;;  %v21231_v25 = vsub.f32 %v21035_v42, %v24723_v15  ;;  %v24732_v15 = vand.u32 4294901760, %v21043_v62  ;;  %v24740_v42 = vand.u32 4294901760, %v21167_v58 }
 0x2b4   :  { %24720 = vst [vmem:[#allocation92_spill] sm:$0xff] %v21219_v23  ;;  %13886 = vmatmul.mubr.f32.gmra.mrb[34].mxu0 %v24725_v41  ;;  %16095 = vmatprep.subr.bf16.mxu1 %v24726_v47  ;;  %v21239_v44 = vpack.c.bf16 %v23304_v30, %v24727_v24  ;;  %v24736_v24 = vand.u32 4294901760, %v21171_v53  ;;  %v24737_v30 = vand.u32 4294901760, %v21173_v14 }
 0x2b5   :  { %24724 = vst [vmem:[#allocation58_spill] sm:$0xff] %v21231_v25  ;;  %v21252_v23 = vsub.f32 %v21043_v62, %v24732_v15  ;;  %14222 = vmatmul.mubr.f32.gmra.mrb[34].mxu1 %v24734_v38  ;;  %13888 = vmatprep.mubr.f32.mxu0 %v24735_v22  ;;  %v8273_v15 = vsub.f32 %v21164_v1, %v24739_v34  ;;  %v24745_v1 = vld [vmem:[#allocation61_spill] sm:$0xff] }
 0x2b6   :  { %24728 = vst [vmem:[#allocation85_spill] sm:$0xff] %v21239_v44  ;;  %v21260_v44 = vpack.c.bf16 %v24737_v30, %v24736_v24  ;;  %v8280_v62 = vsub.f32 %v21167_v58, %v24740_v42  ;;  %15905 = vmatpush3.bf16.msra.mxu0 %v24719_v26  ;;  %14224 = vmatprep.mubr.f32.mxu1 %v24741_v3  ;;  %v24742_v30 = vand.u32 4294901760, %v21176_v54  ;;  %v24746_v26 = vand.u32 4294901760, %v21189_v2  ;;  %v24757_v42 = vld [vmem:[#allocation17_spill] sm:$0xff] }
 0x2b7   :  { %24733 = vst [vmem:[#allocation31_spill] sm:$0xff] %v21252_v23  ;;  %v8287_v34 = vsub.f32 %v21182_v35, %v24744_v60  ;;  %16097 = vmatpush3.bf16.msra.mxu1 %v24726_v47  ;;  %15907 = vmatprep.subr.bf16.mxu0 %v24745_v1  ;;  %v24750_v60 = vld [vmem:[#allocation24_spill] sm:$0xff] }
 0x2b8   :  { %24738 = vst [vmem:[#allocation20_spill] sm:$0xff] %v21260_v44  ;;  %v9559_v24 = vsub.f32 %v21176_v54, %v24742_v30  ;;  %v24743_v44 = vand.u32 4294901760, %v21179_v7  ;;  %v8294_v58 = vsub.f32 %v21189_v2, %v24746_v26  ;;  %v24747_v54 = vand.u32 4294901760, %v21045_v63  ;;  %16099 = vmatprep.subr.bf16.mxu1 %v24750_v60  ;;  %v24751_v26 = vld [vmem:[#allocation81_spill] sm:$0xff]  ;;  %v24752_v30 = vld [vmem:[#allocation48_spill] sm:$0xff] }
 0x2b9   :  { %14225 = vmatmul.mubr.f32.gmra.mrb[36].mxu1 %v24751_v26  ;;  %v8274_v2 = vand.u32 4294901760, %v8273_v15  ;;  %v8281_v50 = vand.u32 4294901760, %v8280_v62  ;;  %v8288_v26 = vand.u32 4294901760, %v8287_v34  ;;  %v24758_v15 = vand.u32 4294901760, %v21060_v18  ;;  %v24764_v34 = vld [vmem:[#allocation79_spill] sm:$0xff] }
 0x2ba   :  { %v9566_v31 = vsub.f32 %v21179_v7, %v24743_v44  ;;  %v21295_v44 = vsub.f32 %v21045_v63, %v24747_v54  ;;  %v24749_v7 = vld [vmem:[#allocation95_spill] sm:$0xff]  ;;  %v24753_v54 = vand.u32 4294901760, %v21047_v45  ;;  %15909 = vmatpush3.bf16.msra.mxu0 %v24745_v1  ;;  %14227 = vmatprep.mubr.f32.mxu1 %v24757_v42  ;;  %v9560_v35 = vand.u32 4294901760, %v9559_v24 }
 0x2bb   :  { %13889 = vmatmul.mubr.f32.gmra.mrb[36].mxu0 %v24749_v7  ;;  %v24755_v7 = vand.u32 4294901760, %v21058_v9  ;;  %v21320_v62 = vsub.f32 %v21060_v18, %v24758_v15  ;;  %16101 = vmatpush3.bf16.msra.mxu1 %v24750_v60  ;;  %v24762_v24 = vand.u32 4294901760, %v21062_v39  ;;  %v24765_v15 = vld [vmem:[#allocation19_spill] sm:$0xff]  ;;  %v24766_v60 = vand.u32 4294901760, %v21252_v23 }
 0x2bc   :  { %24748 = vst [vmem:[#allocation62_spill] sm:$0xff] %v21295_v44  ;;  %13891 = vmatprep.mubr.f32.mxu0 %v24752_v30  ;;  %v21308_v63 = vsub.f32 %v21047_v45, %v24753_v54  ;;  %v9567_v3 = vand.u32 4294901760, %v9566_v31  ;;  %v24760_v54 = vld [vmem:[#allocation27_spill] sm:$0xff]  ;;  %v8295_v30 = vand.u32 4294901760, %v8294_v58  ;;  %16103 = vmatprep.subr.bf16.mxu1 %v24765_v15  ;;  %v24767_v58 = vand.u32 4294901760, %v21073_v32 }
 0x2bd   :  { %v21313_v47 = vsub.f32 %v21058_v9, %v24755_v7  ;;  %24759 = vst [vmem:[#allocation66_spill] sm:$0xff] %v21320_v62  ;;  %15911 = vmatprep.subr.bf16.mxu0 %v24760_v54  ;;  %v24761_v7 = vand.u32 4294901760, %v21231_v25  ;;  %v21331_v31 = vsub.f32 %v21062_v39, %v24762_v24  ;;  %v9580_v18 = vsub.f32 %v21252_v23, %v24766_v60  ;;  %v24771_v24 = vld [vmem:[#allocation46_spill] sm:$0xff] }
 0x2be   :  { %24754 = vst [vmem:[#allocation37_spill] sm:$0xff] %v21308_v63  ;;  %v21341_v42 = vsub.f32 %v21073_v32, %v24767_v58  ;;  %14228 = vmatmul.mubr.f32.gmra.mrb[38].mxu1 %v24771_v24  ;;  %v24773_v39 = vand.u32 4294901760, %v21247_v33  ;;  %v24776_v23 = vand.u32 4294901760, %v21077_v0  ;;  %15913 = vmatpush3.bf16.msra.mxu0 %v24760_v54  ;;  %v21378_v60 = vpack.c.bf16 %v8295_v30, %v8288_v26  ;;  %v24791_v26 = vld [vmem:[#allocation44_spill] sm:$0xff] }
 0x2bf   :  { %24756 = vst [vmem:[#allocation54_spill] sm:$0xff] %v21313_v47  ;;  %v9573_v9 = vsub.f32 %v21231_v25, %v24761_v7  ;;  %24763 = vst [vmem:[#allocation90_spill] sm:$0xff] %v21331_v31  ;;  %13892 = vmatmul.mubr.f32.gmra.mrb[38].mxu0 %v24764_v34  ;;  %v24769_v7 = vand.u32 4294901760, %v21075_v11  ;;  %v24772_v25 = vld [vmem:[#allocation33_spill] sm:$0xff]  ;;  %v24774_v34 = vand.u32 4294901760, %v21262_v17  ;;  %16105 = vmatpush3.bf16.msra.mxu1 %v24765_v15  ;;  %v24789_v30 = vand.u32 4294901760, %v21103_v10 }
 0x2c0   :  { %24768 = vst [vmem:[#allocation16_spill] sm:$0xff] %v21341_v42  ;;  %13894 = vmatprep.mubr.f32.mxu0 %v24772_v25  ;;  %v21361_v32 = vsub.f32 %v21077_v0, %v24776_v23  ;;  %v24780_v25 = vand.u32 4294901760, %v21266_v27  ;;  %v24784_v23 = vld [vmem:[#allocation23_spill] sm:$0xff]  ;;  %24785 = vst [vmem:[#allocation57_spill] sm:$0xff] %v21378_v60  ;;  %v24793_v15 = vand.u32 4294901760, %v21308_v63  ;;  %v24794_v58 = vand.u32 4294901760, %v21313_v47 }
 0x2c1   :  { %v21346_v1 = vsub.f32 %v21075_v11, %v24769_v7  ;;  %v21354_v45 = vpack.c.bf16 %v24774_v34, %v24773_v39  ;;  %v24778_v7 = vld [vmem:[#allocation86_spill] sm:$0xff]  ;;  %v24779_v11 = vand.u32 4294901760, %v21264_v36  ;;  %v21371_v39 = vpack.c.bf16 %v8281_v50, %v8274_v2  ;;  %15915 = vmatprep.subr.bf16.mxu0 %v24784_v23  ;;  %v24787_v50 = vld [vmem:[#allocation75_spill] sm:$0xff] }
 0x2c2   :  { %24777 = vst [vmem:[#allocation45_spill] sm:$0xff] %v21361_v32  ;;  %14230 = vmatprep.mubr.f32.mxu1 %v24778_v7  ;;  %v21373_v34 = vpack.c.bf16 %v9567_v3, %v9560_v35  ;;  %v9574_v54 = vand.u32 4294901760, %v9573_v9  ;;  %v24788_v2 = vld [vmem:[#allocation63_spill] sm:$0xff]  ;;  %v9581_v3 = vand.u32 4294901760, %v9580_v18  ;;  %v21393_v9 = vsub.f32 %v21103_v10, %v24789_v30  ;;  %15917 = vmatpush3.bf16.msra.mxu0 %v24784_v23 }
 0x2c3   :  { %24770 = vst [vmem:[#allocation103_spill] sm:$0xff] %v21346_v1  ;;  %24775 = vst [vmem:[#allocation87_spill] sm:$0xff] %v21354_v45  ;;  %v21369_v24 = vpack.c.bf16 %v24780_v25, %v24779_v11  ;;  %v24786_v45 = vand.u32 4294901760, %v21295_v44  ;;  %13895 = vmatmul.mubr.f32.gmra.mrb[40].mxu0 %v24787_v50  ;;  %16107 = vmatprep.subr.bf16.mxu1 %v24788_v2  ;;  %v8308_v11 = vsub.f32 %v21308_v63, %v24793_v15 }
 0x2c4   :  { %24782 = vst [vmem:[#allocation74_spill] sm:$0xff] %v21371_v39  ;;  %24783 = vst [vmem:[#allocation50_spill] sm:$0xff] %v21373_v34  ;;  %14231 = vmatmul.mubr.f32.gmra.mrb[40].mxu1 %v24791_v26  ;;  %v21403_v18 = vsub.f32 %v21313_v47, %v24794_v58  ;;  %v24795_v35 = vand.u32 4294901760, %v21105_v8  ;;  %v24798_v60 = vand.u32 4294901760, %v21320_v62  ;;  %v24799_v63 = vand.u32 4294901760, %v21123_v13 }
 0x2c5   :  { %24781 = vst [vmem:[#allocation64_spill] sm:$0xff] %v21369_v24  ;;  %v21383_v0 = vsub.f32 %v21295_v44, %v24786_v45  ;;  %24790 = vst [vmem:[#allocation36_spill] sm:$0xff] %v21393_v9  ;;  %v24792_v45 = vld [vmem:[#allocation25_spill] sm:$0xff]  ;;  %v24797_v44 = vld [vmem:[#allocation76_spill] sm:$0xff]  ;;  %v24801_v25 = vand.u32 4294901760, %v21125_v6  ;;  %16109 = vmatpush3.bf16.msra.mxu1 %v24788_v2  ;;  %v24804_v34 = vand.u32 4294901760, %v21331_v31 }
 0x2c6   :  { %13897 = vmatprep.mubr.f32.mxu0 %v24792_v45  ;;  %v21409_v30 = vsub.f32 %v21105_v8, %v24795_v35  ;;  %14233 = vmatprep.mubr.f32.mxu1 %v24797_v44  ;;  %v9594_v15 = vsub.f32 %v21320_v62, %v24798_v60  ;;  %v21419_v58 = vsub.f32 %v21123_v13, %v24799_v63  ;;  %v24803_v35 = vld [vmem:[#allocation68_spill] sm:$0xff]  ;;  %v24805_v62 = vand.u32 4294901760, %v21148_v59  ;;  %v24809_v24 = vld [vmem:[#allocation43_spill] sm:$0xff] }
 0x2c7   :  { %v21424_v47 = vsub.f32 %v21125_v6, %v24801_v25  ;;  %15919 = vmatprep.subr.bf16.mxu0 %v24803_v35  ;;  %v8302_v23 = vand.u32 4294901760, %v21383_v0  ;;  %v8315_v60 = vsub.f32 %v21331_v31, %v24804_v34  ;;  %v24807_v39 = vand.u32 4294901760, %v21150_v56  ;;  %13898 = vmatmul.mubr.f32.gmra.mrb[42].mxu0 %v24809_v24  ;;  %v24810_v2 = vld [vmem:[#allocation100_spill] sm:$0xff] }
 0x2c8   :  { %24796 = vst [vmem:[#allocation91_spill] sm:$0xff] %v21409_v30  ;;  %24800 = vst [vmem:[#allocation52_spill] sm:$0xff] %v21419_v58  ;;  %v21435_v63 = vsub.f32 %v21148_v59, %v24805_v62  ;;  %16111 = vmatprep.subr.bf16.mxu1 %v24810_v2  ;;  %v24811_v0 = vand.u32 4294901760, %v21341_v42  ;;  %v24812_v34 = vand.u32 4294901760, %v21346_v1  ;;  %v24813_v59 = vand.u32 4294901760, %v21152_v19  ;;  %15921 = vmatpush3.bf16.msra.mxu0 %v24803_v35  ;;  %v24823_v35 = vld [vmem:[#allocation42_spill] sm:$0xff] }
 0x2c9   :  { %24802 = vst [vmem:[#allocation29_spill] sm:$0xff] %v21424_v47  ;;  %v21440_v25 = vsub.f32 %v21150_v56, %v24807_v39  ;;  %v24815_v39 = vld [vmem:[#allocation34_spill] sm:$0xff]  ;;  %v21458_v24 = vpack.c.bf16 %v9581_v3, %v9574_v54  ;;  %v24818_v44 = vand.u32 4294901760, %v21361_v32  ;;  %16113 = vmatpush3.bf16.msra.mxu1 %v24810_v2  ;;  %v24825_v54 = vand.u32 4294901760, %v21393_v9 }
 0x2ca   :  { %24806 = vst [vmem:[#allocation78_spill] sm:$0xff] %v21435_v63  ;;  %v8322_v13 = vsub.f32 %v21341_v42, %v24811_v0  ;;  %v9601_v31 = vsub.f32 %v21346_v1, %v24812_v34  ;;  %v21454_v6 = vsub.f32 %v21152_v19, %v24813_v59  ;;  %14234 = vmatmul.mubr.f32.gmra.mrb[42].mxu1 %v24815_v39  ;;  %v24816_v56 = vld [vmem:[#allocation94_spill] sm:$0xff]  ;;  %v24819_v34 = vand.u32 4294901760, %v21157_v16  ;;  %v24821_v59 = vld [vmem:[#allocation93_spill] sm:$0xff] }
 0x2cb   :  { %24808 = vst [vmem:[#allocation99_spill] sm:$0xff] %v21440_v25  ;;  %13900 = vmatprep.mubr.f32.mxu0 %v24816_v56  ;;  %24817 = vst [vmem:[#allocation61_spill] sm:$0xff] %v21458_v24  ;;  %v9608_v0 = vsub.f32 %v21361_v32, %v24818_v44  ;;  %14236 = vmatprep.mubr.f32.mxu1 %v24821_v59  ;;  %v8309_v1 = vand.u32 4294901760, %v8308_v11  ;;  %v9588_v19 = vand.u32 4294901760, %v21403_v18  ;;  %v24822_v44 = vld [vmem:[#allocation96_spill] sm:$0xff]  ;;  %v9595_v42 = vand.u32 4294901760, %v9594_v15 }
 0x2cc   :  { %24814 = vst [vmem:[#allocation84_spill] sm:$0xff] %v21454_v6  ;;  %v21467_v62 = vsub.f32 %v21157_v16, %v24819_v34  ;;  %15923 = vmatprep.subr.bf16.mxu0 %v24822_v44  ;;  %v8316_v32 = vand.u32 4294901760, %v8315_v60  ;;  %13901 = vmatmul.mubr.f32.gmra.mrb[44].mxu0 %v24823_v35  ;;  %v24824_v16 = vld [vmem:[#allocation35_spill] sm:$0xff]  ;;  %v8323_v11 = vand.u32 4294901760, %v8322_v13  ;;  %v9602_v18 = vand.u32 4294901760, %v9601_v31  ;;  %v24826_v59 = vld [vmem:[#allocation26_spill] sm:$0xff] }
 0x2cd   :  { %16115 = vmatprep.subr.bf16.mxu1 %v24824_v16  ;;  %v8329_v3 = vsub.f32 %v21393_v9, %v24825_v54  ;;  %v24827_v15 = vld [vmem:[#allocation56_spill] sm:$0xff]  ;;  %v9609_v60 = vand.u32 4294901760, %v9608_v0  ;;  %v24828_v34 = vand.u32 4294901760, %v21409_v30  ;;  %v24829_v13 = vand.u32 4294901760, %v21159_v48  ;;  %15925 = vmatpush3.bf16.msra.mxu0 %v24822_v44 }
 0x2ce   :  { %24820 = vst [vmem:[#allocation24_spill] sm:$0xff] %v21467_v62  ;;  %14237 = vmatmul.mubr.f32.gmra.mrb[44].mxu1 %v24826_v59  ;;  %13903 = vmatprep.mubr.f32.mxu0 %v24827_v15  ;;  %v24831_v54 = vld [vmem:[#allocation104_spill] sm:$0xff]  ;;  %v24832_v2 = vand.u32 4294901760, %v21419_v58  ;;  %v24833_v0 = vand.u32 4294901760, %v21424_v47  ;;  %v21510_v44 = vpack.c.bf16 %v8309_v1, %v8302_v23  ;;  %v24840_v23 = vld [vmem:[#allocation70_spill] sm:$0xff] }
 0x2cf   :  { %v8336_v24 = vsub.f32 %v21409_v30, %v24828_v34  ;;  %v21493_v31 = vsub.f32 %v21159_v48, %v24829_v13  ;;  %14239 = vmatprep.mubr.f32.mxu1 %v24831_v54  ;;  %v24834_v34 = vand.u32 4294901760, %v21161_v12  ;;  %16117 = vmatpush3.bf16.msra.mxu1 %v24824_v16  ;;  %v24836_v13 = vand.u32 4294901760, %v21435_v63 }
 0x2d0   :  { %v9615_v9 = vsub.f32 %v21419_v58, %v24832_v2  ;;  %v9622_v15 = vsub.f32 %v21424_v47, %v24833_v0  ;;  %15927 = vmatprep.subr.bf16.mxu0 %v24599_v51  ;;  %v24837_v2 = vand.u32 4294901760, %v21440_v25  ;;  %v24838_v0 = vld [vmem:[#allocation30_spill] sm:$0xff]  ;;  %16119 = vmatprep.subr.bf16.mxu1 %v24604_v40  ;;  %v21522_v47 = vpack.c.bf16 %v8323_v11, %v8316_v32 }
 0x2d1   :  { %24830 = vst [vmem:[#allocation27_spill] sm:$0xff] %v21493_v31  ;;  %v21506_v35 = vsub.f32 %v21161_v12, %v24834_v34  ;;  %v8343_v30 = vsub.f32 %v21435_v63, %v24836_v13  ;;  %13904 = vmatmul.mubr.f32.gmra.mrb[46].mxu0 %v24838_v0  ;;  %v21520_v34 = vpack.c.bf16 %v9595_v42, %v9588_v19  ;;  %v24839_v16 = vand.u32 4294901760, %v21454_v6 }
 0x2d2   :  { %v8350_v58 = vsub.f32 %v21440_v25, %v24837_v2  ;;  %14240 = vmatmul.mubr.f32.gmra.mrb[46].mxu1 %v24840_v23  ;;  %13938 = vmatprep.mubr.f32.mxu0 %v24697_v4  ;;  %v21529_v13 = vpack.c.bf16 %v9609_v60, %v9602_v18  ;;  %v8330_v63 = vand.u32 4294901760, %v8329_v3  ;;  %v24841_v2 = vand.u32 4294901760, %v21467_v62  ;;  %v13268_v4 = vpop.f32.mrb[16].mxu0 }
 0x2d3   :  { %24835 = vst [vmem:[#allocation19_spill] sm:$0xff] %v21506_v35  ;;  %v9629_v1 = vsub.f32 %v21454_v6, %v24839_v16  ;;  %v23379_v19 = vand.u32 4294901760, %v21493_v31  ;;  %15929 = vmatpush3.bf16.msra.mxu0 %v24599_v51  ;;  %14274 = vmatprep.mubr.f32.mxu1 %v24704_v57  ;;  %v8337_v32 = vand.u32 4294901760, %v8336_v24  ;;  %v9616_v42 = vand.u32 4294901760, %v9615_v9  ;;  %v4012_v9 = vpop.f32.mrb[17].mxu0 }
 0x2d4   :  { %v9636_v25 = vsub.f32 %v21467_v62, %v24841_v2  ;;  %v9623_v11 = vand.u32 4294901760, %v9622_v15  ;;  %16121 = vmatpush3.bf16.msra.mxu1 %v24604_v40  ;;  %16123 = vmatprep.subr.bf16.mxu0 %v21099_v55  ;;  %v8344_v3 = vand.u32 4294901760, %v8343_v30  ;;  %v8351_v18 = vand.u32 4294901760, %v8350_v58 }
 0x2d5   :  { %v24842_v60 = vand.u32 4294901760, %v21171_v53  ;;  %v24844_v51 = vand.u32 4294901760, %v21173_v14  ;;  %16315 = vmatprep.subr.bf16.mxu1 %v21101_v5  ;;  %v5425_v24 = vadd.f32 %v13268_v4, %v21021_v49  ;;  %v21552_v40 = vand.u32 4294901760, %v13268_v4 }
 0x2d6   :  { %v9630_v15 = vand.u32 4294901760, %v9629_v1  ;;  %v24847_v30 = vand.u32 4294901760, %v21247_v33  ;;  %13939 = vmatmul.mubr.f32.vlgmr.msra.gmra.mrb[32].mxu0 %v24714_v21  ;;  %v21561_v16 = vand.u32 4294901760, %v4012_v9  ;;  %v21566_v49 = vsub.f32 %v21493_v31, %v23379_v19 }
 0x2d7   :  { %v21543_v2 = vsub.f32 %v21171_v53, %v24842_v60  ;;  %v21548_v57 = vsub.f32 %v21173_v14, %v24844_v51  ;;  %24846 = vst [vmem:[#allocation75_spill] sm:$0xff] %v21552_v40  ;;  %v5424_v60 = vadd.f32 %v4012_v9, %v21017_v37  ;;  %v9637_v51 = vand.u32 4294901760, %v9636_v25  ;;  %14275 = vmatmul.mubr.f32.vlgmr.msra.gmra.mrb[32].mxu1 %v24715_v52  ;;  %v21582_v25 = vpop.f32.mrb[18].mxu0 }
 0x2d8   :  { %v21557_v58 = vsub.f32 %v21247_v33, %v24847_v30  ;;  %24849 = vst [vmem:[#allocation44_spill] sm:$0xff] %v21561_v16  ;;  %13941 = vmatprep.mubr.f32.mxu0 %v24716_v46  ;;  %v21571_v1 = vsub.f32 %v13268_v4, %v21552_v40  ;;  %10633 = vst [vmem:[#allocation8 + $0x208] sm:$0xff] %v5425_v24  ;;  %v21573_v30 = vpack.c.bf16 %v8337_v32, %v8330_v63  ;;  %v21597_v24 = vpop.f32.mrb[19].mxu0 }
 0x2d9   :  { %24843 = vst [vmem:[#allocation86_spill] sm:$0xff] %v21543_v2  ;;  %24845 = vst [vmem:[#allocation23_spill] sm:$0xff] %v21548_v57  ;;  %v24851_v37 = vand.u32 4294901760, %v21506_v35  ;;  %14277 = vmatprep.mubr.f32.mxu1 %v24717_v61  ;;  %16125 = vmatpush3.bf16.msra.mxu0 %v21099_v55  ;;  %v21584_v52 = vpack.c.bf16 %v9623_v11, %v9616_v42  ;;  %v21586_v46 = vpack.c.bf16 %v8351_v18, %v8344_v3  ;;  %v13604_v18 = vpop.f32.mrb[16].mxu1  ;;  %v24869_v55 = vld [vmem:[#allocation95_spill] sm:$0xff] }
 0x2da   :  { %24848 = vst [vmem:[#allocation63_spill] sm:$0xff] %v21557_v58  ;;  %24850 = vst [vmem:[#allocation25_spill] sm:$0xff] %v21571_v1  ;;  %16317 = vmatpush3.bf16.msra.mxu1 %v21101_v5  ;;  %16127 = vmatprep.subr.bf16.mxu0 %v21109_v20  ;;  %v21593_v32 = vsub.f32 %v4012_v9, %v21561_v16  ;;  %v5427_v61 = vadd.f32 %v21582_v25, %v21033_v29  ;;  %v24854_v11 = vand.u32 4294901760, %v21262_v17 }
 0x2db   :  { %v21578_v21 = vsub.f32 %v21506_v35, %v24851_v37  ;;  %10632 = vst [vmem:[#allocation8 + $0x200] sm:$0xff] %v5424_v60  ;;  %24852 = vst [vmem:[#allocation68_spill] sm:$0xff] %v21586_v46  ;;  %13942 = vmatmul.mubr.f32.gmra.mrb[34].mxu0 %v24725_v41  ;;  %16319 = vmatprep.subr.bf16.mxu1 %v21115_v28  ;;  %v5426_v9 = vadd.f32 %v21597_v24, %v21031_v43  ;;  %v8358_v29 = vand.u32 4294901760, %v21566_v49  ;;  %v5298_v43 = vpop.f32.mrb[17].mxu1  ;;  %v24860_v49 = vld [vmem:[#allocation41_spill] sm:$0xff]  ;;  %v24934_v46 = vld [vmem:[#allocation56_spill] sm:$0xff] }
 0x2dc   :  { %24853 = vst [vmem:[#allocation100_spill] sm:$0xff] %v21593_v32  ;;  %v21603_v3 = vsub.f32 %v21262_v17, %v24854_v11  ;;  %v21609_v60 = vpack.c.bf16 %v9637_v51, %v9630_v15  ;;  %v24856_v37 = vand.u32 4294901760, %v21264_v36  ;;  %14278 = vmatmul.mubr.f32.gmra.mrb[34].mxu1 %v24734_v38  ;;  %13944 = vmatprep.mubr.f32.mxu0 %v24735_v22  ;;  %v24857_v11 = vld [vmem:[#allocation40_spill] sm:$0xff]  ;;  %v21621_v63 = vand.u32 4294901760, %v13604_v18  ;;  %v24859_v51 = vld [vmem:[#allocation67_spill] sm:$0xff]  ;;  %v21629_v38 = vpop.f32.mrb[20].mxu0 }
 0x2dd   :  { %v5441_v42 = vadd.f32 %v13604_v18, %v24857_v11  ;;  %10635 = vst [vmem:[#allocation8 + $0x218] sm:$0xff] %v5427_v61  ;;  %v8365_v15 = vand.u32 4294901760, %v21578_v21  ;;  %14280 = vmatprep.mubr.f32.mxu1 %v24859_v51  ;;  %16129 = vmatpush3.bf16.msra.mxu0 %v21109_v20  ;;  %v21627_v4 = vand.u32 4294901760, %v5298_v43  ;;  %10634 = vst [vmem:[#allocation8 + $0x210] sm:$0xff] %v5426_v9  ;;  %v24862_v22 = vand.u32 4294901760, %v21543_v2  ;;  %v24864_v51 = vld [vmem:[#allocation88_spill] sm:$0xff] }
 0x2de   :  { %24855 = vst [vmem:[#allocation34_spill] sm:$0xff] %v21609_v60  ;;  %v21615_v19 = vsub.f32 %v21264_v36, %v24856_v37  ;;  %24858 = vst [vmem:[#allocation94_spill] sm:$0xff] %v21621_v63  ;;  %v5440_v37 = vadd.f32 %v5298_v43, %v24860_v49  ;;  %v24863_v61 = vand.u32 4294901760, %v21548_v57  ;;  %16321 = vmatpush3.bf16.msra.mxu1 %v21115_v28  ;;  %16131 = vmatprep.subr.bf16.mxu0 %v24864_v51  ;;  %v24866_v9 = vld [vmem:[#allocation53_spill] sm:$0xff]  ;;  %v21648_v20 = vpop.f32.mrb[21].mxu0 }
 0x2df   :  { %24861 = vst [vmem:[#allocation96_spill] sm:$0xff] %v21627_v4  ;;  %v21634_v11 = vsub.f32 %v21543_v2, %v24862_v22  ;;  %v21644_v49 = vsub.f32 %v13604_v18, %v21621_v63  ;;  %10649 = vst [vmem:[#allocation8 + $0x308] sm:$0xff] %v5441_v42  ;;  %v5429_v41 = vadd.f32 %v21629_v38, %v24866_v9  ;;  %v24867_v5 = vand.u32 4294901760, %v21557_v58  ;;  %v24870_v28 = vld [vmem:[#allocation13_spill] sm:$0xff]  ;;  %v21664_v9 = vpop.f32.mrb[18].mxu1 }
 0x2e0   :  { %v21639_v21 = vsub.f32 %v21548_v57, %v24863_v61  ;;  %13945 = vmatmul.mubr.f32.gmra.mrb[36].mxu0 %v24869_v55  ;;  %16323 = vmatprep.subr.bf16.mxu1 %v24870_v28  ;;  %v21659_v18 = vsub.f32 %v5298_v43, %v21627_v4  ;;  %10648 = vst [vmem:[#allocation8 + $0x300] sm:$0xff] %v5440_v37  ;;  %v21662_v42 = vand.u32 4294901760, %v21582_v25  ;;  %v24873_v57 = vld [vmem:[#allocation83_spill] sm:$0xff]  ;;  %v24876_v55 = vand.u32 4294901760, %v21571_v1  ;;  %v24877_v37 = vld [vmem:[#allocation73_spill] sm:$0xff]  ;;  %v5310_v62 = vpop.f32.mrb[19].mxu1 }
 0x2e1   :  { %24865 = vst [vmem:[#allocation35_spill] sm:$0xff] %v21644_v49  ;;  %v21654_v61 = vsub.f32 %v21557_v58, %v24867_v5  ;;  %v5428_v22 = vadd.f32 %v21648_v20, %v24873_v57  ;;  %v24874_v5 = vld [vmem:[#allocation81_spill] sm:$0xff]  ;;  %v24875_v58 = vld [vmem:[#allocation48_spill] sm:$0xff]  ;;  %v5443_v35 = vadd.f32 %v21664_v9, %v24877_v37  ;;  %v21679_v31 = vand.u32 4294901760, %v21597_v24  ;;  %10637 = vst [vmem:[#allocation8 + $0x228] sm:$0xff] %v5429_v41 }
 0x2e2   :  { %24871 = vst [vmem:[#allocation104_spill] sm:$0xff] %v21659_v18  ;;  %24872 = vst [vmem:[#allocation30_spill] sm:$0xff] %v21662_v42  ;;  %14281 = vmatmul.mubr.f32.gmra.mrb[36].mxu1 %v24874_v5  ;;  %13947 = vmatprep.mubr.f32.mxu0 %v24875_v58  ;;  %v21674_v43 = vsub.f32 %v21571_v1, %v24876_v55  ;;  %v24879_v2 = vld [vmem:[#allocation17_spill] sm:$0xff]  ;;  %v21686_v55 = vand.u32 4294901760, %v5310_v62  ;;  %v13277_v1 = vpop.f32.mrb[22].mxu0  ;;  %v24882_v37 = vand.u32 4294901760, %v21266_v27 }
 0x2e3   :  { %24868 = vst [vmem:[#allocation26_spill] sm:$0xff] %v21654_v61  ;;  %24878 = vst [vmem:[#allocation70_spill] sm:$0xff] %v21679_v31  ;;  %14283 = vmatprep.mubr.f32.mxu1 %v24879_v2  ;;  %16133 = vmatpush3.bf16.msra.mxu0 %v24864_v51  ;;  %v24880_v5 = vld [vmem:[#allocation101_spill] sm:$0xff]  ;;  %v24884_v2 = vld [vmem:[#allocation38_spill] sm:$0xff]  ;;  %v24885_v58 = vand.u32 4294901760, %v21593_v32  ;;  %v4048_v51 = vpop.f32.mrb[23].mxu0  ;;  %v21702_v40 = vpack.c.bf16 %v8365_v15, %v8358_v29 }
 0x2e4   :  { %v5442_v6 = vadd.f32 %v5310_v62, %v24880_v5  ;;  %24881 = vst [vmem:[#allocation40_spill] sm:$0xff] %v21686_v55  ;;  %10636 = vst [vmem:[#allocation8 + $0x220] sm:$0xff] %v5428_v22  ;;  %v21691_v63 = vsub.f32 %v21266_v27, %v24882_v37  ;;  %16325 = vmatpush3.bf16.msra.mxu1 %v24870_v28  ;;  %v24883_v41 = vld [vmem:[#allocation21_spill] sm:$0xff]  ;;  %v5431_v57 = vadd.f32 %v13277_v1, %v24884_v2  ;;  %v24887_v4 = vld [vmem:[#allocation79_spill] sm:$0xff]  ;;  %v21713_v2 = vpop.f32.mrb[20].mxu1 }
 0x2e5   :  { %16135 = vmatprep.subr.bf16.mxu0 %v24883_v41  ;;  %10651 = vst [vmem:[#allocation8 + $0x318] sm:$0xff] %v5443_v35  ;;  %v21699_v5 = vsub.f32 %v21593_v32, %v24885_v58  ;;  %24886 = vst [vmem:[#allocation67_spill] sm:$0xff] %v21702_v40  ;;  %13948 = vmatmul.mubr.f32.gmra.mrb[38].mxu0 %v24887_v4  ;;  %v24888_v37 = vld [vmem:[#allocation80_spill] sm:$0xff]  ;;  %v21708_v28 = vsub.f32 %v21582_v25, %v21662_v42  ;;  %v21711_v35 = vand.u32 4294901760, %v21629_v38  ;;  %v24892_v22 = vld [vmem:[#allocation69_spill] sm:$0xff]  ;;  %v5322_v40 = vpop.f32.mrb[21].mxu1 }
 0x2e6   :  { %16327 = vmatprep.subr.bf16.mxu1 %v24888_v37  ;;  %10650 = vst [vmem:[#allocation8 + $0x310] sm:$0xff] %v5442_v6  ;;  %v21716_v58 = vand.u32 4294901760, %v21648_v20  ;;  %v5430_v29 = vadd.f32 %v4048_v51, %v24892_v22  ;;  %v24893_v15 = vld [vmem:[#allocation46_spill] sm:$0xff]  ;;  %v24894_v4 = vld [vmem:[#allocation33_spill] sm:$0xff]  ;;  %v21723_v25 = vand.u32 4294901760, %v21664_v9  ;;  %v21727_v6 = vsub.f32 %v21597_v24, %v21679_v31  ;;  %v24897_v42 = vld [vmem:[#allocation60_spill] sm:$0xff] }
 0x2e7   :  { %24889 = vst [vmem:[#allocation41_spill] sm:$0xff] %v21708_v28  ;;  %24890 = vst [vmem:[#allocation53_spill] sm:$0xff] %v21711_v35  ;;  %14284 = vmatmul.mubr.f32.gmra.mrb[38].mxu1 %v24893_v15  ;;  %13950 = vmatprep.mubr.f32.mxu0 %v24894_v4  ;;  %v5445_v16 = vadd.f32 %v21713_v2, %v24897_v42  ;;  %v24898_v22 = vand.u32 4294901760, %v21644_v49  ;;  %v21739_v4 = vsub.f32 %v5310_v62, %v21686_v55  ;;  %v24900_v32 = vld [vmem:[#allocation15_spill] sm:$0xff]  ;;  %v21744_v42 = vpop.f32.mrb[24].mxu0  ;;  %v24923_v60 = vld [vmem:[#allocation93_spill] sm:$0xff] }
 0x2e8   :  { %24891 = vst [vmem:[#allocation95_spill] sm:$0xff] %v21716_v58  ;;  %24895 = vst [vmem:[#allocation83_spill] sm:$0xff] %v21723_v25  ;;  %14286 = vmatprep.mubr.f32.mxu1 %v24778_v7  ;;  %16137 = vmatpush3.bf16.msra.mxu0 %v24883_v41  ;;  %v5444_v24 = vadd.f32 %v5322_v40, %v24900_v32  ;;  %v21742_v31 = vand.u32 4294901760, %v13277_v1  ;;  %v24902_v7 = vld [vmem:[#allocation71_spill] sm:$0xff]  ;;  %v21754_v62 = vand.u32 4294901760, %v4048_v51 }
 0x2e9   :  { %24896 = vst [vmem:[#allocation81_spill] sm:$0xff] %v21727_v6  ;;  %10639 = vst [vmem:[#allocation8 + $0x238] sm:$0xff] %v5431_v57  ;;  %v21736_v15 = vsub.f32 %v21644_v49, %v24898_v22  ;;  %16329 = vmatpush3.bf16.msra.mxu1 %v24888_v37  ;;  %16139 = vmatprep.subr.bf16.mxu0 %v24902_v7  ;;  %v24903_v22 = vand.u32 4294901760, %v21659_v18  ;;  %v5433_v32 = vadd.f32 %v21744_v42, %v21105_v8  ;;  %v24905_v37 = vld [vmem:[#allocation92_spill] sm:$0xff]  ;;  %v13613_v49 = vpop.f32.mrb[22].mxu1 }
 0x2ea   :  { %24899 = vst [vmem:[#allocation48_spill] sm:$0xff] %v21739_v4  ;;  %24901 = vst [vmem:[#allocation73_spill] sm:$0xff] %v21742_v31  ;;  %13951 = vmatmul.mubr.f32.gmra.mrb[40].mxu0 %v24787_v50  ;;  %16331 = vmatprep.subr.bf16.mxu1 %v24905_v37  ;;  %v21768_v57 = vsub.f32 %v21648_v20, %v21716_v58  ;;  %v21778_v50 = vsub.f32 %v21664_v9, %v21723_v25  ;;  %v24910_v20 = vld [vmem:[#allocation72_spill] sm:$0xff]  ;;  %v24916_v25 = vld [vmem:[#allocation85_spill] sm:$0xff] }
 0x2eb   :  { %10638 = vst [vmem:[#allocation8 + $0x230] sm:$0xff] %v5430_v29  ;;  %10653 = vst [vmem:[#allocation8 + $0x328] sm:$0xff] %v5445_v16  ;;  %v21752_v41 = vsub.f32 %v21659_v18, %v24903_v22  ;;  %v21758_v29 = vpop.f32.mrb[25].mxu0  ;;  %v21764_v16 = vsub.f32 %v21629_v38, %v21711_v35  ;;  %v21770_v22 = vand.u32 4294901760, %v5322_v40  ;;  %14287 = vmatmul.mubr.f32.gmra.mrb[40].mxu1 %v24791_v26  ;;  %13953 = vmatprep.mubr.f32.mxu0 %v24792_v45  ;;  %v21784_v35 = vpop.f32.mrb[23].mxu1  ;;  %v24911_v58 = vld [vmem:[#allocation76_spill] sm:$0xff] }
 0x2ec   :  { %24904 = vst [vmem:[#allocation17_spill] sm:$0xff] %v21754_v62  ;;  %24906 = vst [vmem:[#allocation101_spill] sm:$0xff] %v21768_v57  ;;  %v5432_v8 = vadd.f32 %v21758_v29, %v21103_v10  ;;  %v21781_v38 = vand.u32 4294901760, %v21713_v2  ;;  %v5447_v18 = vadd.f32 %v13613_v49, %v24910_v20  ;;  %14289 = vmatprep.mubr.f32.mxu1 %v24911_v58  ;;  %16141 = vmatpush3.bf16.msra.mxu0 %v24902_v7  ;;  %v24912_v45 = vld [vmem:[#allocation12_spill] sm:$0xff]  ;;  %v21796_v20 = vpop.f32.mrb[26].mxu0  ;;  %v13616_v58 = vpop.f32.mrb[24].mxu1 }
 0x2ed   :  { %24907 = vst [vmem:[#allocation38_spill] sm:$0xff] %v21770_v22  ;;  %10652 = vst [vmem:[#allocation8 + $0x320] sm:$0xff] %v5444_v24  ;;  %v21791_v26 = vsub.f32 %v13277_v1, %v21742_v31  ;;  %v5446_v9 = vadd.f32 %v21784_v35, %v24912_v45  ;;  %16333 = vmatpush3.bf16.msra.mxu1 %v24905_v37  ;;  %v21802_v10 = vsub.f32 %v4048_v51, %v21754_v62  ;;  %v21808_v24 = vpop.f32.mrb[27].mxu0  ;;  %v24920_v7 = vld [vmem:[#allocation28_spill] sm:$0xff] }
 0x2ee   :  { %24908 = vst [vmem:[#allocation79_spill] sm:$0xff] %v21778_v50  ;;  %24909 = vst [vmem:[#allocation69_spill] sm:$0xff] %v21781_v38  ;;  %v21805_v1 = vand.u32 4294901760, %v21744_v42  ;;  %16335 = vmatprep.subr.bf16.mxu1 %v24916_v25  ;;  %v21813_v37 = vsub.f32 %v5322_v40, %v21770_v22  ;;  %v21818_v51 = vand.u32 4294901760, %v21758_v29  ;;  %v5435_v31 = vadd.f32 %v21796_v20, %v24920_v7  ;;  %v24921_v40 = vld [vmem:[#allocation18_spill] sm:$0xff]  ;;  %v5346_v22 = vpop.f32.mrb[25].mxu1 }
 0x2ef   :  { %10641 = vst [vmem:[#allocation8 + $0x248] sm:$0xff] %v5433_v32  ;;  %10640 = vst [vmem:[#allocation8 + $0x240] sm:$0xff] %v5432_v8  ;;  %v24913_v32 = vld [vmem:[#allocation97_spill] sm:$0xff]  ;;  %v24915_v8 = vld [vmem:[#allocation43_spill] sm:$0xff]  ;;  %14290 = vmatmul.mubr.f32.gmra.mrb[42].mxu1 %v24815_v39  ;;  %v5449_v45 = vadd.f32 %v13616_v58, %v24921_v40  ;;  %v24922_v62 = vand.u32 4294901760, %v21727_v6  ;;  %v24925_v39 = vand.u32 4294901760, %v21739_v4 }
 0x2f0   :  { %16143 = vmatprep.subr.bf16.mxu0 %v24913_v32  ;;  %10655 = vst [vmem:[#allocation8 + $0x338] sm:$0xff] %v5447_v18  ;;  %24914 = vst [vmem:[#allocation46_spill] sm:$0xff] %v21805_v1  ;;  %13954 = vmatmul.mubr.f32.gmra.mrb[42].mxu0 %v24915_v8  ;;  %v21815_v18 = vand.u32 4294901760, %v13613_v49  ;;  %v21826_v8 = vsub.f32 %v21713_v2, %v21781_v38  ;;  %v24926_v7 = vld [vmem:[#allocation49_spill] sm:$0xff]  ;;  %v21853_v55 = vsub.f32 %v21744_v42, %v21805_v1  ;;  %v13619_v1 = vpop.f32.mrb[26].mxu1 }
 0x2f1   :  { %24917 = vst [vmem:[#allocation33_spill] sm:$0xff] %v21813_v37  ;;  %10654 = vst [vmem:[#allocation8 + $0x330] sm:$0xff] %v5446_v9  ;;  %13956 = vmatprep.mubr.f32.mxu0 %v24816_v56  ;;  %v21832_v9 = vsub.f32 %v21727_v6, %v24922_v62  ;;  %14292 = vmatprep.mubr.f32.mxu1 %v24923_v60  ;;  %v21838_v56 = vand.u32 4294901760, %v21784_v35  ;;  %v21843_v2 = vsub.f32 %v21739_v4, %v24925_v39  ;;  %v21847_v6 = vpop.f32.mrb[28].mxu0  ;;  %v24927_v60 = vld [vmem:[#allocation102_spill] sm:$0xff]  ;;  %v24932_v4 = vld [vmem:[#allocation20_spill] sm:$0xff] }
 0x2f2   :  { %24918 = vst [vmem:[#allocation60_spill] sm:$0xff] %v21815_v18  ;;  %24919 = vst [vmem:[#allocation15_spill] sm:$0xff] %v21818_v51  ;;  %16145 = vmatpush3.bf16.msra.mxu0 %v24913_v32  ;;  %v5448_v40 = vadd.f32 %v5346_v22, %v24926_v7  ;;  %16337 = vmatpush3.bf16.msra.mxu1 %v24916_v25  ;;  %v21855_v32 = vand.u32 4294901760, %v13616_v58  ;;  %v24929_v39 = vand.u32 4294901760, %v21708_v28  ;;  %v21865_v62 = vpop.f32.mrb[29].mxu0  ;;  %v24931_v25 = vld [vmem:[#allocation42_spill] sm:$0xff] }
 0x2f3   :  { %24924 = vst [vmem:[#allocation72_spill] sm:$0xff] %v21838_v56  ;;  %10643 = vst [vmem:[#allocation8 + $0x258] sm:$0xff] %v5435_v31  ;;  %16147 = vmatprep.subr.bf16.mxu0 %v24927_v60  ;;  %v21863_v31 = vand.u32 4294901760, %v21796_v20  ;;  %16339 = vmatprep.subr.bf16.mxu1 %v24932_v4  ;;  %v21870_v42 = vsub.f32 %v13613_v49, %v21815_v18  ;;  %v21882_v61 = vand.u32 4294901760, %v5346_v22  ;;  %v24936_v49 = vand.u32 4294901760, %v21778_v50  ;;  %v21890_v18 = vpop.f32.mrb[27].mxu1 }
 0x2f4   :  { %24928 = vst [vmem:[#allocation76_spill] sm:$0xff] %v21855_v32  ;;  %10657 = vst [vmem:[#allocation8 + $0x348] sm:$0xff] %v5449_v45  ;;  %v21860_v7 = vsub.f32 %v21708_v28, %v24929_v39  ;;  %13957 = vmatmul.mubr.f32.gmra.mrb[44].mxu0 %v24931_v25  ;;  %v21874_v45 = vsub.f32 %v21758_v29, %v21818_v51  ;;  %v24933_v28 = vld [vmem:[#allocation47_spill] sm:$0xff]  ;;  %14293 = vmatmul.mubr.f32.gmra.mrb[44].mxu1 %v24826_v59  ;;  %v21906_v39 = vpop.f32.mrb[30].mxu0  ;;  %v21931_v59 = vand.u32 4294901760, %v21808_v24 }
 0x2f5   :  { %24930 = vst [vmem:[#allocation12_spill] sm:$0xff] %v21863_v31  ;;  %10656 = vst [vmem:[#allocation8 + $0x340] sm:$0xff] %v5448_v40  ;;  %v5434_v38 = vadd.f32 %v21808_v24, %v24933_v28  ;;  %13959 = vmatprep.mubr.f32.mxu0 %v24934_v46  ;;  %v21887_v29 = vsub.f32 %v21778_v50, %v24936_v49  ;;  %v24937_v40 = vld [vmem:[#allocation82_spill] sm:$0xff]  ;;  %14295 = vmatprep.mubr.f32.mxu1 %v24831_v54  ;;  %v24938_v46 = vand.u32 4294901760, %v21768_v57  ;;  %v24939_v49 = vld [vmem:[#allocation77_spill] sm:$0xff] }
 0x2f6   :  { %24935 = vst [vmem:[#allocation43_spill] sm:$0xff] %v21882_v61  ;;  %v5451_v51 = vadd.f32 %v13619_v1, %v24937_v40  ;;  %16149 = vmatpush3.bf16.msra.mxu0 %v24927_v60  ;;  %v21896_v28 = vsub.f32 %v21784_v35, %v21838_v56  ;;  %v5450_v40 = vadd.f32 %v21890_v18, %v24939_v49  ;;  %v24940_v54 = vld [vmem:[#allocation87_spill] sm:$0xff]  ;;  %v24941_v49 = vld [vmem:[#allocation64_spill] sm:$0xff]  ;;  %24944 = vst [vmem:[#allocation18_spill] sm:$0xff] %v21931_v59 }
 0x2f7   :  { %v21902_v25 = vsub.f32 %v21768_v57, %v24938_v46  ;;  %10642 = vst [vmem:[#allocation8 + $0x250] sm:$0xff] %v5434_v38  ;;  %16341 = vmatpush3.bf16.msra.mxu1 %v24932_v4  ;;  %16151 = vmatprep.subr.bf16.mxu0 %v24940_v54  ;;  %v21911_v35 = vsub.f32 %v13616_v58, %v21855_v32  ;;  %v21919_v46 = vpop.f32.mrb[31].mxu0  ;;  %v21923_v4 = vand.u32 4294901760, %v13619_v1  ;;  %v24943_v58 = vand.u32 4294901760, %v21813_v37 }
 0x2f8   :  { %v21916_v60 = vsub.f32 %v21796_v20, %v21863_v31  ;;  %10659 = vst [vmem:[#allocation8 + $0x358] sm:$0xff] %v5451_v51  ;;  %13960 = vmatmul.mubr.f32.gmra.mrb[46].mxu0 %v24838_v0  ;;  %16343 = vmatprep.subr.bf16.mxu1 %v24941_v49  ;;  %10658 = vst [vmem:[#allocation8 + $0x350] sm:$0xff] %v5450_v40  ;;  %v5437_v20 = vadd.f32 %v21847_v6, %v21161_v12  ;;  %v13622_v51 = vpop.f32.mrb[28].mxu1  ;;  %v24945_v0 = vand.u32 4294901760, %v21699_v5 }
 0x2f9   :  { %24942 = vst [vmem:[#allocation28_spill] sm:$0xff] %v21923_v4  ;;  %v21928_v57 = vsub.f32 %v21813_v37, %v24943_v58  ;;  %14296 = vmatmul.mubr.f32.gmra.mrb[46].mxu1 %v24840_v23  ;;  %v21939_v38 = vsub.f32 %v5346_v22, %v21882_v61  ;;  %v9429_v50 = vand.u32 4294901760, %v21887_v29  ;;  %v5453_v37 = vadd.f32 %v13622_v51, %v21173_v14  ;;  %v21944_v31 = vpop.f32.mrb[29].mxu1  ;;  %v24947_v14 = vld [vmem:[#allocation74_spill] sm:$0xff] }
 0x2fa   :  { %14330 = vmatprep.mubr.f32.mxu0 %v24945_v0  ;;  %16153 = vmatpush3.bf16.msra.mxu0 %v24940_v54  ;;  %v24946_v12 = vand.u32 4294901760, %v21752_v41  ;;  %v8153_v23 = vand.u32 4294901760, %v21902_v25  ;;  %10645 = vst [vmem:[#allocation8 + $0x268] sm:$0xff] %v5437_v20  ;;  %v5436_v29 = vadd.f32 %v21865_v62, %v21159_v48  ;;  %v21957_v40 = vand.u32 4294901760, %v21890_v18  ;;  %v24951_v48 = vld [vmem:[#allocation50_spill] sm:$0xff]  ;;  %v21980_v58 = vpop.f32.mrb[30].mxu1 }
 0x2fb   :  { %16345 = vmatpush3.bf16.msra.mxu1 %v24941_v49  ;;  %16155 = vmatprep.subr.bf16.mxu0 %v24947_v14  ;;  %v24949_v41 = vand.u32 4294901760, %v21764_v16  ;;  %v21965_v25 = vand.u32 4294901760, %v21847_v6  ;;  %10661 = vst [vmem:[#allocation8 + $0x368] sm:$0xff] %v5453_v37  ;;  %v5452_v20 = vadd.f32 %v21944_v31, %v21171_v53  ;;  %v9439_v22 = vand.u32 4294901760, %v21928_v57  ;;  %v21991_v54 = vpop.f32.mrb[31].mxu1 }
 0x2fc   :  { %14666 = vmatprep.mubr.f32.mxu1 %v24946_v12  ;;  %24948 = vst [vmem:[#allocation93_spill] sm:$0xff] %v21957_v40  ;;  %16347 = vmatprep.subr.bf16.mxu1 %v24951_v48  ;;  %v21971_v12 = vsub.f32 %v13619_v1, %v21923_v4  ;;  %v21976_v5 = vsub.f32 %v21808_v24, %v21931_v59  ;;  %10644 = vst [vmem:[#allocation8 + $0x260] sm:$0xff] %v5436_v29  ;;  %v24953_v37 = vand.u32 4294901760, %v21674_v43 }
 0x2fd   :  { %v21962_v0 = vsub.f32 %v21764_v16, %v24949_v41  ;;  %24950 = vst [vmem:[#allocation49_spill] sm:$0xff] %v21965_v25  ;;  %v21978_v41 = vand.u32 4294901760, %v13622_v51  ;;  %v24954_v53 = vand.u32 4294901760, %v21826_v8  ;;  %10660 = vst [vmem:[#allocation8 + $0x360] sm:$0xff] %v5452_v20  ;;  %v23473_v1 = vand.u32 4294901760, %v21791_v26 }
 0x2fe   :  { %14331 = vmatmul.mubr.f32.vlgmr.msra.gmra.mrb[48].mxu0 %v24953_v37  ;;  %v5439_v24 = vadd.f32 %v21906_v39, %v21262_v17  ;;  %v24955_v29 = vand.u32 4294901760, %v21736_v15  ;;  %v24956_v43 = vand.u32 4294901760, %v21802_v10  ;;  %v24957_v20 = vand.u32 4294901760, %v21896_v28 }
 0x2ff   :  { %24952 = vst [vmem:[#allocation42_spill] sm:$0xff] %v21978_v41  ;;  %v9448_v49 = vsub.f32 %v21826_v8, %v24954_v53  ;;  %16157 = vmatpush3.bf16.msra.mxu0 %v24947_v14  ;;  %v22003_v57 = vand.u32 4294901760, %v21865_v62  ;;  %v5455_v17 = vadd.f32 %v21980_v58, %v21266_v27  ;;  %v24959_v15 = vand.u32 4294901760, %v21832_v9 }
 0x300   :  { %14667 = vmatmul.mubr.f32.vlgmr.msra.gmra.mrb[48].mxu1 %v24955_v29  ;;  %v8172_v37 = vsub.f32 %v21802_v10, %v24956_v43  ;;  %v9458_v53 = vsub.f32 %v21896_v28, %v24957_v20  ;;  %v22012_v14 = vsub.f32 %v21890_v18, %v21957_v40  ;;  %v8163_v29 = vand.u32 4294901760, %v21962_v0  ;;  %10647 = vst [vmem:[#allocation8 + $0x278] sm:$0xff] %v5439_v24 }
 0x301   :  { %24958 = vst [vmem:[#allocation47_spill] sm:$0xff] %v22003_v57  ;;  %16349 = vmatpush3.bf16.msra.mxu1 %v24951_v48  ;;  %14333 = vmatprep.mubr.f32.mxu0 %v24959_v15  ;;  %v22017_v43 = vsub.f32 %v21847_v6, %v21965_v25  ;;  %v24960_v27 = vand.u32 4294901760, %v21843_v2  ;;  %v24961_v48 = vld [vmem:[#allocation57_spill] sm:$0xff]  ;;  %v22024_v9 = vsub.f32 %v13622_v51, %v21978_v41  ;;  %v22027_v18 = vand.u32 4294901760, %v21944_v31 }
 0x302   :  { %16159 = vmatprep.subr.bf16.mxu0 %v24961_v48  ;;  %10663 = vst [vmem:[#allocation8 + $0x378] sm:$0xff] %v5455_v17  ;;  %v23476_v0 = vand.u32 4294901760, %v21939_v38  ;;  %v5438_v6 = vadd.f32 %v21919_v46, %v21247_v33  ;;  %v24963_v24 = vand.u32 4294901760, %v21860_v7  ;;  %v24964_v15 = vld [vmem:[#allocation61_spill] sm:$0xff]  ;;  %v9449_v2 = vand.u32 4294901760, %v9448_v49 }
 0x303   :  { %14669 = vmatprep.mubr.f32.mxu1 %v24960_v27  ;;  %24962 = vst [vmem:[#allocation56_spill] sm:$0xff] %v22027_v18  ;;  %16351 = vmatprep.subr.bf16.mxu1 %v24964_v15  ;;  %v8182_v51 = vsub.f32 %v21791_v26, %v23473_v1  ;;  %v24965_v27 = vand.u32 4294901760, %v21870_v42  ;;  %v5454_v17 = vadd.f32 %v21991_v54, %v21264_v36  ;;  %v8173_v33 = vand.u32 4294901760, %v8172_v37 }
 0x304   :  { %14334 = vmatmul.mubr.f32.gmra.mrb[50].mxu0 %v24963_v24  ;;  %14670 = vmatmul.mubr.f32.gmra.mrb[50].mxu1 %v9429_v50  ;;  %v9459_v7 = vand.u32 4294901760, %v9458_v53  ;;  %v22046_v24 = vsub.f32 %v21865_v62, %v22003_v57  ;;  %10646 = vst [vmem:[#allocation8 + $0x270] sm:$0xff] %v5438_v6  ;;  %v23474_v49 = vand.u32 4294901760, %v21853_v55  ;;  %v22054_v36 = vand.u32 4294901760, %v21919_v46 }
 0x305   :  { %v9468_v20 = vsub.f32 %v21870_v42, %v24965_v27  ;;  %16161 = vmatpush3.bf16.msra.mxu0 %v24961_v48  ;;  %16353 = vmatpush3.bf16.msra.mxu1 %v24964_v15  ;;  %v24966_v27 = vand.u32 4294901760, %v21874_v45  ;;  %10662 = vst [vmem:[#allocation8 + $0x370] sm:$0xff] %v5454_v17  ;;  %v23475_v50 = vand.u32 4294901760, %v21911_v35  ;;  %v23478_v37 = vand.u32 4294901760, %v21976_v5 }
 0x306   :  { %14336 = vmatprep.mubr.f32.mxu0 %v8153_v23  ;;  %24967 = vst [vmem:[#allocation82_spill] sm:$0xff] %v22054_v36  ;;  %14672 = vmatprep.mubr.f32.mxu1 %v9439_v22  ;;  %v22061_v62 = vsub.f32 %v21944_v31, %v22027_v18  ;;  %v9478_v23 = vsub.f32 %v21939_v38, %v23476_v0  ;;  %v22067_v53 = vand.u32 4294901760, %v21991_v54  ;;  %v23477_v48 = vand.u32 4294901760, %v22012_v14 }
 0x307   :  { %v8192_v1 = vsub.f32 %v21874_v45, %v24966_v27  ;;  %16163 = vmatprep.subr.bf16.mxu0 %v21510_v44  ;;  %16355 = vmatprep.subr.bf16.mxu1 %v21520_v34  ;;  %v8183_v6 = vand.u32 4294901760, %v8182_v51  ;;  %v9469_v22 = vand.u32 4294901760, %v9468_v20  ;;  %v22072_v15 = vand.u32 4294901760, %v21906_v39 }
 0x308   :  { %24968 = vst [vmem:[#allocation77_spill] sm:$0xff] %v22067_v53  ;;  %14337 = vmatmul.mubr.f32.gmra.mrb[52].mxu0 %v8163_v29  ;;  %v22075_v31 = vand.u32 4294901760, %v21980_v58  ;;  %14673 = vmatmul.mubr.f32.gmra.mrb[52].mxu1 %v9449_v2  ;;  %v8202_v17 = vsub.f32 %v21853_v55, %v23474_v49  ;;  %v9488_v29 = vsub.f32 %v21911_v35, %v23475_v50  ;;  %v23482_v51 = vand.u32 4294901760, %v21916_v60 }
 0x309   :  { %24969 = vst [vmem:[#allocation74_spill] sm:$0xff] %v22072_v15  ;;  %16165 = vmatpush3.bf16.msra.mxu0 %v21510_v44  ;;  %v23480_v20 = vand.u32 4294901760, %v21971_v12  ;;  %16357 = vmatpush3.bf16.msra.mxu1 %v21520_v34  ;;  %v8193_v27 = vand.u32 4294901760, %v8192_v1  ;;  %v22089_v2 = vsub.f32 %v21919_v46, %v22054_v36  ;;  %v8212_v44 = vsub.f32 %v21976_v5, %v23478_v37 }
 0x30a   :  { %24970 = vst [vmem:[#allocation50_spill] sm:$0xff] %v22075_v31  ;;  %14339 = vmatprep.mubr.f32.mxu0 %v8173_v33  ;;  %v23479_v49 = vand.u32 4294901760, %v22046_v24  ;;  %14675 = vmatprep.mubr.f32.mxu1 %v9459_v7  ;;  %v9479_v50 = vand.u32 4294901760, %v9478_v23  ;;  %v22098_v0 = vsub.f32 %v21991_v54, %v22067_v53  ;;  %v9498_v34 = vsub.f32 %v22012_v14, %v23477_v48 }
 0x30b   :  { %24971 = vst [vmem:[#allocation57_spill] sm:$0xff] %v22089_v2  ;;  %16167 = vmatprep.subr.bf16.mxu0 %v21522_v47  ;;  %v23481_v46 = vand.u32 4294901760, %v22061_v62  ;;  %16359 = vmatprep.subr.bf16.mxu1 %v21529_v13  ;;  %v22107_v1 = vsub.f32 %v21906_v39, %v22072_v15  ;;  %v22111_v33 = vsub.f32 %v21980_v58, %v22075_v31  ;;  %v24972_v54 = vand.u32 4294901760, %v21603_v3 }
 0x30c   :  { %14340 = vmatmul.mubr.f32.gmra.mrb[54].mxu0 %v8183_v6  ;;  %v23484_v23 = vand.u32 4294901760, %v21691_v63  ;;  %14676 = vmatmul.mubr.f32.gmra.mrb[54].mxu1 %v9469_v22  ;;  %v8203_v6 = vand.u32 4294901760, %v8202_v17  ;;  %v9489_v48 = vand.u32 4294901760, %v9488_v29  ;;  %v8222_v39 = vsub.f32 %v21916_v60, %v23482_v51 }
 0x30d   :  { %v8378_v7 = vsub.f32 %v21603_v3, %v24972_v54  ;;  %16169 = vmatpush3.bf16.msra.mxu0 %v21522_v47  ;;  %v9508_v58 = vsub.f32 %v21971_v12, %v23480_v20  ;;  %16361 = vmatpush3.bf16.msra.mxu1 %v21529_v13  ;;  %v8213_v37 = vand.u32 4294901760, %v8212_v44  ;;  %v8232_v22 = vsub.f32 %v22046_v24, %v23479_v49 }
 0x30e   :  { %14342 = vmatprep.mubr.f32.mxu0 %v8193_v27  ;;  %v23485_v47 = vand.u32 4294901760, %v22017_v43  ;;  %v23483_v17 = vand.u32 4294901760, %v22089_v2  ;;  %14678 = vmatprep.mubr.f32.mxu1 %v9479_v50  ;;  %v9499_v29 = vand.u32 4294901760, %v9498_v34  ;;  %v9518_v54 = vsub.f32 %v22061_v62, %v23481_v46 }
 0x30f   :  { %16171 = vmatprep.subr.bf16.mxu0 %v21573_v30  ;;  %16363 = vmatprep.subr.bf16.mxu1 %v21584_v52  ;;  %v9644_v44 = vand.u32 4294901760, %v21634_v11  ;;  %v9651_v49 = vand.u32 4294901760, %v21639_v21  ;;  %v24973_v50 = vand.u32 4294901760, %v21615_v19  ;;  %v9664_v34 = vsub.f32 %v21691_v63, %v23484_v23 }
 0x310   :  { %14343 = vmatmul.mubr.f32.gmra.mrb[56].mxu0 %v8203_v6  ;;  %14679 = vmatmul.mubr.f32.gmra.mrb[56].mxu1 %v9489_v48  ;;  %v8223_v46 = vand.u32 4294901760, %v8222_v39  ;;  %v9509_v51 = vand.u32 4294901760, %v9508_v58  ;;  %v24974_v6 = vld [vmem:[#allocation26_spill] sm:$0xff]  ;;  %v8379_v13 = vand.u32 4294901760, %v8378_v7  ;;  %v8233_v11 = vand.u32 4294901760, %v8232_v22 }
 0x311   :  { %v9657_v20 = vsub.f32 %v21615_v19, %v24973_v50  ;;  %16173 = vmatpush3.bf16.msra.mxu0 %v21573_v30  ;;  %v8372_v27 = vand.u32 4294901760, %v24974_v6  ;;  %16365 = vmatpush3.bf16.msra.mxu1 %v21584_v52  ;;  %v8242_v21 = vsub.f32 %v22017_v43, %v23485_v47  ;;  %v8252_v50 = vsub.f32 %v22089_v2, %v23483_v17  ;;  %v24975_v30 = vld [vmem:[#allocation68_spill] sm:$0xff]  ;;  %v24978_v6 = vld [vmem:[#allocation34_spill] sm:$0xff] }
 0x312   :  { %14345 = vmatprep.mubr.f32.mxu0 %v8213_v37  ;;  %v23486_v48 = vand.u32 4294901760, %v22107_v1  ;;  %14681 = vmatprep.mubr.f32.mxu1 %v9499_v29  ;;  %v9519_v39 = vand.u32 4294901760, %v9518_v54  ;;  %v24976_v7 = vand.u32 4294901760, %v22024_v9  ;;  %v24977_v37 = vand.u32 4294901760, %v22098_v0 }
 0x313   :  { %16175 = vmatprep.subr.bf16.mxu0 %v24975_v30  ;;  %16367 = vmatprep.subr.bf16.mxu1 %v24978_v6  ;;  %v16370_v17 = vpack.c.bf16 %v9651_v49, %v9644_v44  ;;  %v9658_v23 = vand.u32 4294901760, %v9657_v20  ;;  %v9665_v47 = vand.u32 4294901760, %v9664_v34  ;;  %v8243_v29 = vand.u32 4294901760, %v8242_v21  ;;  %v24981_v21 = vld [vmem:[#allocation89_spill] sm:$0xff] }
 0x314   :  { %v9528_v52 = vsub.f32 %v22024_v9, %v24976_v7  ;;  %v9538_v58 = vsub.f32 %v22098_v0, %v24977_v37  ;;  %14346 = vmatmul.mubr.f32.gmra.mrb[58].mxu0 %v8223_v46  ;;  %14682 = vmatmul.mubr.f32.gmra.mrb[58].mxu1 %v9509_v51  ;;  %v8253_v54 = vand.u32 4294901760, %v8252_v50  ;;  %v8262_v7 = vsub.f32 %v22107_v1, %v23486_v48  ;;  %v24979_v37 = vld [vmem:[#allocation67_spill] sm:$0xff]  ;;  %v24982_v50 = vld [vmem:[#allocation22_spill] sm:$0xff] }
 0x315   :  { %16177 = vmatpush3.bf16.msra.mxu0 %v24975_v30  ;;  %16369 = vmatpush3.bf16.msra.mxu1 %v24978_v6  ;;  %v16182_v49 = vpack.c.bf16 %v8379_v13, %v8372_v27  ;;  %v24980_v20 = vand.u32 4294901760, %v22111_v33  ;;  %v16374_v44 = vpack.c.bf16 %v9665_v47, %v9658_v23  ;;  %v16186_v30 = vpack.c.bf16 %v24982_v50, %v24981_v21  ;;  %v24983_v13 = vld [vmem:[#allocation65_spill] sm:$0xff]  ;;  %v24984_v27 = vld [vmem:[#allocation55_spill] sm:$0xff]  ;;  %v24985_v23 = vld [vmem:[#allocation44_spill] sm:$0xff] }
 0x316   :  { %14348 = vmatprep.mubr.f32.mxu0 %v8233_v11  ;;  %14684 = vmatprep.mubr.f32.mxu1 %v9519_v39  ;;  %v9529_v46 = vand.u32 4294901760, %v9528_v52  ;;  %v9539_v22 = vand.u32 4294901760, %v9538_v58  ;;  %v8263_v34 = vand.u32 4294901760, %v8262_v7  ;;  %v16378_v39 = vpack.c.bf16 %v24984_v27, %v24983_v13  ;;  %v24986_v47 = vld [vmem:[#allocation96_spill] sm:$0xff]  ;;  %v24990_v6 = vld [vmem:[#allocation58_spill] sm:$0xff] }
 0x317   :  { %16179 = vmatprep.subr.bf16.mxu0 %v24979_v37  ;;  %v9548_v51 = vsub.f32 %v22111_v33, %v24980_v20  ;;  %16371 = vmatprep.subr.bf16.mxu1 %v16370_v17  ;;  %v24988_v52 = vld [vmem:[#allocation32_spill] sm:$0xff]  ;;  %v24992_v7 = vld [vmem:[#allocation94_spill] sm:$0xff]  ;;  %v24996_v20 = vld [vmem:[#allocation37_spill] sm:$0xff] }
 0x318   :  { %14349 = vmatmul.mubr.f32.gmra.mrb[60].mxu0 %v8243_v29  ;;  %14685 = vmatmul.mubr.f32.gmra.mrb[60].mxu1 %v9529_v46  ;;  %v24991_v29 = vld [vmem:[#allocation31_spill] sm:$0xff]  ;;  %v24994_v46 = vld [vmem:[#allocation40_spill] sm:$0xff] }
 0x319   :  { %16181 = vmatpush3.bf16.msra.mxu0 %v24979_v37  ;;  %16373 = vmatpush3.bf16.msra.mxu1 %v16370_v17  ;;  %v9549_v11 = vand.u32 4294901760, %v9548_v51  ;;  %v24987_v17 = vld [vmem:[#allocation98_spill] sm:$0xff] }
 0x31a   :  { %14351 = vmatprep.mubr.f32.mxu0 %v8253_v54  ;;  %14687 = vmatprep.mubr.f32.mxu1 %v9539_v22  ;;  %v16190_v58 = vpack.c.bf16 %v24988_v52, %v24987_v17  ;;  %v24989_v22 = vld [vmem:[#allocation75_spill] sm:$0xff]  ;;  %v16382_v54 = vpack.c.bf16 %v24991_v29, %v24990_v6  ;;  %v24993_v37 = vld [vmem:[#allocation70_spill] sm:$0xff] }
 0x31b   :  { %16183 = vmatprep.subr.bf16.mxu0 %v16182_v49  ;;  %16375 = vmatprep.subr.bf16.mxu1 %v16374_v44 }
 0x31c   :  { %14352 = vmatmul.mubr.f32.gmra.mrb[62].mxu0 %v8263_v34  ;;  %14688 = vmatmul.mubr.f32.gmra.mrb[62].mxu1 %v9549_v11  ;;  %v24998_v34 = vld [vmem:[#allocation54_spill] sm:$0xff] }
 0x31d   :  { %16185 = vmatpush3.bf16.msra.mxu0 %v16182_v49  ;;  %14386 = vmatprep.mubr.f32.mxu0 %v24985_v23  ;;  %v24995_v49 = vld [vmem:[#allocation62_spill] sm:$0xff]  ;;  %v25007_v23 = vld [vmem:[#allocation45_spill] sm:$0xff] }
 0x31e   :  { %16377 = vmatpush3.bf16.msra.mxu1 %v16374_v44  ;;  %14722 = vmatprep.mubr.f32.mxu1 %v24986_v47  ;;  %v16194_v51 = vpack.c.bf16 %v24996_v20, %v24995_v49  ;;  %v24997_v44 = vld [vmem:[#allocation30_spill] sm:$0xff]  ;;  %v25001_v47 = vld [vmem:[#allocation95_spill] sm:$0xff]  ;;  %v25008_v49 = vld [vmem:[#allocation69_spill] sm:$0xff] }
 0x31f   :  { %16187 = vmatprep.subr.bf16.mxu0 %v16186_v30  ;;  %16379 = vmatprep.subr.bf16.mxu1 %v16378_v39  ;;  %v24999_v11 = vld [vmem:[#allocation66_spill] sm:$0xff] }
 0x320   :  { %14387 = vmatmul.mubr.f32.vlgmr.msra.gmra.mrb[48].mxu0 %v24989_v22  ;;  %v16386_v48 = vpack.c.bf16 %v24999_v11, %v24998_v34  ;;  %v25000_v22 = vld [vmem:[#allocation83_spill] sm:$0xff]  ;;  %v25009_v11 = vld [vmem:[#allocation17_spill] sm:$0xff] }
 0x321   :  { %14723 = vmatmul.mubr.f32.vlgmr.msra.gmra.mrb[48].mxu1 %v24992_v7  ;;  %14389 = vmatprep.mubr.f32.mxu0 %v24993_v37  ;;  %v25002_v37 = vld [vmem:[#allocation38_spill] sm:$0xff]  ;;  %v25005_v7 = vld [vmem:[#allocation53_spill] sm:$0xff] }
 0x322   :  { %16189 = vmatpush3.bf16.msra.mxu0 %v16186_v30  ;;  %14725 = vmatprep.mubr.f32.mxu1 %v24994_v46  ;;  %v25003_v30 = vld [vmem:[#allocation90_spill] sm:$0xff] }
 0x323   :  { %16381 = vmatpush3.bf16.msra.mxu1 %v16378_v39  ;;  %16191 = vmatprep.subr.bf16.mxu0 %v16190_v58  ;;  %v25004_v39 = vld [vmem:[#allocation16_spill] sm:$0xff] }
 0x324   :  { %14390 = vmatmul.mubr.f32.gmra.mrb[50].mxu0 %v24997_v44  ;;  %16383 = vmatprep.subr.bf16.mxu1 %v16382_v54  ;;  %v16198_v46 = vpack.c.bf16 %v25004_v39, %v25003_v30  ;;  %v25006_v44 = vld [vmem:[#allocation103_spill] sm:$0xff]  ;;  %v25015_v30 = vld [vmem:[#allocation60_spill] sm:$0xff] }
 0x325   :  { %14726 = vmatmul.mubr.f32.gmra.mrb[50].mxu1 %v25000_v22  ;;  %14392 = vmatprep.mubr.f32.mxu0 %v25001_v47  ;;  %v16390_v20 = vpack.c.bf16 %v25007_v23, %v25006_v44  ;;  %v25012_v47 = vld [vmem:[#allocation73_spill] sm:$0xff]  ;;  %v25016_v23 = vld [vmem:[#allocation15_spill] sm:$0xff] }
 0x326   :  { %16193 = vmatpush3.bf16.msra.mxu0 %v16190_v58  ;;  %14728 = vmatprep.mubr.f32.mxu1 %v25002_v37  ;;  %v25010_v58 = vld [vmem:[#allocation36_spill] sm:$0xff]  ;;  %v25014_v22 = vld [vmem:[#allocation29_spill] sm:$0xff] }
 0x327   :  { %16385 = vmatpush3.bf16.msra.mxu1 %v16382_v54  ;;  %16195 = vmatprep.subr.bf16.mxu0 %v16194_v51  ;;  %v25011_v54 = vld [vmem:[#allocation91_spill] sm:$0xff] }
 0x328   :  { %14393 = vmatmul.mubr.f32.gmra.mrb[52].mxu0 %v25005_v7  ;;  %16387 = vmatprep.subr.bf16.mxu1 %v16386_v48  ;;  %v16202_v37 = vpack.c.bf16 %v25011_v54, %v25010_v58  ;;  %v25013_v7 = vld [vmem:[#allocation52_spill] sm:$0xff] }
 0x329   :  { %14729 = vmatmul.mubr.f32.gmra.mrb[52].mxu1 %v25008_v49  ;;  %14395 = vmatprep.mubr.f32.mxu0 %v25009_v11  ;;  %v16394_v39 = vpack.c.bf16 %v25014_v22, %v25013_v7  ;;  %v25019_v11 = vld [vmem:[#allocation46_spill] sm:$0xff]  ;;  %v25021_v49 = vld [vmem:[#allocation24_spill] sm:$0xff] }
 0x32a   :  { %16197 = vmatpush3.bf16.msra.mxu0 %v16194_v51  ;;  %14731 = vmatprep.mubr.f32.mxu1 %v21838_v56  ;;  %v25018_v51 = vld [vmem:[#allocation99_spill] sm:$0xff] }
 0x32b   :  { %16389 = vmatpush3.bf16.msra.mxu1 %v16386_v48  ;;  %16199 = vmatprep.subr.bf16.mxu0 %v16198_v46  ;;  %v25017_v48 = vld [vmem:[#allocation78_spill] sm:$0xff] }
 0x32c   :  { %14396 = vmatmul.mubr.f32.gmra.mrb[54].mxu0 %v25012_v47  ;;  %16391 = vmatprep.subr.bf16.mxu1 %v16390_v20  ;;  %v16206_v56 = vpack.c.bf16 %v25018_v51, %v25017_v48  ;;  %v25020_v47 = vld [vmem:[#allocation84_spill] sm:$0xff] }
 0x32d   :  { %14732 = vmatmul.mubr.f32.gmra.mrb[54].mxu1 %v25015_v30  ;;  %14398 = vmatprep.mubr.f32.mxu0 %v25016_v23  ;;  %v16398_v54 = vpack.c.bf16 %v25021_v49, %v25020_v47  ;;  %v25024_v23 = vld [vmem:[#allocation12_spill] sm:$0xff]  ;;  %v25026_v30 = vld [vmem:[#allocation23_spill] sm:$0xff] }
 0x32e   :  { %16201 = vmatpush3.bf16.msra.mxu0 %v16198_v46  ;;  %14734 = vmatprep.mubr.f32.mxu1 %v21882_v61  ;;  %v25022_v46 = vld [vmem:[#allocation27_spill] sm:$0xff] }
 0x32f   :  { %16393 = vmatpush3.bf16.msra.mxu1 %v16390_v20  ;;  %16203 = vmatprep.subr.bf16.mxu0 %v16202_v37  ;;  %v25023_v20 = vld [vmem:[#allocation19_spill] sm:$0xff] }
 0x330   :  { %14399 = vmatmul.mubr.f32.gmra.mrb[56].mxu0 %v25019_v11  ;;  %16395 = vmatprep.subr.bf16.mxu1 %v16394_v39  ;;  %v16210_v61 = vpack.c.bf16 %v25023_v20, %v25022_v46  ;;  %v25025_v11 = vld [vmem:[#allocation86_spill] sm:$0xff] }
 0x331   :  { %14735 = vmatmul.mubr.f32.gmra.mrb[56].mxu1 %v21855_v32  ;;  %14401 = vmatprep.mubr.f32.mxu0 %v21931_v59  ;;  %v16402_v51 = vpack.c.bf16 %v25026_v30, %v25025_v11  ;;  %v25044_v59 = vld [vmem:[#allocation21_spill] sm:$0xff]  ;;  %v25045_v32 = vld [vmem:[#allocation80_spill] sm:$0xff] }
 0x332   :  { %16205 = vmatpush3.bf16.msra.mxu0 %v16202_v37  ;;  %14737 = vmatprep.mubr.f32.mxu1 %v21957_v40  ;;  %v25027_v37 = vld [vmem:[#allocation63_spill] sm:$0xff]  ;;  %v25043_v40 = vld [vmem:[#allocation13_spill] sm:$0xff] }
 0x333   :  { %16397 = vmatpush3.bf16.msra.mxu1 %v16394_v39  ;;  %16207 = vmatprep.subr.bf16.mxu0 %v16206_v56  ;;  %v16214_v39 = vpack.c.bf16 %v21603_v3, %v25027_v37 }
 0x334   :  { %14402 = vmatmul.mubr.f32.gmra.mrb[58].mxu0 %v25024_v23  ;;  %16399 = vmatprep.subr.bf16.mxu1 %v16398_v54  ;;  %v16406_v23 = vpack.c.bf16 %v21691_v63, %v21615_v19 }
 0x335   :  { %14738 = vmatmul.mubr.f32.gmra.mrb[58].mxu1 %v21923_v4  ;;  %14404 = vmatprep.mubr.f32.mxu0 %v22003_v57  ;;  %v25041_v57 = vld [vmem:[#allocation33_spill] sm:$0xff]  ;;  %v25042_v4 = vld [vmem:[#allocation88_spill] sm:$0xff] }
 0x336   :  { %16209 = vmatpush3.bf16.msra.mxu0 %v16206_v56  ;;  %14740 = vmatprep.mubr.f32.mxu1 %v22027_v18  ;;  %v25028_v56 = vld [vmem:[#allocation100_spill] sm:$0xff]  ;;  %v25040_v18 = vld [vmem:[#allocation101_spill] sm:$0xff] }
 0x337   :  { %16401 = vmatpush3.bf16.msra.mxu1 %v16398_v54  ;;  %16211 = vmatprep.subr.bf16.mxu0 %v16210_v61  ;;  %v25029_v54 = vld [vmem:[#allocation104_spill] sm:$0xff] }
 0x338   :  { %14405 = vmatmul.mubr.f32.gmra.mrb[60].mxu0 %v21965_v25  ;;  %16403 = vmatprep.subr.bf16.mxu1 %v16402_v51  ;;  %v25030_v25 = vld [vmem:[#allocation51_spill] sm:$0xff] }
 0x339   :  { %14741 = vmatmul.mubr.f32.gmra.mrb[60].mxu1 %v21978_v41  ;;  %14407 = vmatprep.mubr.f32.mxu0 %v22054_v36  ;;  %v25031_v41 = vld [vmem:[#allocation39_spill] sm:$0xff] }
 0x33a   :  { %16213 = vmatpush3.bf16.msra.mxu0 %v16210_v61  ;;  %14743 = vmatprep.mubr.f32.mxu1 %v22067_v53  ;;  %v25032_v61 = vld [vmem:[#allocation25_spill] sm:$0xff]  ;;  %v25033_v53 = vld [vmem:[#allocation35_spill] sm:$0xff] }
 0x33b   :  { %16405 = vmatpush3.bf16.msra.mxu1 %v16402_v51  ;;  %16215 = vmatprep.subr.bf16.mxu0 %v16214_v39  ;;  %v25034_v51 = vld [vmem:[#allocation81_spill] sm:$0xff]  ;;  %v25039_v36 = vld [vmem:[#allocation79_spill] sm:$0xff] }
 0x33c   :  { %14408 = vmatmul.mubr.f32.gmra.mrb[62].mxu0 %v22072_v15  ;;  %16407 = vmatprep.subr.bf16.mxu1 %v16406_v23  ;;  %v25035_v15 = vld [vmem:[#allocation48_spill] sm:$0xff] }
 0x33d   :  { %14744 = vmatmul.mubr.f32.gmra.mrb[62].mxu1 %v22075_v31  ;;  %14442 = vmatprep.mubr.f32.mxu0 %v25028_v56  ;;  %v25037_v31 = vld [vmem:[#allocation41_spill] sm:$0xff] }
 0x33e   :  { %16217 = vmatpush3.bf16.msra.mxu0 %v16214_v39  ;;  %14778 = vmatprep.mubr.f32.mxu1 %v25029_v54  ;;  %v25036_v39 = vld [vmem:[#allocation14_spill] sm:$0xff] }
 0x33f   :  { %16409 = vmatpush3.bf16.msra.mxu1 %v16406_v23  ;;  %16219 = vmatprep.subr.bf16.mxu0 %v25030_v25  ;;  %v25038_v23 = vld [vmem:[#allocation59_spill] sm:$0xff] }
 0x340   :  { %16411 = vmatprep.subr.bf16.mxu1 %v25031_v41 }
 0x341   :  { %14443 = vmatmul.mubr.f32.vlgmr.msra.gmra.mrb[48].mxu0 %v25032_v61 }
 0x342   :  { %14779 = vmatmul.mubr.f32.vlgmr.msra.gmra.mrb[48].mxu1 %v25033_v53  ;;  %14445 = vmatprep.mubr.f32.mxu0 %v25034_v51 }
 0x343   :  { %16221 = vmatpush3.bf16.msra.mxu0 %v25030_v25  ;;  %14781 = vmatprep.mubr.f32.mxu1 %v25035_v15  ;;  %v25056_v25 = vand.u32 4294901760, %v24983_v13 }
 0x344   :  { %16413 = vmatpush3.bf16.msra.mxu1 %v25031_v41  ;;  %16223 = vmatprep.subr.bf16.mxu0 %v25036_v39  ;;  %v25055_v41 = vld [vmem:[#allocation64_spill] sm:$0xff] }
 0x345   :  { %14446 = vmatmul.mubr.f32.gmra.mrb[50].mxu0 %v25037_v31  ;;  %16415 = vmatprep.subr.bf16.mxu1 %v25038_v23 }
 0x346   :  { %14782 = vmatmul.mubr.f32.gmra.mrb[50].mxu1 %v25039_v36  ;;  %14448 = vmatprep.mubr.f32.mxu0 %v25040_v18 }
 0x347   :  { %16225 = vmatpush3.bf16.msra.mxu0 %v25036_v39  ;;  %14784 = vmatprep.mubr.f32.mxu1 %v25041_v57 }
 0x348   :  { %16417 = vmatpush3.bf16.msra.mxu1 %v25038_v23  ;;  %16227 = vmatprep.subr.bf16.mxu0 %v25042_v4  ;;  %v25054_v23 = vand.u32 4294901760, %v24982_v50  ;;  %v25061_v50 = vand.u32 4294901760, %v24988_v52  ;;  %v25068_v52 = vld [vmem:[#allocation62_spill] sm:$0xff] }
 0x349   :  { %14449 = vmatmul.mubr.f32.gmra.mrb[52].mxu0 %v21764_v16  ;;  %16419 = vmatprep.subr.bf16.mxu1 %v25043_v40 }
 0x34a   :  { %14785 = vmatmul.mubr.f32.gmra.mrb[52].mxu1 %v21826_v8  ;;  %14451 = vmatprep.mubr.f32.mxu0 %v21802_v10 }
 0x34b   :  { %16229 = vmatpush3.bf16.msra.mxu0 %v25042_v4  ;;  %14787 = vmatprep.mubr.f32.mxu1 %v21896_v28  ;;  %v25046_v4 = vld [vmem:[#allocation71_spill] sm:$0xff] }
 0x34c   :  { %16421 = vmatpush3.bf16.msra.mxu1 %v25043_v40  ;;  %16231 = vmatprep.subr.bf16.mxu0 %v25044_v59  ;;  %v25047_v40 = vld [vmem:[#allocation92_spill] sm:$0xff] }
 0x34d   :  { %14452 = vmatmul.mubr.f32.gmra.mrb[54].mxu0 %v21791_v26  ;;  %16423 = vmatprep.subr.bf16.mxu1 %v25045_v32 }
 0x34e   :  { %14788 = vmatmul.mubr.f32.gmra.mrb[54].mxu1 %v21870_v42  ;;  %14454 = vmatprep.mubr.f32.mxu0 %v21874_v45 }
 0x34f   :  { %16233 = vmatpush3.bf16.msra.mxu0 %v25044_v59  ;;  %14790 = vmatprep.mubr.f32.mxu1 %v21939_v38  ;;  %v25048_v59 = vld [vmem:[#allocation97_spill] sm:$0xff] }
 0x350   :  { %16425 = vmatpush3.bf16.msra.mxu1 %v25045_v32  ;;  %16235 = vmatprep.subr.bf16.mxu0 %v25046_v4  ;;  %v25049_v32 = vld [vmem:[#allocation85_spill] sm:$0xff] }
 0x351   :  { %14455 = vmatmul.mubr.f32.gmra.mrb[56].mxu0 %v21853_v55  ;;  %16427 = vmatprep.subr.bf16.mxu1 %v25047_v40 }
 0x352   :  { %14791 = vmatmul.mubr.f32.gmra.mrb[56].mxu1 %v21911_v35  ;;  %14457 = vmatprep.mubr.f32.mxu0 %v21976_v5 }
 0x353   :  { %16237 = vmatpush3.bf16.msra.mxu0 %v25046_v4  ;;  %14793 = vmatprep.mubr.f32.mxu1 %v22012_v14  ;;  %v25050_v4 = vld [vmem:[#allocation102_spill] sm:$0xff] }
 0x354   :  { %16429 = vmatpush3.bf16.msra.mxu1 %v25047_v40  ;;  %16239 = vmatprep.subr.bf16.mxu0 %v25048_v59  ;;  %v25051_v40 = vld [vmem:[#allocation20_spill] sm:$0xff] }
 0x355   :  { %14458 = vmatmul.mubr.f32.gmra.mrb[58].mxu0 %v21916_v60  ;;  %16431 = vmatprep.subr.bf16.mxu1 %v25049_v32 }
 0x356   :  { %14794 = vmatmul.mubr.f32.gmra.mrb[58].mxu1 %v21971_v12  ;;  %14460 = vmatprep.mubr.f32.mxu0 %v22046_v24 }
 0x357   :  { %16241 = vmatpush3.bf16.msra.mxu0 %v25048_v59  ;;  %14796 = vmatprep.mubr.f32.mxu1 %v22061_v62  ;;  %v25052_v59 = vld [vmem:[#allocation87_spill] sm:$0xff] }
 0x358   :  { %16433 = vmatpush3.bf16.msra.mxu1 %v25049_v32  ;;  %16243 = vmatprep.subr.bf16.mxu0 %v25050_v4  ;;  %v25053_v32 = vand.u32 4294901760, %v24981_v21  ;;  %v25059_v21 = vand.u32 4294901760, %v25029_v54  ;;  %v25066_v54 = vand.u32 4294901760, %v25034_v51 }
 0x359   :  { %14461 = vmatmul.mubr.f32.gmra.mrb[60].mxu0 %v22017_v43  ;;  %16435 = vmatprep.subr.bf16.mxu1 %v25051_v40 }
 0x35a   :  { %14797 = vmatmul.mubr.f32.gmra.mrb[60].mxu1 %v22024_v9  ;;  %14463 = vmatprep.mubr.f32.mxu0 %v22089_v2  ;;  %v16250_v39 = vpack.c.bf16 %v25054_v23, %v25053_v32  ;;  %v25057_v2 = vand.u32 4294901760, %v24984_v27  ;;  %v25060_v32 = vand.u32 4294901760, %v24987_v17  ;;  %v25067_v17 = vand.u32 4294901760, %v25035_v15  ;;  %v25070_v23 = vld [vmem:[#allocation37_spill] sm:$0xff] }
 0x35b   :  { %16245 = vmatpush3.bf16.msra.mxu0 %v25050_v4  ;;  %14799 = vmatprep.mubr.f32.mxu1 %v22098_v0  ;;  %v25078_v15 = vand.u32 4294901760, %v25041_v57  ;;  %v25088_v57 = vand.u32 4294901760, %v21802_v10  ;;  %v25095_v10 = vand.u32 4294901760, %v25014_v22  ;;  %v25102_v22 = vand.u32 4294901760, %v21853_v55 }
 0x35c   :  { %16437 = vmatpush3.bf16.msra.mxu1 %v25051_v40  ;;  %16247 = vmatprep.subr.bf16.mxu0 %v25052_v59  ;;  %v16442_v4 = vpack.c.bf16 %v25057_v2, %v25056_v25  ;;  %v25058_v40 = vand.u32 4294901760, %v25028_v56  ;;  %v16254_v13 = vpack.c.bf16 %v25061_v50, %v25060_v32  ;;  %v25062_v25 = vand.u32 4294901760, %v25032_v61  ;;  %v25074_v32 = vld [vmem:[#allocation66_spill] sm:$0xff] }
 0x35d   :  { %14464 = vmatmul.mubr.f32.gmra.mrb[62].mxu0 %v22107_v1  ;;  %16439 = vmatprep.subr.bf16.mxu1 %v25055_v41  ;;  %v25063_v2 = vand.u32 4294901760, %v24990_v6  ;;  %v25065_v56 = vand.u32 4294901760, %v25033_v53  ;;  %v25069_v61 = vand.u32 4294901760, %v25068_v52  ;;  %v25073_v53 = vand.u32 4294901760, %v24998_v34  ;;  %v25091_v52 = vld [vmem:[#allocation91_spill] sm:$0xff] }
 0x35e   :  { %14800 = vmatmul.mubr.f32.gmra.mrb[62].mxu1 %v22111_v33  ;;  %14498 = vmatprep.mubr.f32.mxu0 %v25058_v40  ;;  %v25064_v40 = vand.u32 4294901760, %v24991_v29  ;;  %v25072_v29 = vand.u32 4294901760, %v25037_v31  ;;  %v25075_v51 = vand.u32 4294901760, %v25074_v32  ;;  %v25079_v31 = vld [vmem:[#allocation90_spill] sm:$0xff]  ;;  %v25108_v55 = vand.u32 4294901760, %v25022_v46 }
 0x35f   :  { %16249 = vmatpush3.bf16.msra.mxu0 %v25052_v59  ;;  %14834 = vmatprep.mubr.f32.mxu1 %v25059_v21  ;;  %v25071_v21 = vand.u32 4294901760, %v25070_v23  ;;  %v25093_v23 = vand.u32 4294901760, %v21791_v26  ;;  %v25099_v26 = vand.u32 4294901760, %v25017_v48  ;;  %v25107_v48 = vand.u32 4294901760, %v22012_v14 }
 0x360   :  { %16441 = vmatpush3.bf16.msra.mxu1 %v25055_v41  ;;  %16251 = vmatprep.subr.bf16.mxu0 %v16250_v39  ;;  %v16446_v27 = vpack.c.bf16 %v25064_v40, %v25063_v2  ;;  %v16450_v50 = vpack.c.bf16 %v25075_v51, %v25073_v53  ;;  %v25081_v2 = vld [vmem:[#allocation16_spill] sm:$0xff]  ;;  %v25105_v51 = vand.u32 4294901760, %v21911_v35  ;;  %v25111_v35 = vand.u32 4294901760, %v25025_v11 }
 0x361   :  { %16443 = vmatprep.subr.bf16.mxu1 %v16442_v4  ;;  %v16258_v6 = vpack.c.bf16 %v25071_v21, %v25069_v61  ;;  %v25082_v40 = vand.u32 4294901760, %v25081_v2  ;;  %v25092_v61 = vand.u32 4294901760, %v25091_v52  ;;  %v25114_v14 = vand.u32 4294901760, %v22046_v24  ;;  %v25130_v2 = vld [vmem:[#allocation39_spill] sm:$0xff]  ;;  %v25145_v52 = vld [vmem:[#allocation17_spill] sm:$0xff] }
 0x362   :  { %14499 = vmatmul.mubr.f32.vlgmr.msra.gmra.mrb[48].mxu0 %v25062_v25  ;;  %v25080_v25 = vand.u32 4294901760, %v25079_v31  ;;  %v25115_v46 = vand.u32 4294901760, %v22061_v62  ;;  %v25120_v24 = vand.u32 4294901760, %v21691_v63  ;;  %v25121_v31 = vand.u32 4294901760, %v22024_v9  ;;  %v25122_v62 = vld [vmem:[#allocation57_spill] sm:$0xff]  ;;  %v25127_v63 = vld [vmem:[#allocation44_spill] sm:$0xff] }
 0x363   :  { %14835 = vmatmul.mubr.f32.vlgmr.msra.gmra.mrb[48].mxu1 %v25065_v56  ;;  %14501 = vmatprep.mubr.f32.mxu0 %v25066_v54  ;;  %v25083_v56 = vand.u32 4294901760, %v21764_v16  ;;  %v25085_v54 = vld [vmem:[#allocation45_spill] sm:$0xff]  ;;  %v25090_v16 = vand.u32 4294901760, %v25010_v58  ;;  %v25098_v58 = vand.u32 4294901760, %v21939_v38  ;;  %v25106_v38 = vand.u32 4294901760, %v21976_v5  ;;  %v25129_v9 = vld [vmem:[#allocation51_spill] sm:$0xff] }
 0x364   :  { %16253 = vmatpush3.bf16.msra.mxu0 %v16250_v39  ;;  %14837 = vmatprep.mubr.f32.mxu1 %v25067_v17  ;;  %v25076_v39 = vand.u32 4294901760, %v25039_v36  ;;  %v16262_v34 = vpack.c.bf16 %v25082_v40, %v25080_v25  ;;  %v25084_v36 = vand.u32 4294901760, %v25006_v44  ;;  %v25112_v5 = vand.u32 4294901760, %v25026_v30  ;;  %v25132_v40 = vld [vmem:[#allocation94_spill] sm:$0xff] }
 0x365   :  { %16445 = vmatpush3.bf16.msra.mxu1 %v16442_v4  ;;  %16255 = vmatprep.subr.bf16.mxu0 %v16254_v13  ;;  %v25077_v4 = vand.u32 4294901760, %v25040_v18  ;;  %v25086_v18 = vand.u32 4294901760, %v25085_v54  ;;  %v16266_v44 = vpack.c.bf16 %v25092_v61, %v25090_v16  ;;  %v25118_v30 = vand.u32 4294901760, %v22017_v43  ;;  %v25128_v43 = vld [vmem:[#allocation96_spill] sm:$0xff]  ;;  %v25138_v54 = vld [vmem:[#allocation83_spill] sm:$0xff]  ;;  %v25144_v16 = vld [vmem:[#allocation69_spill] sm:$0xff] }
 0x366   :  { %14502 = vmatmul.mubr.f32.gmra.mrb[50].mxu0 %v25072_v29  ;;  %16447 = vmatprep.subr.bf16.mxu1 %v16446_v27  ;;  %v25100_v29 = vld [vmem:[#allocation99_spill] sm:$0xff]  ;;  %v25123_v25 = vand.u32 4294901760, %v25122_v62  ;;  %v25146_v61 = vld [vmem:[#allocation72_spill] sm:$0xff] }
 0x367   :  { %14838 = vmatmul.mubr.f32.gmra.mrb[50].mxu1 %v25076_v39  ;;  %14504 = vmatprep.mubr.f32.mxu0 %v25077_v4  ;;  %v16454_v17 = vpack.c.bf16 %v25086_v18, %v25084_v36  ;;  %v25101_v53 = vand.u32 4294901760, %v25100_v29  ;;  %v16466_v39 = vpack.c.bf16 %v25112_v5, %v25111_v35  ;;  %v25113_v4 = vand.u32 4294901760, %v21971_v12  ;;  %v25137_v36 = vld [vmem:[#allocation59_spill] sm:$0xff]  ;;  %v25156_v29 = vld [vmem:[#allocation76_spill] sm:$0xff]  ;;  %v25170_v35 = vld [vmem:[#allocation77_spill] sm:$0xff] }
 0x368   :  { %16257 = vmatpush3.bf16.msra.mxu0 %v16254_v13  ;;  %14840 = vmatprep.mubr.f32.mxu1 %v25078_v15  ;;  %v25087_v13 = vand.u32 4294901760, %v21826_v8  ;;  %v25094_v8 = vand.u32 4294901760, %v25013_v7  ;;  %v25119_v12 = vand.u32 4294901760, %v21615_v19  ;;  %v25126_v19 = vand.u32 4294901760, %v22111_v33  ;;  %v25134_v33 = vld [vmem:[#allocation40_spill] sm:$0xff]  ;;  %v25139_v18 = vld [vmem:[#allocation95_spill] sm:$0xff] }
 0x369   :  { %16449 = vmatpush3.bf16.msra.mxu1 %v16446_v27  ;;  %16259 = vmatprep.subr.bf16.mxu0 %v16258_v6  ;;  %v25089_v27 = vand.u32 4294901760, %v21896_v28  ;;  %v25097_v28 = vand.u32 4294901760, %v21874_v45  ;;  %v16270_v7 = vpack.c.bf16 %v25101_v53, %v25099_v26  ;;  %v25104_v45 = vand.u32 4294901760, %v25021_v49  ;;  %v25155_v26 = vld [vmem:[#allocation92_spill] sm:$0xff]  ;;  %v25157_v53 = vld [vmem:[#allocation18_spill] sm:$0xff] }
 0x36a   :  { %14505 = vmatmul.mubr.f32.gmra.mrb[52].mxu0 %v25083_v56  ;;  %16451 = vmatprep.subr.bf16.mxu1 %v16450_v50  ;;  %v16458_v21 = vpack.c.bf16 %v25095_v10, %v25094_v8  ;;  %v25110_v49 = vand.u32 4294901760, %v21916_v60  ;;  %v25116_v60 = vand.u32 4294901760, %v25027_v37  ;;  %v16470_v15 = vpack.c.bf16 %v25120_v24, %v25119_v12  ;;  %v25136_v56 = vld [vmem:[#allocation30_spill] sm:$0xff]  ;;  %v25149_v8 = vld [vmem:[#allocation80_spill] sm:$0xff] }
 0x36b   :  { %14841 = vmatmul.mubr.f32.gmra.mrb[52].mxu1 %v25087_v13  ;;  %14507 = vmatprep.mubr.f32.mxu0 %v25088_v57  ;;  %v25124_v37 = vand.u32 4294901760, %v22098_v0  ;;  %v25131_v0 = vld [vmem:[#allocation75_spill] sm:$0xff]  ;;  %v25141_v13 = vld [vmem:[#allocation88_spill] sm:$0xff]  ;;  %v25142_v57 = vld [vmem:[#allocation53_spill] sm:$0xff] }
 0x36c   :  { %16261 = vmatpush3.bf16.msra.mxu0 %v16258_v6  ;;  %14843 = vmatprep.mubr.f32.mxu1 %v25089_v27  ;;  %v25096_v6 = vand.u32 4294901760, %v21870_v42  ;;  %v25103_v42 = vand.u32 4294901760, %v25020_v47  ;;  %v25143_v27 = vld [vmem:[#allocation13_spill] sm:$0xff]  ;;  %v25150_v10 = vld [vmem:[#allocation60_spill] sm:$0xff]  ;;  %v25171_v5 = vld [vmem:[#allocation74_spill] sm:$0xff] }
 0x36d   :  { %16453 = vmatpush3.bf16.msra.mxu1 %v16450_v50  ;;  %16263 = vmatprep.subr.bf16.mxu0 %v16262_v34  ;;  %v25109_v50 = vand.u32 4294901760, %v25023_v20  ;;  %v25117_v20 = vand.u32 4294901760, %v21603_v3  ;;  %v25125_v3 = vand.u32 4294901760, %v22107_v1  ;;  %v25133_v1 = vld [vmem:[#allocation70_spill] sm:$0xff] }
 0x36e   :  { %14508 = vmatmul.mubr.f32.gmra.mrb[54].mxu0 %v25093_v23  ;;  %16455 = vmatprep.subr.bf16.mxu1 %v16454_v17  ;;  %v16462_v32 = vpack.c.bf16 %v25104_v45, %v25103_v42  ;;  %v25148_v23 = vld [vmem:[#allocation73_spill] sm:$0xff]  ;;  %v25160_v42 = vld [vmem:[#allocation12_spill] sm:$0xff] }
 0x36f   :  { %14844 = vmatmul.mubr.f32.gmra.mrb[54].mxu1 %v25096_v6  ;;  %14510 = vmatprep.mubr.f32.mxu0 %v25097_v28  ;;  %v16274_v47 = vpack.c.bf16 %v25109_v50, %v25108_v55  ;;  %v16278_v11 = vpack.c.bf16 %v25117_v20, %v25116_v60  ;;  %v25152_v6 = vld [vmem:[#allocation43_spill] sm:$0xff]  ;;  %v25161_v45 = vld [vmem:[#allocation85_spill] sm:$0xff]  ;;  %v25167_v50 = vld [vmem:[#allocation20_spill] sm:$0xff] }
 0x370   :  { %16265 = vmatpush3.bf16.msra.mxu0 %v16262_v34  ;;  %14846 = vmatprep.mubr.f32.mxu1 %v25098_v58  ;;  %v25135_v34 = vld [vmem:[#allocation14_spill] sm:$0xff]  ;;  %v25153_v28 = vld [vmem:[#allocation71_spill] sm:$0xff]  ;;  %v25166_v55 = vld [vmem:[#allocation49_spill] sm:$0xff] }
 0x371   :  { %16457 = vmatpush3.bf16.msra.mxu1 %v16454_v17  ;;  %16267 = vmatprep.subr.bf16.mxu0 %v16266_v44  ;;  %v25140_v17 = vld [vmem:[#allocation38_spill] sm:$0xff] }
 0x372   :  { %14511 = vmatmul.mubr.f32.gmra.mrb[56].mxu0 %v25102_v22  ;;  %16459 = vmatprep.subr.bf16.mxu1 %v16458_v21  ;;  %v25154_v58 = vld [vmem:[#allocation46_spill] sm:$0xff]  ;;  %v25159_v22 = vld [vmem:[#allocation97_spill] sm:$0xff] }
 0x373   :  { %14847 = vmatmul.mubr.f32.gmra.mrb[56].mxu1 %v25105_v51  ;;  %14513 = vmatprep.mubr.f32.mxu0 %v25106_v38  ;;  %v25163_v51 = vld [vmem:[#allocation47_spill] sm:$0xff]  ;;  %v25164_v38 = vld [vmem:[#allocation56_spill] sm:$0xff] }
 0x374   :  { %16269 = vmatpush3.bf16.msra.mxu0 %v16266_v44  ;;  %14849 = vmatprep.mubr.f32.mxu1 %v25107_v48  ;;  %v25147_v44 = vld [vmem:[#allocation21_spill] sm:$0xff]  ;;  %v25165_v48 = vld [vmem:[#allocation102_spill] sm:$0xff] }
 0x375   :  { %16461 = vmatpush3.bf16.msra.mxu1 %v16458_v21  ;;  %16271 = vmatprep.subr.bf16.mxu0 %v16270_v7  ;;  %v25151_v21 = vld [vmem:[#allocation15_spill] sm:$0xff] }
 0x376   :  { %14514 = vmatmul.mubr.f32.gmra.mrb[58].mxu0 %v25110_v49  ;;  %16463 = vmatprep.subr.bf16.mxu1 %v16462_v32  ;;  %v25169_v49 = vld [vmem:[#allocation82_spill] sm:$0xff] }
 0x377   :  { %14850 = vmatmul.mubr.f32.gmra.mrb[58].mxu1 %v25113_v4  ;;  %14516 = vmatprep.mubr.f32.mxu0 %v25114_v14 }
 0x378   :  { %16273 = vmatpush3.bf16.msra.mxu0 %v16270_v7  ;;  %14852 = vmatprep.mubr.f32.mxu1 %v25115_v46  ;;  %v25158_v7 = vld [vmem:[#allocation93_spill] sm:$0xff] }
 0x379   :  { %16465 = vmatpush3.bf16.msra.mxu1 %v16462_v32  ;;  %16275 = vmatprep.subr.bf16.mxu0 %v16274_v47  ;;  %v25162_v32 = vld [vmem:[#allocation28_spill] sm:$0xff] }
 0x37a   :  { %14517 = vmatmul.mubr.f32.gmra.mrb[60].mxu0 %v25118_v30  ;;  %16467 = vmatprep.subr.bf16.mxu1 %v16466_v39 }
 0x37b   :  { %14853 = vmatmul.mubr.f32.gmra.mrb[60].mxu1 %v25121_v31  ;;  %14519 = vmatprep.mubr.f32.mxu0 %v25123_v25 }
 0x37c   :  { %16277 = vmatpush3.bf16.msra.mxu0 %v16274_v47  ;;  %14855 = vmatprep.mubr.f32.mxu1 %v25124_v37  ;;  %v25168_v47 = vld [vmem:[#allocation42_spill] sm:$0xff] }
 0x37d   :  { %16469 = vmatpush3.bf16.msra.mxu1 %v16466_v39  ;;  %16279 = vmatprep.subr.bf16.mxu0 %v16278_v11  ;;  %v25172_v39 = vld [vmem:[#allocation50_spill] sm:$0xff] }
 0x37e   :  { %14520 = vmatmul.mubr.f32.gmra.mrb[62].mxu0 %v25125_v3  ;;  %16471 = vmatprep.subr.bf16.mxu1 %v16470_v15 }
 0x37f   :  { %14856 = vmatmul.mubr.f32.gmra.mrb[62].mxu1 %v25126_v19  ;;  %14554 = vmatprep.mubr.f32.mxu0 %v25127_v63 }
 0x380   :  { %16281 = vmatpush3.bf16.msra.mxu0 %v16278_v11  ;;  %14890 = vmatprep.mubr.f32.mxu1 %v25128_v43 }
 0x381   :  { %16473 = vmatpush3.bf16.msra.mxu1 %v16470_v15  ;;  %16283 = vmatprep.subr.bf16.mxu0 %v25129_v9 }
 0x382   :  { %16475 = vmatprep.subr.bf16.mxu1 %v25130_v2 }
 0x383   :  { %14555 = vmatmul.mubr.f32.vlgmr.msra.gmra.mrb[48].mxu0 %v25131_v0 }
 0x384   :  { %14891 = vmatmul.mubr.f32.vlgmr.msra.gmra.mrb[48].mxu1 %v25132_v40  ;;  %14557 = vmatprep.mubr.f32.mxu0 %v25133_v1 }
 0x385   :  { %16285 = vmatpush3.bf16.msra.mxu0 %v25129_v9  ;;  %14893 = vmatprep.mubr.f32.mxu1 %v25134_v33 }
 0x386   :  { %16477 = vmatpush3.bf16.msra.mxu1 %v25130_v2  ;;  %16287 = vmatprep.subr.bf16.mxu0 %v25135_v34 }
 0x387   :  { %14558 = vmatmul.mubr.f32.gmra.mrb[50].mxu0 %v25136_v56  ;;  %16479 = vmatprep.subr.bf16.mxu1 %v25137_v36 }
 0x388   :  { %14894 = vmatmul.mubr.f32.gmra.mrb[50].mxu1 %v25138_v54  ;;  %14560 = vmatprep.mubr.f32.mxu0 %v25139_v18 }
 0x389   :  { %16289 = vmatpush3.bf16.msra.mxu0 %v25135_v34  ;;  %14896 = vmatprep.mubr.f32.mxu1 %v25140_v17 }
 0x38a   :  { %16481 = vmatpush3.bf16.msra.mxu1 %v25137_v36  ;;  %16291 = vmatprep.subr.bf16.mxu0 %v25141_v13 }
 0x38b   :  { %14561 = vmatmul.mubr.f32.gmra.mrb[52].mxu0 %v25142_v57  ;;  %16483 = vmatprep.subr.bf16.mxu1 %v25143_v27 }
 0x38c   :  { %14897 = vmatmul.mubr.f32.gmra.mrb[52].mxu1 %v25144_v16  ;;  %14563 = vmatprep.mubr.f32.mxu0 %v25145_v52 }
 0x38d   :  { %16293 = vmatpush3.bf16.msra.mxu0 %v25141_v13  ;;  %14899 = vmatprep.mubr.f32.mxu1 %v25146_v61 }
 0x38e   :  { %16485 = vmatpush3.bf16.msra.mxu1 %v25143_v27  ;;  %16295 = vmatprep.subr.bf16.mxu0 %v25147_v44 }
 0x38f   :  { %14564 = vmatmul.mubr.f32.gmra.mrb[54].mxu0 %v25148_v23  ;;  %16487 = vmatprep.subr.bf16.mxu1 %v25149_v8 }
 0x390   :  { %14900 = vmatmul.mubr.f32.gmra.mrb[54].mxu1 %v25150_v10  ;;  %14566 = vmatprep.mubr.f32.mxu0 %v25151_v21 }
 0x391   :  { %16297 = vmatpush3.bf16.msra.mxu0 %v25147_v44  ;;  %14902 = vmatprep.mubr.f32.mxu1 %v25152_v6 }
 0x392   :  { %16489 = vmatpush3.bf16.msra.mxu1 %v25149_v8  ;;  %16299 = vmatprep.subr.bf16.mxu0 %v25153_v28 }
 0x393   :  { %14567 = vmatmul.mubr.f32.gmra.mrb[56].mxu0 %v25154_v58  ;;  %16491 = vmatprep.subr.bf16.mxu1 %v25155_v26 }
 0x394   :  { %14903 = vmatmul.mubr.f32.gmra.mrb[56].mxu1 %v25156_v29  ;;  %14569 = vmatprep.mubr.f32.mxu0 %v25157_v53 }
 0x395   :  { %16301 = vmatpush3.bf16.msra.mxu0 %v25153_v28  ;;  %14905 = vmatprep.mubr.f32.mxu1 %v25158_v7 }
 0x396   :  { %16493 = vmatpush3.bf16.msra.mxu1 %v25155_v26  ;;  %16303 = vmatprep.subr.bf16.mxu0 %v25159_v22 }
 0x397   :  { %14570 = vmatmul.mubr.f32.gmra.mrb[58].mxu0 %v25160_v42  ;;  %16495 = vmatprep.subr.bf16.mxu1 %v25161_v45 }
 0x398   :  { %14906 = vmatmul.mubr.f32.gmra.mrb[58].mxu1 %v25162_v32  ;;  %14572 = vmatprep.mubr.f32.mxu0 %v25163_v51 }
 0x399   :  { %16305 = vmatpush3.bf16.msra.mxu0 %v25159_v22  ;;  %14908 = vmatprep.mubr.f32.mxu1 %v25164_v38 }
 0x39a   :  { %16497 = vmatpush3.bf16.msra.mxu1 %v25161_v45  ;;  %16307 = vmatprep.subr.bf16.mxu0 %v25165_v48 }
 0x39b   :  { %14573 = vmatmul.mubr.f32.gmra.mrb[60].mxu0 %v25166_v55  ;;  %16499 = vmatprep.subr.bf16.mxu1 %v25167_v50 }
 0x39c   :  { %14909 = vmatmul.mubr.f32.gmra.mrb[60].mxu1 %v25168_v47  ;;  %14575 = vmatprep.mubr.f32.mxu0 %v25169_v49 }
 0x39d   :  { %16309 = vmatpush3.bf16.msra.mxu0 %v25165_v48  ;;  %14911 = vmatprep.mubr.f32.mxu1 %v25170_v35 }
 0x39e   :  { %16501 = vmatpush3.bf16.msra.mxu1 %v25167_v50  ;;  %16311 = vmatprep.subr.bf16.mxu0 %v25052_v59 }
 0x39f   :  { %14576 = vmatmul.mubr.f32.gmra.mrb[62].mxu0 %v25171_v5  ;;  %16503 = vmatprep.subr.bf16.mxu1 %v25055_v41 }
 0x3a0   :  { %14912 = vmatmul.mubr.f32.gmra.mrb[62].mxu1 %v25172_v39  ;;  %14610 = vmatprep.mubr.f32.mxu0 %v25127_v63 }
 0x3a1   :  { %16313 = vmatpush3.bf16.msra.mxu0 %v25052_v59  ;;  %14946 = vmatprep.mubr.f32.mxu1 %v25128_v43 }
 0x3a2   :  { %16505 = vmatpush3.bf16.msra.mxu1 %v25055_v41 }
 0x3a4   :  { %14611 = vmatmul.mubr.f32.vlgmr.msra.gmra.mrb[48].mxu0 %v25131_v0 }
 0x3a5   :  { %14947 = vmatmul.mubr.f32.vlgmr.msra.gmra.mrb[48].mxu1 %v25132_v40  ;;  %14613 = vmatprep.mubr.f32.mxu0 %v25133_v1 }
 0x3a6   :  { %14949 = vmatprep.mubr.f32.mxu1 %v25134_v33 }
 0x3a8   :  { %14614 = vmatmul.mubr.f32.gmra.mrb[50].mxu0 %v25136_v56 }
 0x3a9   :  { %14950 = vmatmul.mubr.f32.gmra.mrb[50].mxu1 %v25138_v54  ;;  %14616 = vmatprep.mubr.f32.mxu0 %v25139_v18  ;;  %v13940_v59 = vpop.f32.mrb[32].mxu0 }
 0x3aa   :  { %14952 = vmatprep.mubr.f32.mxu1 %v25140_v17  ;;  %10665 = vst [vmem:[#allocation8 + $0x88] sm:$0xff] %v13940_v59  ;;  %v14276_v41 = vpop.f32.mrb[32].mxu1  ;;  %v6648_v4 = vpop.f32.mrb[33].mxu0 }
 0x3ab   :  { %10681 = vst [vmem:[#allocation8 + $0x188] sm:$0xff] %v14276_v41  ;;  %10664 = vst [vmem:[#allocation8 + $0x80] sm:$0xff] %v6648_v4  ;;  %v7934_v14 = vpop.f32.mrb[33].mxu1 }
 0x3ac   :  { %14617 = vmatmul.mubr.f32.gmra.mrb[52].mxu0 %v25142_v57  ;;  %10680 = vst [vmem:[#allocation8 + $0x180] sm:$0xff] %v7934_v14 }
 0x3ad   :  { %14953 = vmatmul.mubr.f32.gmra.mrb[52].mxu1 %v25144_v16  ;;  %14619 = vmatprep.mubr.f32.mxu0 %v25145_v52 }
 0x3ae   :  { %14955 = vmatprep.mubr.f32.mxu1 %v25146_v61  ;;  %v13943_v46 = vpop.f32.mrb[34].mxu0 }
 0x3af   :  { %10667 = vst [vmem:[#allocation8 + $0x98] sm:$0xff] %v13943_v46  ;;  %v14279_v60 = vpop.f32.mrb[34].mxu1  ;;  %v6660_v20 = vpop.f32.mrb[35].mxu0 }
 0x3b0   :  { %14620 = vmatmul.mubr.f32.gmra.mrb[54].mxu0 %v25148_v23  ;;  %10683 = vst [vmem:[#allocation8 + $0x198] sm:$0xff] %v14279_v60  ;;  %10666 = vst [vmem:[#allocation8 + $0x90] sm:$0xff] %v6660_v20  ;;  %v7946_v11 = vpop.f32.mrb[35].mxu1 }
 0x3b1   :  { %14956 = vmatmul.mubr.f32.gmra.mrb[54].mxu1 %v25150_v10  ;;  %14622 = vmatprep.mubr.f32.mxu0 %v25151_v21  ;;  %10682 = vst [vmem:[#allocation8 + $0x190] sm:$0xff] %v7946_v11 }
 0x3b2   :  { %14958 = vmatprep.mubr.f32.mxu1 %v25152_v6 }
 0x3b3   :  { %v13946_v30 = vpop.f32.mrb[36].mxu0 }
 0x3b4   :  { %14623 = vmatmul.mubr.f32.gmra.mrb[56].mxu0 %v25154_v58  ;;  %10669 = vst [vmem:[#allocation8 + $0xa8] sm:$0xff] %v13946_v30  ;;  %v6672_v24 = vpop.f32.mrb[37].mxu0 }
 0x3b5   :  { %14959 = vmatmul.mubr.f32.gmra.mrb[56].mxu1 %v25156_v29  ;;  %14625 = vmatprep.mubr.f32.mxu0 %v25157_v53  ;;  %v14282_v12 = vpop.f32.mrb[36].mxu1  ;;  %10668 = vst [vmem:[#allocation8 + $0xa0] sm:$0xff] %v6672_v24 }
 0x3b6   :  { %14961 = vmatprep.mubr.f32.mxu1 %v25158_v7  ;;  %10685 = vst [vmem:[#allocation8 + $0x1a8] sm:$0xff] %v14282_v12  ;;  %v7958_v15 = vpop.f32.mrb[37].mxu1 }
 0x3b7   :  { %10684 = vst [vmem:[#allocation8 + $0x1a0] sm:$0xff] %v7958_v15 }
 0x3b8   :  { %14626 = vmatmul.mubr.f32.gmra.mrb[58].mxu0 %v25160_v42  ;;  %v13949_v31 = vpop.f32.mrb[38].mxu0 }
 0x3b9   :  { %14962 = vmatmul.mubr.f32.gmra.mrb[58].mxu1 %v25162_v32  ;;  %14628 = vmatprep.mubr.f32.mxu0 %v25163_v51  ;;  %10671 = vst [vmem:[#allocation8 + $0xb8] sm:$0xff] %v13949_v31  ;;  %v6684_v25 = vpop.f32.mrb[39].mxu0 }
 0x3ba   :  { %14964 = vmatprep.mubr.f32.mxu1 %v25164_v38  ;;  %v14285_v62 = vpop.f32.mrb[38].mxu1  ;;  %10670 = vst [vmem:[#allocation8 + $0xb0] sm:$0xff] %v6684_v25 }
 0x3bb   :  { %10687 = vst [vmem:[#allocation8 + $0x1b8] sm:$0xff] %v14285_v62  ;;  %v7970_v37 = vpop.f32.mrb[39].mxu1 }
 0x3bc   :  { %14629 = vmatmul.mubr.f32.gmra.mrb[60].mxu0 %v25166_v55  ;;  %10686 = vst [vmem:[#allocation8 + $0x1b0] sm:$0xff] %v7970_v37 }
 0x3bd   :  { %14965 = vmatmul.mubr.f32.gmra.mrb[60].mxu1 %v25168_v47  ;;  %14631 = vmatprep.mubr.f32.mxu0 %v25169_v49  ;;  %v13952_v3 = vpop.f32.mrb[40].mxu0 }
 0x3be   :  { %14967 = vmatprep.mubr.f32.mxu1 %v25170_v35  ;;  %10673 = vst [vmem:[#allocation8 + $0xc8] sm:$0xff] %v13952_v3  ;;  %v14288_v19 = vpop.f32.mrb[40].mxu1  ;;  %v6696_v63 = vpop.f32.mrb[41].mxu0 }
 0x3bf   :  { %10689 = vst [vmem:[#allocation8 + $0x1c8] sm:$0xff] %v14288_v19  ;;  %10672 = vst [vmem:[#allocation8 + $0xc0] sm:$0xff] %v6696_v63  ;;  %v7982_v43 = vpop.f32.mrb[41].mxu1 }
 0x3c0   :  { %14632 = vmatmul.mubr.f32.gmra.mrb[62].mxu0 %v25171_v5  ;;  %10688 = vst [vmem:[#allocation8 + $0x1c0] sm:$0xff] %v7982_v43 }
 0x3c1   :  { %14968 = vmatmul.mubr.f32.gmra.mrb[62].mxu1 %v25172_v39 }
 0x3c2   :  { %v14291_v2 = vpop.f32.mrb[42].mxu1 }
 0x3c3   :  { %v13955_v9 = vpop.f32.mrb[42].mxu0  ;;  %10691 = vst [vmem:[#allocation8 + $0x1d8] sm:$0xff] %v14291_v2  ;;  %v7994_v40 = vpop.f32.mrb[43].mxu1 }
 0x3c4   :  { %10675 = vst [vmem:[#allocation8 + $0xd8] sm:$0xff] %v13955_v9  ;;  %v6708_v0 = vpop.f32.mrb[43].mxu0  ;;  %10690 = vst [vmem:[#allocation8 + $0x1d0] sm:$0xff] %v7994_v40 }
 0x3c5   :  { %10674 = vst [vmem:[#allocation8 + $0xd0] sm:$0xff] %v6708_v0 }
 0x3c7   :  { %v13958_v1 = vpop.f32.mrb[44].mxu0  ;;  %v14294_v33 = vpop.f32.mrb[44].mxu1 }
 0x3c8   :  { %10677 = vst [vmem:[#allocation8 + $0xe8] sm:$0xff] %v13958_v1  ;;  %v6720_v34 = vpop.f32.mrb[45].mxu0  ;;  %10693 = vst [vmem:[#allocation8 + $0x1e8] sm:$0xff] %v14294_v33  ;;  %v8006_v56 = vpop.f32.mrb[45].mxu1 }
 0x3c9   :  { %10676 = vst [vmem:[#allocation8 + $0xe0] sm:$0xff] %v6720_v34  ;;  %10692 = vst [vmem:[#allocation8 + $0x1e0] sm:$0xff] %v8006_v56 }
 0x3cb   :  { %v13961_v36 = vpop.f32.mrb[46].mxu0 }
 0x3cc   :  { %10679 = vst [vmem:[#allocation8 + $0xf8] sm:$0xff] %v13961_v36  ;;  %v14297_v54 = vpop.f32.mrb[46].mxu1  ;;  %v6732_v18 = vpop.f32.mrb[47].mxu0 }
 0x3cd   :  { %10695 = vst [vmem:[#allocation8 + $0x1f8] sm:$0xff] %v14297_v54  ;;  %10678 = vst [vmem:[#allocation8 + $0xf0] sm:$0xff] %v6732_v18  ;;  %v8018_v17 = vpop.f32.mrb[47].mxu1 }
 0x3ce   :  { %10694 = vst [vmem:[#allocation8 + $0x1f0] sm:$0xff] %v8018_v17 }
 0x477   :  { %v14612_v13 = vpop.f32.mrb[48].mxu0 }
 0x478   :  { %10697 = vst [vmem:[#allocation8 + $0x288] sm:$0xff] %v14612_v13  ;;  %v14948_v57 = vpop.f32.mrb[48].mxu1  ;;  %v9220_v27 = vpop.f32.mrb[49].mxu0 }
 0x479   :  { %10713 = vst [vmem:[#allocation8 + $0x388] sm:$0xff] %v14948_v57  ;;  %10696 = vst [vmem:[#allocation8 + $0x280] sm:$0xff] %v9220_v27  ;;  %v10506_v16 = vpop.f32.mrb[49].mxu1 }
 0x47a   :  { %10712 = vst [vmem:[#allocation8 + $0x380] sm:$0xff] %v10506_v16 }
 0x47b   :  { %v14615_v52 = vpop.f32.mrb[50].mxu0 }
 0x47c   :  { %10699 = vst [vmem:[#allocation8 + $0x298] sm:$0xff] %v14615_v52  ;;  %v14951_v61 = vpop.f32.mrb[50].mxu1  ;;  %v9232_v44 = vpop.f32.mrb[51].mxu0 }
 0x47d   :  { %10715 = vst [vmem:[#allocation8 + $0x398] sm:$0xff] %v14951_v61  ;;  %10698 = vst [vmem:[#allocation8 + $0x290] sm:$0xff] %v9232_v44  ;;  %v10518_v23 = vpop.f32.mrb[51].mxu1 }
 0x47e   :  { %10714 = vst [vmem:[#allocation8 + $0x390] sm:$0xff] %v10518_v23 }
 0x47f   :  { %v14618_v8 = vpop.f32.mrb[52].mxu0 }
 0x480   :  { %10701 = vst [vmem:[#allocation8 + $0x2a8] sm:$0xff] %v14618_v8  ;;  %v14954_v10 = vpop.f32.mrb[52].mxu1  ;;  %v9244_v21 = vpop.f32.mrb[53].mxu0 }
 0x481   :  { %10717 = vst [vmem:[#allocation8 + $0x3a8] sm:$0xff] %v14954_v10  ;;  %10700 = vst [vmem:[#allocation8 + $0x2a0] sm:$0xff] %v9244_v21  ;;  %v10530_v6 = vpop.f32.mrb[53].mxu1 }
 0x482   :  { %10716 = vst [vmem:[#allocation8 + $0x3a0] sm:$0xff] %v10530_v6 }
 0x483   :  { %v14621_v28 = vpop.f32.mrb[54].mxu0 }
 0x484   :  { %10703 = vst [vmem:[#allocation8 + $0x2b8] sm:$0xff] %v14621_v28  ;;  %v14957_v58 = vpop.f32.mrb[54].mxu1  ;;  %v9256_v26 = vpop.f32.mrb[55].mxu0 }
 0x485   :  { %10719 = vst [vmem:[#allocation8 + $0x3b8] sm:$0xff] %v14957_v58  ;;  %10702 = vst [vmem:[#allocation8 + $0x2b0] sm:$0xff] %v9256_v26  ;;  %v10542_v29 = vpop.f32.mrb[55].mxu1 }
 0x486   :  { %10718 = vst [vmem:[#allocation8 + $0x3b0] sm:$0xff] %v10542_v29 }
 0x487   :  { %v14624_v53 = vpop.f32.mrb[56].mxu0 }
 0x488   :  { %10705 = vst [vmem:[#allocation8 + $0x2c8] sm:$0xff] %v14624_v53  ;;  %v14960_v7 = vpop.f32.mrb[56].mxu1  ;;  %v9268_v22 = vpop.f32.mrb[57].mxu0 }
 0x489   :  { %10721 = vst [vmem:[#allocation8 + $0x3c8] sm:$0xff] %v14960_v7  ;;  %10704 = vst [vmem:[#allocation8 + $0x2c0] sm:$0xff] %v9268_v22  ;;  %v10554_v42 = vpop.f32.mrb[57].mxu1 }
 0x48a   :  { %10720 = vst [vmem:[#allocation8 + $0x3c0] sm:$0xff] %v10554_v42 }
 0x48b   :  { %v14627_v45 = vpop.f32.mrb[58].mxu0 }
 0x48c   :  { %10707 = vst [vmem:[#allocation8 + $0x2d8] sm:$0xff] %v14627_v45  ;;  %v14963_v32 = vpop.f32.mrb[58].mxu1  ;;  %v9280_v51 = vpop.f32.mrb[59].mxu0 }
 0x48d   :  { %10723 = vst [vmem:[#allocation8 + $0x3d8] sm:$0xff] %v14963_v32  ;;  %10706 = vst [vmem:[#allocation8 + $0x2d0] sm:$0xff] %v9280_v51  ;;  %v10566_v38 = vpop.f32.mrb[59].mxu1 }
 0x48e   :  { %10722 = vst [vmem:[#allocation8 + $0x3d0] sm:$0xff] %v10566_v38 }
 0x48f   :  { %v14630_v48 = vpop.f32.mrb[60].mxu0 }
 0x490   :  { %10709 = vst [vmem:[#allocation8 + $0x2e8] sm:$0xff] %v14630_v48  ;;  %v14966_v55 = vpop.f32.mrb[60].mxu1  ;;  %v9292_v50 = vpop.f32.mrb[61].mxu0 }
 0x491   :  { %10725 = vst [vmem:[#allocation8 + $0x3e8] sm:$0xff] %v14966_v55  ;;  %10708 = vst [vmem:[#allocation8 + $0x2e0] sm:$0xff] %v9292_v50  ;;  %v10578_v47 = vpop.f32.mrb[61].mxu1 }
 0x492   :  { %10724 = vst [vmem:[#allocation8 + $0x3e0] sm:$0xff] %v10578_v47 }
 0x493   :  { %v14633_v49 = vpop.f32.mrb[62].mxu0 }
 0x494   :  { %10711 = vst [vmem:[#allocation8 + $0x2f8] sm:$0xff] %v14633_v49  ;;  %v14969_v35 = vpop.f32.mrb[62].mxu1  ;;  %v9304_v5 = vpop.f32.mrb[63].mxu0 }
 0x495   :  { %10727 = vst [vmem:[#allocation8 + $0x3f8] sm:$0xff] %v14969_v35  ;;  %10710 = vst [vmem:[#allocation8 + $0x2f0] sm:$0xff] %v9304_v5  ;;  %v10590_v39 = vpop.f32.mrb[63].mxu1 }
 0x496   :  { %10726 = vst [vmem:[#allocation8 + $0x3f0] sm:$0xff] %v10590_v39 }
 0x497   :  { %17229 = shalt.err (!%p17226_p0)
}
 0x498   :  { %s17230_s27 = scalar_lea.hbm %s22544_s3, 16384 }
 0x499   :  { %p17231_p1 = scmp.ne.s32.totalorder %s22544_s3, %s17230_s27  ;;  %p17234_p2 = scmp.lt.u32.totalorder %s17230_s27, %s22544_s3 }
 0x49b   :  { %p17236_p3 = pnand %p17234_p2, %p17231_p1 }
 0x49d   :  { %17239 = shalt.err (!%p17236_p3)
}
 0x49e   :  { %10739 = dma.vmem_to_hbm [thread:$0]  %s10734_s21, 16384, %s22544_s3, [#allocation4], %s17248_s24, %s17248_s24, %s17249_s25  }
 0x49f   :  { %17244 = dma.done.wait [#allocation4], 16384  }
 0x4a0   :  { %17245 = vsyncadd [#allocation4], 4294950912 }
 0x4a1   :  { %10743 = vsyncpa [#allocation3], 1 }
 0x4a2   :  { %10744 = vsyncpa [#allocation6], 1 }
 0x4a3   :  { %10745 = vsyncpa [#allocation4], 1 }

</bundles_post_ra>
